<compile_context>
chip_gen: v6e
topology: v6e:2x2x1
jax: 0.10.0
libtpu: 0.0.40
codegen_flags: <defaults>
</compile_context>

<pallas_src>
import functools

import jax
import jax.numpy as jnp
from jax.experimental import pallas as pl
from jax.experimental.pallas import tpu as pltpu


# ----------------------------------------------------------------------------
# Fused kernel: BN -> batched layer-0 input projection -> stacked LSTM
# (wavefront over time) -> FC
# ----------------------------------------------------------------------------
def _fused_forward_kernel(num_layers, batch_real, x_ref, gamma_ref, beta_ref,
                          *refs):
    # refs layout: [w_ih_t, w_hh_t, bias] * num_layers, fc_w_t, fc_b,
    #              out_ref, x2d_scratch, ig0_scratch
    layer_refs = refs[: 3 * num_layers]
    fc_w_ref, fc_b_ref, out_ref, x2d_ref, ig0_ref = refs[3 * num_layers:]

    T, Bp, D = x_ref.shape
    H = fc_w_ref.shape[0]

    # ---- BatchNorm1d (training mode, biased variance), once for the whole
    # sequence.  Padded batch rows are zero, so sums over the padded array
    # divided by the *real* element count give exact per-time-step stats.
    x = x_ref[...].astype(jnp.float32)                              # (T, Bp, D)
    cnt = jnp.float32(batch_real * D)
    s1 = jnp.sum(jnp.sum(x, axis=2, keepdims=True), axis=1, keepdims=True)
    s2 = jnp.sum(jnp.sum(x * x, axis=2, keepdims=True), axis=1, keepdims=True)
    mean = s1 / cnt                                                 # (T, 1, 1)
    var = s2 / cnt - mean * mean                                    # biased var
    rstd = jax.lax.rsqrt(var + 1e-5)
    scale = rstd * gamma_ref[...]                                   # (T, 1, 1)
    shift = beta_ref[...] - mean * scale                            # (T, 1, 1)
    xbn = x * scale + shift                                         # (T, Bp, D)

    # ---- Hoist loop-invariant weights out of the recurrence.
    w_ih = [layer_refs[3 * l][...] for l in range(num_layers)]      # (Din, 4H)
    w_hh = [layer_refs[3 * l + 1][...] for l in range(num_layers)]  # (H, 4H)
    bias = [layer_refs[3 * l + 2][...] for l in range(num_layers)]  # (1, 4H)

    # ---- Stage BN output into a 2-D (T*Bp, D) scratch (static sublane-tile
    # stores, no reshape needed), then do the WHOLE layer-0 input projection
    # as one batched MXU matmul, completely off the recurrence.
    for t in range(T):                       # static Python loop, T vreg stores
        x2d_ref[pl.ds(t * Bp, Bp), :] = xbn[t]
    ig0_ref[...] = (
        jnp.dot(x2d_ref[...], w_ih[0], preferred_element_type=jnp.float32)
        + bias[0])                                                  # (T*Bp, 4H)

    # ---- Wavefront time loop: every layer advances one step per iteration.
    # Only h @ W_hh (and, for layers > 0, h_{l-1} @ W_ih) stays in the loop.
    def step(t, carry):
        hs, cs = carry
        row0 = pl.multiple_of(t * Bp, Bp)
        new_hs, new_cs = [], []
        for l in range(num_layers):
            if l == 0:
                gates = (ig0_ref[pl.ds(row0, Bp), :]
                         + jnp.dot(hs[0], w_hh[0],
                                   preferred_element_type=jnp.float32))
            else:
                gates = (jnp.dot(new_hs[l - 1], w_ih[l],
                                 preferred_element_type=jnp.float32)
                         + jnp.dot(hs[l], w_hh[l],
                                   preferred_element_type=jnp.float32)
                         + bias[l])                                 # (Bp, 4H)
            i_g = jax.nn.sigmoid(gates[:, 0 * H:1 * H])
            f_g = jax.nn.sigmoid(gates[:, 1 * H:2 * H])
            g_g = jnp.tanh(gates[:, 2 * H:3 * H])
            o_g = jax.nn.sigmoid(gates[:, 3 * H:4 * H])
            c = f_g * cs[l] + i_g * g_g
            h = o_g * jnp.tanh(c)
            new_hs.append(h)
            new_cs.append(c)
        return tuple(new_hs), tuple(new_cs)

    zero = jnp.zeros((Bp, H), jnp.float32)
    init = (tuple(zero for _ in range(num_layers)),
            tuple(zero for _ in range(num_layers)))
    hs, _ = jax.lax.fori_loop(0, T, step, init, unroll=True)

    # ---- FC on the last time step of the last layer (lane-dense padded out).
    out = (jnp.dot(hs[-1], fc_w_ref[...], preferred_element_type=jnp.float32)
           + fc_b_ref[...])
    out_ref[...] = out.astype(out_ref.dtype)


# ----------------------------------------------------------------------------
# Wrapper: layout prep + single pallas_call
# ----------------------------------------------------------------------------
def lstm_model_forward(inputs, params, hidden_dim):
    # inputs: (B, T, D) batch-first; T must equal 30 (BatchNorm1d(30)).
    B, T, D = inputs.shape
    H = hidden_dim
    num_layers = len(params["lstm"])
    out_dim = params["fc_w"].shape[0]
    b_pad = max(8, ((B + 7) // 8) * 8)          # full f32 sublane tile
    o_pad = max(128, ((out_dim + 127) // 128) * 128)  # lane-dense output

    # Time-major + zero-pad the batch to a full sublane tile.
    x_tm = jnp.transpose(inputs, (1, 0, 2)).astype(jnp.float32)     # (T, B, D)
    if b_pad != B:
        x_tm = jnp.pad(x_tm, ((0, 0), (0, b_pad - B), (0, 0)))

    gamma = params["bn_gamma"].reshape(T, 1, 1).astype(jnp.float32)
    beta = params["bn_beta"].reshape(T, 1, 1).astype(jnp.float32)

    args = [x_tm, gamma, beta]
    for lp in params["lstm"]:
        args.append(jnp.transpose(lp["w_ih"]).astype(jnp.float32))  # (Din, 4H)
        args.append(jnp.transpose(lp["w_hh"]).astype(jnp.float32))  # (H, 4H)
        args.append((lp["b_ih"] + lp["b_hh"]).reshape(1, 4 * H)
                    .astype(jnp.float32))                           # (1, 4H)
    fc_w_t = jnp.transpose(params["fc_w"]).astype(jnp.float32)      # (H, O)
    fc_b = params["fc_b"].reshape(1, out_dim).astype(jnp.float32)   # (1, O)
    if o_pad != out_dim:
        fc_w_t = jnp.pad(fc_w_t, ((0, 0), (0, o_pad - out_dim)))
        fc_b = jnp.pad(fc_b, ((0, 0), (0, o_pad - out_dim)))
    args.append(fc_w_t)
    args.append(fc_b)

    def _full_spec(a):
        ndim = a.ndim
        return pl.BlockSpec(tuple(a.shape), lambda i, _n=ndim: (0,) * _n)

    out_padded = pl.pallas_call(
        functools.partial(_fused_forward_kernel, num_layers, B),
        grid=(1,),
        in_specs=[_full_spec(a) for a in args],
        out_specs=pl.BlockSpec((b_pad, o_pad), lambda i: (0, 0)),
        out_shape=jax.ShapeDtypeStruct((b_pad, o_pad), jnp.float32),
        scratch_shapes=[
            pltpu.VMEM((T * b_pad, D), jnp.float32),        # staged BN output
            pltpu.VMEM((T * b_pad, 4 * H), jnp.float32),    # layer-0 gates
        ],
        compiler_params=pltpu.CompilerParams(
            dimension_semantics=("arbitrary",)),
    )(*args)
    return out_padded[:B, :out_dim]


# ----------------------------------------------------------------------------
# Parameter init (matches torch defaults: U(-1/sqrt(H), 1/sqrt(H)); BN weight=1)
# ----------------------------------------------------------------------------
def init_params(key, input_dim, hidden_dim, output_dim, layer_num, seq_len):
    params = {"lstm": []}
    k = 1.0 / jnp.sqrt(jnp.float32(hidden_dim))
    for layer in range(layer_num):
        d_in = input_dim if layer == 0 else hidden_dim
        key, k1, k2, k3, k4 = jax.random.split(key, 5)
        params["lstm"].append({
            "w_ih": jax.random.uniform(k1, (4 * hidden_dim, d_in), jnp.float32, -k, k),
            "w_hh": jax.random.uniform(k2, (4 * hidden_dim, hidden_dim), jnp.float32, -k, k),
            "b_ih": jax.random.uniform(k3, (4 * hidden_dim,), jnp.float32, -k, k),
            "b_hh": jax.random.uniform(k4, (4 * hidden_dim,), jnp.float32, -k, k),
        })
    key, k1, k2 = jax.random.split(key, 3)
    params["fc_w"] = jax.random.uniform(k1, (output_dim, hidden_dim), jnp.float32, -k, k)
    params["fc_b"] = jax.random.uniform(k2, (output_dim,), jnp.float32, -k, k)
    params["bn_gamma"] = jnp.ones((seq_len,), jnp.float32)
    params["bn_beta"] = jnp.zeros((seq_len,), jnp.float32)
    return params


if __name__ == "__main__":
    # Small shapes consistent with the module: seq_len forced to 30 by BatchNorm1d(30).
    B, T, D = 2, 30, 16
    HIDDEN, OUT, LAYERS = 32, 4, 2

    key = jax.random.PRNGKey(0)
    key, kin = jax.random.split(key)
    inputs = jax.random.normal(kin, (B, T, D), jnp.float32)

    params = init_params(key, D, HIDDEN, OUT, LAYERS, T)

    fwd = jax.jit(functools.partial(lstm_model_forward, hidden_dim=HIDDEN))
    out = fwd(inputs, params)
    jax.block_until_ready(out)

    assert out.shape == (B, OUT), out.shape
    print("KERNEL_OK")
</pallas_src>

<mosaic_0001>
module attributes {stable_mosaic.version = 11 : i64} {
  func.func @_fused_forward_kernel(%arg0: i32, %arg1: memref<30x8x16xf32, #tpu.memory_space<vmem>>, %arg2: memref<30x1x1xf32, #tpu.memory_space<vmem>>, %arg3: memref<30x1x1xf32, #tpu.memory_space<vmem>>, %arg4: memref<16x128xf32, #tpu.memory_space<vmem>>, %arg5: memref<32x128xf32, #tpu.memory_space<vmem>>, %arg6: memref<1x128xf32, #tpu.memory_space<vmem>>, %arg7: memref<32x128xf32, #tpu.memory_space<vmem>>, %arg8: memref<32x128xf32, #tpu.memory_space<vmem>>, %arg9: memref<1x128xf32, #tpu.memory_space<vmem>>, %arg10: memref<32x128xf32, #tpu.memory_space<vmem>>, %arg11: memref<1x128xf32, #tpu.memory_space<vmem>>, %arg12: memref<8x128xf32, #tpu.memory_space<vmem>>, %arg13: memref<240x16xf32, #tpu.memory_space<vmem>>, %arg14: memref<240x128xf32, #tpu.memory_space<vmem>>) attributes {dimension_semantics = [#tpu.dimension_semantics<arbitrary>], iteration_bounds = array<i64: 1>, scalar_prefetch = 0 : i64, scratch_operands = 2 : i64, tpu.core_type = #tpu.core_type<tc>, window_params = [{pipeline_mode = #tpu.pipeline_mode<synchronous>, transform_indices = @transform_0, window_bounds = array<i64: 30, 8, 16>}, {pipeline_mode = #tpu.pipeline_mode<synchronous>, transform_indices = @transform_1, window_bounds = array<i64: 30, 1, 1>}, {pipeline_mode = #tpu.pipeline_mode<synchronous>, transform_indices = @transform_2, window_bounds = array<i64: 30, 1, 1>}, {pipeline_mode = #tpu.pipeline_mode<synchronous>, transform_indices = @transform_3, window_bounds = array<i64: 16, 128>}, {pipeline_mode = #tpu.pipeline_mode<synchronous>, transform_indices = @transform_4, window_bounds = array<i64: 32, 128>}, {pipeline_mode = #tpu.pipeline_mode<synchronous>, transform_indices = @transform_5, window_bounds = array<i64: 1, 128>}, {pipeline_mode = #tpu.pipeline_mode<synchronous>, transform_indices = @transform_6, window_bounds = array<i64: 32, 128>}, {pipeline_mode = #tpu.pipeline_mode<synchronous>, transform_indices = @transform_7, window_bounds = array<i64: 32, 128>}, {pipeline_mode = #tpu.pipeline_mode<synchronous>, transform_indices = @transform_8, window_bounds = array<i64: 1, 128>}, {pipeline_mode = #tpu.pipeline_mode<synchronous>, transform_indices = @transform_9, window_bounds = array<i64: 32, 128>}, {pipeline_mode = #tpu.pipeline_mode<synchronous>, transform_indices = @transform_10, window_bounds = array<i64: 1, 128>}, {pipeline_mode = #tpu.pipeline_mode<synchronous>, transform_indices = @transform_11, window_bounds = array<i64: 8, 128>}]} {
    %c0 = arith.constant 0 : index
    %c0_0 = arith.constant 0 : index
    %c0_1 = arith.constant 0 : index
    %0 = vector.load %arg1[%c0, %c0_0, %c0_1] : memref<30x8x16xf32, #tpu.memory_space<vmem>>, vector<30x8x16xf32>
    %cst = arith.constant dense<0.000000e+00> : vector<30x8xf32>
    %1 = vector.multi_reduction <add>, %0, %cst [2] : vector<30x8x16xf32> to vector<30x8xf32>
    %2 = vector.shape_cast %1 : vector<30x8xf32> to vector<30x8x1xf32>
    %cst_2 = arith.constant dense<0.000000e+00> : vector<30x1xf32>
    %3 = vector.multi_reduction <add>, %2, %cst_2 [1] : vector<30x8x1xf32> to vector<30x1xf32>
    %4 = vector.shape_cast %3 : vector<30x1xf32> to vector<30x1x1xf32>
    %5 = arith.mulf %0, %0 : vector<30x8x16xf32>
    %cst_3 = arith.constant dense<0.000000e+00> : vector<30x8xf32>
    %6 = vector.multi_reduction <add>, %5, %cst_3 [2] : vector<30x8x16xf32> to vector<30x8xf32>
    %7 = vector.shape_cast %6 : vector<30x8xf32> to vector<30x8x1xf32>
    %cst_4 = arith.constant dense<0.000000e+00> : vector<30x1xf32>
    %8 = vector.multi_reduction <add>, %7, %cst_4 [1] : vector<30x8x1xf32> to vector<30x1xf32>
    %9 = vector.shape_cast %8 : vector<30x1xf32> to vector<30x1x1xf32>
    %cst_5 = arith.constant 3.200000e+01 : f32
    %10 = vector.broadcast %cst_5 : f32 to vector<30x1x1xf32>
    %11 = arith.divf %4, %10 : vector<30x1x1xf32>
    %cst_6 = arith.constant 3.200000e+01 : f32
    %12 = vector.broadcast %cst_6 : f32 to vector<30x1x1xf32>
    %13 = arith.divf %9, %12 : vector<30x1x1xf32>
    %14 = arith.mulf %11, %11 : vector<30x1x1xf32>
    %15 = arith.subf %13, %14 : vector<30x1x1xf32>
    %cst_7 = arith.constant 9.99999974E-6 : f32
    %16 = vector.broadcast %cst_7 : f32 to vector<30x1x1xf32>
    %17 = arith.addf %15, %16 : vector<30x1x1xf32>
    %18 = math.rsqrt %17 : vector<30x1x1xf32>
    %c0_8 = arith.constant 0 : index
    %c0_9 = arith.constant 0 : index
    %c0_10 = arith.constant 0 : index
    %19 = vector.load %arg2[%c0_8, %c0_9, %c0_10] : memref<30x1x1xf32, #tpu.memory_space<vmem>>, vector<30x1x1xf32>
    %20 = arith.mulf %18, %19 : vector<30x1x1xf32>
    %c0_11 = arith.constant 0 : index
    %c0_12 = arith.constant 0 : index
    %c0_13 = arith.constant 0 : index
    %21 = vector.load %arg3[%c0_11, %c0_12, %c0_13] : memref<30x1x1xf32, #tpu.memory_space<vmem>>, vector<30x1x1xf32>
    %22 = arith.mulf %11, %20 : vector<30x1x1xf32>
    %23 = arith.subf %21, %22 : vector<30x1x1xf32>
    %24 = vector.broadcast %20 : vector<30x1x1xf32> to vector<30x8x16xf32>
    %25 = arith.mulf %0, %24 : vector<30x8x16xf32>
    %26 = vector.broadcast %23 : vector<30x1x1xf32> to vector<30x8x16xf32>
    %27 = arith.addf %25, %26 : vector<30x8x16xf32>
    %c0_14 = arith.constant 0 : index
    %c0_15 = arith.constant 0 : index
    %28 = vector.load %arg4[%c0_14, %c0_15] : memref<16x128xf32, #tpu.memory_space<vmem>>, vector<16x128xf32>
    %c0_16 = arith.constant 0 : index
    %c0_17 = arith.constant 0 : index
    %29 = vector.load %arg7[%c0_16, %c0_17] : memref<32x128xf32, #tpu.memory_space<vmem>>, vector<32x128xf32>
    %c0_18 = arith.constant 0 : index
    %c0_19 = arith.constant 0 : index
    %30 = vector.load %arg5[%c0_18, %c0_19] : memref<32x128xf32, #tpu.memory_space<vmem>>, vector<32x128xf32>
    %c0_20 = arith.constant 0 : index
    %c0_21 = arith.constant 0 : index
    %31 = vector.load %arg8[%c0_20, %c0_21] : memref<32x128xf32, #tpu.memory_space<vmem>>, vector<32x128xf32>
    %c0_22 = arith.constant 0 : index
    %c0_23 = arith.constant 0 : index
    %32 = vector.load %arg6[%c0_22, %c0_23] : memref<1x128xf32, #tpu.memory_space<vmem>>, vector<1x128xf32>
    %c0_24 = arith.constant 0 : index
    %c0_25 = arith.constant 0 : index
    %33 = vector.load %arg9[%c0_24, %c0_25] : memref<1x128xf32, #tpu.memory_space<vmem>>, vector<1x128xf32>
    %34 = vector.extract_strided_slice %27 {offsets = [0, 0, 0], sizes = [1, 8, 16], strides = [1, 1, 1]} : vector<30x8x16xf32> to vector<1x8x16xf32>
    %35 = vector.shape_cast %34 : vector<1x8x16xf32> to vector<8x16xf32>
    %c0_26 = arith.constant 0 : index
    %c0_27 = arith.constant 0 : index
    %36 = vector.load %arg13[%c0_26, %c0_27] : memref<240x16xf32, #tpu.memory_space<vmem>>, vector<8x16xf32>
    tpu.vector_store %arg13[%c0_26, %c0_27], %35 {strides = array<i32>} : memref<240x16xf32, #tpu.memory_space<vmem>>, vector<8x16xf32>,
    %37 = vector.extract_strided_slice %27 {offsets = [1, 0, 0], sizes = [1, 8, 16], strides = [1, 1, 1]} : vector<30x8x16xf32> to vector<1x8x16xf32>
    %38 = vector.shape_cast %37 : vector<1x8x16xf32> to vector<8x16xf32>
    %c8 = arith.constant 8 : index
    %c0_28 = arith.constant 0 : index
    %39 = vector.load %arg13[%c8, %c0_28] : memref<240x16xf32, #tpu.memory_space<vmem>>, vector<8x16xf32>
    tpu.vector_store %arg13[%c8, %c0_28], %38 {strides = array<i32>} : memref<240x16xf32, #tpu.memory_space<vmem>>, vector<8x16xf32>,
    %40 = vector.extract_strided_slice %27 {offsets = [2, 0, 0], sizes = [1, 8, 16], strides = [1, 1, 1]} : vector<30x8x16xf32> to vector<1x8x16xf32>
    %41 = vector.shape_cast %40 : vector<1x8x16xf32> to vector<8x16xf32>
    %c16 = arith.constant 16 : index
    %c0_29 = arith.constant 0 : index
    %42 = vector.load %arg13[%c16, %c0_29] : memref<240x16xf32, #tpu.memory_space<vmem>>, vector<8x16xf32>
    tpu.vector_store %arg13[%c16, %c0_29], %41 {strides = array<i32>} : memref<240x16xf32, #tpu.memory_space<vmem>>, vector<8x16xf32>,
    %43 = vector.extract_strided_slice %27 {offsets = [3, 0, 0], sizes = [1, 8, 16], strides = [1, 1, 1]} : vector<30x8x16xf32> to vector<1x8x16xf32>
    %44 = vector.shape_cast %43 : vector<1x8x16xf32> to vector<8x16xf32>
    %c24 = arith.constant 24 : index
    %c0_30 = arith.constant 0 : index
    %45 = vector.load %arg13[%c24, %c0_30] : memref<240x16xf32, #tpu.memory_space<vmem>>, vector<8x16xf32>
    tpu.vector_store %arg13[%c24, %c0_30], %44 {strides = array<i32>} : memref<240x16xf32, #tpu.memory_space<vmem>>, vector<8x16xf32>,
    %46 = vector.extract_strided_slice %27 {offsets = [4, 0, 0], sizes = [1, 8, 16], strides = [1, 1, 1]} : vector<30x8x16xf32> to vector<1x8x16xf32>
    %47 = vector.shape_cast %46 : vector<1x8x16xf32> to vector<8x16xf32>
    %c32 = arith.constant 32 : index
    %c0_31 = arith.constant 0 : index
    %48 = vector.load %arg13[%c32, %c0_31] : memref<240x16xf32, #tpu.memory_space<vmem>>, vector<8x16xf32>
    tpu.vector_store %arg13[%c32, %c0_31], %47 {strides = array<i32>} : memref<240x16xf32, #tpu.memory_space<vmem>>, vector<8x16xf32>,
    %49 = vector.extract_strided_slice %27 {offsets = [5, 0, 0], sizes = [1, 8, 16], strides = [1, 1, 1]} : vector<30x8x16xf32> to vector<1x8x16xf32>
    %50 = vector.shape_cast %49 : vector<1x8x16xf32> to vector<8x16xf32>
    %c40 = arith.constant 40 : index
    %c0_32 = arith.constant 0 : index
    %51 = vector.load %arg13[%c40, %c0_32] : memref<240x16xf32, #tpu.memory_space<vmem>>, vector<8x16xf32>
    tpu.vector_store %arg13[%c40, %c0_32], %50 {strides = array<i32>} : memref<240x16xf32, #tpu.memory_space<vmem>>, vector<8x16xf32>,
    %52 = vector.extract_strided_slice %27 {offsets = [6, 0, 0], sizes = [1, 8, 16], strides = [1, 1, 1]} : vector<30x8x16xf32> to vector<1x8x16xf32>
    %53 = vector.shape_cast %52 : vector<1x8x16xf32> to vector<8x16xf32>
    %c48 = arith.constant 48 : index
    %c0_33 = arith.constant 0 : index
    %54 = vector.load %arg13[%c48, %c0_33] : memref<240x16xf32, #tpu.memory_space<vmem>>, vector<8x16xf32>
    tpu.vector_store %arg13[%c48, %c0_33], %53 {strides = array<i32>} : memref<240x16xf32, #tpu.memory_space<vmem>>, vector<8x16xf32>,
    %55 = vector.extract_strided_slice %27 {offsets = [7, 0, 0], sizes = [1, 8, 16], strides = [1, 1, 1]} : vector<30x8x16xf32> to vector<1x8x16xf32>
    %56 = vector.shape_cast %55 : vector<1x8x16xf32> to vector<8x16xf32>
    %c56 = arith.constant 56 : index
    %c0_34 = arith.constant 0 : index
    %57 = vector.load %arg13[%c56, %c0_34] : memref<240x16xf32, #tpu.memory_space<vmem>>, vector<8x16xf32>
    tpu.vector_store %arg13[%c56, %c0_34], %56 {strides = array<i32>} : memref<240x16xf32, #tpu.memory_space<vmem>>, vector<8x16xf32>,
    %58 = vector.extract_strided_slice %27 {offsets = [8, 0, 0], sizes = [1, 8, 16], strides = [1, 1, 1]} : vector<30x8x16xf32> to vector<1x8x16xf32>
    %59 = vector.shape_cast %58 : vector<1x8x16xf32> to vector<8x16xf32>
    %c64 = arith.constant 64 : index
    %c0_35 = arith.constant 0 : index
    %60 = vector.load %arg13[%c64, %c0_35] : memref<240x16xf32, #tpu.memory_space<vmem>>, vector<8x16xf32>
    tpu.vector_store %arg13[%c64, %c0_35], %59 {strides = array<i32>} : memref<240x16xf32, #tpu.memory_space<vmem>>, vector<8x16xf32>,
    %61 = vector.extract_strided_slice %27 {offsets = [9, 0, 0], sizes = [1, 8, 16], strides = [1, 1, 1]} : vector<30x8x16xf32> to vector<1x8x16xf32>
    %62 = vector.shape_cast %61 : vector<1x8x16xf32> to vector<8x16xf32>
    %c72 = arith.constant 72 : index
    %c0_36 = arith.constant 0 : index
    %63 = vector.load %arg13[%c72, %c0_36] : memref<240x16xf32, #tpu.memory_space<vmem>>, vector<8x16xf32>
    tpu.vector_store %arg13[%c72, %c0_36], %62 {strides = array<i32>} : memref<240x16xf32, #tpu.memory_space<vmem>>, vector<8x16xf32>,
    %64 = vector.extract_strided_slice %27 {offsets = [10, 0, 0], sizes = [1, 8, 16], strides = [1, 1, 1]} : vector<30x8x16xf32> to vector<1x8x16xf32>
    %65 = vector.shape_cast %64 : vector<1x8x16xf32> to vector<8x16xf32>
    %c80 = arith.constant 80 : index
    %c0_37 = arith.constant 0 : index
    %66 = vector.load %arg13[%c80, %c0_37] : memref<240x16xf32, #tpu.memory_space<vmem>>, vector<8x16xf32>
    tpu.vector_store %arg13[%c80, %c0_37], %65 {strides = array<i32>} : memref<240x16xf32, #tpu.memory_space<vmem>>, vector<8x16xf32>,
    %67 = vector.extract_strided_slice %27 {offsets = [11, 0, 0], sizes = [1, 8, 16], strides = [1, 1, 1]} : vector<30x8x16xf32> to vector<1x8x16xf32>
    %68 = vector.shape_cast %67 : vector<1x8x16xf32> to vector<8x16xf32>
    %c88 = arith.constant 88 : index
    %c0_38 = arith.constant 0 : index
    %69 = vector.load %arg13[%c88, %c0_38] : memref<240x16xf32, #tpu.memory_space<vmem>>, vector<8x16xf32>
    tpu.vector_store %arg13[%c88, %c0_38], %68 {strides = array<i32>} : memref<240x16xf32, #tpu.memory_space<vmem>>, vector<8x16xf32>,
    %70 = vector.extract_strided_slice %27 {offsets = [12, 0, 0], sizes = [1, 8, 16], strides = [1, 1, 1]} : vector<30x8x16xf32> to vector<1x8x16xf32>
    %71 = vector.shape_cast %70 : vector<1x8x16xf32> to vector<8x16xf32>
    %c96 = arith.constant 96 : index
    %c0_39 = arith.constant 0 : index
    %72 = vector.load %arg13[%c96, %c0_39] : memref<240x16xf32, #tpu.memory_space<vmem>>, vector<8x16xf32>
    tpu.vector_store %arg13[%c96, %c0_39], %71 {strides = array<i32>} : memref<240x16xf32, #tpu.memory_space<vmem>>, vector<8x16xf32>,
    %73 = vector.extract_strided_slice %27 {offsets = [13, 0, 0], sizes = [1, 8, 16], strides = [1, 1, 1]} : vector<30x8x16xf32> to vector<1x8x16xf32>
    %74 = vector.shape_cast %73 : vector<1x8x16xf32> to vector<8x16xf32>
    %c104 = arith.constant 104 : index
    %c0_40 = arith.constant 0 : index
    %75 = vector.load %arg13[%c104, %c0_40] : memref<240x16xf32, #tpu.memory_space<vmem>>, vector<8x16xf32>
    tpu.vector_store %arg13[%c104, %c0_40], %74 {strides = array<i32>} : memref<240x16xf32, #tpu.memory_space<vmem>>, vector<8x16xf32>,
    %76 = vector.extract_strided_slice %27 {offsets = [14, 0, 0], sizes = [1, 8, 16], strides = [1, 1, 1]} : vector<30x8x16xf32> to vector<1x8x16xf32>
    %77 = vector.shape_cast %76 : vector<1x8x16xf32> to vector<8x16xf32>
    %c112 = arith.constant 112 : index
    %c0_41 = arith.constant 0 : index
    %78 = vector.load %arg13[%c112, %c0_41] : memref<240x16xf32, #tpu.memory_space<vmem>>, vector<8x16xf32>
    tpu.vector_store %arg13[%c112, %c0_41], %77 {strides = array<i32>} : memref<240x16xf32, #tpu.memory_space<vmem>>, vector<8x16xf32>,
    %79 = vector.extract_strided_slice %27 {offsets = [15, 0, 0], sizes = [1, 8, 16], strides = [1, 1, 1]} : vector<30x8x16xf32> to vector<1x8x16xf32>
    %80 = vector.shape_cast %79 : vector<1x8x16xf32> to vector<8x16xf32>
    %c120 = arith.constant 120 : index
    %c0_42 = arith.constant 0 : index
    %81 = vector.load %arg13[%c120, %c0_42] : memref<240x16xf32, #tpu.memory_space<vmem>>, vector<8x16xf32>
    tpu.vector_store %arg13[%c120, %c0_42], %80 {strides = array<i32>} : memref<240x16xf32, #tpu.memory_space<vmem>>, vector<8x16xf32>,
    %82 = vector.extract_strided_slice %27 {offsets = [16, 0, 0], sizes = [1, 8, 16], strides = [1, 1, 1]} : vector<30x8x16xf32> to vector<1x8x16xf32>
    %83 = vector.shape_cast %82 : vector<1x8x16xf32> to vector<8x16xf32>
    %c128 = arith.constant 128 : index
    %c0_43 = arith.constant 0 : index
    %84 = vector.load %arg13[%c128, %c0_43] : memref<240x16xf32, #tpu.memory_space<vmem>>, vector<8x16xf32>
    tpu.vector_store %arg13[%c128, %c0_43], %83 {strides = array<i32>} : memref<240x16xf32, #tpu.memory_space<vmem>>, vector<8x16xf32>,
    %85 = vector.extract_strided_slice %27 {offsets = [17, 0, 0], sizes = [1, 8, 16], strides = [1, 1, 1]} : vector<30x8x16xf32> to vector<1x8x16xf32>
    %86 = vector.shape_cast %85 : vector<1x8x16xf32> to vector<8x16xf32>
    %c136 = arith.constant 136 : index
    %c0_44 = arith.constant 0 : index
    %87 = vector.load %arg13[%c136, %c0_44] : memref<240x16xf32, #tpu.memory_space<vmem>>, vector<8x16xf32>
    tpu.vector_store %arg13[%c136, %c0_44], %86 {strides = array<i32>} : memref<240x16xf32, #tpu.memory_space<vmem>>, vector<8x16xf32>,
    %88 = vector.extract_strided_slice %27 {offsets = [18, 0, 0], sizes = [1, 8, 16], strides = [1, 1, 1]} : vector<30x8x16xf32> to vector<1x8x16xf32>
    %89 = vector.shape_cast %88 : vector<1x8x16xf32> to vector<8x16xf32>
    %c144 = arith.constant 144 : index
    %c0_45 = arith.constant 0 : index
    %90 = vector.load %arg13[%c144, %c0_45] : memref<240x16xf32, #tpu.memory_space<vmem>>, vector<8x16xf32>
    tpu.vector_store %arg13[%c144, %c0_45], %89 {strides = array<i32>} : memref<240x16xf32, #tpu.memory_space<vmem>>, vector<8x16xf32>,
    %91 = vector.extract_strided_slice %27 {offsets = [19, 0, 0], sizes = [1, 8, 16], strides = [1, 1, 1]} : vector<30x8x16xf32> to vector<1x8x16xf32>
    %92 = vector.shape_cast %91 : vector<1x8x16xf32> to vector<8x16xf32>
    %c152 = arith.constant 152 : index
    %c0_46 = arith.constant 0 : index
    %93 = vector.load %arg13[%c152, %c0_46] : memref<240x16xf32, #tpu.memory_space<vmem>>, vector<8x16xf32>
    tpu.vector_store %arg13[%c152, %c0_46], %92 {strides = array<i32>} : memref<240x16xf32, #tpu.memory_space<vmem>>, vector<8x16xf32>,
    %94 = vector.extract_strided_slice %27 {offsets = [20, 0, 0], sizes = [1, 8, 16], strides = [1, 1, 1]} : vector<30x8x16xf32> to vector<1x8x16xf32>
    %95 = vector.shape_cast %94 : vector<1x8x16xf32> to vector<8x16xf32>
    %c160 = arith.constant 160 : index
    %c0_47 = arith.constant 0 : index
    %96 = vector.load %arg13[%c160, %c0_47] : memref<240x16xf32, #tpu.memory_space<vmem>>, vector<8x16xf32>
    tpu.vector_store %arg13[%c160, %c0_47], %95 {strides = array<i32>} : memref<240x16xf32, #tpu.memory_space<vmem>>, vector<8x16xf32>,
    %97 = vector.extract_strided_slice %27 {offsets = [21, 0, 0], sizes = [1, 8, 16], strides = [1, 1, 1]} : vector<30x8x16xf32> to vector<1x8x16xf32>
    %98 = vector.shape_cast %97 : vector<1x8x16xf32> to vector<8x16xf32>
    %c168 = arith.constant 168 : index
    %c0_48 = arith.constant 0 : index
    %99 = vector.load %arg13[%c168, %c0_48] : memref<240x16xf32, #tpu.memory_space<vmem>>, vector<8x16xf32>
    tpu.vector_store %arg13[%c168, %c0_48], %98 {strides = array<i32>} : memref<240x16xf32, #tpu.memory_space<vmem>>, vector<8x16xf32>,
    %100 = vector.extract_strided_slice %27 {offsets = [22, 0, 0], sizes = [1, 8, 16], strides = [1, 1, 1]} : vector<30x8x16xf32> to vector<1x8x16xf32>
    %101 = vector.shape_cast %100 : vector<1x8x16xf32> to vector<8x16xf32>
    %c176 = arith.constant 176 : index
    %c0_49 = arith.constant 0 : index
    %102 = vector.load %arg13[%c176, %c0_49] : memref<240x16xf32, #tpu.memory_space<vmem>>, vector<8x16xf32>
    tpu.vector_store %arg13[%c176, %c0_49], %101 {strides = array<i32>} : memref<240x16xf32, #tpu.memory_space<vmem>>, vector<8x16xf32>,
    %103 = vector.extract_strided_slice %27 {offsets = [23, 0, 0], sizes = [1, 8, 16], strides = [1, 1, 1]} : vector<30x8x16xf32> to vector<1x8x16xf32>
    %104 = vector.shape_cast %103 : vector<1x8x16xf32> to vector<8x16xf32>
    %c184 = arith.constant 184 : index
    %c0_50 = arith.constant 0 : index
    %105 = vector.load %arg13[%c184, %c0_50] : memref<240x16xf32, #tpu.memory_space<vmem>>, vector<8x16xf32>
    tpu.vector_store %arg13[%c184, %c0_50], %104 {strides = array<i32>} : memref<240x16xf32, #tpu.memory_space<vmem>>, vector<8x16xf32>,
    %106 = vector.extract_strided_slice %27 {offsets = [24, 0, 0], sizes = [1, 8, 16], strides = [1, 1, 1]} : vector<30x8x16xf32> to vector<1x8x16xf32>
    %107 = vector.shape_cast %106 : vector<1x8x16xf32> to vector<8x16xf32>
    %c192 = arith.constant 192 : index
    %c0_51 = arith.constant 0 : index
    %108 = vector.load %arg13[%c192, %c0_51] : memref<240x16xf32, #tpu.memory_space<vmem>>, vector<8x16xf32>
    tpu.vector_store %arg13[%c192, %c0_51], %107 {strides = array<i32>} : memref<240x16xf32, #tpu.memory_space<vmem>>, vector<8x16xf32>,
    %109 = vector.extract_strided_slice %27 {offsets = [25, 0, 0], sizes = [1, 8, 16], strides = [1, 1, 1]} : vector<30x8x16xf32> to vector<1x8x16xf32>
    %110 = vector.shape_cast %109 : vector<1x8x16xf32> to vector<8x16xf32>
    %c200 = arith.constant 200 : index
    %c0_52 = arith.constant 0 : index
    %111 = vector.load %arg13[%c200, %c0_52] : memref<240x16xf32, #tpu.memory_space<vmem>>, vector<8x16xf32>
    tpu.vector_store %arg13[%c200, %c0_52], %110 {strides = array<i32>} : memref<240x16xf32, #tpu.memory_space<vmem>>, vector<8x16xf32>,
    %112 = vector.extract_strided_slice %27 {offsets = [26, 0, 0], sizes = [1, 8, 16], strides = [1, 1, 1]} : vector<30x8x16xf32> to vector<1x8x16xf32>
    %113 = vector.shape_cast %112 : vector<1x8x16xf32> to vector<8x16xf32>
    %c208 = arith.constant 208 : index
    %c0_53 = arith.constant 0 : index
    %114 = vector.load %arg13[%c208, %c0_53] : memref<240x16xf32, #tpu.memory_space<vmem>>, vector<8x16xf32>
    tpu.vector_store %arg13[%c208, %c0_53], %113 {strides = array<i32>} : memref<240x16xf32, #tpu.memory_space<vmem>>, vector<8x16xf32>,
    %115 = vector.extract_strided_slice %27 {offsets = [27, 0, 0], sizes = [1, 8, 16], strides = [1, 1, 1]} : vector<30x8x16xf32> to vector<1x8x16xf32>
    %116 = vector.shape_cast %115 : vector<1x8x16xf32> to vector<8x16xf32>
    %c216 = arith.constant 216 : index
    %c0_54 = arith.constant 0 : index
    %117 = vector.load %arg13[%c216, %c0_54] : memref<240x16xf32, #tpu.memory_space<vmem>>, vector<8x16xf32>
    tpu.vector_store %arg13[%c216, %c0_54], %116 {strides = array<i32>} : memref<240x16xf32, #tpu.memory_space<vmem>>, vector<8x16xf32>,
    %118 = vector.extract_strided_slice %27 {offsets = [28, 0, 0], sizes = [1, 8, 16], strides = [1, 1, 1]} : vector<30x8x16xf32> to vector<1x8x16xf32>
    %119 = vector.shape_cast %118 : vector<1x8x16xf32> to vector<8x16xf32>
    %c224 = arith.constant 224 : index
    %c0_55 = arith.constant 0 : index
    %120 = vector.load %arg13[%c224, %c0_55] : memref<240x16xf32, #tpu.memory_space<vmem>>, vector<8x16xf32>
    tpu.vector_store %arg13[%c224, %c0_55], %119 {strides = array<i32>} : memref<240x16xf32, #tpu.memory_space<vmem>>, vector<8x16xf32>,
    %121 = vector.extract_strided_slice %27 {offsets = [29, 0, 0], sizes = [1, 8, 16], strides = [1, 1, 1]} : vector<30x8x16xf32> to vector<1x8x16xf32>
    %122 = vector.shape_cast %121 : vector<1x8x16xf32> to vector<8x16xf32>
    %c232 = arith.constant 232 : index
    %c0_56 = arith.constant 0 : index
    %123 = vector.load %arg13[%c232, %c0_56] : memref<240x16xf32, #tpu.memory_space<vmem>>, vector<8x16xf32>
    tpu.vector_store %arg13[%c232, %c0_56], %122 {strides = array<i32>} : memref<240x16xf32, #tpu.memory_space<vmem>>, vector<8x16xf32>,
    %c0_57 = arith.constant 0 : index
    %c0_58 = arith.constant 0 : index
    %124 = vector.load %arg13[%c0_57, %c0_58] : memref<240x16xf32, #tpu.memory_space<vmem>>, vector<240x16xf32>
    %cst_59 = arith.constant dense<0.000000e+00> : vector<240x128xf32>
    %125 = tpu.matmul %124, %28, %cst_59 {dimension_numbers = #tpu.dot_dimension_numbers<[1], [0], [0], [1], [0, 0, 1, 1], [], []>} : vector<240x16xf32>, vector<16x128xf32>, vector<240x128xf32> -> vector<240x128xf32>
    %126 = vector.broadcast %32 : vector<1x128xf32> to vector<240x128xf32>
    %127 = arith.addf %125, %126 : vector<240x128xf32>
    %c0_60 = arith.constant 0 : index
    %c0_61 = arith.constant 0 : index
    %128 = vector.load %arg14[%c0_60, %c0_61] : memref<240x128xf32, #tpu.memory_space<vmem>>, vector<240x128xf32>
    tpu.vector_store %arg14[%c0_60, %c0_61], %127 {strides = array<i32>} : memref<240x128xf32, #tpu.memory_space<vmem>>, vector<240x128xf32>,
    %cst_62 = arith.constant 0.000000e+00 : f32
    %129 = vector.broadcast %cst_62 : f32 to vector<8x32xf32>
    %c0_i32 = arith.constant 0 : i32
    %c8_i32 = arith.constant 8 : i32
    %130 = arith.muli %c0_i32, %c8_i32 : i32
    %131 = tpu.assume_multiple %130, 8 : i32
    %132 = arith.index_cast %131 : i32 to index
    %c0_63 = arith.constant 0 : index
    %133 = vector.load %arg14[%132, %c0_63] : memref<240x128xf32, #tpu.memory_space<vmem>>, vector<8x128xf32>
    %cst_64 = arith.constant dense<0.000000e+00> : vector<8x128xf32>
    %134 = tpu.matmul %129, %30, %cst_64 {dimension_numbers = #tpu.dot_dimension_numbers<[1], [0], [0], [1], [0, 0, 1, 1], [], []>} : vector<8x32xf32>, vector<32x128xf32>, vector<8x128xf32> -> vector<8x128xf32>
    %135 = arith.addf %133, %134 : vector<8x128xf32>
    %136 = vector.extract_strided_slice %135 {offsets = [0, 0], sizes = [8, 32], strides = [1, 1]} : vector<8x128xf32> to vector<8x32xf32>
    %137 = arith.negf %136 : vector<8x32xf32>
    %138 = math.exp %137 : vector<8x32xf32>
    %cst_65 = arith.constant 1.000000e+00 : f32
    %139 = vector.broadcast %cst_65 : f32 to vector<8x32xf32>
    %140 = arith.addf %139, %138 : vector<8x32xf32>
    %141 = arith.divf %139, %140 : vector<8x32xf32>
    %142 = vector.extract_strided_slice %135 {offsets = [0, 32], sizes = [8, 32], strides = [1, 1]} : vector<8x128xf32> to vector<8x32xf32>
    %143 = arith.negf %142 : vector<8x32xf32>
    %144 = math.exp %143 : vector<8x32xf32>
    %cst_66 = arith.constant 1.000000e+00 : f32
    %145 = vector.broadcast %cst_66 : f32 to vector<8x32xf32>
    %146 = arith.addf %145, %144 : vector<8x32xf32>
    %147 = arith.divf %145, %146 : vector<8x32xf32>
    %148 = vector.extract_strided_slice %135 {offsets = [0, 64], sizes = [8, 32], strides = [1, 1]} : vector<8x128xf32> to vector<8x32xf32>
    %149 = math.tanh %148 : vector<8x32xf32>
    %150 = vector.extract_strided_slice %135 {offsets = [0, 96], sizes = [8, 32], strides = [1, 1]} : vector<8x128xf32> to vector<8x32xf32>
    %151 = arith.negf %150 : vector<8x32xf32>
    %152 = math.exp %151 : vector<8x32xf32>
    %cst_67 = arith.constant 1.000000e+00 : f32
    %153 = vector.broadcast %cst_67 : f32 to vector<8x32xf32>
    %154 = arith.addf %153, %152 : vector<8x32xf32>
    %155 = arith.divf %153, %154 : vector<8x32xf32>
    %156 = arith.mulf %147, %129 : vector<8x32xf32>
    %157 = arith.mulf %141, %149 : vector<8x32xf32>
    %158 = arith.addf %156, %157 : vector<8x32xf32>
    %159 = math.tanh %158 : vector<8x32xf32>
    %160 = arith.mulf %155, %159 : vector<8x32xf32>
    %cst_68 = arith.constant dense<0.000000e+00> : vector<8x128xf32>
    %161 = tpu.matmul %160, %29, %cst_68 {dimension_numbers = #tpu.dot_dimension_numbers<[1], [0], [0], [1], [0, 0, 1, 1], [], []>} : vector<8x32xf32>, vector<32x128xf32>, vector<8x128xf32> -> vector<8x128xf32>
    %cst_69 = arith.constant dense<0.000000e+00> : vector<8x128xf32>
    %162 = tpu.matmul %129, %31, %cst_69 {dimension_numbers = #tpu.dot_dimension_numbers<[1], [0], [0], [1], [0, 0, 1, 1], [], []>} : vector<8x32xf32>, vector<32x128xf32>, vector<8x128xf32> -> vector<8x128xf32>
    %163 = arith.addf %161, %162 : vector<8x128xf32>
    %164 = vector.broadcast %33 : vector<1x128xf32> to vector<8x128xf32>
    %165 = arith.addf %163, %164 : vector<8x128xf32>
    %166 = vector.extract_strided_slice %165 {offsets = [0, 0], sizes = [8, 32], strides = [1, 1]} : vector<8x128xf32> to vector<8x32xf32>
    %167 = arith.negf %166 : vector<8x32xf32>
    %168 = math.exp %167 : vector<8x32xf32>
    %cst_70 = arith.constant 1.000000e+00 : f32
    %169 = vector.broadcast %cst_70 : f32 to vector<8x32xf32>
    %170 = arith.addf %169, %168 : vector<8x32xf32>
    %171 = arith.divf %169, %170 : vector<8x32xf32>
    %172 = vector.extract_strided_slice %165 {offsets = [0, 32], sizes = [8, 32], strides = [1, 1]} : vector<8x128xf32> to vector<8x32xf32>
    %173 = arith.negf %172 : vector<8x32xf32>
    %174 = math.exp %173 : vector<8x32xf32>
    %cst_71 = arith.constant 1.000000e+00 : f32
    %175 = vector.broadcast %cst_71 : f32 to vector<8x32xf32>
    %176 = arith.addf %175, %174 : vector<8x32xf32>
    %177 = arith.divf %175, %176 : vector<8x32xf32>
    %178 = vector.extract_strided_slice %165 {offsets = [0, 64], sizes = [8, 32], strides = [1, 1]} : vector<8x128xf32> to vector<8x32xf32>
    %179 = math.tanh %178 : vector<8x32xf32>
    %180 = vector.extract_strided_slice %165 {offsets = [0, 96], sizes = [8, 32], strides = [1, 1]} : vector<8x128xf32> to vector<8x32xf32>
    %181 = arith.negf %180 : vector<8x32xf32>
    %182 = math.exp %181 : vector<8x32xf32>
    %cst_72 = arith.constant 1.000000e+00 : f32
    %183 = vector.broadcast %cst_72 : f32 to vector<8x32xf32>
    %184 = arith.addf %183, %182 : vector<8x32xf32>
    %185 = arith.divf %183, %184 : vector<8x32xf32>
    %186 = arith.mulf %177, %129 : vector<8x32xf32>
    %187 = arith.mulf %171, %179 : vector<8x32xf32>
    %188 = arith.addf %186, %187 : vector<8x32xf32>
    %189 = math.tanh %188 : vector<8x32xf32>
    %190 = arith.mulf %185, %189 : vector<8x32xf32>
    %c1_i32 = arith.constant 1 : i32
    %c8_i32_73 = arith.constant 8 : i32
    %191 = arith.muli %c1_i32, %c8_i32_73 : i32
    %192 = tpu.assume_multiple %191, 8 : i32
    %193 = arith.index_cast %192 : i32 to index
    %c0_74 = arith.constant 0 : index
    %194 = vector.load %arg14[%193, %c0_74] : memref<240x128xf32, #tpu.memory_space<vmem>>, vector<8x128xf32>
    %cst_75 = arith.constant dense<0.000000e+00> : vector<8x128xf32>
    %195 = tpu.matmul %160, %30, %cst_75 {dimension_numbers = #tpu.dot_dimension_numbers<[1], [0], [0], [1], [0, 0, 1, 1], [], []>} : vector<8x32xf32>, vector<32x128xf32>, vector<8x128xf32> -> vector<8x128xf32>
    %196 = arith.addf %194, %195 : vector<8x128xf32>
    %197 = vector.extract_strided_slice %196 {offsets = [0, 0], sizes = [8, 32], strides = [1, 1]} : vector<8x128xf32> to vector<8x32xf32>
    %198 = arith.negf %197 : vector<8x32xf32>
    %199 = math.exp %198 : vector<8x32xf32>
    %cst_76 = arith.constant 1.000000e+00 : f32
    %200 = vector.broadcast %cst_76 : f32 to vector<8x32xf32>
    %201 = arith.addf %200, %199 : vector<8x32xf32>
    %202 = arith.divf %200, %201 : vector<8x32xf32>
    %203 = vector.extract_strided_slice %196 {offsets = [0, 32], sizes = [8, 32], strides = [1, 1]} : vector<8x128xf32> to vector<8x32xf32>
    %204 = arith.negf %203 : vector<8x32xf32>
    %205 = math.exp %204 : vector<8x32xf32>
    %cst_77 = arith.constant 1.000000e+00 : f32
    %206 = vector.broadcast %cst_77 : f32 to vector<8x32xf32>
    %207 = arith.addf %206, %205 : vector<8x32xf32>
    %208 = arith.divf %206, %207 : vector<8x32xf32>
    %209 = vector.extract_strided_slice %196 {offsets = [0, 64], sizes = [8, 32], strides = [1, 1]} : vector<8x128xf32> to vector<8x32xf32>
    %210 = math.tanh %209 : vector<8x32xf32>
    %211 = vector.extract_strided_slice %196 {offsets = [0, 96], sizes = [8, 32], strides = [1, 1]} : vector<8x128xf32> to vector<8x32xf32>
    %212 = arith.negf %211 : vector<8x32xf32>
    %213 = math.exp %212 : vector<8x32xf32>
    %cst_78 = arith.constant 1.000000e+00 : f32
    %214 = vector.broadcast %cst_78 : f32 to vector<8x32xf32>
    %215 = arith.addf %214, %213 : vector<8x32xf32>
    %216 = arith.divf %214, %215 : vector<8x32xf32>
    %217 = arith.mulf %208, %158 : vector<8x32xf32>
    %218 = arith.mulf %202, %210 : vector<8x32xf32>
    %219 = arith.addf %217, %218 : vector<8x32xf32>
    %220 = math.tanh %219 : vector<8x32xf32>
    %221 = arith.mulf %216, %220 : vector<8x32xf32>
    %cst_79 = arith.constant dense<0.000000e+00> : vector<8x128xf32>
    %222 = tpu.matmul %221, %29, %cst_79 {dimension_numbers = #tpu.dot_dimension_numbers<[1], [0], [0], [1], [0, 0, 1, 1], [], []>} : vector<8x32xf32>, vector<32x128xf32>, vector<8x128xf32> -> vector<8x128xf32>
    %cst_80 = arith.constant dense<0.000000e+00> : vector<8x128xf32>
    %223 = tpu.matmul %190, %31, %cst_80 {dimension_numbers = #tpu.dot_dimension_numbers<[1], [0], [0], [1], [0, 0, 1, 1], [], []>} : vector<8x32xf32>, vector<32x128xf32>, vector<8x128xf32> -> vector<8x128xf32>
    %224 = arith.addf %222, %223 : vector<8x128xf32>
    %225 = vector.broadcast %33 : vector<1x128xf32> to vector<8x128xf32>
    %226 = arith.addf %224, %225 : vector<8x128xf32>
    %227 = vector.extract_strided_slice %226 {offsets = [0, 0], sizes = [8, 32], strides = [1, 1]} : vector<8x128xf32> to vector<8x32xf32>
    %228 = arith.negf %227 : vector<8x32xf32>
    %229 = math.exp %228 : vector<8x32xf32>
    %cst_81 = arith.constant 1.000000e+00 : f32
    %230 = vector.broadcast %cst_81 : f32 to vector<8x32xf32>
    %231 = arith.addf %230, %229 : vector<8x32xf32>
    %232 = arith.divf %230, %231 : vector<8x32xf32>
    %233 = vector.extract_strided_slice %226 {offsets = [0, 32], sizes = [8, 32], strides = [1, 1]} : vector<8x128xf32> to vector<8x32xf32>
    %234 = arith.negf %233 : vector<8x32xf32>
    %235 = math.exp %234 : vector<8x32xf32>
    %cst_82 = arith.constant 1.000000e+00 : f32
    %236 = vector.broadcast %cst_82 : f32 to vector<8x32xf32>
    %237 = arith.addf %236, %235 : vector<8x32xf32>
    %238 = arith.divf %236, %237 : vector<8x32xf32>
    %239 = vector.extract_strided_slice %226 {offsets = [0, 64], sizes = [8, 32], strides = [1, 1]} : vector<8x128xf32> to vector<8x32xf32>
    %240 = math.tanh %239 : vector<8x32xf32>
    %241 = vector.extract_strided_slice %226 {offsets = [0, 96], sizes = [8, 32], strides = [1, 1]} : vector<8x128xf32> to vector<8x32xf32>
    %242 = arith.negf %241 : vector<8x32xf32>
    %243 = math.exp %242 : vector<8x32xf32>
    %cst_83 = arith.constant 1.000000e+00 : f32
    %244 = vector.broadcast %cst_83 : f32 to vector<8x32xf32>
    %245 = arith.addf %244, %243 : vector<8x32xf32>
    %246 = arith.divf %244, %245 : vector<8x32xf32>
    %247 = arith.mulf %238, %188 : vector<8x32xf32>
    %248 = arith.mulf %232, %240 : vector<8x32xf32>
    %249 = arith.addf %247, %248 : vector<8x32xf32>
    %250 = math.tanh %249 : vector<8x32xf32>
    %251 = arith.mulf %246, %250 : vector<8x32xf32>
    %c2_i32 = arith.constant 2 : i32
    %c8_i32_84 = arith.constant 8 : i32
    %252 = arith.muli %c2_i32, %c8_i32_84 : i32
    %253 = tpu.assume_multiple %252, 8 : i32
    %254 = arith.index_cast %253 : i32 to index
    %c0_85 = arith.constant 0 : index
    %255 = vector.load %arg14[%254, %c0_85] : memref<240x128xf32, #tpu.memory_space<vmem>>, vector<8x128xf32>
    %cst_86 = arith.constant dense<0.000000e+00> : vector<8x128xf32>
    %256 = tpu.matmul %221, %30, %cst_86 {dimension_numbers = #tpu.dot_dimension_numbers<[1], [0], [0], [1], [0, 0, 1, 1], [], []>} : vector<8x32xf32>, vector<32x128xf32>, vector<8x128xf32> -> vector<8x128xf32>
    %257 = arith.addf %255, %256 : vector<8x128xf32>
    %258 = vector.extract_strided_slice %257 {offsets = [0, 0], sizes = [8, 32], strides = [1, 1]} : vector<8x128xf32> to vector<8x32xf32>
    %259 = arith.negf %258 : vector<8x32xf32>
    %260 = math.exp %259 : vector<8x32xf32>
    %cst_87 = arith.constant 1.000000e+00 : f32
    %261 = vector.broadcast %cst_87 : f32 to vector<8x32xf32>
    %262 = arith.addf %261, %260 : vector<8x32xf32>
    %263 = arith.divf %261, %262 : vector<8x32xf32>
    %264 = vector.extract_strided_slice %257 {offsets = [0, 32], sizes = [8, 32], strides = [1, 1]} : vector<8x128xf32> to vector<8x32xf32>
    %265 = arith.negf %264 : vector<8x32xf32>
    %266 = math.exp %265 : vector<8x32xf32>
    %cst_88 = arith.constant 1.000000e+00 : f32
    %267 = vector.broadcast %cst_88 : f32 to vector<8x32xf32>
    %268 = arith.addf %267, %266 : vector<8x32xf32>
    %269 = arith.divf %267, %268 : vector<8x32xf32>
    %270 = vector.extract_strided_slice %257 {offsets = [0, 64], sizes = [8, 32], strides = [1, 1]} : vector<8x128xf32> to vector<8x32xf32>
    %271 = math.tanh %270 : vector<8x32xf32>
    %272 = vector.extract_strided_slice %257 {offsets = [0, 96], sizes = [8, 32], strides = [1, 1]} : vector<8x128xf32> to vector<8x32xf32>
    %273 = arith.negf %272 : vector<8x32xf32>
    %274 = math.exp %273 : vector<8x32xf32>
    %cst_89 = arith.constant 1.000000e+00 : f32
    %275 = vector.broadcast %cst_89 : f32 to vector<8x32xf32>
    %276 = arith.addf %275, %274 : vector<8x32xf32>
    %277 = arith.divf %275, %276 : vector<8x32xf32>
    %278 = arith.mulf %269, %219 : vector<8x32xf32>
    %279 = arith.mulf %263, %271 : vector<8x32xf32>
    %280 = arith.addf %278, %279 : vector<8x32xf32>
    %281 = math.tanh %280 : vector<8x32xf32>
    %282 = arith.mulf %277, %281 : vector<8x32xf32>
    %cst_90 = arith.constant dense<0.000000e+00> : vector<8x128xf32>
    %283 = tpu.matmul %282, %29, %cst_90 {dimension_numbers = #tpu.dot_dimension_numbers<[1], [0], [0], [1], [0, 0, 1, 1], [], []>} : vector<8x32xf32>, vector<32x128xf32>, vector<8x128xf32> -> vector<8x128xf32>
    %cst_91 = arith.constant dense<0.000000e+00> : vector<8x128xf32>
    %284 = tpu.matmul %251, %31, %cst_91 {dimension_numbers = #tpu.dot_dimension_numbers<[1], [0], [0], [1], [0, 0, 1, 1], [], []>} : vector<8x32xf32>, vector<32x128xf32>, vector<8x128xf32> -> vector<8x128xf32>
    %285 = arith.addf %283, %284 : vector<8x128xf32>
    %286 = vector.broadcast %33 : vector<1x128xf32> to vector<8x128xf32>
    %287 = arith.addf %285, %286 : vector<8x128xf32>
    %288 = vector.extract_strided_slice %287 {offsets = [0, 0], sizes = [8, 32], strides = [1, 1]} : vector<8x128xf32> to vector<8x32xf32>
    %289 = arith.negf %288 : vector<8x32xf32>
    %290 = math.exp %289 : vector<8x32xf32>
    %cst_92 = arith.constant 1.000000e+00 : f32
    %291 = vector.broadcast %cst_92 : f32 to vector<8x32xf32>
    %292 = arith.addf %291, %290 : vector<8x32xf32>
    %293 = arith.divf %291, %292 : vector<8x32xf32>
    %294 = vector.extract_strided_slice %287 {offsets = [0, 32], sizes = [8, 32], strides = [1, 1]} : vector<8x128xf32> to vector<8x32xf32>
    %295 = arith.negf %294 : vector<8x32xf32>
    %296 = math.exp %295 : vector<8x32xf32>
    %cst_93 = arith.constant 1.000000e+00 : f32
    %297 = vector.broadcast %cst_93 : f32 to vector<8x32xf32>
    %298 = arith.addf %297, %296 : vector<8x32xf32>
    %299 = arith.divf %297, %298 : vector<8x32xf32>
    %300 = vector.extract_strided_slice %287 {offsets = [0, 64], sizes = [8, 32], strides = [1, 1]} : vector<8x128xf32> to vector<8x32xf32>
    %301 = math.tanh %300 : vector<8x32xf32>
    %302 = vector.extract_strided_slice %287 {offsets = [0, 96], sizes = [8, 32], strides = [1, 1]} : vector<8x128xf32> to vector<8x32xf32>
    %303 = arith.negf %302 : vector<8x32xf32>
    %304 = math.exp %303 : vector<8x32xf32>
    %cst_94 = arith.constant 1.000000e+00 : f32
    %305 = vector.broadcast %cst_94 : f32 to vector<8x32xf32>
    %306 = arith.addf %305, %304 : vector<8x32xf32>
    %307 = arith.divf %305, %306 : vector<8x32xf32>
    %308 = arith.mulf %299, %249 : vector<8x32xf32>
    %309 = arith.mulf %293, %301 : vector<8x32xf32>
    %310 = arith.addf %308, %309 : vector<8x32xf32>
    %311 = math.tanh %310 : vector<8x32xf32>
    %312 = arith.mulf %307, %311 : vector<8x32xf32>
    %c3_i32 = arith.constant 3 : i32
    %c8_i32_95 = arith.constant 8 : i32
    %313 = arith.muli %c3_i32, %c8_i32_95 : i32
    %314 = tpu.assume_multiple %313, 8 : i32
    %315 = arith.index_cast %314 : i32 to index
    %c0_96 = arith.constant 0 : index
    %316 = vector.load %arg14[%315, %c0_96] : memref<240x128xf32, #tpu.memory_space<vmem>>, vector<8x128xf32>
    %cst_97 = arith.constant dense<0.000000e+00> : vector<8x128xf32>
    %317 = tpu.matmul %282, %30, %cst_97 {dimension_numbers = #tpu.dot_dimension_numbers<[1], [0], [0], [1], [0, 0, 1, 1], [], []>} : vector<8x32xf32>, vector<32x128xf32>, vector<8x128xf32> -> vector<8x128xf32>
    %318 = arith.addf %316, %317 : vector<8x128xf32>
    %319 = vector.extract_strided_slice %318 {offsets = [0, 0], sizes = [8, 32], strides = [1, 1]} : vector<8x128xf32> to vector<8x32xf32>
    %320 = arith.negf %319 : vector<8x32xf32>
    %321 = math.exp %320 : vector<8x32xf32>
    %cst_98 = arith.constant 1.000000e+00 : f32
    %322 = vector.broadcast %cst_98 : f32 to vector<8x32xf32>
    %323 = arith.addf %322, %321 : vector<8x32xf32>
    %324 = arith.divf %322, %323 : vector<8x32xf32>
    %325 = vector.extract_strided_slice %318 {offsets = [0, 32], sizes = [8, 32], strides = [1, 1]} : vector<8x128xf32> to vector<8x32xf32>
    %326 = arith.negf %325 : vector<8x32xf32>
    %327 = math.exp %326 : vector<8x32xf32>
    %cst_99 = arith.constant 1.000000e+00 : f32
    %328 = vector.broadcast %cst_99 : f32 to vector<8x32xf32>
    %329 = arith.addf %328, %327 : vector<8x32xf32>
    %330 = arith.divf %328, %329 : vector<8x32xf32>
    %331 = vector.extract_strided_slice %318 {offsets = [0, 64], sizes = [8, 32], strides = [1, 1]} : vector<8x128xf32> to vector<8x32xf32>
    %332 = math.tanh %331 : vector<8x32xf32>
    %333 = vector.extract_strided_slice %318 {offsets = [0, 96], sizes = [8, 32], strides = [1, 1]} : vector<8x128xf32> to vector<8x32xf32>
    %334 = arith.negf %333 : vector<8x32xf32>
    %335 = math.exp %334 : vector<8x32xf32>
    %cst_100 = arith.constant 1.000000e+00 : f32
    %336 = vector.broadcast %cst_100 : f32 to vector<8x32xf32>
    %337 = arith.addf %336, %335 : vector<8x32xf32>
    %338 = arith.divf %336, %337 : vector<8x32xf32>
    %339 = arith.mulf %330, %280 : vector<8x32xf32>
    %340 = arith.mulf %324, %332 : vector<8x32xf32>
    %341 = arith.addf %339, %340 : vector<8x32xf32>
    %342 = math.tanh %341 : vector<8x32xf32>
    %343 = arith.mulf %338, %342 : vector<8x32xf32>
    %cst_101 = arith.constant dense<0.000000e+00> : vector<8x128xf32>
    %344 = tpu.matmul %343, %29, %cst_101 {dimension_numbers = #tpu.dot_dimension_numbers<[1], [0], [0], [1], [0, 0, 1, 1], [], []>} : vector<8x32xf32>, vector<32x128xf32>, vector<8x128xf32> -> vector<8x128xf32>
    %cst_102 = arith.constant dense<0.000000e+00> : vector<8x128xf32>
    %345 = tpu.matmul %312, %31, %cst_102 {dimension_numbers = #tpu.dot_dimension_numbers<[1], [0], [0], [1], [0, 0, 1, 1], [], []>} : vector<8x32xf32>, vector<32x128xf32>, vector<8x128xf32> -> vector<8x128xf32>
    %346 = arith.addf %344, %345 : vector<8x128xf32>
    %347 = vector.broadcast %33 : vector<1x128xf32> to vector<8x128xf32>
    %348 = arith.addf %346, %347 : vector<8x128xf32>
    %349 = vector.extract_strided_slice %348 {offsets = [0, 0], sizes = [8, 32], strides = [1, 1]} : vector<8x128xf32> to vector<8x32xf32>
    %350 = arith.negf %349 : vector<8x32xf32>
    %351 = math.exp %350 : vector<8x32xf32>
    %cst_103 = arith.constant 1.000000e+00 : f32
    %352 = vector.broadcast %cst_103 : f32 to vector<8x32xf32>
    %353 = arith.addf %352, %351 : vector<8x32xf32>
    %354 = arith.divf %352, %353 : vector<8x32xf32>
    %355 = vector.extract_strided_slice %348 {offsets = [0, 32], sizes = [8, 32], strides = [1, 1]} : vector<8x128xf32> to vector<8x32xf32>
    %356 = arith.negf %355 : vector<8x32xf32>
    %357 = math.exp %356 : vector<8x32xf32>
    %cst_104 = arith.constant 1.000000e+00 : f32
    %358 = vector.broadcast %cst_104 : f32 to vector<8x32xf32>
    %359 = arith.addf %358, %357 : vector<8x32xf32>
    %360 = arith.divf %358, %359 : vector<8x32xf32>
    %361 = vector.extract_strided_slice %348 {offsets = [0, 64], sizes = [8, 32], strides = [1, 1]} : vector<8x128xf32> to vector<8x32xf32>
    %362 = math.tanh %361 : vector<8x32xf32>
    %363 = vector.extract_strided_slice %348 {offsets = [0, 96], sizes = [8, 32], strides = [1, 1]} : vector<8x128xf32> to vector<8x32xf32>
    %364 = arith.negf %363 : vector<8x32xf32>
    %365 = math.exp %364 : vector<8x32xf32>
    %cst_105 = arith.constant 1.000000e+00 : f32
    %366 = vector.broadcast %cst_105 : f32 to vector<8x32xf32>
    %367 = arith.addf %366, %365 : vector<8x32xf32>
    %368 = arith.divf %366, %367 : vector<8x32xf32>
    %369 = arith.mulf %360, %310 : vector<8x32xf32>
    %370 = arith.mulf %354, %362 : vector<8x32xf32>
    %371 = arith.addf %369, %370 : vector<8x32xf32>
    %372 = math.tanh %371 : vector<8x32xf32>
    %373 = arith.mulf %368, %372 : vector<8x32xf32>
    %c4_i32 = arith.constant 4 : i32
    %c8_i32_106 = arith.constant 8 : i32
    %374 = arith.muli %c4_i32, %c8_i32_106 : i32
    %375 = tpu.assume_multiple %374, 8 : i32
    %376 = arith.index_cast %375 : i32 to index
    %c0_107 = arith.constant 0 : index
    %377 = vector.load %arg14[%376, %c0_107] : memref<240x128xf32, #tpu.memory_space<vmem>>, vector<8x128xf32>
    %cst_108 = arith.constant dense<0.000000e+00> : vector<8x128xf32>
    %378 = tpu.matmul %343, %30, %cst_108 {dimension_numbers = #tpu.dot_dimension_numbers<[1], [0], [0], [1], [0, 0, 1, 1], [], []>} : vector<8x32xf32>, vector<32x128xf32>, vector<8x128xf32> -> vector<8x128xf32>
    %379 = arith.addf %377, %378 : vector<8x128xf32>
    %380 = vector.extract_strided_slice %379 {offsets = [0, 0], sizes = [8, 32], strides = [1, 1]} : vector<8x128xf32> to vector<8x32xf32>
    %381 = arith.negf %380 : vector<8x32xf32>
    %382 = math.exp %381 : vector<8x32xf32>
    %cst_109 = arith.constant 1.000000e+00 : f32
    %383 = vector.broadcast %cst_109 : f32 to vector<8x32xf32>
    %384 = arith.addf %383, %382 : vector<8x32xf32>
    %385 = arith.divf %383, %384 : vector<8x32xf32>
    %386 = vector.extract_strided_slice %379 {offsets = [0, 32], sizes = [8, 32], strides = [1, 1]} : vector<8x128xf32> to vector<8x32xf32>
    %387 = arith.negf %386 : vector<8x32xf32>
    %388 = math.exp %387 : vector<8x32xf32>
    %cst_110 = arith.constant 1.000000e+00 : f32
    %389 = vector.broadcast %cst_110 : f32 to vector<8x32xf32>
    %390 = arith.addf %389, %388 : vector<8x32xf32>
    %391 = arith.divf %389, %390 : vector<8x32xf32>
    %392 = vector.extract_strided_slice %379 {offsets = [0, 64], sizes = [8, 32], strides = [1, 1]} : vector<8x128xf32> to vector<8x32xf32>
    %393 = math.tanh %392 : vector<8x32xf32>
    %394 = vector.extract_strided_slice %379 {offsets = [0, 96], sizes = [8, 32], strides = [1, 1]} : vector<8x128xf32> to vector<8x32xf32>
    %395 = arith.negf %394 : vector<8x32xf32>
    %396 = math.exp %395 : vector<8x32xf32>
    %cst_111 = arith.constant 1.000000e+00 : f32
    %397 = vector.broadcast %cst_111 : f32 to vector<8x32xf32>
    %398 = arith.addf %397, %396 : vector<8x32xf32>
    %399 = arith.divf %397, %398 : vector<8x32xf32>
    %400 = arith.mulf %391, %341 : vector<8x32xf32>
    %401 = arith.mulf %385, %393 : vector<8x32xf32>
    %402 = arith.addf %400, %401 : vector<8x32xf32>
    %403 = math.tanh %402 : vector<8x32xf32>
    %404 = arith.mulf %399, %403 : vector<8x32xf32>
    %cst_112 = arith.constant dense<0.000000e+00> : vector<8x128xf32>
    %405 = tpu.matmul %404, %29, %cst_112 {dimension_numbers = #tpu.dot_dimension_numbers<[1], [0], [0], [1], [0, 0, 1, 1], [], []>} : vector<8x32xf32>, vector<32x128xf32>, vector<8x128xf32> -> vector<8x128xf32>
    %cst_113 = arith.constant dense<0.000000e+00> : vector<8x128xf32>
    %406 = tpu.matmul %373, %31, %cst_113 {dimension_numbers = #tpu.dot_dimension_numbers<[1], [0], [0], [1], [0, 0, 1, 1], [], []>} : vector<8x32xf32>, vector<32x128xf32>, vector<8x128xf32> -> vector<8x128xf32>
    %407 = arith.addf %405, %406 : vector<8x128xf32>
    %408 = vector.broadcast %33 : vector<1x128xf32> to vector<8x128xf32>
    %409 = arith.addf %407, %408 : vector<8x128xf32>
    %410 = vector.extract_strided_slice %409 {offsets = [0, 0], sizes = [8, 32], strides = [1, 1]} : vector<8x128xf32> to vector<8x32xf32>
    %411 = arith.negf %410 : vector<8x32xf32>
    %412 = math.exp %411 : vector<8x32xf32>
    %cst_114 = arith.constant 1.000000e+00 : f32
    %413 = vector.broadcast %cst_114 : f32 to vector<8x32xf32>
    %414 = arith.addf %413, %412 : vector<8x32xf32>
    %415 = arith.divf %413, %414 : vector<8x32xf32>
    %416 = vector.extract_strided_slice %409 {offsets = [0, 32], sizes = [8, 32], strides = [1, 1]} : vector<8x128xf32> to vector<8x32xf32>
    %417 = arith.negf %416 : vector<8x32xf32>
    %418 = math.exp %417 : vector<8x32xf32>
    %cst_115 = arith.constant 1.000000e+00 : f32
    %419 = vector.broadcast %cst_115 : f32 to vector<8x32xf32>
    %420 = arith.addf %419, %418 : vector<8x32xf32>
    %421 = arith.divf %419, %420 : vector<8x32xf32>
    %422 = vector.extract_strided_slice %409 {offsets = [0, 64], sizes = [8, 32], strides = [1, 1]} : vector<8x128xf32> to vector<8x32xf32>
    %423 = math.tanh %422 : vector<8x32xf32>
    %424 = vector.extract_strided_slice %409 {offsets = [0, 96], sizes = [8, 32], strides = [1, 1]} : vector<8x128xf32> to vector<8x32xf32>
    %425 = arith.negf %424 : vector<8x32xf32>
    %426 = math.exp %425 : vector<8x32xf32>
    %cst_116 = arith.constant 1.000000e+00 : f32
    %427 = vector.broadcast %cst_116 : f32 to vector<8x32xf32>
    %428 = arith.addf %427, %426 : vector<8x32xf32>
    %429 = arith.divf %427, %428 : vector<8x32xf32>
    %430 = arith.mulf %421, %371 : vector<8x32xf32>
    %431 = arith.mulf %415, %423 : vector<8x32xf32>
    %432 = arith.addf %430, %431 : vector<8x32xf32>
    %433 = math.tanh %432 : vector<8x32xf32>
    %434 = arith.mulf %429, %433 : vector<8x32xf32>
    %c5_i32 = arith.constant 5 : i32
    %c8_i32_117 = arith.constant 8 : i32
    %435 = arith.muli %c5_i32, %c8_i32_117 : i32
    %436 = tpu.assume_multiple %435, 8 : i32
    %437 = arith.index_cast %436 : i32 to index
    %c0_118 = arith.constant 0 : index
    %438 = vector.load %arg14[%437, %c0_118] : memref<240x128xf32, #tpu.memory_space<vmem>>, vector<8x128xf32>
    %cst_119 = arith.constant dense<0.000000e+00> : vector<8x128xf32>
    %439 = tpu.matmul %404, %30, %cst_119 {dimension_numbers = #tpu.dot_dimension_numbers<[1], [0], [0], [1], [0, 0, 1, 1], [], []>} : vector<8x32xf32>, vector<32x128xf32>, vector<8x128xf32> -> vector<8x128xf32>
    %440 = arith.addf %438, %439 : vector<8x128xf32>
    %441 = vector.extract_strided_slice %440 {offsets = [0, 0], sizes = [8, 32], strides = [1, 1]} : vector<8x128xf32> to vector<8x32xf32>
    %442 = arith.negf %441 : vector<8x32xf32>
    %443 = math.exp %442 : vector<8x32xf32>
    %cst_120 = arith.constant 1.000000e+00 : f32
    %444 = vector.broadcast %cst_120 : f32 to vector<8x32xf32>
    %445 = arith.addf %444, %443 : vector<8x32xf32>
    %446 = arith.divf %444, %445 : vector<8x32xf32>
    %447 = vector.extract_strided_slice %440 {offsets = [0, 32], sizes = [8, 32], strides = [1, 1]} : vector<8x128xf32> to vector<8x32xf32>
    %448 = arith.negf %447 : vector<8x32xf32>
    %449 = math.exp %448 : vector<8x32xf32>
    %cst_121 = arith.constant 1.000000e+00 : f32
    %450 = vector.broadcast %cst_121 : f32 to vector<8x32xf32>
    %451 = arith.addf %450, %449 : vector<8x32xf32>
    %452 = arith.divf %450, %451 : vector<8x32xf32>
    %453 = vector.extract_strided_slice %440 {offsets = [0, 64], sizes = [8, 32], strides = [1, 1]} : vector<8x128xf32> to vector<8x32xf32>
    %454 = math.tanh %453 : vector<8x32xf32>
    %455 = vector.extract_strided_slice %440 {offsets = [0, 96], sizes = [8, 32], strides = [1, 1]} : vector<8x128xf32> to vector<8x32xf32>
    %456 = arith.negf %455 : vector<8x32xf32>
    %457 = math.exp %456 : vector<8x32xf32>
    %cst_122 = arith.constant 1.000000e+00 : f32
    %458 = vector.broadcast %cst_122 : f32 to vector<8x32xf32>
    %459 = arith.addf %458, %457 : vector<8x32xf32>
    %460 = arith.divf %458, %459 : vector<8x32xf32>
    %461 = arith.mulf %452, %402 : vector<8x32xf32>
    %462 = arith.mulf %446, %454 : vector<8x32xf32>
    %463 = arith.addf %461, %462 : vector<8x32xf32>
    %464 = math.tanh %463 : vector<8x32xf32>
    %465 = arith.mulf %460, %464 : vector<8x32xf32>
    %cst_123 = arith.constant dense<0.000000e+00> : vector<8x128xf32>
    %466 = tpu.matmul %465, %29, %cst_123 {dimension_numbers = #tpu.dot_dimension_numbers<[1], [0], [0], [1], [0, 0, 1, 1], [], []>} : vector<8x32xf32>, vector<32x128xf32>, vector<8x128xf32> -> vector<8x128xf32>
    %cst_124 = arith.constant dense<0.000000e+00> : vector<8x128xf32>
    %467 = tpu.matmul %434, %31, %cst_124 {dimension_numbers = #tpu.dot_dimension_numbers<[1], [0], [0], [1], [0, 0, 1, 1], [], []>} : vector<8x32xf32>, vector<32x128xf32>, vector<8x128xf32> -> vector<8x128xf32>
    %468 = arith.addf %466, %467 : vector<8x128xf32>
    %469 = vector.broadcast %33 : vector<1x128xf32> to vector<8x128xf32>
    %470 = arith.addf %468, %469 : vector<8x128xf32>
    %471 = vector.extract_strided_slice %470 {offsets = [0, 0], sizes = [8, 32], strides = [1, 1]} : vector<8x128xf32> to vector<8x32xf32>
    %472 = arith.negf %471 : vector<8x32xf32>
    %473 = math.exp %472 : vector<8x32xf32>
    %cst_125 = arith.constant 1.000000e+00 : f32
    %474 = vector.broadcast %cst_125 : f32 to vector<8x32xf32>
    %475 = arith.addf %474, %473 : vector<8x32xf32>
    %476 = arith.divf %474, %475 : vector<8x32xf32>
    %477 = vector.extract_strided_slice %470 {offsets = [0, 32], sizes = [8, 32], strides = [1, 1]} : vector<8x128xf32> to vector<8x32xf32>
    %478 = arith.negf %477 : vector<8x32xf32>
    %479 = math.exp %478 : vector<8x32xf32>
    %cst_126 = arith.constant 1.000000e+00 : f32
    %480 = vector.broadcast %cst_126 : f32 to vector<8x32xf32>
    %481 = arith.addf %480, %479 : vector<8x32xf32>
    %482 = arith.divf %480, %481 : vector<8x32xf32>
    %483 = vector.extract_strided_slice %470 {offsets = [0, 64], sizes = [8, 32], strides = [1, 1]} : vector<8x128xf32> to vector<8x32xf32>
    %484 = math.tanh %483 : vector<8x32xf32>
    %485 = vector.extract_strided_slice %470 {offsets = [0, 96], sizes = [8, 32], strides = [1, 1]} : vector<8x128xf32> to vector<8x32xf32>
    %486 = arith.negf %485 : vector<8x32xf32>
    %487 = math.exp %486 : vector<8x32xf32>
    %cst_127 = arith.constant 1.000000e+00 : f32
    %488 = vector.broadcast %cst_127 : f32 to vector<8x32xf32>
    %489 = arith.addf %488, %487 : vector<8x32xf32>
    %490 = arith.divf %488, %489 : vector<8x32xf32>
    %491 = arith.mulf %482, %432 : vector<8x32xf32>
    %492 = arith.mulf %476, %484 : vector<8x32xf32>
    %493 = arith.addf %491, %492 : vector<8x32xf32>
    %494 = math.tanh %493 : vector<8x32xf32>
    %495 = arith.mulf %490, %494 : vector<8x32xf32>
    %c6_i32 = arith.constant 6 : i32
    %c8_i32_128 = arith.constant 8 : i32
    %496 = arith.muli %c6_i32, %c8_i32_128 : i32
    %497 = tpu.assume_multiple %496, 8 : i32
    %498 = arith.index_cast %497 : i32 to index
    %c0_129 = arith.constant 0 : index
    %499 = vector.load %arg14[%498, %c0_129] : memref<240x128xf32, #tpu.memory_space<vmem>>, vector<8x128xf32>
    %cst_130 = arith.constant dense<0.000000e+00> : vector<8x128xf32>
    %500 = tpu.matmul %465, %30, %cst_130 {dimension_numbers = #tpu.dot_dimension_numbers<[1], [0], [0], [1], [0, 0, 1, 1], [], []>} : vector<8x32xf32>, vector<32x128xf32>, vector<8x128xf32> -> vector<8x128xf32>
    %501 = arith.addf %499, %500 : vector<8x128xf32>
    %502 = vector.extract_strided_slice %501 {offsets = [0, 0], sizes = [8, 32], strides = [1, 1]} : vector<8x128xf32> to vector<8x32xf32>
    %503 = arith.negf %502 : vector<8x32xf32>
    %504 = math.exp %503 : vector<8x32xf32>
    %cst_131 = arith.constant 1.000000e+00 : f32
    %505 = vector.broadcast %cst_131 : f32 to vector<8x32xf32>
    %506 = arith.addf %505, %504 : vector<8x32xf32>
    %507 = arith.divf %505, %506 : vector<8x32xf32>
    %508 = vector.extract_strided_slice %501 {offsets = [0, 32], sizes = [8, 32], strides = [1, 1]} : vector<8x128xf32> to vector<8x32xf32>
    %509 = arith.negf %508 : vector<8x32xf32>
    %510 = math.exp %509 : vector<8x32xf32>
    %cst_132 = arith.constant 1.000000e+00 : f32
    %511 = vector.broadcast %cst_132 : f32 to vector<8x32xf32>
    %512 = arith.addf %511, %510 : vector<8x32xf32>
    %513 = arith.divf %511, %512 : vector<8x32xf32>
    %514 = vector.extract_strided_slice %501 {offsets = [0, 64], sizes = [8, 32], strides = [1, 1]} : vector<8x128xf32> to vector<8x32xf32>
    %515 = math.tanh %514 : vector<8x32xf32>
    %516 = vector.extract_strided_slice %501 {offsets = [0, 96], sizes = [8, 32], strides = [1, 1]} : vector<8x128xf32> to vector<8x32xf32>
    %517 = arith.negf %516 : vector<8x32xf32>
    %518 = math.exp %517 : vector<8x32xf32>
    %cst_133 = arith.constant 1.000000e+00 : f32
    %519 = vector.broadcast %cst_133 : f32 to vector<8x32xf32>
    %520 = arith.addf %519, %518 : vector<8x32xf32>
    %521 = arith.divf %519, %520 : vector<8x32xf32>
    %522 = arith.mulf %513, %463 : vector<8x32xf32>
    %523 = arith.mulf %507, %515 : vector<8x32xf32>
    %524 = arith.addf %522, %523 : vector<8x32xf32>
    %525 = math.tanh %524 : vector<8x32xf32>
    %526 = arith.mulf %521, %525 : vector<8x32xf32>
    %cst_134 = arith.constant dense<0.000000e+00> : vector<8x128xf32>
    %527 = tpu.matmul %526, %29, %cst_134 {dimension_numbers = #tpu.dot_dimension_numbers<[1], [0], [0], [1], [0, 0, 1, 1], [], []>} : vector<8x32xf32>, vector<32x128xf32>, vector<8x128xf32> -> vector<8x128xf32>
    %cst_135 = arith.constant dense<0.000000e+00> : vector<8x128xf32>
    %528 = tpu.matmul %495, %31, %cst_135 {dimension_numbers = #tpu.dot_dimension_numbers<[1], [0], [0], [1], [0, 0, 1, 1], [], []>} : vector<8x32xf32>, vector<32x128xf32>, vector<8x128xf32> -> vector<8x128xf32>
    %529 = arith.addf %527, %528 : vector<8x128xf32>
    %530 = vector.broadcast %33 : vector<1x128xf32> to vector<8x128xf32>
    %531 = arith.addf %529, %530 : vector<8x128xf32>
    %532 = vector.extract_strided_slice %531 {offsets = [0, 0], sizes = [8, 32], strides = [1, 1]} : vector<8x128xf32> to vector<8x32xf32>
    %533 = arith.negf %532 : vector<8x32xf32>
    %534 = math.exp %533 : vector<8x32xf32>
    %cst_136 = arith.constant 1.000000e+00 : f32
    %535 = vector.broadcast %cst_136 : f32 to vector<8x32xf32>
    %536 = arith.addf %535, %534 : vector<8x32xf32>
    %537 = arith.divf %535, %536 : vector<8x32xf32>
    %538 = vector.extract_strided_slice %531 {offsets = [0, 32], sizes = [8, 32], strides = [1, 1]} : vector<8x128xf32> to vector<8x32xf32>
    %539 = arith.negf %538 : vector<8x32xf32>
    %540 = math.exp %539 : vector<8x32xf32>
    %cst_137 = arith.constant 1.000000e+00 : f32
    %541 = vector.broadcast %cst_137 : f32 to vector<8x32xf32>
    %542 = arith.addf %541, %540 : vector<8x32xf32>
    %543 = arith.divf %541, %542 : vector<8x32xf32>
    %544 = vector.extract_strided_slice %531 {offsets = [0, 64], sizes = [8, 32], strides = [1, 1]} : vector<8x128xf32> to vector<8x32xf32>
    %545 = math.tanh %544 : vector<8x32xf32>
    %546 = vector.extract_strided_slice %531 {offsets = [0, 96], sizes = [8, 32], strides = [1, 1]} : vector<8x128xf32> to vector<8x32xf32>
    %547 = arith.negf %546 : vector<8x32xf32>
    %548 = math.exp %547 : vector<8x32xf32>
    %cst_138 = arith.constant 1.000000e+00 : f32
    %549 = vector.broadcast %cst_138 : f32 to vector<8x32xf32>
    %550 = arith.addf %549, %548 : vector<8x32xf32>
    %551 = arith.divf %549, %550 : vector<8x32xf32>
    %552 = arith.mulf %543, %493 : vector<8x32xf32>
    %553 = arith.mulf %537, %545 : vector<8x32xf32>
    %554 = arith.addf %552, %553 : vector<8x32xf32>
    %555 = math.tanh %554 : vector<8x32xf32>
    %556 = arith.mulf %551, %555 : vector<8x32xf32>
    %c7_i32 = arith.constant 7 : i32
    %c8_i32_139 = arith.constant 8 : i32
    %557 = arith.muli %c7_i32, %c8_i32_139 : i32
    %558 = tpu.assume_multiple %557, 8 : i32
    %559 = arith.index_cast %558 : i32 to index
    %c0_140 = arith.constant 0 : index
    %560 = vector.load %arg14[%559, %c0_140] : memref<240x128xf32, #tpu.memory_space<vmem>>, vector<8x128xf32>
    %cst_141 = arith.constant dense<0.000000e+00> : vector<8x128xf32>
    %561 = tpu.matmul %526, %30, %cst_141 {dimension_numbers = #tpu.dot_dimension_numbers<[1], [0], [0], [1], [0, 0, 1, 1], [], []>} : vector<8x32xf32>, vector<32x128xf32>, vector<8x128xf32> -> vector<8x128xf32>
    %562 = arith.addf %560, %561 : vector<8x128xf32>
    %563 = vector.extract_strided_slice %562 {offsets = [0, 0], sizes = [8, 32], strides = [1, 1]} : vector<8x128xf32> to vector<8x32xf32>
    %564 = arith.negf %563 : vector<8x32xf32>
    %565 = math.exp %564 : vector<8x32xf32>
    %cst_142 = arith.constant 1.000000e+00 : f32
    %566 = vector.broadcast %cst_142 : f32 to vector<8x32xf32>
    %567 = arith.addf %566, %565 : vector<8x32xf32>
    %568 = arith.divf %566, %567 : vector<8x32xf32>
    %569 = vector.extract_strided_slice %562 {offsets = [0, 32], sizes = [8, 32], strides = [1, 1]} : vector<8x128xf32> to vector<8x32xf32>
    %570 = arith.negf %569 : vector<8x32xf32>
    %571 = math.exp %570 : vector<8x32xf32>
    %cst_143 = arith.constant 1.000000e+00 : f32
    %572 = vector.broadcast %cst_143 : f32 to vector<8x32xf32>
    %573 = arith.addf %572, %571 : vector<8x32xf32>
    %574 = arith.divf %572, %573 : vector<8x32xf32>
    %575 = vector.extract_strided_slice %562 {offsets = [0, 64], sizes = [8, 32], strides = [1, 1]} : vector<8x128xf32> to vector<8x32xf32>
    %576 = math.tanh %575 : vector<8x32xf32>
    %577 = vector.extract_strided_slice %562 {offsets = [0, 96], sizes = [8, 32], strides = [1, 1]} : vector<8x128xf32> to vector<8x32xf32>
    %578 = arith.negf %577 : vector<8x32xf32>
    %579 = math.exp %578 : vector<8x32xf32>
    %cst_144 = arith.constant 1.000000e+00 : f32
    %580 = vector.broadcast %cst_144 : f32 to vector<8x32xf32>
    %581 = arith.addf %580, %579 : vector<8x32xf32>
    %582 = arith.divf %580, %581 : vector<8x32xf32>
    %583 = arith.mulf %574, %524 : vector<8x32xf32>
    %584 = arith.mulf %568, %576 : vector<8x32xf32>
    %585 = arith.addf %583, %584 : vector<8x32xf32>
    %586 = math.tanh %585 : vector<8x32xf32>
    %587 = arith.mulf %582, %586 : vector<8x32xf32>
    %cst_145 = arith.constant dense<0.000000e+00> : vector<8x128xf32>
    %588 = tpu.matmul %587, %29, %cst_145 {dimension_numbers = #tpu.dot_dimension_numbers<[1], [0], [0], [1], [0, 0, 1, 1], [], []>} : vector<8x32xf32>, vector<32x128xf32>, vector<8x128xf32> -> vector<8x128xf32>
    %cst_146 = arith.constant dense<0.000000e+00> : vector<8x128xf32>
    %589 = tpu.matmul %556, %31, %cst_146 {dimension_numbers = #tpu.dot_dimension_numbers<[1], [0], [0], [1], [0, 0, 1, 1], [], []>} : vector<8x32xf32>, vector<32x128xf32>, vector<8x128xf32> -> vector<8x128xf32>
    %590 = arith.addf %588, %589 : vector<8x128xf32>
    %591 = vector.broadcast %33 : vector<1x128xf32> to vector<8x128xf32>
    %592 = arith.addf %590, %591 : vector<8x128xf32>
    %593 = vector.extract_strided_slice %592 {offsets = [0, 0], sizes = [8, 32], strides = [1, 1]} : vector<8x128xf32> to vector<8x32xf32>
    %594 = arith.negf %593 : vector<8x32xf32>
    %595 = math.exp %594 : vector<8x32xf32>
    %cst_147 = arith.constant 1.000000e+00 : f32
    %596 = vector.broadcast %cst_147 : f32 to vector<8x32xf32>
    %597 = arith.addf %596, %595 : vector<8x32xf32>
    %598 = arith.divf %596, %597 : vector<8x32xf32>
    %599 = vector.extract_strided_slice %592 {offsets = [0, 32], sizes = [8, 32], strides = [1, 1]} : vector<8x128xf32> to vector<8x32xf32>
    %600 = arith.negf %599 : vector<8x32xf32>
    %601 = math.exp %600 : vector<8x32xf32>
    %cst_148 = arith.constant 1.000000e+00 : f32
    %602 = vector.broadcast %cst_148 : f32 to vector<8x32xf32>
    %603 = arith.addf %602, %601 : vector<8x32xf32>
    %604 = arith.divf %602, %603 : vector<8x32xf32>
    %605 = vector.extract_strided_slice %592 {offsets = [0, 64], sizes = [8, 32], strides = [1, 1]} : vector<8x128xf32> to vector<8x32xf32>
    %606 = math.tanh %605 : vector<8x32xf32>
    %607 = vector.extract_strided_slice %592 {offsets = [0, 96], sizes = [8, 32], strides = [1, 1]} : vector<8x128xf32> to vector<8x32xf32>
    %608 = arith.negf %607 : vector<8x32xf32>
    %609 = math.exp %608 : vector<8x32xf32>
    %cst_149 = arith.constant 1.000000e+00 : f32
    %610 = vector.broadcast %cst_149 : f32 to vector<8x32xf32>
    %611 = arith.addf %610, %609 : vector<8x32xf32>
    %612 = arith.divf %610, %611 : vector<8x32xf32>
    %613 = arith.mulf %604, %554 : vector<8x32xf32>
    %614 = arith.mulf %598, %606 : vector<8x32xf32>
    %615 = arith.addf %613, %614 : vector<8x32xf32>
    %616 = math.tanh %615 : vector<8x32xf32>
    %617 = arith.mulf %612, %616 : vector<8x32xf32>
    %c8_i32_150 = arith.constant 8 : i32
    %c8_i32_151 = arith.constant 8 : i32
    %618 = arith.muli %c8_i32_150, %c8_i32_151 : i32
    %619 = tpu.assume_multiple %618, 8 : i32
    %620 = arith.index_cast %619 : i32 to index
    %c0_152 = arith.constant 0 : index
    %621 = vector.load %arg14[%620, %c0_152] : memref<240x128xf32, #tpu.memory_space<vmem>>, vector<8x128xf32>
    %cst_153 = arith.constant dense<0.000000e+00> : vector<8x128xf32>
    %622 = tpu.matmul %587, %30, %cst_153 {dimension_numbers = #tpu.dot_dimension_numbers<[1], [0], [0], [1], [0, 0, 1, 1], [], []>} : vector<8x32xf32>, vector<32x128xf32>, vector<8x128xf32> -> vector<8x128xf32>
    %623 = arith.addf %621, %622 : vector<8x128xf32>
    %624 = vector.extract_strided_slice %623 {offsets = [0, 0], sizes = [8, 32], strides = [1, 1]} : vector<8x128xf32> to vector<8x32xf32>
    %625 = arith.negf %624 : vector<8x32xf32>
    %626 = math.exp %625 : vector<8x32xf32>
    %cst_154 = arith.constant 1.000000e+00 : f32
    %627 = vector.broadcast %cst_154 : f32 to vector<8x32xf32>
    %628 = arith.addf %627, %626 : vector<8x32xf32>
    %629 = arith.divf %627, %628 : vector<8x32xf32>
    %630 = vector.extract_strided_slice %623 {offsets = [0, 32], sizes = [8, 32], strides = [1, 1]} : vector<8x128xf32> to vector<8x32xf32>
    %631 = arith.negf %630 : vector<8x32xf32>
    %632 = math.exp %631 : vector<8x32xf32>
    %cst_155 = arith.constant 1.000000e+00 : f32
    %633 = vector.broadcast %cst_155 : f32 to vector<8x32xf32>
    %634 = arith.addf %633, %632 : vector<8x32xf32>
    %635 = arith.divf %633, %634 : vector<8x32xf32>
    %636 = vector.extract_strided_slice %623 {offsets = [0, 64], sizes = [8, 32], strides = [1, 1]} : vector<8x128xf32> to vector<8x32xf32>
    %637 = math.tanh %636 : vector<8x32xf32>
    %638 = vector.extract_strided_slice %623 {offsets = [0, 96], sizes = [8, 32], strides = [1, 1]} : vector<8x128xf32> to vector<8x32xf32>
    %639 = arith.negf %638 : vector<8x32xf32>
    %640 = math.exp %639 : vector<8x32xf32>
    %cst_156 = arith.constant 1.000000e+00 : f32
    %641 = vector.broadcast %cst_156 : f32 to vector<8x32xf32>
    %642 = arith.addf %641, %640 : vector<8x32xf32>
    %643 = arith.divf %641, %642 : vector<8x32xf32>
    %644 = arith.mulf %635, %585 : vector<8x32xf32>
    %645 = arith.mulf %629, %637 : vector<8x32xf32>
    %646 = arith.addf %644, %645 : vector<8x32xf32>
    %647 = math.tanh %646 : vector<8x32xf32>
    %648 = arith.mulf %643, %647 : vector<8x32xf32>
    %cst_157 = arith.constant dense<0.000000e+00> : vector<8x128xf32>
    %649 = tpu.matmul %648, %29, %cst_157 {dimension_numbers = #tpu.dot_dimension_numbers<[1], [0], [0], [1], [0, 0, 1, 1], [], []>} : vector<8x32xf32>, vector<32x128xf32>, vector<8x128xf32> -> vector<8x128xf32>
    %cst_158 = arith.constant dense<0.000000e+00> : vector<8x128xf32>
    %650 = tpu.matmul %617, %31, %cst_158 {dimension_numbers = #tpu.dot_dimension_numbers<[1], [0], [0], [1], [0, 0, 1, 1], [], []>} : vector<8x32xf32>, vector<32x128xf32>, vector<8x128xf32> -> vector<8x128xf32>
    %651 = arith.addf %649, %650 : vector<8x128xf32>
    %652 = vector.broadcast %33 : vector<1x128xf32> to vector<8x128xf32>
    %653 = arith.addf %651, %652 : vector<8x128xf32>
    %654 = vector.extract_strided_slice %653 {offsets = [0, 0], sizes = [8, 32], strides = [1, 1]} : vector<8x128xf32> to vector<8x32xf32>
    %655 = arith.negf %654 : vector<8x32xf32>
    %656 = math.exp %655 : vector<8x32xf32>
    %cst_159 = arith.constant 1.000000e+00 : f32
    %657 = vector.broadcast %cst_159 : f32 to vector<8x32xf32>
    %658 = arith.addf %657, %656 : vector<8x32xf32>
    %659 = arith.divf %657, %658 : vector<8x32xf32>
    %660 = vector.extract_strided_slice %653 {offsets = [0, 32], sizes = [8, 32], strides = [1, 1]} : vector<8x128xf32> to vector<8x32xf32>
    %661 = arith.negf %660 : vector<8x32xf32>
    %662 = math.exp %661 : vector<8x32xf32>
    %cst_160 = arith.constant 1.000000e+00 : f32
    %663 = vector.broadcast %cst_160 : f32 to vector<8x32xf32>
    %664 = arith.addf %663, %662 : vector<8x32xf32>
    %665 = arith.divf %663, %664 : vector<8x32xf32>
    %666 = vector.extract_strided_slice %653 {offsets = [0, 64], sizes = [8, 32], strides = [1, 1]} : vector<8x128xf32> to vector<8x32xf32>
    %667 = math.tanh %666 : vector<8x32xf32>
    %668 = vector.extract_strided_slice %653 {offsets = [0, 96], sizes = [8, 32], strides = [1, 1]} : vector<8x128xf32> to vector<8x32xf32>
    %669 = arith.negf %668 : vector<8x32xf32>
    %670 = math.exp %669 : vector<8x32xf32>
    %cst_161 = arith.constant 1.000000e+00 : f32
    %671 = vector.broadcast %cst_161 : f32 to vector<8x32xf32>
    %672 = arith.addf %671, %670 : vector<8x32xf32>
    %673 = arith.divf %671, %672 : vector<8x32xf32>
    %674 = arith.mulf %665, %615 : vector<8x32xf32>
    %675 = arith.mulf %659, %667 : vector<8x32xf32>
    %676 = arith.addf %674, %675 : vector<8x32xf32>
    %677 = math.tanh %676 : vector<8x32xf32>
    %678 = arith.mulf %673, %677 : vector<8x32xf32>
    %c9_i32 = arith.constant 9 : i32
    %c8_i32_162 = arith.constant 8 : i32
    %679 = arith.muli %c9_i32, %c8_i32_162 : i32
    %680 = tpu.assume_multiple %679, 8 : i32
    %681 = arith.index_cast %680 : i32 to index
    %c0_163 = arith.constant 0 : index
    %682 = vector.load %arg14[%681, %c0_163] : memref<240x128xf32, #tpu.memory_space<vmem>>, vector<8x128xf32>
    %cst_164 = arith.constant dense<0.000000e+00> : vector<8x128xf32>
    %683 = tpu.matmul %648, %30, %cst_164 {dimension_numbers = #tpu.dot_dimension_numbers<[1], [0], [0], [1], [0, 0, 1, 1], [], []>} : vector<8x32xf32>, vector<32x128xf32>, vector<8x128xf32> -> vector<8x128xf32>
    %684 = arith.addf %682, %683 : vector<8x128xf32>
    %685 = vector.extract_strided_slice %684 {offsets = [0, 0], sizes = [8, 32], strides = [1, 1]} : vector<8x128xf32> to vector<8x32xf32>
    %686 = arith.negf %685 : vector<8x32xf32>
    %687 = math.exp %686 : vector<8x32xf32>
    %cst_165 = arith.constant 1.000000e+00 : f32
    %688 = vector.broadcast %cst_165 : f32 to vector<8x32xf32>
    %689 = arith.addf %688, %687 : vector<8x32xf32>
    %690 = arith.divf %688, %689 : vector<8x32xf32>
    %691 = vector.extract_strided_slice %684 {offsets = [0, 32], sizes = [8, 32], strides = [1, 1]} : vector<8x128xf32> to vector<8x32xf32>
    %692 = arith.negf %691 : vector<8x32xf32>
    %693 = math.exp %692 : vector<8x32xf32>
    %cst_166 = arith.constant 1.000000e+00 : f32
    %694 = vector.broadcast %cst_166 : f32 to vector<8x32xf32>
    %695 = arith.addf %694, %693 : vector<8x32xf32>
    %696 = arith.divf %694, %695 : vector<8x32xf32>
    %697 = vector.extract_strided_slice %684 {offsets = [0, 64], sizes = [8, 32], strides = [1, 1]} : vector<8x128xf32> to vector<8x32xf32>
    %698 = math.tanh %697 : vector<8x32xf32>
    %699 = vector.extract_strided_slice %684 {offsets = [0, 96], sizes = [8, 32], strides = [1, 1]} : vector<8x128xf32> to vector<8x32xf32>
    %700 = arith.negf %699 : vector<8x32xf32>
    %701 = math.exp %700 : vector<8x32xf32>
    %cst_167 = arith.constant 1.000000e+00 : f32
    %702 = vector.broadcast %cst_167 : f32 to vector<8x32xf32>
    %703 = arith.addf %702, %701 : vector<8x32xf32>
    %704 = arith.divf %702, %703 : vector<8x32xf32>
    %705 = arith.mulf %696, %646 : vector<8x32xf32>
    %706 = arith.mulf %690, %698 : vector<8x32xf32>
    %707 = arith.addf %705, %706 : vector<8x32xf32>
    %708 = math.tanh %707 : vector<8x32xf32>
    %709 = arith.mulf %704, %708 : vector<8x32xf32>
    %cst_168 = arith.constant dense<0.000000e+00> : vector<8x128xf32>
    %710 = tpu.matmul %709, %29, %cst_168 {dimension_numbers = #tpu.dot_dimension_numbers<[1], [0], [0], [1], [0, 0, 1, 1], [], []>} : vector<8x32xf32>, vector<32x128xf32>, vector<8x128xf32> -> vector<8x128xf32>
    %cst_169 = arith.constant dense<0.000000e+00> : vector<8x128xf32>
    %711 = tpu.matmul %678, %31, %cst_169 {dimension_numbers = #tpu.dot_dimension_numbers<[1], [0], [0], [1], [0, 0, 1, 1], [], []>} : vector<8x32xf32>, vector<32x128xf32>, vector<8x128xf32> -> vector<8x128xf32>
    %712 = arith.addf %710, %711 : vector<8x128xf32>
    %713 = vector.broadcast %33 : vector<1x128xf32> to vector<8x128xf32>
    %714 = arith.addf %712, %713 : vector<8x128xf32>
    %715 = vector.extract_strided_slice %714 {offsets = [0, 0], sizes = [8, 32], strides = [1, 1]} : vector<8x128xf32> to vector<8x32xf32>
    %716 = arith.negf %715 : vector<8x32xf32>
    %717 = math.exp %716 : vector<8x32xf32>
    %cst_170 = arith.constant 1.000000e+00 : f32
    %718 = vector.broadcast %cst_170 : f32 to vector<8x32xf32>
    %719 = arith.addf %718, %717 : vector<8x32xf32>
    %720 = arith.divf %718, %719 : vector<8x32xf32>
    %721 = vector.extract_strided_slice %714 {offsets = [0, 32], sizes = [8, 32], strides = [1, 1]} : vector<8x128xf32> to vector<8x32xf32>
    %722 = arith.negf %721 : vector<8x32xf32>
    %723 = math.exp %722 : vector<8x32xf32>
    %cst_171 = arith.constant 1.000000e+00 : f32
    %724 = vector.broadcast %cst_171 : f32 to vector<8x32xf32>
    %725 = arith.addf %724, %723 : vector<8x32xf32>
    %726 = arith.divf %724, %725 : vector<8x32xf32>
    %727 = vector.extract_strided_slice %714 {offsets = [0, 64], sizes = [8, 32], strides = [1, 1]} : vector<8x128xf32> to vector<8x32xf32>
    %728 = math.tanh %727 : vector<8x32xf32>
    %729 = vector.extract_strided_slice %714 {offsets = [0, 96], sizes = [8, 32], strides = [1, 1]} : vector<8x128xf32> to vector<8x32xf32>
    %730 = arith.negf %729 : vector<8x32xf32>
    %731 = math.exp %730 : vector<8x32xf32>
    %cst_172 = arith.constant 1.000000e+00 : f32
    %732 = vector.broadcast %cst_172 : f32 to vector<8x32xf32>
    %733 = arith.addf %732, %731 : vector<8x32xf32>
    %734 = arith.divf %732, %733 : vector<8x32xf32>
    %735 = arith.mulf %726, %676 : vector<8x32xf32>
    %736 = arith.mulf %720, %728 : vector<8x32xf32>
    %737 = arith.addf %735, %736 : vector<8x32xf32>
    %738 = math.tanh %737 : vector<8x32xf32>
    %739 = arith.mulf %734, %738 : vector<8x32xf32>
    %c10_i32 = arith.constant 10 : i32
    %c8_i32_173 = arith.constant 8 : i32
    %740 = arith.muli %c10_i32, %c8_i32_173 : i32
    %741 = tpu.assume_multiple %740, 8 : i32
    %742 = arith.index_cast %741 : i32 to index
    %c0_174 = arith.constant 0 : index
    %743 = vector.load %arg14[%742, %c0_174] : memref<240x128xf32, #tpu.memory_space<vmem>>, vector<8x128xf32>
    %cst_175 = arith.constant dense<0.000000e+00> : vector<8x128xf32>
    %744 = tpu.matmul %709, %30, %cst_175 {dimension_numbers = #tpu.dot_dimension_numbers<[1], [0], [0], [1], [0, 0, 1, 1], [], []>} : vector<8x32xf32>, vector<32x128xf32>, vector<8x128xf32> -> vector<8x128xf32>
    %745 = arith.addf %743, %744 : vector<8x128xf32>
    %746 = vector.extract_strided_slice %745 {offsets = [0, 0], sizes = [8, 32], strides = [1, 1]} : vector<8x128xf32> to vector<8x32xf32>
    %747 = arith.negf %746 : vector<8x32xf32>
    %748 = math.exp %747 : vector<8x32xf32>
    %cst_176 = arith.constant 1.000000e+00 : f32
    %749 = vector.broadcast %cst_176 : f32 to vector<8x32xf32>
    %750 = arith.addf %749, %748 : vector<8x32xf32>
    %751 = arith.divf %749, %750 : vector<8x32xf32>
    %752 = vector.extract_strided_slice %745 {offsets = [0, 32], sizes = [8, 32], strides = [1, 1]} : vector<8x128xf32> to vector<8x32xf32>
    %753 = arith.negf %752 : vector<8x32xf32>
    %754 = math.exp %753 : vector<8x32xf32>
    %cst_177 = arith.constant 1.000000e+00 : f32
    %755 = vector.broadcast %cst_177 : f32 to vector<8x32xf32>
    %756 = arith.addf %755, %754 : vector<8x32xf32>
    %757 = arith.divf %755, %756 : vector<8x32xf32>
    %758 = vector.extract_strided_slice %745 {offsets = [0, 64], sizes = [8, 32], strides = [1, 1]} : vector<8x128xf32> to vector<8x32xf32>
    %759 = math.tanh %758 : vector<8x32xf32>
    %760 = vector.extract_strided_slice %745 {offsets = [0, 96], sizes = [8, 32], strides = [1, 1]} : vector<8x128xf32> to vector<8x32xf32>
    %761 = arith.negf %760 : vector<8x32xf32>
    %762 = math.exp %761 : vector<8x32xf32>
    %cst_178 = arith.constant 1.000000e+00 : f32
    %763 = vector.broadcast %cst_178 : f32 to vector<8x32xf32>
    %764 = arith.addf %763, %762 : vector<8x32xf32>
    %765 = arith.divf %763, %764 : vector<8x32xf32>
    %766 = arith.mulf %757, %707 : vector<8x32xf32>
    %767 = arith.mulf %751, %759 : vector<8x32xf32>
    %768 = arith.addf %766, %767 : vector<8x32xf32>
    %769 = math.tanh %768 : vector<8x32xf32>
    %770 = arith.mulf %765, %769 : vector<8x32xf32>
    %cst_179 = arith.constant dense<0.000000e+00> : vector<8x128xf32>
    %771 = tpu.matmul %770, %29, %cst_179 {dimension_numbers = #tpu.dot_dimension_numbers<[1], [0], [0], [1], [0, 0, 1, 1], [], []>} : vector<8x32xf32>, vector<32x128xf32>, vector<8x128xf32> -> vector<8x128xf32>
    %cst_180 = arith.constant dense<0.000000e+00> : vector<8x128xf32>
    %772 = tpu.matmul %739, %31, %cst_180 {dimension_numbers = #tpu.dot_dimension_numbers<[1], [0], [0], [1], [0, 0, 1, 1], [], []>} : vector<8x32xf32>, vector<32x128xf32>, vector<8x128xf32> -> vector<8x128xf32>
    %773 = arith.addf %771, %772 : vector<8x128xf32>
    %774 = vector.broadcast %33 : vector<1x128xf32> to vector<8x128xf32>
    %775 = arith.addf %773, %774 : vector<8x128xf32>
    %776 = vector.extract_strided_slice %775 {offsets = [0, 0], sizes = [8, 32], strides = [1, 1]} : vector<8x128xf32> to vector<8x32xf32>
    %777 = arith.negf %776 : vector<8x32xf32>
    %778 = math.exp %777 : vector<8x32xf32>
    %cst_181 = arith.constant 1.000000e+00 : f32
    %779 = vector.broadcast %cst_181 : f32 to vector<8x32xf32>
    %780 = arith.addf %779, %778 : vector<8x32xf32>
    %781 = arith.divf %779, %780 : vector<8x32xf32>
    %782 = vector.extract_strided_slice %775 {offsets = [0, 32], sizes = [8, 32], strides = [1, 1]} : vector<8x128xf32> to vector<8x32xf32>
    %783 = arith.negf %782 : vector<8x32xf32>
    %784 = math.exp %783 : vector<8x32xf32>
    %cst_182 = arith.constant 1.000000e+00 : f32
    %785 = vector.broadcast %cst_182 : f32 to vector<8x32xf32>
    %786 = arith.addf %785, %784 : vector<8x32xf32>
    %787 = arith.divf %785, %786 : vector<8x32xf32>
    %788 = vector.extract_strided_slice %775 {offsets = [0, 64], sizes = [8, 32], strides = [1, 1]} : vector<8x128xf32> to vector<8x32xf32>
    %789 = math.tanh %788 : vector<8x32xf32>
    %790 = vector.extract_strided_slice %775 {offsets = [0, 96], sizes = [8, 32], strides = [1, 1]} : vector<8x128xf32> to vector<8x32xf32>
    %791 = arith.negf %790 : vector<8x32xf32>
    %792 = math.exp %791 : vector<8x32xf32>
    %cst_183 = arith.constant 1.000000e+00 : f32
    %793 = vector.broadcast %cst_183 : f32 to vector<8x32xf32>
    %794 = arith.addf %793, %792 : vector<8x32xf32>
    %795 = arith.divf %793, %794 : vector<8x32xf32>
    %796 = arith.mulf %787, %737 : vector<8x32xf32>
    %797 = arith.mulf %781, %789 : vector<8x32xf32>
    %798 = arith.addf %796, %797 : vector<8x32xf32>
    %799 = math.tanh %798 : vector<8x32xf32>
    %800 = arith.mulf %795, %799 : vector<8x32xf32>
    %c11_i32 = arith.constant 11 : i32
    %c8_i32_184 = arith.constant 8 : i32
    %801 = arith.muli %c11_i32, %c8_i32_184 : i32
    %802 = tpu.assume_multiple %801, 8 : i32
    %803 = arith.index_cast %802 : i32 to index
    %c0_185 = arith.constant 0 : index
    %804 = vector.load %arg14[%803, %c0_185] : memref<240x128xf32, #tpu.memory_space<vmem>>, vector<8x128xf32>
    %cst_186 = arith.constant dense<0.000000e+00> : vector<8x128xf32>
    %805 = tpu.matmul %770, %30, %cst_186 {dimension_numbers = #tpu.dot_dimension_numbers<[1], [0], [0], [1], [0, 0, 1, 1], [], []>} : vector<8x32xf32>, vector<32x128xf32>, vector<8x128xf32> -> vector<8x128xf32>
    %806 = arith.addf %804, %805 : vector<8x128xf32>
    %807 = vector.extract_strided_slice %806 {offsets = [0, 0], sizes = [8, 32], strides = [1, 1]} : vector<8x128xf32> to vector<8x32xf32>
    %808 = arith.negf %807 : vector<8x32xf32>
    %809 = math.exp %808 : vector<8x32xf32>
    %cst_187 = arith.constant 1.000000e+00 : f32
    %810 = vector.broadcast %cst_187 : f32 to vector<8x32xf32>
    %811 = arith.addf %810, %809 : vector<8x32xf32>
    %812 = arith.divf %810, %811 : vector<8x32xf32>
    %813 = vector.extract_strided_slice %806 {offsets = [0, 32], sizes = [8, 32], strides = [1, 1]} : vector<8x128xf32> to vector<8x32xf32>
    %814 = arith.negf %813 : vector<8x32xf32>
    %815 = math.exp %814 : vector<8x32xf32>
    %cst_188 = arith.constant 1.000000e+00 : f32
    %816 = vector.broadcast %cst_188 : f32 to vector<8x32xf32>
    %817 = arith.addf %816, %815 : vector<8x32xf32>
    %818 = arith.divf %816, %817 : vector<8x32xf32>
    %819 = vector.extract_strided_slice %806 {offsets = [0, 64], sizes = [8, 32], strides = [1, 1]} : vector<8x128xf32> to vector<8x32xf32>
    %820 = math.tanh %819 : vector<8x32xf32>
    %821 = vector.extract_strided_slice %806 {offsets = [0, 96], sizes = [8, 32], strides = [1, 1]} : vector<8x128xf32> to vector<8x32xf32>
    %822 = arith.negf %821 : vector<8x32xf32>
    %823 = math.exp %822 : vector<8x32xf32>
    %cst_189 = arith.constant 1.000000e+00 : f32
    %824 = vector.broadcast %cst_189 : f32 to vector<8x32xf32>
    %825 = arith.addf %824, %823 : vector<8x32xf32>
    %826 = arith.divf %824, %825 : vector<8x32xf32>
    %827 = arith.mulf %818, %768 : vector<8x32xf32>
    %828 = arith.mulf %812, %820 : vector<8x32xf32>
    %829 = arith.addf %827, %828 : vector<8x32xf32>
    %830 = math.tanh %829 : vector<8x32xf32>
    %831 = arith.mulf %826, %830 : vector<8x32xf32>
    %cst_190 = arith.constant dense<0.000000e+00> : vector<8x128xf32>
    %832 = tpu.matmul %831, %29, %cst_190 {dimension_numbers = #tpu.dot_dimension_numbers<[1], [0], [0], [1], [0, 0, 1, 1], [], []>} : vector<8x32xf32>, vector<32x128xf32>, vector<8x128xf32> -> vector<8x128xf32>
    %cst_191 = arith.constant dense<0.000000e+00> : vector<8x128xf32>
    %833 = tpu.matmul %800, %31, %cst_191 {dimension_numbers = #tpu.dot_dimension_numbers<[1], [0], [0], [1], [0, 0, 1, 1], [], []>} : vector<8x32xf32>, vector<32x128xf32>, vector<8x128xf32> -> vector<8x128xf32>
    %834 = arith.addf %832, %833 : vector<8x128xf32>
    %835 = vector.broadcast %33 : vector<1x128xf32> to vector<8x128xf32>
    %836 = arith.addf %834, %835 : vector<8x128xf32>
    %837 = vector.extract_strided_slice %836 {offsets = [0, 0], sizes = [8, 32], strides = [1, 1]} : vector<8x128xf32> to vector<8x32xf32>
    %838 = arith.negf %837 : vector<8x32xf32>
    %839 = math.exp %838 : vector<8x32xf32>
    %cst_192 = arith.constant 1.000000e+00 : f32
    %840 = vector.broadcast %cst_192 : f32 to vector<8x32xf32>
    %841 = arith.addf %840, %839 : vector<8x32xf32>
    %842 = arith.divf %840, %841 : vector<8x32xf32>
    %843 = vector.extract_strided_slice %836 {offsets = [0, 32], sizes = [8, 32], strides = [1, 1]} : vector<8x128xf32> to vector<8x32xf32>
    %844 = arith.negf %843 : vector<8x32xf32>
    %845 = math.exp %844 : vector<8x32xf32>
    %cst_193 = arith.constant 1.000000e+00 : f32
    %846 = vector.broadcast %cst_193 : f32 to vector<8x32xf32>
    %847 = arith.addf %846, %845 : vector<8x32xf32>
    %848 = arith.divf %846, %847 : vector<8x32xf32>
    %849 = vector.extract_strided_slice %836 {offsets = [0, 64], sizes = [8, 32], strides = [1, 1]} : vector<8x128xf32> to vector<8x32xf32>
    %850 = math.tanh %849 : vector<8x32xf32>
    %851 = vector.extract_strided_slice %836 {offsets = [0, 96], sizes = [8, 32], strides = [1, 1]} : vector<8x128xf32> to vector<8x32xf32>
    %852 = arith.negf %851 : vector<8x32xf32>
    %853 = math.exp %852 : vector<8x32xf32>
    %cst_194 = arith.constant 1.000000e+00 : f32
    %854 = vector.broadcast %cst_194 : f32 to vector<8x32xf32>
    %855 = arith.addf %854, %853 : vector<8x32xf32>
    %856 = arith.divf %854, %855 : vector<8x32xf32>
    %857 = arith.mulf %848, %798 : vector<8x32xf32>
    %858 = arith.mulf %842, %850 : vector<8x32xf32>
    %859 = arith.addf %857, %858 : vector<8x32xf32>
    %860 = math.tanh %859 : vector<8x32xf32>
    %861 = arith.mulf %856, %860 : vector<8x32xf32>
    %c12_i32 = arith.constant 12 : i32
    %c8_i32_195 = arith.constant 8 : i32
    %862 = arith.muli %c12_i32, %c8_i32_195 : i32
    %863 = tpu.assume_multiple %862, 8 : i32
    %864 = arith.index_cast %863 : i32 to index
    %c0_196 = arith.constant 0 : index
    %865 = vector.load %arg14[%864, %c0_196] : memref<240x128xf32, #tpu.memory_space<vmem>>, vector<8x128xf32>
    %cst_197 = arith.constant dense<0.000000e+00> : vector<8x128xf32>
    %866 = tpu.matmul %831, %30, %cst_197 {dimension_numbers = #tpu.dot_dimension_numbers<[1], [0], [0], [1], [0, 0, 1, 1], [], []>} : vector<8x32xf32>, vector<32x128xf32>, vector<8x128xf32> -> vector<8x128xf32>
    %867 = arith.addf %865, %866 : vector<8x128xf32>
    %868 = vector.extract_strided_slice %867 {offsets = [0, 0], sizes = [8, 32], strides = [1, 1]} : vector<8x128xf32> to vector<8x32xf32>
    %869 = arith.negf %868 : vector<8x32xf32>
    %870 = math.exp %869 : vector<8x32xf32>
    %cst_198 = arith.constant 1.000000e+00 : f32
    %871 = vector.broadcast %cst_198 : f32 to vector<8x32xf32>
    %872 = arith.addf %871, %870 : vector<8x32xf32>
    %873 = arith.divf %871, %872 : vector<8x32xf32>
    %874 = vector.extract_strided_slice %867 {offsets = [0, 32], sizes = [8, 32], strides = [1, 1]} : vector<8x128xf32> to vector<8x32xf32>
    %875 = arith.negf %874 : vector<8x32xf32>
    %876 = math.exp %875 : vector<8x32xf32>
    %cst_199 = arith.constant 1.000000e+00 : f32
    %877 = vector.broadcast %cst_199 : f32 to vector<8x32xf32>
    %878 = arith.addf %877, %876 : vector<8x32xf32>
    %879 = arith.divf %877, %878 : vector<8x32xf32>
    %880 = vector.extract_strided_slice %867 {offsets = [0, 64], sizes = [8, 32], strides = [1, 1]} : vector<8x128xf32> to vector<8x32xf32>
    %881 = math.tanh %880 : vector<8x32xf32>
    %882 = vector.extract_strided_slice %867 {offsets = [0, 96], sizes = [8, 32], strides = [1, 1]} : vector<8x128xf32> to vector<8x32xf32>
    %883 = arith.negf %882 : vector<8x32xf32>
    %884 = math.exp %883 : vector<8x32xf32>
    %cst_200 = arith.constant 1.000000e+00 : f32
    %885 = vector.broadcast %cst_200 : f32 to vector<8x32xf32>
    %886 = arith.addf %885, %884 : vector<8x32xf32>
    %887 = arith.divf %885, %886 : vector<8x32xf32>
    %888 = arith.mulf %879, %829 : vector<8x32xf32>
    %889 = arith.mulf %873, %881 : vector<8x32xf32>
    %890 = arith.addf %888, %889 : vector<8x32xf32>
    %891 = math.tanh %890 : vector<8x32xf32>
    %892 = arith.mulf %887, %891 : vector<8x32xf32>
    %cst_201 = arith.constant dense<0.000000e+00> : vector<8x128xf32>
    %893 = tpu.matmul %892, %29, %cst_201 {dimension_numbers = #tpu.dot_dimension_numbers<[1], [0], [0], [1], [0, 0, 1, 1], [], []>} : vector<8x32xf32>, vector<32x128xf32>, vector<8x128xf32> -> vector<8x128xf32>
    %cst_202 = arith.constant dense<0.000000e+00> : vector<8x128xf32>
    %894 = tpu.matmul %861, %31, %cst_202 {dimension_numbers = #tpu.dot_dimension_numbers<[1], [0], [0], [1], [0, 0, 1, 1], [], []>} : vector<8x32xf32>, vector<32x128xf32>, vector<8x128xf32> -> vector<8x128xf32>
    %895 = arith.addf %893, %894 : vector<8x128xf32>
    %896 = vector.broadcast %33 : vector<1x128xf32> to vector<8x128xf32>
    %897 = arith.addf %895, %896 : vector<8x128xf32>
    %898 = vector.extract_strided_slice %897 {offsets = [0, 0], sizes = [8, 32], strides = [1, 1]} : vector<8x128xf32> to vector<8x32xf32>
    %899 = arith.negf %898 : vector<8x32xf32>
    %900 = math.exp %899 : vector<8x32xf32>
    %cst_203 = arith.constant 1.000000e+00 : f32
    %901 = vector.broadcast %cst_203 : f32 to vector<8x32xf32>
    %902 = arith.addf %901, %900 : vector<8x32xf32>
    %903 = arith.divf %901, %902 : vector<8x32xf32>
    %904 = vector.extract_strided_slice %897 {offsets = [0, 32], sizes = [8, 32], strides = [1, 1]} : vector<8x128xf32> to vector<8x32xf32>
    %905 = arith.negf %904 : vector<8x32xf32>
    %906 = math.exp %905 : vector<8x32xf32>
    %cst_204 = arith.constant 1.000000e+00 : f32
    %907 = vector.broadcast %cst_204 : f32 to vector<8x32xf32>
    %908 = arith.addf %907, %906 : vector<8x32xf32>
    %909 = arith.divf %907, %908 : vector<8x32xf32>
    %910 = vector.extract_strided_slice %897 {offsets = [0, 64], sizes = [8, 32], strides = [1, 1]} : vector<8x128xf32> to vector<8x32xf32>
    %911 = math.tanh %910 : vector<8x32xf32>
    %912 = vector.extract_strided_slice %897 {offsets = [0, 96], sizes = [8, 32], strides = [1, 1]} : vector<8x128xf32> to vector<8x32xf32>
    %913 = arith.negf %912 : vector<8x32xf32>
    %914 = math.exp %913 : vector<8x32xf32>
    %cst_205 = arith.constant 1.000000e+00 : f32
    %915 = vector.broadcast %cst_205 : f32 to vector<8x32xf32>
    %916 = arith.addf %915, %914 : vector<8x32xf32>
    %917 = arith.divf %915, %916 : vector<8x32xf32>
    %918 = arith.mulf %909, %859 : vector<8x32xf32>
    %919 = arith.mulf %903, %911 : vector<8x32xf32>
    %920 = arith.addf %918, %919 : vector<8x32xf32>
    %921 = math.tanh %920 : vector<8x32xf32>
    %922 = arith.mulf %917, %921 : vector<8x32xf32>
    %c13_i32 = arith.constant 13 : i32
    %c8_i32_206 = arith.constant 8 : i32
    %923 = arith.muli %c13_i32, %c8_i32_206 : i32
    %924 = tpu.assume_multiple %923, 8 : i32
    %925 = arith.index_cast %924 : i32 to index
    %c0_207 = arith.constant 0 : index
    %926 = vector.load %arg14[%925, %c0_207] : memref<240x128xf32, #tpu.memory_space<vmem>>, vector<8x128xf32>
    %cst_208 = arith.constant dense<0.000000e+00> : vector<8x128xf32>
    %927 = tpu.matmul %892, %30, %cst_208 {dimension_numbers = #tpu.dot_dimension_numbers<[1], [0], [0], [1], [0, 0, 1, 1], [], []>} : vector<8x32xf32>, vector<32x128xf32>, vector<8x128xf32> -> vector<8x128xf32>
    %928 = arith.addf %926, %927 : vector<8x128xf32>
    %929 = vector.extract_strided_slice %928 {offsets = [0, 0], sizes = [8, 32], strides = [1, 1]} : vector<8x128xf32> to vector<8x32xf32>
    %930 = arith.negf %929 : vector<8x32xf32>
    %931 = math.exp %930 : vector<8x32xf32>
    %cst_209 = arith.constant 1.000000e+00 : f32
    %932 = vector.broadcast %cst_209 : f32 to vector<8x32xf32>
    %933 = arith.addf %932, %931 : vector<8x32xf32>
    %934 = arith.divf %932, %933 : vector<8x32xf32>
    %935 = vector.extract_strided_slice %928 {offsets = [0, 32], sizes = [8, 32], strides = [1, 1]} : vector<8x128xf32> to vector<8x32xf32>
    %936 = arith.negf %935 : vector<8x32xf32>
    %937 = math.exp %936 : vector<8x32xf32>
    %cst_210 = arith.constant 1.000000e+00 : f32
    %938 = vector.broadcast %cst_210 : f32 to vector<8x32xf32>
    %939 = arith.addf %938, %937 : vector<8x32xf32>
    %940 = arith.divf %938, %939 : vector<8x32xf32>
    %941 = vector.extract_strided_slice %928 {offsets = [0, 64], sizes = [8, 32], strides = [1, 1]} : vector<8x128xf32> to vector<8x32xf32>
    %942 = math.tanh %941 : vector<8x32xf32>
    %943 = vector.extract_strided_slice %928 {offsets = [0, 96], sizes = [8, 32], strides = [1, 1]} : vector<8x128xf32> to vector<8x32xf32>
    %944 = arith.negf %943 : vector<8x32xf32>
    %945 = math.exp %944 : vector<8x32xf32>
    %cst_211 = arith.constant 1.000000e+00 : f32
    %946 = vector.broadcast %cst_211 : f32 to vector<8x32xf32>
    %947 = arith.addf %946, %945 : vector<8x32xf32>
    %948 = arith.divf %946, %947 : vector<8x32xf32>
    %949 = arith.mulf %940, %890 : vector<8x32xf32>
    %950 = arith.mulf %934, %942 : vector<8x32xf32>
    %951 = arith.addf %949, %950 : vector<8x32xf32>
    %952 = math.tanh %951 : vector<8x32xf32>
    %953 = arith.mulf %948, %952 : vector<8x32xf32>
    %cst_212 = arith.constant dense<0.000000e+00> : vector<8x128xf32>
    %954 = tpu.matmul %953, %29, %cst_212 {dimension_numbers = #tpu.dot_dimension_numbers<[1], [0], [0], [1], [0, 0, 1, 1], [], []>} : vector<8x32xf32>, vector<32x128xf32>, vector<8x128xf32> -> vector<8x128xf32>
    %cst_213 = arith.constant dense<0.000000e+00> : vector<8x128xf32>
    %955 = tpu.matmul %922, %31, %cst_213 {dimension_numbers = #tpu.dot_dimension_numbers<[1], [0], [0], [1], [0, 0, 1, 1], [], []>} : vector<8x32xf32>, vector<32x128xf32>, vector<8x128xf32> -> vector<8x128xf32>
    %956 = arith.addf %954, %955 : vector<8x128xf32>
    %957 = vector.broadcast %33 : vector<1x128xf32> to vector<8x128xf32>
    %958 = arith.addf %956, %957 : vector<8x128xf32>
    %959 = vector.extract_strided_slice %958 {offsets = [0, 0], sizes = [8, 32], strides = [1, 1]} : vector<8x128xf32> to vector<8x32xf32>
    %960 = arith.negf %959 : vector<8x32xf32>
    %961 = math.exp %960 : vector<8x32xf32>
    %cst_214 = arith.constant 1.000000e+00 : f32
    %962 = vector.broadcast %cst_214 : f32 to vector<8x32xf32>
    %963 = arith.addf %962, %961 : vector<8x32xf32>
    %964 = arith.divf %962, %963 : vector<8x32xf32>
    %965 = vector.extract_strided_slice %958 {offsets = [0, 32], sizes = [8, 32], strides = [1, 1]} : vector<8x128xf32> to vector<8x32xf32>
    %966 = arith.negf %965 : vector<8x32xf32>
    %967 = math.exp %966 : vector<8x32xf32>
    %cst_215 = arith.constant 1.000000e+00 : f32
    %968 = vector.broadcast %cst_215 : f32 to vector<8x32xf32>
    %969 = arith.addf %968, %967 : vector<8x32xf32>
    %970 = arith.divf %968, %969 : vector<8x32xf32>
    %971 = vector.extract_strided_slice %958 {offsets = [0, 64], sizes = [8, 32], strides = [1, 1]} : vector<8x128xf32> to vector<8x32xf32>
    %972 = math.tanh %971 : vector<8x32xf32>
    %973 = vector.extract_strided_slice %958 {offsets = [0, 96], sizes = [8, 32], strides = [1, 1]} : vector<8x128xf32> to vector<8x32xf32>
    %974 = arith.negf %973 : vector<8x32xf32>
    %975 = math.exp %974 : vector<8x32xf32>
    %cst_216 = arith.constant 1.000000e+00 : f32
    %976 = vector.broadcast %cst_216 : f32 to vector<8x32xf32>
    %977 = arith.addf %976, %975 : vector<8x32xf32>
    %978 = arith.divf %976, %977 : vector<8x32xf32>
    %979 = arith.mulf %970, %920 : vector<8x32xf32>
    %980 = arith.mulf %964, %972 : vector<8x32xf32>
    %981 = arith.addf %979, %980 : vector<8x32xf32>
    %982 = math.tanh %981 : vector<8x32xf32>
    %983 = arith.mulf %978, %982 : vector<8x32xf32>
    %c14_i32 = arith.constant 14 : i32
    %c8_i32_217 = arith.constant 8 : i32
    %984 = arith.muli %c14_i32, %c8_i32_217 : i32
    %985 = tpu.assume_multiple %984, 8 : i32
    %986 = arith.index_cast %985 : i32 to index
    %c0_218 = arith.constant 0 : index
    %987 = vector.load %arg14[%986, %c0_218] : memref<240x128xf32, #tpu.memory_space<vmem>>, vector<8x128xf32>
    %cst_219 = arith.constant dense<0.000000e+00> : vector<8x128xf32>
    %988 = tpu.matmul %953, %30, %cst_219 {dimension_numbers = #tpu.dot_dimension_numbers<[1], [0], [0], [1], [0, 0, 1, 1], [], []>} : vector<8x32xf32>, vector<32x128xf32>, vector<8x128xf32> -> vector<8x128xf32>
    %989 = arith.addf %987, %988 : vector<8x128xf32>
    %990 = vector.extract_strided_slice %989 {offsets = [0, 0], sizes = [8, 32], strides = [1, 1]} : vector<8x128xf32> to vector<8x32xf32>
    %991 = arith.negf %990 : vector<8x32xf32>
    %992 = math.exp %991 : vector<8x32xf32>
    %cst_220 = arith.constant 1.000000e+00 : f32
    %993 = vector.broadcast %cst_220 : f32 to vector<8x32xf32>
    %994 = arith.addf %993, %992 : vector<8x32xf32>
    %995 = arith.divf %993, %994 : vector<8x32xf32>
    %996 = vector.extract_strided_slice %989 {offsets = [0, 32], sizes = [8, 32], strides = [1, 1]} : vector<8x128xf32> to vector<8x32xf32>
    %997 = arith.negf %996 : vector<8x32xf32>
    %998 = math.exp %997 : vector<8x32xf32>
    %cst_221 = arith.constant 1.000000e+00 : f32
    %999 = vector.broadcast %cst_221 : f32 to vector<8x32xf32>
    %1000 = arith.addf %999, %998 : vector<8x32xf32>
    %1001 = arith.divf %999, %1000 : vector<8x32xf32>
    %1002 = vector.extract_strided_slice %989 {offsets = [0, 64], sizes = [8, 32], strides = [1, 1]} : vector<8x128xf32> to vector<8x32xf32>
    %1003 = math.tanh %1002 : vector<8x32xf32>
    %1004 = vector.extract_strided_slice %989 {offsets = [0, 96], sizes = [8, 32], strides = [1, 1]} : vector<8x128xf32> to vector<8x32xf32>
    %1005 = arith.negf %1004 : vector<8x32xf32>
    %1006 = math.exp %1005 : vector<8x32xf32>
    %cst_222 = arith.constant 1.000000e+00 : f32
    %1007 = vector.broadcast %cst_222 : f32 to vector<8x32xf32>
    %1008 = arith.addf %1007, %1006 : vector<8x32xf32>
    %1009 = arith.divf %1007, %1008 : vector<8x32xf32>
    %1010 = arith.mulf %1001, %951 : vector<8x32xf32>
    %1011 = arith.mulf %995, %1003 : vector<8x32xf32>
    %1012 = arith.addf %1010, %1011 : vector<8x32xf32>
    %1013 = math.tanh %1012 : vector<8x32xf32>
    %1014 = arith.mulf %1009, %1013 : vector<8x32xf32>
    %cst_223 = arith.constant dense<0.000000e+00> : vector<8x128xf32>
    %1015 = tpu.matmul %1014, %29, %cst_223 {dimension_numbers = #tpu.dot_dimension_numbers<[1], [0], [0], [1], [0, 0, 1, 1], [], []>} : vector<8x32xf32>, vector<32x128xf32>, vector<8x128xf32> -> vector<8x128xf32>
    %cst_224 = arith.constant dense<0.000000e+00> : vector<8x128xf32>
    %1016 = tpu.matmul %983, %31, %cst_224 {dimension_numbers = #tpu.dot_dimension_numbers<[1], [0], [0], [1], [0, 0, 1, 1], [], []>} : vector<8x32xf32>, vector<32x128xf32>, vector<8x128xf32> -> vector<8x128xf32>
    %1017 = arith.addf %1015, %1016 : vector<8x128xf32>
    %1018 = vector.broadcast %33 : vector<1x128xf32> to vector<8x128xf32>
    %1019 = arith.addf %1017, %1018 : vector<8x128xf32>
    %1020 = vector.extract_strided_slice %1019 {offsets = [0, 0], sizes = [8, 32], strides = [1, 1]} : vector<8x128xf32> to vector<8x32xf32>
    %1021 = arith.negf %1020 : vector<8x32xf32>
    %1022 = math.exp %1021 : vector<8x32xf32>
    %cst_225 = arith.constant 1.000000e+00 : f32
    %1023 = vector.broadcast %cst_225 : f32 to vector<8x32xf32>
    %1024 = arith.addf %1023, %1022 : vector<8x32xf32>
    %1025 = arith.divf %1023, %1024 : vector<8x32xf32>
    %1026 = vector.extract_strided_slice %1019 {offsets = [0, 32], sizes = [8, 32], strides = [1, 1]} : vector<8x128xf32> to vector<8x32xf32>
    %1027 = arith.negf %1026 : vector<8x32xf32>
    %1028 = math.exp %1027 : vector<8x32xf32>
    %cst_226 = arith.constant 1.000000e+00 : f32
    %1029 = vector.broadcast %cst_226 : f32 to vector<8x32xf32>
    %1030 = arith.addf %1029, %1028 : vector<8x32xf32>
    %1031 = arith.divf %1029, %1030 : vector<8x32xf32>
    %1032 = vector.extract_strided_slice %1019 {offsets = [0, 64], sizes = [8, 32], strides = [1, 1]} : vector<8x128xf32> to vector<8x32xf32>
    %1033 = math.tanh %1032 : vector<8x32xf32>
    %1034 = vector.extract_strided_slice %1019 {offsets = [0, 96], sizes = [8, 32], strides = [1, 1]} : vector<8x128xf32> to vector<8x32xf32>
    %1035 = arith.negf %1034 : vector<8x32xf32>
    %1036 = math.exp %1035 : vector<8x32xf32>
    %cst_227 = arith.constant 1.000000e+00 : f32
    %1037 = vector.broadcast %cst_227 : f32 to vector<8x32xf32>
    %1038 = arith.addf %1037, %1036 : vector<8x32xf32>
    %1039 = arith.divf %1037, %1038 : vector<8x32xf32>
    %1040 = arith.mulf %1031, %981 : vector<8x32xf32>
    %1041 = arith.mulf %1025, %1033 : vector<8x32xf32>
    %1042 = arith.addf %1040, %1041 : vector<8x32xf32>
    %1043 = math.tanh %1042 : vector<8x32xf32>
    %1044 = arith.mulf %1039, %1043 : vector<8x32xf32>
    %c15_i32 = arith.constant 15 : i32
    %c8_i32_228 = arith.constant 8 : i32
    %1045 = arith.muli %c15_i32, %c8_i32_228 : i32
    %1046 = tpu.assume_multiple %1045, 8 : i32
    %1047 = arith.index_cast %1046 : i32 to index
    %c0_229 = arith.constant 0 : index
    %1048 = vector.load %arg14[%1047, %c0_229] : memref<240x128xf32, #tpu.memory_space<vmem>>, vector<8x128xf32>
    %cst_230 = arith.constant dense<0.000000e+00> : vector<8x128xf32>
    %1049 = tpu.matmul %1014, %30, %cst_230 {dimension_numbers = #tpu.dot_dimension_numbers<[1], [0], [0], [1], [0, 0, 1, 1], [], []>} : vector<8x32xf32>, vector<32x128xf32>, vector<8x128xf32> -> vector<8x128xf32>
    %1050 = arith.addf %1048, %1049 : vector<8x128xf32>
    %1051 = vector.extract_strided_slice %1050 {offsets = [0, 0], sizes = [8, 32], strides = [1, 1]} : vector<8x128xf32> to vector<8x32xf32>
    %1052 = arith.negf %1051 : vector<8x32xf32>
    %1053 = math.exp %1052 : vector<8x32xf32>
    %cst_231 = arith.constant 1.000000e+00 : f32
    %1054 = vector.broadcast %cst_231 : f32 to vector<8x32xf32>
    %1055 = arith.addf %1054, %1053 : vector<8x32xf32>
    %1056 = arith.divf %1054, %1055 : vector<8x32xf32>
    %1057 = vector.extract_strided_slice %1050 {offsets = [0, 32], sizes = [8, 32], strides = [1, 1]} : vector<8x128xf32> to vector<8x32xf32>
    %1058 = arith.negf %1057 : vector<8x32xf32>
    %1059 = math.exp %1058 : vector<8x32xf32>
    %cst_232 = arith.constant 1.000000e+00 : f32
    %1060 = vector.broadcast %cst_232 : f32 to vector<8x32xf32>
    %1061 = arith.addf %1060, %1059 : vector<8x32xf32>
    %1062 = arith.divf %1060, %1061 : vector<8x32xf32>
    %1063 = vector.extract_strided_slice %1050 {offsets = [0, 64], sizes = [8, 32], strides = [1, 1]} : vector<8x128xf32> to vector<8x32xf32>
    %1064 = math.tanh %1063 : vector<8x32xf32>
    %1065 = vector.extract_strided_slice %1050 {offsets = [0, 96], sizes = [8, 32], strides = [1, 1]} : vector<8x128xf32> to vector<8x32xf32>
    %1066 = arith.negf %1065 : vector<8x32xf32>
    %1067 = math.exp %1066 : vector<8x32xf32>
    %cst_233 = arith.constant 1.000000e+00 : f32
    %1068 = vector.broadcast %cst_233 : f32 to vector<8x32xf32>
    %1069 = arith.addf %1068, %1067 : vector<8x32xf32>
    %1070 = arith.divf %1068, %1069 : vector<8x32xf32>
    %1071 = arith.mulf %1062, %1012 : vector<8x32xf32>
    %1072 = arith.mulf %1056, %1064 : vector<8x32xf32>
    %1073 = arith.addf %1071, %1072 : vector<8x32xf32>
    %1074 = math.tanh %1073 : vector<8x32xf32>
    %1075 = arith.mulf %1070, %1074 : vector<8x32xf32>
    %cst_234 = arith.constant dense<0.000000e+00> : vector<8x128xf32>
    %1076 = tpu.matmul %1075, %29, %cst_234 {dimension_numbers = #tpu.dot_dimension_numbers<[1], [0], [0], [1], [0, 0, 1, 1], [], []>} : vector<8x32xf32>, vector<32x128xf32>, vector<8x128xf32> -> vector<8x128xf32>
    %cst_235 = arith.constant dense<0.000000e+00> : vector<8x128xf32>
    %1077 = tpu.matmul %1044, %31, %cst_235 {dimension_numbers = #tpu.dot_dimension_numbers<[1], [0], [0], [1], [0, 0, 1, 1], [], []>} : vector<8x32xf32>, vector<32x128xf32>, vector<8x128xf32> -> vector<8x128xf32>
    %1078 = arith.addf %1076, %1077 : vector<8x128xf32>
    %1079 = vector.broadcast %33 : vector<1x128xf32> to vector<8x128xf32>
    %1080 = arith.addf %1078, %1079 : vector<8x128xf32>
    %1081 = vector.extract_strided_slice %1080 {offsets = [0, 0], sizes = [8, 32], strides = [1, 1]} : vector<8x128xf32> to vector<8x32xf32>
    %1082 = arith.negf %1081 : vector<8x32xf32>
    %1083 = math.exp %1082 : vector<8x32xf32>
    %cst_236 = arith.constant 1.000000e+00 : f32
    %1084 = vector.broadcast %cst_236 : f32 to vector<8x32xf32>
    %1085 = arith.addf %1084, %1083 : vector<8x32xf32>
    %1086 = arith.divf %1084, %1085 : vector<8x32xf32>
    %1087 = vector.extract_strided_slice %1080 {offsets = [0, 32], sizes = [8, 32], strides = [1, 1]} : vector<8x128xf32> to vector<8x32xf32>
    %1088 = arith.negf %1087 : vector<8x32xf32>
    %1089 = math.exp %1088 : vector<8x32xf32>
    %cst_237 = arith.constant 1.000000e+00 : f32
    %1090 = vector.broadcast %cst_237 : f32 to vector<8x32xf32>
    %1091 = arith.addf %1090, %1089 : vector<8x32xf32>
    %1092 = arith.divf %1090, %1091 : vector<8x32xf32>
    %1093 = vector.extract_strided_slice %1080 {offsets = [0, 64], sizes = [8, 32], strides = [1, 1]} : vector<8x128xf32> to vector<8x32xf32>
    %1094 = math.tanh %1093 : vector<8x32xf32>
    %1095 = vector.extract_strided_slice %1080 {offsets = [0, 96], sizes = [8, 32], strides = [1, 1]} : vector<8x128xf32> to vector<8x32xf32>
    %1096 = arith.negf %1095 : vector<8x32xf32>
    %1097 = math.exp %1096 : vector<8x32xf32>
    %cst_238 = arith.constant 1.000000e+00 : f32
    %1098 = vector.broadcast %cst_238 : f32 to vector<8x32xf32>
    %1099 = arith.addf %1098, %1097 : vector<8x32xf32>
    %1100 = arith.divf %1098, %1099 : vector<8x32xf32>
    %1101 = arith.mulf %1092, %1042 : vector<8x32xf32>
    %1102 = arith.mulf %1086, %1094 : vector<8x32xf32>
    %1103 = arith.addf %1101, %1102 : vector<8x32xf32>
    %1104 = math.tanh %1103 : vector<8x32xf32>
    %1105 = arith.mulf %1100, %1104 : vector<8x32xf32>
    %c16_i32 = arith.constant 16 : i32
    %c8_i32_239 = arith.constant 8 : i32
    %1106 = arith.muli %c16_i32, %c8_i32_239 : i32
    %1107 = tpu.assume_multiple %1106, 8 : i32
    %1108 = arith.index_cast %1107 : i32 to index
    %c0_240 = arith.constant 0 : index
    %1109 = vector.load %arg14[%1108, %c0_240] : memref<240x128xf32, #tpu.memory_space<vmem>>, vector<8x128xf32>
    %cst_241 = arith.constant dense<0.000000e+00> : vector<8x128xf32>
    %1110 = tpu.matmul %1075, %30, %cst_241 {dimension_numbers = #tpu.dot_dimension_numbers<[1], [0], [0], [1], [0, 0, 1, 1], [], []>} : vector<8x32xf32>, vector<32x128xf32>, vector<8x128xf32> -> vector<8x128xf32>
    %1111 = arith.addf %1109, %1110 : vector<8x128xf32>
    %1112 = vector.extract_strided_slice %1111 {offsets = [0, 0], sizes = [8, 32], strides = [1, 1]} : vector<8x128xf32> to vector<8x32xf32>
    %1113 = arith.negf %1112 : vector<8x32xf32>
    %1114 = math.exp %1113 : vector<8x32xf32>
    %cst_242 = arith.constant 1.000000e+00 : f32
    %1115 = vector.broadcast %cst_242 : f32 to vector<8x32xf32>
    %1116 = arith.addf %1115, %1114 : vector<8x32xf32>
    %1117 = arith.divf %1115, %1116 : vector<8x32xf32>
    %1118 = vector.extract_strided_slice %1111 {offsets = [0, 32], sizes = [8, 32], strides = [1, 1]} : vector<8x128xf32> to vector<8x32xf32>
    %1119 = arith.negf %1118 : vector<8x32xf32>
    %1120 = math.exp %1119 : vector<8x32xf32>
    %cst_243 = arith.constant 1.000000e+00 : f32
    %1121 = vector.broadcast %cst_243 : f32 to vector<8x32xf32>
    %1122 = arith.addf %1121, %1120 : vector<8x32xf32>
    %1123 = arith.divf %1121, %1122 : vector<8x32xf32>
    %1124 = vector.extract_strided_slice %1111 {offsets = [0, 64], sizes = [8, 32], strides = [1, 1]} : vector<8x128xf32> to vector<8x32xf32>
    %1125 = math.tanh %1124 : vector<8x32xf32>
    %1126 = vector.extract_strided_slice %1111 {offsets = [0, 96], sizes = [8, 32], strides = [1, 1]} : vector<8x128xf32> to vector<8x32xf32>
    %1127 = arith.negf %1126 : vector<8x32xf32>
    %1128 = math.exp %1127 : vector<8x32xf32>
    %cst_244 = arith.constant 1.000000e+00 : f32
    %1129 = vector.broadcast %cst_244 : f32 to vector<8x32xf32>
    %1130 = arith.addf %1129, %1128 : vector<8x32xf32>
    %1131 = arith.divf %1129, %1130 : vector<8x32xf32>
    %1132 = arith.mulf %1123, %1073 : vector<8x32xf32>
    %1133 = arith.mulf %1117, %1125 : vector<8x32xf32>
    %1134 = arith.addf %1132, %1133 : vector<8x32xf32>
    %1135 = math.tanh %1134 : vector<8x32xf32>
    %1136 = arith.mulf %1131, %1135 : vector<8x32xf32>
    %cst_245 = arith.constant dense<0.000000e+00> : vector<8x128xf32>
    %1137 = tpu.matmul %1136, %29, %cst_245 {dimension_numbers = #tpu.dot_dimension_numbers<[1], [0], [0], [1], [0, 0, 1, 1], [], []>} : vector<8x32xf32>, vector<32x128xf32>, vector<8x128xf32> -> vector<8x128xf32>
    %cst_246 = arith.constant dense<0.000000e+00> : vector<8x128xf32>
    %1138 = tpu.matmul %1105, %31, %cst_246 {dimension_numbers = #tpu.dot_dimension_numbers<[1], [0], [0], [1], [0, 0, 1, 1], [], []>} : vector<8x32xf32>, vector<32x128xf32>, vector<8x128xf32> -> vector<8x128xf32>
    %1139 = arith.addf %1137, %1138 : vector<8x128xf32>
    %1140 = vector.broadcast %33 : vector<1x128xf32> to vector<8x128xf32>
    %1141 = arith.addf %1139, %1140 : vector<8x128xf32>
    %1142 = vector.extract_strided_slice %1141 {offsets = [0, 0], sizes = [8, 32], strides = [1, 1]} : vector<8x128xf32> to vector<8x32xf32>
    %1143 = arith.negf %1142 : vector<8x32xf32>
    %1144 = math.exp %1143 : vector<8x32xf32>
    %cst_247 = arith.constant 1.000000e+00 : f32
    %1145 = vector.broadcast %cst_247 : f32 to vector<8x32xf32>
    %1146 = arith.addf %1145, %1144 : vector<8x32xf32>
    %1147 = arith.divf %1145, %1146 : vector<8x32xf32>
    %1148 = vector.extract_strided_slice %1141 {offsets = [0, 32], sizes = [8, 32], strides = [1, 1]} : vector<8x128xf32> to vector<8x32xf32>
    %1149 = arith.negf %1148 : vector<8x32xf32>
    %1150 = math.exp %1149 : vector<8x32xf32>
    %cst_248 = arith.constant 1.000000e+00 : f32
    %1151 = vector.broadcast %cst_248 : f32 to vector<8x32xf32>
    %1152 = arith.addf %1151, %1150 : vector<8x32xf32>
    %1153 = arith.divf %1151, %1152 : vector<8x32xf32>
    %1154 = vector.extract_strided_slice %1141 {offsets = [0, 64], sizes = [8, 32], strides = [1, 1]} : vector<8x128xf32> to vector<8x32xf32>
    %1155 = math.tanh %1154 : vector<8x32xf32>
    %1156 = vector.extract_strided_slice %1141 {offsets = [0, 96], sizes = [8, 32], strides = [1, 1]} : vector<8x128xf32> to vector<8x32xf32>
    %1157 = arith.negf %1156 : vector<8x32xf32>
    %1158 = math.exp %1157 : vector<8x32xf32>
    %cst_249 = arith.constant 1.000000e+00 : f32
    %1159 = vector.broadcast %cst_249 : f32 to vector<8x32xf32>
    %1160 = arith.addf %1159, %1158 : vector<8x32xf32>
    %1161 = arith.divf %1159, %1160 : vector<8x32xf32>
    %1162 = arith.mulf %1153, %1103 : vector<8x32xf32>
    %1163 = arith.mulf %1147, %1155 : vector<8x32xf32>
    %1164 = arith.addf %1162, %1163 : vector<8x32xf32>
    %1165 = math.tanh %1164 : vector<8x32xf32>
    %1166 = arith.mulf %1161, %1165 : vector<8x32xf32>
    %c17_i32 = arith.constant 17 : i32
    %c8_i32_250 = arith.constant 8 : i32
    %1167 = arith.muli %c17_i32, %c8_i32_250 : i32
    %1168 = tpu.assume_multiple %1167, 8 : i32
    %1169 = arith.index_cast %1168 : i32 to index
    %c0_251 = arith.constant 0 : index
    %1170 = vector.load %arg14[%1169, %c0_251] : memref<240x128xf32, #tpu.memory_space<vmem>>, vector<8x128xf32>
    %cst_252 = arith.constant dense<0.000000e+00> : vector<8x128xf32>
    %1171 = tpu.matmul %1136, %30, %cst_252 {dimension_numbers = #tpu.dot_dimension_numbers<[1], [0], [0], [1], [0, 0, 1, 1], [], []>} : vector<8x32xf32>, vector<32x128xf32>, vector<8x128xf32> -> vector<8x128xf32>
    %1172 = arith.addf %1170, %1171 : vector<8x128xf32>
    %1173 = vector.extract_strided_slice %1172 {offsets = [0, 0], sizes = [8, 32], strides = [1, 1]} : vector<8x128xf32> to vector<8x32xf32>
    %1174 = arith.negf %1173 : vector<8x32xf32>
    %1175 = math.exp %1174 : vector<8x32xf32>
    %cst_253 = arith.constant 1.000000e+00 : f32
    %1176 = vector.broadcast %cst_253 : f32 to vector<8x32xf32>
    %1177 = arith.addf %1176, %1175 : vector<8x32xf32>
    %1178 = arith.divf %1176, %1177 : vector<8x32xf32>
    %1179 = vector.extract_strided_slice %1172 {offsets = [0, 32], sizes = [8, 32], strides = [1, 1]} : vector<8x128xf32> to vector<8x32xf32>
    %1180 = arith.negf %1179 : vector<8x32xf32>
    %1181 = math.exp %1180 : vector<8x32xf32>
    %cst_254 = arith.constant 1.000000e+00 : f32
    %1182 = vector.broadcast %cst_254 : f32 to vector<8x32xf32>
    %1183 = arith.addf %1182, %1181 : vector<8x32xf32>
    %1184 = arith.divf %1182, %1183 : vector<8x32xf32>
    %1185 = vector.extract_strided_slice %1172 {offsets = [0, 64], sizes = [8, 32], strides = [1, 1]} : vector<8x128xf32> to vector<8x32xf32>
    %1186 = math.tanh %1185 : vector<8x32xf32>
    %1187 = vector.extract_strided_slice %1172 {offsets = [0, 96], sizes = [8, 32], strides = [1, 1]} : vector<8x128xf32> to vector<8x32xf32>
    %1188 = arith.negf %1187 : vector<8x32xf32>
    %1189 = math.exp %1188 : vector<8x32xf32>
    %cst_255 = arith.constant 1.000000e+00 : f32
    %1190 = vector.broadcast %cst_255 : f32 to vector<8x32xf32>
    %1191 = arith.addf %1190, %1189 : vector<8x32xf32>
    %1192 = arith.divf %1190, %1191 : vector<8x32xf32>
    %1193 = arith.mulf %1184, %1134 : vector<8x32xf32>
    %1194 = arith.mulf %1178, %1186 : vector<8x32xf32>
    %1195 = arith.addf %1193, %1194 : vector<8x32xf32>
    %1196 = math.tanh %1195 : vector<8x32xf32>
    %1197 = arith.mulf %1192, %1196 : vector<8x32xf32>
    %cst_256 = arith.constant dense<0.000000e+00> : vector<8x128xf32>
    %1198 = tpu.matmul %1197, %29, %cst_256 {dimension_numbers = #tpu.dot_dimension_numbers<[1], [0], [0], [1], [0, 0, 1, 1], [], []>} : vector<8x32xf32>, vector<32x128xf32>, vector<8x128xf32> -> vector<8x128xf32>
    %cst_257 = arith.constant dense<0.000000e+00> : vector<8x128xf32>
    %1199 = tpu.matmul %1166, %31, %cst_257 {dimension_numbers = #tpu.dot_dimension_numbers<[1], [0], [0], [1], [0, 0, 1, 1], [], []>} : vector<8x32xf32>, vector<32x128xf32>, vector<8x128xf32> -> vector<8x128xf32>
    %1200 = arith.addf %1198, %1199 : vector<8x128xf32>
    %1201 = vector.broadcast %33 : vector<1x128xf32> to vector<8x128xf32>
    %1202 = arith.addf %1200, %1201 : vector<8x128xf32>
    %1203 = vector.extract_strided_slice %1202 {offsets = [0, 0], sizes = [8, 32], strides = [1, 1]} : vector<8x128xf32> to vector<8x32xf32>
    %1204 = arith.negf %1203 : vector<8x32xf32>
    %1205 = math.exp %1204 : vector<8x32xf32>
    %cst_258 = arith.constant 1.000000e+00 : f32
    %1206 = vector.broadcast %cst_258 : f32 to vector<8x32xf32>
    %1207 = arith.addf %1206, %1205 : vector<8x32xf32>
    %1208 = arith.divf %1206, %1207 : vector<8x32xf32>
    %1209 = vector.extract_strided_slice %1202 {offsets = [0, 32], sizes = [8, 32], strides = [1, 1]} : vector<8x128xf32> to vector<8x32xf32>
    %1210 = arith.negf %1209 : vector<8x32xf32>
    %1211 = math.exp %1210 : vector<8x32xf32>
    %cst_259 = arith.constant 1.000000e+00 : f32
    %1212 = vector.broadcast %cst_259 : f32 to vector<8x32xf32>
    %1213 = arith.addf %1212, %1211 : vector<8x32xf32>
    %1214 = arith.divf %1212, %1213 : vector<8x32xf32>
    %1215 = vector.extract_strided_slice %1202 {offsets = [0, 64], sizes = [8, 32], strides = [1, 1]} : vector<8x128xf32> to vector<8x32xf32>
    %1216 = math.tanh %1215 : vector<8x32xf32>
    %1217 = vector.extract_strided_slice %1202 {offsets = [0, 96], sizes = [8, 32], strides = [1, 1]} : vector<8x128xf32> to vector<8x32xf32>
    %1218 = arith.negf %1217 : vector<8x32xf32>
    %1219 = math.exp %1218 : vector<8x32xf32>
    %cst_260 = arith.constant 1.000000e+00 : f32
    %1220 = vector.broadcast %cst_260 : f32 to vector<8x32xf32>
    %1221 = arith.addf %1220, %1219 : vector<8x32xf32>
    %1222 = arith.divf %1220, %1221 : vector<8x32xf32>
    %1223 = arith.mulf %1214, %1164 : vector<8x32xf32>
    %1224 = arith.mulf %1208, %1216 : vector<8x32xf32>
    %1225 = arith.addf %1223, %1224 : vector<8x32xf32>
    %1226 = math.tanh %1225 : vector<8x32xf32>
    %1227 = arith.mulf %1222, %1226 : vector<8x32xf32>
    %c18_i32 = arith.constant 18 : i32
    %c8_i32_261 = arith.constant 8 : i32
    %1228 = arith.muli %c18_i32, %c8_i32_261 : i32
    %1229 = tpu.assume_multiple %1228, 8 : i32
    %1230 = arith.index_cast %1229 : i32 to index
    %c0_262 = arith.constant 0 : index
    %1231 = vector.load %arg14[%1230, %c0_262] : memref<240x128xf32, #tpu.memory_space<vmem>>, vector<8x128xf32>
    %cst_263 = arith.constant dense<0.000000e+00> : vector<8x128xf32>
    %1232 = tpu.matmul %1197, %30, %cst_263 {dimension_numbers = #tpu.dot_dimension_numbers<[1], [0], [0], [1], [0, 0, 1, 1], [], []>} : vector<8x32xf32>, vector<32x128xf32>, vector<8x128xf32> -> vector<8x128xf32>
    %1233 = arith.addf %1231, %1232 : vector<8x128xf32>
    %1234 = vector.extract_strided_slice %1233 {offsets = [0, 0], sizes = [8, 32], strides = [1, 1]} : vector<8x128xf32> to vector<8x32xf32>
    %1235 = arith.negf %1234 : vector<8x32xf32>
    %1236 = math.exp %1235 : vector<8x32xf32>
    %cst_264 = arith.constant 1.000000e+00 : f32
    %1237 = vector.broadcast %cst_264 : f32 to vector<8x32xf32>
    %1238 = arith.addf %1237, %1236 : vector<8x32xf32>
    %1239 = arith.divf %1237, %1238 : vector<8x32xf32>
    %1240 = vector.extract_strided_slice %1233 {offsets = [0, 32], sizes = [8, 32], strides = [1, 1]} : vector<8x128xf32> to vector<8x32xf32>
    %1241 = arith.negf %1240 : vector<8x32xf32>
    %1242 = math.exp %1241 : vector<8x32xf32>
    %cst_265 = arith.constant 1.000000e+00 : f32
    %1243 = vector.broadcast %cst_265 : f32 to vector<8x32xf32>
    %1244 = arith.addf %1243, %1242 : vector<8x32xf32>
    %1245 = arith.divf %1243, %1244 : vector<8x32xf32>
    %1246 = vector.extract_strided_slice %1233 {offsets = [0, 64], sizes = [8, 32], strides = [1, 1]} : vector<8x128xf32> to vector<8x32xf32>
    %1247 = math.tanh %1246 : vector<8x32xf32>
    %1248 = vector.extract_strided_slice %1233 {offsets = [0, 96], sizes = [8, 32], strides = [1, 1]} : vector<8x128xf32> to vector<8x32xf32>
    %1249 = arith.negf %1248 : vector<8x32xf32>
    %1250 = math.exp %1249 : vector<8x32xf32>
    %cst_266 = arith.constant 1.000000e+00 : f32
    %1251 = vector.broadcast %cst_266 : f32 to vector<8x32xf32>
    %1252 = arith.addf %1251, %1250 : vector<8x32xf32>
    %1253 = arith.divf %1251, %1252 : vector<8x32xf32>
    %1254 = arith.mulf %1245, %1195 : vector<8x32xf32>
    %1255 = arith.mulf %1239, %1247 : vector<8x32xf32>
    %1256 = arith.addf %1254, %1255 : vector<8x32xf32>
    %1257 = math.tanh %1256 : vector<8x32xf32>
    %1258 = arith.mulf %1253, %1257 : vector<8x32xf32>
    %cst_267 = arith.constant dense<0.000000e+00> : vector<8x128xf32>
    %1259 = tpu.matmul %1258, %29, %cst_267 {dimension_numbers = #tpu.dot_dimension_numbers<[1], [0], [0], [1], [0, 0, 1, 1], [], []>} : vector<8x32xf32>, vector<32x128xf32>, vector<8x128xf32> -> vector<8x128xf32>
    %cst_268 = arith.constant dense<0.000000e+00> : vector<8x128xf32>
    %1260 = tpu.matmul %1227, %31, %cst_268 {dimension_numbers = #tpu.dot_dimension_numbers<[1], [0], [0], [1], [0, 0, 1, 1], [], []>} : vector<8x32xf32>, vector<32x128xf32>, vector<8x128xf32> -> vector<8x128xf32>
    %1261 = arith.addf %1259, %1260 : vector<8x128xf32>
    %1262 = vector.broadcast %33 : vector<1x128xf32> to vector<8x128xf32>
    %1263 = arith.addf %1261, %1262 : vector<8x128xf32>
    %1264 = vector.extract_strided_slice %1263 {offsets = [0, 0], sizes = [8, 32], strides = [1, 1]} : vector<8x128xf32> to vector<8x32xf32>
    %1265 = arith.negf %1264 : vector<8x32xf32>
    %1266 = math.exp %1265 : vector<8x32xf32>
    %cst_269 = arith.constant 1.000000e+00 : f32
    %1267 = vector.broadcast %cst_269 : f32 to vector<8x32xf32>
    %1268 = arith.addf %1267, %1266 : vector<8x32xf32>
    %1269 = arith.divf %1267, %1268 : vector<8x32xf32>
    %1270 = vector.extract_strided_slice %1263 {offsets = [0, 32], sizes = [8, 32], strides = [1, 1]} : vector<8x128xf32> to vector<8x32xf32>
    %1271 = arith.negf %1270 : vector<8x32xf32>
    %1272 = math.exp %1271 : vector<8x32xf32>
    %cst_270 = arith.constant 1.000000e+00 : f32
    %1273 = vector.broadcast %cst_270 : f32 to vector<8x32xf32>
    %1274 = arith.addf %1273, %1272 : vector<8x32xf32>
    %1275 = arith.divf %1273, %1274 : vector<8x32xf32>
    %1276 = vector.extract_strided_slice %1263 {offsets = [0, 64], sizes = [8, 32], strides = [1, 1]} : vector<8x128xf32> to vector<8x32xf32>
    %1277 = math.tanh %1276 : vector<8x32xf32>
    %1278 = vector.extract_strided_slice %1263 {offsets = [0, 96], sizes = [8, 32], strides = [1, 1]} : vector<8x128xf32> to vector<8x32xf32>
    %1279 = arith.negf %1278 : vector<8x32xf32>
    %1280 = math.exp %1279 : vector<8x32xf32>
    %cst_271 = arith.constant 1.000000e+00 : f32
    %1281 = vector.broadcast %cst_271 : f32 to vector<8x32xf32>
    %1282 = arith.addf %1281, %1280 : vector<8x32xf32>
    %1283 = arith.divf %1281, %1282 : vector<8x32xf32>
    %1284 = arith.mulf %1275, %1225 : vector<8x32xf32>
    %1285 = arith.mulf %1269, %1277 : vector<8x32xf32>
    %1286 = arith.addf %1284, %1285 : vector<8x32xf32>
    %1287 = math.tanh %1286 : vector<8x32xf32>
    %1288 = arith.mulf %1283, %1287 : vector<8x32xf32>
    %c19_i32 = arith.constant 19 : i32
    %c8_i32_272 = arith.constant 8 : i32
    %1289 = arith.muli %c19_i32, %c8_i32_272 : i32
    %1290 = tpu.assume_multiple %1289, 8 : i32
    %1291 = arith.index_cast %1290 : i32 to index
    %c0_273 = arith.constant 0 : index
    %1292 = vector.load %arg14[%1291, %c0_273] : memref<240x128xf32, #tpu.memory_space<vmem>>, vector<8x128xf32>
    %cst_274 = arith.constant dense<0.000000e+00> : vector<8x128xf32>
    %1293 = tpu.matmul %1258, %30, %cst_274 {dimension_numbers = #tpu.dot_dimension_numbers<[1], [0], [0], [1], [0, 0, 1, 1], [], []>} : vector<8x32xf32>, vector<32x128xf32>, vector<8x128xf32> -> vector<8x128xf32>
    %1294 = arith.addf %1292, %1293 : vector<8x128xf32>
    %1295 = vector.extract_strided_slice %1294 {offsets = [0, 0], sizes = [8, 32], strides = [1, 1]} : vector<8x128xf32> to vector<8x32xf32>
    %1296 = arith.negf %1295 : vector<8x32xf32>
    %1297 = math.exp %1296 : vector<8x32xf32>
    %cst_275 = arith.constant 1.000000e+00 : f32
    %1298 = vector.broadcast %cst_275 : f32 to vector<8x32xf32>
    %1299 = arith.addf %1298, %1297 : vector<8x32xf32>
    %1300 = arith.divf %1298, %1299 : vector<8x32xf32>
    %1301 = vector.extract_strided_slice %1294 {offsets = [0, 32], sizes = [8, 32], strides = [1, 1]} : vector<8x128xf32> to vector<8x32xf32>
    %1302 = arith.negf %1301 : vector<8x32xf32>
    %1303 = math.exp %1302 : vector<8x32xf32>
    %cst_276 = arith.constant 1.000000e+00 : f32
    %1304 = vector.broadcast %cst_276 : f32 to vector<8x32xf32>
    %1305 = arith.addf %1304, %1303 : vector<8x32xf32>
    %1306 = arith.divf %1304, %1305 : vector<8x32xf32>
    %1307 = vector.extract_strided_slice %1294 {offsets = [0, 64], sizes = [8, 32], strides = [1, 1]} : vector<8x128xf32> to vector<8x32xf32>
    %1308 = math.tanh %1307 : vector<8x32xf32>
    %1309 = vector.extract_strided_slice %1294 {offsets = [0, 96], sizes = [8, 32], strides = [1, 1]} : vector<8x128xf32> to vector<8x32xf32>
    %1310 = arith.negf %1309 : vector<8x32xf32>
    %1311 = math.exp %1310 : vector<8x32xf32>
    %cst_277 = arith.constant 1.000000e+00 : f32
    %1312 = vector.broadcast %cst_277 : f32 to vector<8x32xf32>
    %1313 = arith.addf %1312, %1311 : vector<8x32xf32>
    %1314 = arith.divf %1312, %1313 : vector<8x32xf32>
    %1315 = arith.mulf %1306, %1256 : vector<8x32xf32>
    %1316 = arith.mulf %1300, %1308 : vector<8x32xf32>
    %1317 = arith.addf %1315, %1316 : vector<8x32xf32>
    %1318 = math.tanh %1317 : vector<8x32xf32>
    %1319 = arith.mulf %1314, %1318 : vector<8x32xf32>
    %cst_278 = arith.constant dense<0.000000e+00> : vector<8x128xf32>
    %1320 = tpu.matmul %1319, %29, %cst_278 {dimension_numbers = #tpu.dot_dimension_numbers<[1], [0], [0], [1], [0, 0, 1, 1], [], []>} : vector<8x32xf32>, vector<32x128xf32>, vector<8x128xf32> -> vector<8x128xf32>
    %cst_279 = arith.constant dense<0.000000e+00> : vector<8x128xf32>
    %1321 = tpu.matmul %1288, %31, %cst_279 {dimension_numbers = #tpu.dot_dimension_numbers<[1], [0], [0], [1], [0, 0, 1, 1], [], []>} : vector<8x32xf32>, vector<32x128xf32>, vector<8x128xf32> -> vector<8x128xf32>
    %1322 = arith.addf %1320, %1321 : vector<8x128xf32>
    %1323 = vector.broadcast %33 : vector<1x128xf32> to vector<8x128xf32>
    %1324 = arith.addf %1322, %1323 : vector<8x128xf32>
    %1325 = vector.extract_strided_slice %1324 {offsets = [0, 0], sizes = [8, 32], strides = [1, 1]} : vector<8x128xf32> to vector<8x32xf32>
    %1326 = arith.negf %1325 : vector<8x32xf32>
    %1327 = math.exp %1326 : vector<8x32xf32>
    %cst_280 = arith.constant 1.000000e+00 : f32
    %1328 = vector.broadcast %cst_280 : f32 to vector<8x32xf32>
    %1329 = arith.addf %1328, %1327 : vector<8x32xf32>
    %1330 = arith.divf %1328, %1329 : vector<8x32xf32>
    %1331 = vector.extract_strided_slice %1324 {offsets = [0, 32], sizes = [8, 32], strides = [1, 1]} : vector<8x128xf32> to vector<8x32xf32>
    %1332 = arith.negf %1331 : vector<8x32xf32>
    %1333 = math.exp %1332 : vector<8x32xf32>
    %cst_281 = arith.constant 1.000000e+00 : f32
    %1334 = vector.broadcast %cst_281 : f32 to vector<8x32xf32>
    %1335 = arith.addf %1334, %1333 : vector<8x32xf32>
    %1336 = arith.divf %1334, %1335 : vector<8x32xf32>
    %1337 = vector.extract_strided_slice %1324 {offsets = [0, 64], sizes = [8, 32], strides = [1, 1]} : vector<8x128xf32> to vector<8x32xf32>
    %1338 = math.tanh %1337 : vector<8x32xf32>
    %1339 = vector.extract_strided_slice %1324 {offsets = [0, 96], sizes = [8, 32], strides = [1, 1]} : vector<8x128xf32> to vector<8x32xf32>
    %1340 = arith.negf %1339 : vector<8x32xf32>
    %1341 = math.exp %1340 : vector<8x32xf32>
    %cst_282 = arith.constant 1.000000e+00 : f32
    %1342 = vector.broadcast %cst_282 : f32 to vector<8x32xf32>
    %1343 = arith.addf %1342, %1341 : vector<8x32xf32>
    %1344 = arith.divf %1342, %1343 : vector<8x32xf32>
    %1345 = arith.mulf %1336, %1286 : vector<8x32xf32>
    %1346 = arith.mulf %1330, %1338 : vector<8x32xf32>
    %1347 = arith.addf %1345, %1346 : vector<8x32xf32>
    %1348 = math.tanh %1347 : vector<8x32xf32>
    %1349 = arith.mulf %1344, %1348 : vector<8x32xf32>
    %c20_i32 = arith.constant 20 : i32
    %c8_i32_283 = arith.constant 8 : i32
    %1350 = arith.muli %c20_i32, %c8_i32_283 : i32
    %1351 = tpu.assume_multiple %1350, 8 : i32
    %1352 = arith.index_cast %1351 : i32 to index
    %c0_284 = arith.constant 0 : index
    %1353 = vector.load %arg14[%1352, %c0_284] : memref<240x128xf32, #tpu.memory_space<vmem>>, vector<8x128xf32>
    %cst_285 = arith.constant dense<0.000000e+00> : vector<8x128xf32>
    %1354 = tpu.matmul %1319, %30, %cst_285 {dimension_numbers = #tpu.dot_dimension_numbers<[1], [0], [0], [1], [0, 0, 1, 1], [], []>} : vector<8x32xf32>, vector<32x128xf32>, vector<8x128xf32> -> vector<8x128xf32>
    %1355 = arith.addf %1353, %1354 : vector<8x128xf32>
    %1356 = vector.extract_strided_slice %1355 {offsets = [0, 0], sizes = [8, 32], strides = [1, 1]} : vector<8x128xf32> to vector<8x32xf32>
    %1357 = arith.negf %1356 : vector<8x32xf32>
    %1358 = math.exp %1357 : vector<8x32xf32>
    %cst_286 = arith.constant 1.000000e+00 : f32
    %1359 = vector.broadcast %cst_286 : f32 to vector<8x32xf32>
    %1360 = arith.addf %1359, %1358 : vector<8x32xf32>
    %1361 = arith.divf %1359, %1360 : vector<8x32xf32>
    %1362 = vector.extract_strided_slice %1355 {offsets = [0, 32], sizes = [8, 32], strides = [1, 1]} : vector<8x128xf32> to vector<8x32xf32>
    %1363 = arith.negf %1362 : vector<8x32xf32>
    %1364 = math.exp %1363 : vector<8x32xf32>
    %cst_287 = arith.constant 1.000000e+00 : f32
    %1365 = vector.broadcast %cst_287 : f32 to vector<8x32xf32>
    %1366 = arith.addf %1365, %1364 : vector<8x32xf32>
    %1367 = arith.divf %1365, %1366 : vector<8x32xf32>
    %1368 = vector.extract_strided_slice %1355 {offsets = [0, 64], sizes = [8, 32], strides = [1, 1]} : vector<8x128xf32> to vector<8x32xf32>
    %1369 = math.tanh %1368 : vector<8x32xf32>
    %1370 = vector.extract_strided_slice %1355 {offsets = [0, 96], sizes = [8, 32], strides = [1, 1]} : vector<8x128xf32> to vector<8x32xf32>
    %1371 = arith.negf %1370 : vector<8x32xf32>
    %1372 = math.exp %1371 : vector<8x32xf32>
    %cst_288 = arith.constant 1.000000e+00 : f32
    %1373 = vector.broadcast %cst_288 : f32 to vector<8x32xf32>
    %1374 = arith.addf %1373, %1372 : vector<8x32xf32>
    %1375 = arith.divf %1373, %1374 : vector<8x32xf32>
    %1376 = arith.mulf %1367, %1317 : vector<8x32xf32>
    %1377 = arith.mulf %1361, %1369 : vector<8x32xf32>
    %1378 = arith.addf %1376, %1377 : vector<8x32xf32>
    %1379 = math.tanh %1378 : vector<8x32xf32>
    %1380 = arith.mulf %1375, %1379 : vector<8x32xf32>
    %cst_289 = arith.constant dense<0.000000e+00> : vector<8x128xf32>
    %1381 = tpu.matmul %1380, %29, %cst_289 {dimension_numbers = #tpu.dot_dimension_numbers<[1], [0], [0], [1], [0, 0, 1, 1], [], []>} : vector<8x32xf32>, vector<32x128xf32>, vector<8x128xf32> -> vector<8x128xf32>
    %cst_290 = arith.constant dense<0.000000e+00> : vector<8x128xf32>
    %1382 = tpu.matmul %1349, %31, %cst_290 {dimension_numbers = #tpu.dot_dimension_numbers<[1], [0], [0], [1], [0, 0, 1, 1], [], []>} : vector<8x32xf32>, vector<32x128xf32>, vector<8x128xf32> -> vector<8x128xf32>
    %1383 = arith.addf %1381, %1382 : vector<8x128xf32>
    %1384 = vector.broadcast %33 : vector<1x128xf32> to vector<8x128xf32>
    %1385 = arith.addf %1383, %1384 : vector<8x128xf32>
    %1386 = vector.extract_strided_slice %1385 {offsets = [0, 0], sizes = [8, 32], strides = [1, 1]} : vector<8x128xf32> to vector<8x32xf32>
    %1387 = arith.negf %1386 : vector<8x32xf32>
    %1388 = math.exp %1387 : vector<8x32xf32>
    %cst_291 = arith.constant 1.000000e+00 : f32
    %1389 = vector.broadcast %cst_291 : f32 to vector<8x32xf32>
    %1390 = arith.addf %1389, %1388 : vector<8x32xf32>
    %1391 = arith.divf %1389, %1390 : vector<8x32xf32>
    %1392 = vector.extract_strided_slice %1385 {offsets = [0, 32], sizes = [8, 32], strides = [1, 1]} : vector<8x128xf32> to vector<8x32xf32>
    %1393 = arith.negf %1392 : vector<8x32xf32>
    %1394 = math.exp %1393 : vector<8x32xf32>
    %cst_292 = arith.constant 1.000000e+00 : f32
    %1395 = vector.broadcast %cst_292 : f32 to vector<8x32xf32>
    %1396 = arith.addf %1395, %1394 : vector<8x32xf32>
    %1397 = arith.divf %1395, %1396 : vector<8x32xf32>
    %1398 = vector.extract_strided_slice %1385 {offsets = [0, 64], sizes = [8, 32], strides = [1, 1]} : vector<8x128xf32> to vector<8x32xf32>
    %1399 = math.tanh %1398 : vector<8x32xf32>
    %1400 = vector.extract_strided_slice %1385 {offsets = [0, 96], sizes = [8, 32], strides = [1, 1]} : vector<8x128xf32> to vector<8x32xf32>
    %1401 = arith.negf %1400 : vector<8x32xf32>
    %1402 = math.exp %1401 : vector<8x32xf32>
    %cst_293 = arith.constant 1.000000e+00 : f32
    %1403 = vector.broadcast %cst_293 : f32 to vector<8x32xf32>
    %1404 = arith.addf %1403, %1402 : vector<8x32xf32>
    %1405 = arith.divf %1403, %1404 : vector<8x32xf32>
    %1406 = arith.mulf %1397, %1347 : vector<8x32xf32>
    %1407 = arith.mulf %1391, %1399 : vector<8x32xf32>
    %1408 = arith.addf %1406, %1407 : vector<8x32xf32>
    %1409 = math.tanh %1408 : vector<8x32xf32>
    %1410 = arith.mulf %1405, %1409 : vector<8x32xf32>
    %c21_i32 = arith.constant 21 : i32
    %c8_i32_294 = arith.constant 8 : i32
    %1411 = arith.muli %c21_i32, %c8_i32_294 : i32
    %1412 = tpu.assume_multiple %1411, 8 : i32
    %1413 = arith.index_cast %1412 : i32 to index
    %c0_295 = arith.constant 0 : index
    %1414 = vector.load %arg14[%1413, %c0_295] : memref<240x128xf32, #tpu.memory_space<vmem>>, vector<8x128xf32>
    %cst_296 = arith.constant dense<0.000000e+00> : vector<8x128xf32>
    %1415 = tpu.matmul %1380, %30, %cst_296 {dimension_numbers = #tpu.dot_dimension_numbers<[1], [0], [0], [1], [0, 0, 1, 1], [], []>} : vector<8x32xf32>, vector<32x128xf32>, vector<8x128xf32> -> vector<8x128xf32>
    %1416 = arith.addf %1414, %1415 : vector<8x128xf32>
    %1417 = vector.extract_strided_slice %1416 {offsets = [0, 0], sizes = [8, 32], strides = [1, 1]} : vector<8x128xf32> to vector<8x32xf32>
    %1418 = arith.negf %1417 : vector<8x32xf32>
    %1419 = math.exp %1418 : vector<8x32xf32>
    %cst_297 = arith.constant 1.000000e+00 : f32
    %1420 = vector.broadcast %cst_297 : f32 to vector<8x32xf32>
    %1421 = arith.addf %1420, %1419 : vector<8x32xf32>
    %1422 = arith.divf %1420, %1421 : vector<8x32xf32>
    %1423 = vector.extract_strided_slice %1416 {offsets = [0, 32], sizes = [8, 32], strides = [1, 1]} : vector<8x128xf32> to vector<8x32xf32>
    %1424 = arith.negf %1423 : vector<8x32xf32>
    %1425 = math.exp %1424 : vector<8x32xf32>
    %cst_298 = arith.constant 1.000000e+00 : f32
    %1426 = vector.broadcast %cst_298 : f32 to vector<8x32xf32>
    %1427 = arith.addf %1426, %1425 : vector<8x32xf32>
    %1428 = arith.divf %1426, %1427 : vector<8x32xf32>
    %1429 = vector.extract_strided_slice %1416 {offsets = [0, 64], sizes = [8, 32], strides = [1, 1]} : vector<8x128xf32> to vector<8x32xf32>
    %1430 = math.tanh %1429 : vector<8x32xf32>
    %1431 = vector.extract_strided_slice %1416 {offsets = [0, 96], sizes = [8, 32], strides = [1, 1]} : vector<8x128xf32> to vector<8x32xf32>
    %1432 = arith.negf %1431 : vector<8x32xf32>
    %1433 = math.exp %1432 : vector<8x32xf32>
    %cst_299 = arith.constant 1.000000e+00 : f32
    %1434 = vector.broadcast %cst_299 : f32 to vector<8x32xf32>
    %1435 = arith.addf %1434, %1433 : vector<8x32xf32>
    %1436 = arith.divf %1434, %1435 : vector<8x32xf32>
    %1437 = arith.mulf %1428, %1378 : vector<8x32xf32>
    %1438 = arith.mulf %1422, %1430 : vector<8x32xf32>
    %1439 = arith.addf %1437, %1438 : vector<8x32xf32>
    %1440 = math.tanh %1439 : vector<8x32xf32>
    %1441 = arith.mulf %1436, %1440 : vector<8x32xf32>
    %cst_300 = arith.constant dense<0.000000e+00> : vector<8x128xf32>
    %1442 = tpu.matmul %1441, %29, %cst_300 {dimension_numbers = #tpu.dot_dimension_numbers<[1], [0], [0], [1], [0, 0, 1, 1], [], []>} : vector<8x32xf32>, vector<32x128xf32>, vector<8x128xf32> -> vector<8x128xf32>
    %cst_301 = arith.constant dense<0.000000e+00> : vector<8x128xf32>
    %1443 = tpu.matmul %1410, %31, %cst_301 {dimension_numbers = #tpu.dot_dimension_numbers<[1], [0], [0], [1], [0, 0, 1, 1], [], []>} : vector<8x32xf32>, vector<32x128xf32>, vector<8x128xf32> -> vector<8x128xf32>
    %1444 = arith.addf %1442, %1443 : vector<8x128xf32>
    %1445 = vector.broadcast %33 : vector<1x128xf32> to vector<8x128xf32>
    %1446 = arith.addf %1444, %1445 : vector<8x128xf32>
    %1447 = vector.extract_strided_slice %1446 {offsets = [0, 0], sizes = [8, 32], strides = [1, 1]} : vector<8x128xf32> to vector<8x32xf32>
    %1448 = arith.negf %1447 : vector<8x32xf32>
    %1449 = math.exp %1448 : vector<8x32xf32>
    %cst_302 = arith.constant 1.000000e+00 : f32
    %1450 = vector.broadcast %cst_302 : f32 to vector<8x32xf32>
    %1451 = arith.addf %1450, %1449 : vector<8x32xf32>
    %1452 = arith.divf %1450, %1451 : vector<8x32xf32>
    %1453 = vector.extract_strided_slice %1446 {offsets = [0, 32], sizes = [8, 32], strides = [1, 1]} : vector<8x128xf32> to vector<8x32xf32>
    %1454 = arith.negf %1453 : vector<8x32xf32>
    %1455 = math.exp %1454 : vector<8x32xf32>
    %cst_303 = arith.constant 1.000000e+00 : f32
    %1456 = vector.broadcast %cst_303 : f32 to vector<8x32xf32>
    %1457 = arith.addf %1456, %1455 : vector<8x32xf32>
    %1458 = arith.divf %1456, %1457 : vector<8x32xf32>
    %1459 = vector.extract_strided_slice %1446 {offsets = [0, 64], sizes = [8, 32], strides = [1, 1]} : vector<8x128xf32> to vector<8x32xf32>
    %1460 = math.tanh %1459 : vector<8x32xf32>
    %1461 = vector.extract_strided_slice %1446 {offsets = [0, 96], sizes = [8, 32], strides = [1, 1]} : vector<8x128xf32> to vector<8x32xf32>
    %1462 = arith.negf %1461 : vector<8x32xf32>
    %1463 = math.exp %1462 : vector<8x32xf32>
    %cst_304 = arith.constant 1.000000e+00 : f32
    %1464 = vector.broadcast %cst_304 : f32 to vector<8x32xf32>
    %1465 = arith.addf %1464, %1463 : vector<8x32xf32>
    %1466 = arith.divf %1464, %1465 : vector<8x32xf32>
    %1467 = arith.mulf %1458, %1408 : vector<8x32xf32>
    %1468 = arith.mulf %1452, %1460 : vector<8x32xf32>
    %1469 = arith.addf %1467, %1468 : vector<8x32xf32>
    %1470 = math.tanh %1469 : vector<8x32xf32>
    %1471 = arith.mulf %1466, %1470 : vector<8x32xf32>
    %c22_i32 = arith.constant 22 : i32
    %c8_i32_305 = arith.constant 8 : i32
    %1472 = arith.muli %c22_i32, %c8_i32_305 : i32
    %1473 = tpu.assume_multiple %1472, 8 : i32
    %1474 = arith.index_cast %1473 : i32 to index
    %c0_306 = arith.constant 0 : index
    %1475 = vector.load %arg14[%1474, %c0_306] : memref<240x128xf32, #tpu.memory_space<vmem>>, vector<8x128xf32>
    %cst_307 = arith.constant dense<0.000000e+00> : vector<8x128xf32>
    %1476 = tpu.matmul %1441, %30, %cst_307 {dimension_numbers = #tpu.dot_dimension_numbers<[1], [0], [0], [1], [0, 0, 1, 1], [], []>} : vector<8x32xf32>, vector<32x128xf32>, vector<8x128xf32> -> vector<8x128xf32>
    %1477 = arith.addf %1475, %1476 : vector<8x128xf32>
    %1478 = vector.extract_strided_slice %1477 {offsets = [0, 0], sizes = [8, 32], strides = [1, 1]} : vector<8x128xf32> to vector<8x32xf32>
    %1479 = arith.negf %1478 : vector<8x32xf32>
    %1480 = math.exp %1479 : vector<8x32xf32>
    %cst_308 = arith.constant 1.000000e+00 : f32
    %1481 = vector.broadcast %cst_308 : f32 to vector<8x32xf32>
    %1482 = arith.addf %1481, %1480 : vector<8x32xf32>
    %1483 = arith.divf %1481, %1482 : vector<8x32xf32>
    %1484 = vector.extract_strided_slice %1477 {offsets = [0, 32], sizes = [8, 32], strides = [1, 1]} : vector<8x128xf32> to vector<8x32xf32>
    %1485 = arith.negf %1484 : vector<8x32xf32>
    %1486 = math.exp %1485 : vector<8x32xf32>
    %cst_309 = arith.constant 1.000000e+00 : f32
    %1487 = vector.broadcast %cst_309 : f32 to vector<8x32xf32>
    %1488 = arith.addf %1487, %1486 : vector<8x32xf32>
    %1489 = arith.divf %1487, %1488 : vector<8x32xf32>
    %1490 = vector.extract_strided_slice %1477 {offsets = [0, 64], sizes = [8, 32], strides = [1, 1]} : vector<8x128xf32> to vector<8x32xf32>
    %1491 = math.tanh %1490 : vector<8x32xf32>
    %1492 = vector.extract_strided_slice %1477 {offsets = [0, 96], sizes = [8, 32], strides = [1, 1]} : vector<8x128xf32> to vector<8x32xf32>
    %1493 = arith.negf %1492 : vector<8x32xf32>
    %1494 = math.exp %1493 : vector<8x32xf32>
    %cst_310 = arith.constant 1.000000e+00 : f32
    %1495 = vector.broadcast %cst_310 : f32 to vector<8x32xf32>
    %1496 = arith.addf %1495, %1494 : vector<8x32xf32>
    %1497 = arith.divf %1495, %1496 : vector<8x32xf32>
    %1498 = arith.mulf %1489, %1439 : vector<8x32xf32>
    %1499 = arith.mulf %1483, %1491 : vector<8x32xf32>
    %1500 = arith.addf %1498, %1499 : vector<8x32xf32>
    %1501 = math.tanh %1500 : vector<8x32xf32>
    %1502 = arith.mulf %1497, %1501 : vector<8x32xf32>
    %cst_311 = arith.constant dense<0.000000e+00> : vector<8x128xf32>
    %1503 = tpu.matmul %1502, %29, %cst_311 {dimension_numbers = #tpu.dot_dimension_numbers<[1], [0], [0], [1], [0, 0, 1, 1], [], []>} : vector<8x32xf32>, vector<32x128xf32>, vector<8x128xf32> -> vector<8x128xf32>
    %cst_312 = arith.constant dense<0.000000e+00> : vector<8x128xf32>
    %1504 = tpu.matmul %1471, %31, %cst_312 {dimension_numbers = #tpu.dot_dimension_numbers<[1], [0], [0], [1], [0, 0, 1, 1], [], []>} : vector<8x32xf32>, vector<32x128xf32>, vector<8x128xf32> -> vector<8x128xf32>
    %1505 = arith.addf %1503, %1504 : vector<8x128xf32>
    %1506 = vector.broadcast %33 : vector<1x128xf32> to vector<8x128xf32>
    %1507 = arith.addf %1505, %1506 : vector<8x128xf32>
    %1508 = vector.extract_strided_slice %1507 {offsets = [0, 0], sizes = [8, 32], strides = [1, 1]} : vector<8x128xf32> to vector<8x32xf32>
    %1509 = arith.negf %1508 : vector<8x32xf32>
    %1510 = math.exp %1509 : vector<8x32xf32>
    %cst_313 = arith.constant 1.000000e+00 : f32
    %1511 = vector.broadcast %cst_313 : f32 to vector<8x32xf32>
    %1512 = arith.addf %1511, %1510 : vector<8x32xf32>
    %1513 = arith.divf %1511, %1512 : vector<8x32xf32>
    %1514 = vector.extract_strided_slice %1507 {offsets = [0, 32], sizes = [8, 32], strides = [1, 1]} : vector<8x128xf32> to vector<8x32xf32>
    %1515 = arith.negf %1514 : vector<8x32xf32>
    %1516 = math.exp %1515 : vector<8x32xf32>
    %cst_314 = arith.constant 1.000000e+00 : f32
    %1517 = vector.broadcast %cst_314 : f32 to vector<8x32xf32>
    %1518 = arith.addf %1517, %1516 : vector<8x32xf32>
    %1519 = arith.divf %1517, %1518 : vector<8x32xf32>
    %1520 = vector.extract_strided_slice %1507 {offsets = [0, 64], sizes = [8, 32], strides = [1, 1]} : vector<8x128xf32> to vector<8x32xf32>
    %1521 = math.tanh %1520 : vector<8x32xf32>
    %1522 = vector.extract_strided_slice %1507 {offsets = [0, 96], sizes = [8, 32], strides = [1, 1]} : vector<8x128xf32> to vector<8x32xf32>
    %1523 = arith.negf %1522 : vector<8x32xf32>
    %1524 = math.exp %1523 : vector<8x32xf32>
    %cst_315 = arith.constant 1.000000e+00 : f32
    %1525 = vector.broadcast %cst_315 : f32 to vector<8x32xf32>
    %1526 = arith.addf %1525, %1524 : vector<8x32xf32>
    %1527 = arith.divf %1525, %1526 : vector<8x32xf32>
    %1528 = arith.mulf %1519, %1469 : vector<8x32xf32>
    %1529 = arith.mulf %1513, %1521 : vector<8x32xf32>
    %1530 = arith.addf %1528, %1529 : vector<8x32xf32>
    %1531 = math.tanh %1530 : vector<8x32xf32>
    %1532 = arith.mulf %1527, %1531 : vector<8x32xf32>
    %c23_i32 = arith.constant 23 : i32
    %c8_i32_316 = arith.constant 8 : i32
    %1533 = arith.muli %c23_i32, %c8_i32_316 : i32
    %1534 = tpu.assume_multiple %1533, 8 : i32
    %1535 = arith.index_cast %1534 : i32 to index
    %c0_317 = arith.constant 0 : index
    %1536 = vector.load %arg14[%1535, %c0_317] : memref<240x128xf32, #tpu.memory_space<vmem>>, vector<8x128xf32>
    %cst_318 = arith.constant dense<0.000000e+00> : vector<8x128xf32>
    %1537 = tpu.matmul %1502, %30, %cst_318 {dimension_numbers = #tpu.dot_dimension_numbers<[1], [0], [0], [1], [0, 0, 1, 1], [], []>} : vector<8x32xf32>, vector<32x128xf32>, vector<8x128xf32> -> vector<8x128xf32>
    %1538 = arith.addf %1536, %1537 : vector<8x128xf32>
    %1539 = vector.extract_strided_slice %1538 {offsets = [0, 0], sizes = [8, 32], strides = [1, 1]} : vector<8x128xf32> to vector<8x32xf32>
    %1540 = arith.negf %1539 : vector<8x32xf32>
    %1541 = math.exp %1540 : vector<8x32xf32>
    %cst_319 = arith.constant 1.000000e+00 : f32
    %1542 = vector.broadcast %cst_319 : f32 to vector<8x32xf32>
    %1543 = arith.addf %1542, %1541 : vector<8x32xf32>
    %1544 = arith.divf %1542, %1543 : vector<8x32xf32>
    %1545 = vector.extract_strided_slice %1538 {offsets = [0, 32], sizes = [8, 32], strides = [1, 1]} : vector<8x128xf32> to vector<8x32xf32>
    %1546 = arith.negf %1545 : vector<8x32xf32>
    %1547 = math.exp %1546 : vector<8x32xf32>
    %cst_320 = arith.constant 1.000000e+00 : f32
    %1548 = vector.broadcast %cst_320 : f32 to vector<8x32xf32>
    %1549 = arith.addf %1548, %1547 : vector<8x32xf32>
    %1550 = arith.divf %1548, %1549 : vector<8x32xf32>
    %1551 = vector.extract_strided_slice %1538 {offsets = [0, 64], sizes = [8, 32], strides = [1, 1]} : vector<8x128xf32> to vector<8x32xf32>
    %1552 = math.tanh %1551 : vector<8x32xf32>
    %1553 = vector.extract_strided_slice %1538 {offsets = [0, 96], sizes = [8, 32], strides = [1, 1]} : vector<8x128xf32> to vector<8x32xf32>
    %1554 = arith.negf %1553 : vector<8x32xf32>
    %1555 = math.exp %1554 : vector<8x32xf32>
    %cst_321 = arith.constant 1.000000e+00 : f32
    %1556 = vector.broadcast %cst_321 : f32 to vector<8x32xf32>
    %1557 = arith.addf %1556, %1555 : vector<8x32xf32>
    %1558 = arith.divf %1556, %1557 : vector<8x32xf32>
    %1559 = arith.mulf %1550, %1500 : vector<8x32xf32>
    %1560 = arith.mulf %1544, %1552 : vector<8x32xf32>
    %1561 = arith.addf %1559, %1560 : vector<8x32xf32>
    %1562 = math.tanh %1561 : vector<8x32xf32>
    %1563 = arith.mulf %1558, %1562 : vector<8x32xf32>
    %cst_322 = arith.constant dense<0.000000e+00> : vector<8x128xf32>
    %1564 = tpu.matmul %1563, %29, %cst_322 {dimension_numbers = #tpu.dot_dimension_numbers<[1], [0], [0], [1], [0, 0, 1, 1], [], []>} : vector<8x32xf32>, vector<32x128xf32>, vector<8x128xf32> -> vector<8x128xf32>
    %cst_323 = arith.constant dense<0.000000e+00> : vector<8x128xf32>
    %1565 = tpu.matmul %1532, %31, %cst_323 {dimension_numbers = #tpu.dot_dimension_numbers<[1], [0], [0], [1], [0, 0, 1, 1], [], []>} : vector<8x32xf32>, vector<32x128xf32>, vector<8x128xf32> -> vector<8x128xf32>
    %1566 = arith.addf %1564, %1565 : vector<8x128xf32>
    %1567 = vector.broadcast %33 : vector<1x128xf32> to vector<8x128xf32>
    %1568 = arith.addf %1566, %1567 : vector<8x128xf32>
    %1569 = vector.extract_strided_slice %1568 {offsets = [0, 0], sizes = [8, 32], strides = [1, 1]} : vector<8x128xf32> to vector<8x32xf32>
    %1570 = arith.negf %1569 : vector<8x32xf32>
    %1571 = math.exp %1570 : vector<8x32xf32>
    %cst_324 = arith.constant 1.000000e+00 : f32
    %1572 = vector.broadcast %cst_324 : f32 to vector<8x32xf32>
    %1573 = arith.addf %1572, %1571 : vector<8x32xf32>
    %1574 = arith.divf %1572, %1573 : vector<8x32xf32>
    %1575 = vector.extract_strided_slice %1568 {offsets = [0, 32], sizes = [8, 32], strides = [1, 1]} : vector<8x128xf32> to vector<8x32xf32>
    %1576 = arith.negf %1575 : vector<8x32xf32>
    %1577 = math.exp %1576 : vector<8x32xf32>
    %cst_325 = arith.constant 1.000000e+00 : f32
    %1578 = vector.broadcast %cst_325 : f32 to vector<8x32xf32>
    %1579 = arith.addf %1578, %1577 : vector<8x32xf32>
    %1580 = arith.divf %1578, %1579 : vector<8x32xf32>
    %1581 = vector.extract_strided_slice %1568 {offsets = [0, 64], sizes = [8, 32], strides = [1, 1]} : vector<8x128xf32> to vector<8x32xf32>
    %1582 = math.tanh %1581 : vector<8x32xf32>
    %1583 = vector.extract_strided_slice %1568 {offsets = [0, 96], sizes = [8, 32], strides = [1, 1]} : vector<8x128xf32> to vector<8x32xf32>
    %1584 = arith.negf %1583 : vector<8x32xf32>
    %1585 = math.exp %1584 : vector<8x32xf32>
    %cst_326 = arith.constant 1.000000e+00 : f32
    %1586 = vector.broadcast %cst_326 : f32 to vector<8x32xf32>
    %1587 = arith.addf %1586, %1585 : vector<8x32xf32>
    %1588 = arith.divf %1586, %1587 : vector<8x32xf32>
    %1589 = arith.mulf %1580, %1530 : vector<8x32xf32>
    %1590 = arith.mulf %1574, %1582 : vector<8x32xf32>
    %1591 = arith.addf %1589, %1590 : vector<8x32xf32>
    %1592 = math.tanh %1591 : vector<8x32xf32>
    %1593 = arith.mulf %1588, %1592 : vector<8x32xf32>
    %c24_i32 = arith.constant 24 : i32
    %c8_i32_327 = arith.constant 8 : i32
    %1594 = arith.muli %c24_i32, %c8_i32_327 : i32
    %1595 = tpu.assume_multiple %1594, 8 : i32
    %1596 = arith.index_cast %1595 : i32 to index
    %c0_328 = arith.constant 0 : index
    %1597 = vector.load %arg14[%1596, %c0_328] : memref<240x128xf32, #tpu.memory_space<vmem>>, vector<8x128xf32>
    %cst_329 = arith.constant dense<0.000000e+00> : vector<8x128xf32>
    %1598 = tpu.matmul %1563, %30, %cst_329 {dimension_numbers = #tpu.dot_dimension_numbers<[1], [0], [0], [1], [0, 0, 1, 1], [], []>} : vector<8x32xf32>, vector<32x128xf32>, vector<8x128xf32> -> vector<8x128xf32>
    %1599 = arith.addf %1597, %1598 : vector<8x128xf32>
    %1600 = vector.extract_strided_slice %1599 {offsets = [0, 0], sizes = [8, 32], strides = [1, 1]} : vector<8x128xf32> to vector<8x32xf32>
    %1601 = arith.negf %1600 : vector<8x32xf32>
    %1602 = math.exp %1601 : vector<8x32xf32>
    %cst_330 = arith.constant 1.000000e+00 : f32
    %1603 = vector.broadcast %cst_330 : f32 to vector<8x32xf32>
    %1604 = arith.addf %1603, %1602 : vector<8x32xf32>
    %1605 = arith.divf %1603, %1604 : vector<8x32xf32>
    %1606 = vector.extract_strided_slice %1599 {offsets = [0, 32], sizes = [8, 32], strides = [1, 1]} : vector<8x128xf32> to vector<8x32xf32>
    %1607 = arith.negf %1606 : vector<8x32xf32>
    %1608 = math.exp %1607 : vector<8x32xf32>
    %cst_331 = arith.constant 1.000000e+00 : f32
    %1609 = vector.broadcast %cst_331 : f32 to vector<8x32xf32>
    %1610 = arith.addf %1609, %1608 : vector<8x32xf32>
    %1611 = arith.divf %1609, %1610 : vector<8x32xf32>
    %1612 = vector.extract_strided_slice %1599 {offsets = [0, 64], sizes = [8, 32], strides = [1, 1]} : vector<8x128xf32> to vector<8x32xf32>
    %1613 = math.tanh %1612 : vector<8x32xf32>
    %1614 = vector.extract_strided_slice %1599 {offsets = [0, 96], sizes = [8, 32], strides = [1, 1]} : vector<8x128xf32> to vector<8x32xf32>
    %1615 = arith.negf %1614 : vector<8x32xf32>
    %1616 = math.exp %1615 : vector<8x32xf32>
    %cst_332 = arith.constant 1.000000e+00 : f32
    %1617 = vector.broadcast %cst_332 : f32 to vector<8x32xf32>
    %1618 = arith.addf %1617, %1616 : vector<8x32xf32>
    %1619 = arith.divf %1617, %1618 : vector<8x32xf32>
    %1620 = arith.mulf %1611, %1561 : vector<8x32xf32>
    %1621 = arith.mulf %1605, %1613 : vector<8x32xf32>
    %1622 = arith.addf %1620, %1621 : vector<8x32xf32>
    %1623 = math.tanh %1622 : vector<8x32xf32>
    %1624 = arith.mulf %1619, %1623 : vector<8x32xf32>
    %cst_333 = arith.constant dense<0.000000e+00> : vector<8x128xf32>
    %1625 = tpu.matmul %1624, %29, %cst_333 {dimension_numbers = #tpu.dot_dimension_numbers<[1], [0], [0], [1], [0, 0, 1, 1], [], []>} : vector<8x32xf32>, vector<32x128xf32>, vector<8x128xf32> -> vector<8x128xf32>
    %cst_334 = arith.constant dense<0.000000e+00> : vector<8x128xf32>
    %1626 = tpu.matmul %1593, %31, %cst_334 {dimension_numbers = #tpu.dot_dimension_numbers<[1], [0], [0], [1], [0, 0, 1, 1], [], []>} : vector<8x32xf32>, vector<32x128xf32>, vector<8x128xf32> -> vector<8x128xf32>
    %1627 = arith.addf %1625, %1626 : vector<8x128xf32>
    %1628 = vector.broadcast %33 : vector<1x128xf32> to vector<8x128xf32>
    %1629 = arith.addf %1627, %1628 : vector<8x128xf32>
    %1630 = vector.extract_strided_slice %1629 {offsets = [0, 0], sizes = [8, 32], strides = [1, 1]} : vector<8x128xf32> to vector<8x32xf32>
    %1631 = arith.negf %1630 : vector<8x32xf32>
    %1632 = math.exp %1631 : vector<8x32xf32>
    %cst_335 = arith.constant 1.000000e+00 : f32
    %1633 = vector.broadcast %cst_335 : f32 to vector<8x32xf32>
    %1634 = arith.addf %1633, %1632 : vector<8x32xf32>
    %1635 = arith.divf %1633, %1634 : vector<8x32xf32>
    %1636 = vector.extract_strided_slice %1629 {offsets = [0, 32], sizes = [8, 32], strides = [1, 1]} : vector<8x128xf32> to vector<8x32xf32>
    %1637 = arith.negf %1636 : vector<8x32xf32>
    %1638 = math.exp %1637 : vector<8x32xf32>
    %cst_336 = arith.constant 1.000000e+00 : f32
    %1639 = vector.broadcast %cst_336 : f32 to vector<8x32xf32>
    %1640 = arith.addf %1639, %1638 : vector<8x32xf32>
    %1641 = arith.divf %1639, %1640 : vector<8x32xf32>
    %1642 = vector.extract_strided_slice %1629 {offsets = [0, 64], sizes = [8, 32], strides = [1, 1]} : vector<8x128xf32> to vector<8x32xf32>
    %1643 = math.tanh %1642 : vector<8x32xf32>
    %1644 = vector.extract_strided_slice %1629 {offsets = [0, 96], sizes = [8, 32], strides = [1, 1]} : vector<8x128xf32> to vector<8x32xf32>
    %1645 = arith.negf %1644 : vector<8x32xf32>
    %1646 = math.exp %1645 : vector<8x32xf32>
    %cst_337 = arith.constant 1.000000e+00 : f32
    %1647 = vector.broadcast %cst_337 : f32 to vector<8x32xf32>
    %1648 = arith.addf %1647, %1646 : vector<8x32xf32>
    %1649 = arith.divf %1647, %1648 : vector<8x32xf32>
    %1650 = arith.mulf %1641, %1591 : vector<8x32xf32>
    %1651 = arith.mulf %1635, %1643 : vector<8x32xf32>
    %1652 = arith.addf %1650, %1651 : vector<8x32xf32>
    %1653 = math.tanh %1652 : vector<8x32xf32>
    %1654 = arith.mulf %1649, %1653 : vector<8x32xf32>
    %c25_i32 = arith.constant 25 : i32
    %c8_i32_338 = arith.constant 8 : i32
    %1655 = arith.muli %c25_i32, %c8_i32_338 : i32
    %1656 = tpu.assume_multiple %1655, 8 : i32
    %1657 = arith.index_cast %1656 : i32 to index
    %c0_339 = arith.constant 0 : index
    %1658 = vector.load %arg14[%1657, %c0_339] : memref<240x128xf32, #tpu.memory_space<vmem>>, vector<8x128xf32>
    %cst_340 = arith.constant dense<0.000000e+00> : vector<8x128xf32>
    %1659 = tpu.matmul %1624, %30, %cst_340 {dimension_numbers = #tpu.dot_dimension_numbers<[1], [0], [0], [1], [0, 0, 1, 1], [], []>} : vector<8x32xf32>, vector<32x128xf32>, vector<8x128xf32> -> vector<8x128xf32>
    %1660 = arith.addf %1658, %1659 : vector<8x128xf32>
    %1661 = vector.extract_strided_slice %1660 {offsets = [0, 0], sizes = [8, 32], strides = [1, 1]} : vector<8x128xf32> to vector<8x32xf32>
    %1662 = arith.negf %1661 : vector<8x32xf32>
    %1663 = math.exp %1662 : vector<8x32xf32>
    %cst_341 = arith.constant 1.000000e+00 : f32
    %1664 = vector.broadcast %cst_341 : f32 to vector<8x32xf32>
    %1665 = arith.addf %1664, %1663 : vector<8x32xf32>
    %1666 = arith.divf %1664, %1665 : vector<8x32xf32>
    %1667 = vector.extract_strided_slice %1660 {offsets = [0, 32], sizes = [8, 32], strides = [1, 1]} : vector<8x128xf32> to vector<8x32xf32>
    %1668 = arith.negf %1667 : vector<8x32xf32>
    %1669 = math.exp %1668 : vector<8x32xf32>
    %cst_342 = arith.constant 1.000000e+00 : f32
    %1670 = vector.broadcast %cst_342 : f32 to vector<8x32xf32>
    %1671 = arith.addf %1670, %1669 : vector<8x32xf32>
    %1672 = arith.divf %1670, %1671 : vector<8x32xf32>
    %1673 = vector.extract_strided_slice %1660 {offsets = [0, 64], sizes = [8, 32], strides = [1, 1]} : vector<8x128xf32> to vector<8x32xf32>
    %1674 = math.tanh %1673 : vector<8x32xf32>
    %1675 = vector.extract_strided_slice %1660 {offsets = [0, 96], sizes = [8, 32], strides = [1, 1]} : vector<8x128xf32> to vector<8x32xf32>
    %1676 = arith.negf %1675 : vector<8x32xf32>
    %1677 = math.exp %1676 : vector<8x32xf32>
    %cst_343 = arith.constant 1.000000e+00 : f32
    %1678 = vector.broadcast %cst_343 : f32 to vector<8x32xf32>
    %1679 = arith.addf %1678, %1677 : vector<8x32xf32>
    %1680 = arith.divf %1678, %1679 : vector<8x32xf32>
    %1681 = arith.mulf %1672, %1622 : vector<8x32xf32>
    %1682 = arith.mulf %1666, %1674 : vector<8x32xf32>
    %1683 = arith.addf %1681, %1682 : vector<8x32xf32>
    %1684 = math.tanh %1683 : vector<8x32xf32>
    %1685 = arith.mulf %1680, %1684 : vector<8x32xf32>
    %cst_344 = arith.constant dense<0.000000e+00> : vector<8x128xf32>
    %1686 = tpu.matmul %1685, %29, %cst_344 {dimension_numbers = #tpu.dot_dimension_numbers<[1], [0], [0], [1], [0, 0, 1, 1], [], []>} : vector<8x32xf32>, vector<32x128xf32>, vector<8x128xf32> -> vector<8x128xf32>
    %cst_345 = arith.constant dense<0.000000e+00> : vector<8x128xf32>
    %1687 = tpu.matmul %1654, %31, %cst_345 {dimension_numbers = #tpu.dot_dimension_numbers<[1], [0], [0], [1], [0, 0, 1, 1], [], []>} : vector<8x32xf32>, vector<32x128xf32>, vector<8x128xf32> -> vector<8x128xf32>
    %1688 = arith.addf %1686, %1687 : vector<8x128xf32>
    %1689 = vector.broadcast %33 : vector<1x128xf32> to vector<8x128xf32>
    %1690 = arith.addf %1688, %1689 : vector<8x128xf32>
    %1691 = vector.extract_strided_slice %1690 {offsets = [0, 0], sizes = [8, 32], strides = [1, 1]} : vector<8x128xf32> to vector<8x32xf32>
    %1692 = arith.negf %1691 : vector<8x32xf32>
    %1693 = math.exp %1692 : vector<8x32xf32>
    %cst_346 = arith.constant 1.000000e+00 : f32
    %1694 = vector.broadcast %cst_346 : f32 to vector<8x32xf32>
    %1695 = arith.addf %1694, %1693 : vector<8x32xf32>
    %1696 = arith.divf %1694, %1695 : vector<8x32xf32>
    %1697 = vector.extract_strided_slice %1690 {offsets = [0, 32], sizes = [8, 32], strides = [1, 1]} : vector<8x128xf32> to vector<8x32xf32>
    %1698 = arith.negf %1697 : vector<8x32xf32>
    %1699 = math.exp %1698 : vector<8x32xf32>
    %cst_347 = arith.constant 1.000000e+00 : f32
    %1700 = vector.broadcast %cst_347 : f32 to vector<8x32xf32>
    %1701 = arith.addf %1700, %1699 : vector<8x32xf32>
    %1702 = arith.divf %1700, %1701 : vector<8x32xf32>
    %1703 = vector.extract_strided_slice %1690 {offsets = [0, 64], sizes = [8, 32], strides = [1, 1]} : vector<8x128xf32> to vector<8x32xf32>
    %1704 = math.tanh %1703 : vector<8x32xf32>
    %1705 = vector.extract_strided_slice %1690 {offsets = [0, 96], sizes = [8, 32], strides = [1, 1]} : vector<8x128xf32> to vector<8x32xf32>
    %1706 = arith.negf %1705 : vector<8x32xf32>
    %1707 = math.exp %1706 : vector<8x32xf32>
    %cst_348 = arith.constant 1.000000e+00 : f32
    %1708 = vector.broadcast %cst_348 : f32 to vector<8x32xf32>
    %1709 = arith.addf %1708, %1707 : vector<8x32xf32>
    %1710 = arith.divf %1708, %1709 : vector<8x32xf32>
    %1711 = arith.mulf %1702, %1652 : vector<8x32xf32>
    %1712 = arith.mulf %1696, %1704 : vector<8x32xf32>
    %1713 = arith.addf %1711, %1712 : vector<8x32xf32>
    %1714 = math.tanh %1713 : vector<8x32xf32>
    %1715 = arith.mulf %1710, %1714 : vector<8x32xf32>
    %c26_i32 = arith.constant 26 : i32
    %c8_i32_349 = arith.constant 8 : i32
    %1716 = arith.muli %c26_i32, %c8_i32_349 : i32
    %1717 = tpu.assume_multiple %1716, 8 : i32
    %1718 = arith.index_cast %1717 : i32 to index
    %c0_350 = arith.constant 0 : index
    %1719 = vector.load %arg14[%1718, %c0_350] : memref<240x128xf32, #tpu.memory_space<vmem>>, vector<8x128xf32>
    %cst_351 = arith.constant dense<0.000000e+00> : vector<8x128xf32>
    %1720 = tpu.matmul %1685, %30, %cst_351 {dimension_numbers = #tpu.dot_dimension_numbers<[1], [0], [0], [1], [0, 0, 1, 1], [], []>} : vector<8x32xf32>, vector<32x128xf32>, vector<8x128xf32> -> vector<8x128xf32>
    %1721 = arith.addf %1719, %1720 : vector<8x128xf32>
    %1722 = vector.extract_strided_slice %1721 {offsets = [0, 0], sizes = [8, 32], strides = [1, 1]} : vector<8x128xf32> to vector<8x32xf32>
    %1723 = arith.negf %1722 : vector<8x32xf32>
    %1724 = math.exp %1723 : vector<8x32xf32>
    %cst_352 = arith.constant 1.000000e+00 : f32
    %1725 = vector.broadcast %cst_352 : f32 to vector<8x32xf32>
    %1726 = arith.addf %1725, %1724 : vector<8x32xf32>
    %1727 = arith.divf %1725, %1726 : vector<8x32xf32>
    %1728 = vector.extract_strided_slice %1721 {offsets = [0, 32], sizes = [8, 32], strides = [1, 1]} : vector<8x128xf32> to vector<8x32xf32>
    %1729 = arith.negf %1728 : vector<8x32xf32>
    %1730 = math.exp %1729 : vector<8x32xf32>
    %cst_353 = arith.constant 1.000000e+00 : f32
    %1731 = vector.broadcast %cst_353 : f32 to vector<8x32xf32>
    %1732 = arith.addf %1731, %1730 : vector<8x32xf32>
    %1733 = arith.divf %1731, %1732 : vector<8x32xf32>
    %1734 = vector.extract_strided_slice %1721 {offsets = [0, 64], sizes = [8, 32], strides = [1, 1]} : vector<8x128xf32> to vector<8x32xf32>
    %1735 = math.tanh %1734 : vector<8x32xf32>
    %1736 = vector.extract_strided_slice %1721 {offsets = [0, 96], sizes = [8, 32], strides = [1, 1]} : vector<8x128xf32> to vector<8x32xf32>
    %1737 = arith.negf %1736 : vector<8x32xf32>
    %1738 = math.exp %1737 : vector<8x32xf32>
    %cst_354 = arith.constant 1.000000e+00 : f32
    %1739 = vector.broadcast %cst_354 : f32 to vector<8x32xf32>
    %1740 = arith.addf %1739, %1738 : vector<8x32xf32>
    %1741 = arith.divf %1739, %1740 : vector<8x32xf32>
    %1742 = arith.mulf %1733, %1683 : vector<8x32xf32>
    %1743 = arith.mulf %1727, %1735 : vector<8x32xf32>
    %1744 = arith.addf %1742, %1743 : vector<8x32xf32>
    %1745 = math.tanh %1744 : vector<8x32xf32>
    %1746 = arith.mulf %1741, %1745 : vector<8x32xf32>
    %cst_355 = arith.constant dense<0.000000e+00> : vector<8x128xf32>
    %1747 = tpu.matmul %1746, %29, %cst_355 {dimension_numbers = #tpu.dot_dimension_numbers<[1], [0], [0], [1], [0, 0, 1, 1], [], []>} : vector<8x32xf32>, vector<32x128xf32>, vector<8x128xf32> -> vector<8x128xf32>
    %cst_356 = arith.constant dense<0.000000e+00> : vector<8x128xf32>
    %1748 = tpu.matmul %1715, %31, %cst_356 {dimension_numbers = #tpu.dot_dimension_numbers<[1], [0], [0], [1], [0, 0, 1, 1], [], []>} : vector<8x32xf32>, vector<32x128xf32>, vector<8x128xf32> -> vector<8x128xf32>
    %1749 = arith.addf %1747, %1748 : vector<8x128xf32>
    %1750 = vector.broadcast %33 : vector<1x128xf32> to vector<8x128xf32>
    %1751 = arith.addf %1749, %1750 : vector<8x128xf32>
    %1752 = vector.extract_strided_slice %1751 {offsets = [0, 0], sizes = [8, 32], strides = [1, 1]} : vector<8x128xf32> to vector<8x32xf32>
    %1753 = arith.negf %1752 : vector<8x32xf32>
    %1754 = math.exp %1753 : vector<8x32xf32>
    %cst_357 = arith.constant 1.000000e+00 : f32
    %1755 = vector.broadcast %cst_357 : f32 to vector<8x32xf32>
    %1756 = arith.addf %1755, %1754 : vector<8x32xf32>
    %1757 = arith.divf %1755, %1756 : vector<8x32xf32>
    %1758 = vector.extract_strided_slice %1751 {offsets = [0, 32], sizes = [8, 32], strides = [1, 1]} : vector<8x128xf32> to vector<8x32xf32>
    %1759 = arith.negf %1758 : vector<8x32xf32>
    %1760 = math.exp %1759 : vector<8x32xf32>
    %cst_358 = arith.constant 1.000000e+00 : f32
    %1761 = vector.broadcast %cst_358 : f32 to vector<8x32xf32>
    %1762 = arith.addf %1761, %1760 : vector<8x32xf32>
    %1763 = arith.divf %1761, %1762 : vector<8x32xf32>
    %1764 = vector.extract_strided_slice %1751 {offsets = [0, 64], sizes = [8, 32], strides = [1, 1]} : vector<8x128xf32> to vector<8x32xf32>
    %1765 = math.tanh %1764 : vector<8x32xf32>
    %1766 = vector.extract_strided_slice %1751 {offsets = [0, 96], sizes = [8, 32], strides = [1, 1]} : vector<8x128xf32> to vector<8x32xf32>
    %1767 = arith.negf %1766 : vector<8x32xf32>
    %1768 = math.exp %1767 : vector<8x32xf32>
    %cst_359 = arith.constant 1.000000e+00 : f32
    %1769 = vector.broadcast %cst_359 : f32 to vector<8x32xf32>
    %1770 = arith.addf %1769, %1768 : vector<8x32xf32>
    %1771 = arith.divf %1769, %1770 : vector<8x32xf32>
    %1772 = arith.mulf %1763, %1713 : vector<8x32xf32>
    %1773 = arith.mulf %1757, %1765 : vector<8x32xf32>
    %1774 = arith.addf %1772, %1773 : vector<8x32xf32>
    %1775 = math.tanh %1774 : vector<8x32xf32>
    %1776 = arith.mulf %1771, %1775 : vector<8x32xf32>
    %c27_i32 = arith.constant 27 : i32
    %c8_i32_360 = arith.constant 8 : i32
    %1777 = arith.muli %c27_i32, %c8_i32_360 : i32
    %1778 = tpu.assume_multiple %1777, 8 : i32
    %1779 = arith.index_cast %1778 : i32 to index
    %c0_361 = arith.constant 0 : index
    %1780 = vector.load %arg14[%1779, %c0_361] : memref<240x128xf32, #tpu.memory_space<vmem>>, vector<8x128xf32>
    %cst_362 = arith.constant dense<0.000000e+00> : vector<8x128xf32>
    %1781 = tpu.matmul %1746, %30, %cst_362 {dimension_numbers = #tpu.dot_dimension_numbers<[1], [0], [0], [1], [0, 0, 1, 1], [], []>} : vector<8x32xf32>, vector<32x128xf32>, vector<8x128xf32> -> vector<8x128xf32>
    %1782 = arith.addf %1780, %1781 : vector<8x128xf32>
    %1783 = vector.extract_strided_slice %1782 {offsets = [0, 0], sizes = [8, 32], strides = [1, 1]} : vector<8x128xf32> to vector<8x32xf32>
    %1784 = arith.negf %1783 : vector<8x32xf32>
    %1785 = math.exp %1784 : vector<8x32xf32>
    %cst_363 = arith.constant 1.000000e+00 : f32
    %1786 = vector.broadcast %cst_363 : f32 to vector<8x32xf32>
    %1787 = arith.addf %1786, %1785 : vector<8x32xf32>
    %1788 = arith.divf %1786, %1787 : vector<8x32xf32>
    %1789 = vector.extract_strided_slice %1782 {offsets = [0, 32], sizes = [8, 32], strides = [1, 1]} : vector<8x128xf32> to vector<8x32xf32>
    %1790 = arith.negf %1789 : vector<8x32xf32>
    %1791 = math.exp %1790 : vector<8x32xf32>
    %cst_364 = arith.constant 1.000000e+00 : f32
    %1792 = vector.broadcast %cst_364 : f32 to vector<8x32xf32>
    %1793 = arith.addf %1792, %1791 : vector<8x32xf32>
    %1794 = arith.divf %1792, %1793 : vector<8x32xf32>
    %1795 = vector.extract_strided_slice %1782 {offsets = [0, 64], sizes = [8, 32], strides = [1, 1]} : vector<8x128xf32> to vector<8x32xf32>
    %1796 = math.tanh %1795 : vector<8x32xf32>
    %1797 = vector.extract_strided_slice %1782 {offsets = [0, 96], sizes = [8, 32], strides = [1, 1]} : vector<8x128xf32> to vector<8x32xf32>
    %1798 = arith.negf %1797 : vector<8x32xf32>
    %1799 = math.exp %1798 : vector<8x32xf32>
    %cst_365 = arith.constant 1.000000e+00 : f32
    %1800 = vector.broadcast %cst_365 : f32 to vector<8x32xf32>
    %1801 = arith.addf %1800, %1799 : vector<8x32xf32>
    %1802 = arith.divf %1800, %1801 : vector<8x32xf32>
    %1803 = arith.mulf %1794, %1744 : vector<8x32xf32>
    %1804 = arith.mulf %1788, %1796 : vector<8x32xf32>
    %1805 = arith.addf %1803, %1804 : vector<8x32xf32>
    %1806 = math.tanh %1805 : vector<8x32xf32>
    %1807 = arith.mulf %1802, %1806 : vector<8x32xf32>
    %cst_366 = arith.constant dense<0.000000e+00> : vector<8x128xf32>
    %1808 = tpu.matmul %1807, %29, %cst_366 {dimension_numbers = #tpu.dot_dimension_numbers<[1], [0], [0], [1], [0, 0, 1, 1], [], []>} : vector<8x32xf32>, vector<32x128xf32>, vector<8x128xf32> -> vector<8x128xf32>
    %cst_367 = arith.constant dense<0.000000e+00> : vector<8x128xf32>
    %1809 = tpu.matmul %1776, %31, %cst_367 {dimension_numbers = #tpu.dot_dimension_numbers<[1], [0], [0], [1], [0, 0, 1, 1], [], []>} : vector<8x32xf32>, vector<32x128xf32>, vector<8x128xf32> -> vector<8x128xf32>
    %1810 = arith.addf %1808, %1809 : vector<8x128xf32>
    %1811 = vector.broadcast %33 : vector<1x128xf32> to vector<8x128xf32>
    %1812 = arith.addf %1810, %1811 : vector<8x128xf32>
    %1813 = vector.extract_strided_slice %1812 {offsets = [0, 0], sizes = [8, 32], strides = [1, 1]} : vector<8x128xf32> to vector<8x32xf32>
    %1814 = arith.negf %1813 : vector<8x32xf32>
    %1815 = math.exp %1814 : vector<8x32xf32>
    %cst_368 = arith.constant 1.000000e+00 : f32
    %1816 = vector.broadcast %cst_368 : f32 to vector<8x32xf32>
    %1817 = arith.addf %1816, %1815 : vector<8x32xf32>
    %1818 = arith.divf %1816, %1817 : vector<8x32xf32>
    %1819 = vector.extract_strided_slice %1812 {offsets = [0, 32], sizes = [8, 32], strides = [1, 1]} : vector<8x128xf32> to vector<8x32xf32>
    %1820 = arith.negf %1819 : vector<8x32xf32>
    %1821 = math.exp %1820 : vector<8x32xf32>
    %cst_369 = arith.constant 1.000000e+00 : f32
    %1822 = vector.broadcast %cst_369 : f32 to vector<8x32xf32>
    %1823 = arith.addf %1822, %1821 : vector<8x32xf32>
    %1824 = arith.divf %1822, %1823 : vector<8x32xf32>
    %1825 = vector.extract_strided_slice %1812 {offsets = [0, 64], sizes = [8, 32], strides = [1, 1]} : vector<8x128xf32> to vector<8x32xf32>
    %1826 = math.tanh %1825 : vector<8x32xf32>
    %1827 = vector.extract_strided_slice %1812 {offsets = [0, 96], sizes = [8, 32], strides = [1, 1]} : vector<8x128xf32> to vector<8x32xf32>
    %1828 = arith.negf %1827 : vector<8x32xf32>
    %1829 = math.exp %1828 : vector<8x32xf32>
    %cst_370 = arith.constant 1.000000e+00 : f32
    %1830 = vector.broadcast %cst_370 : f32 to vector<8x32xf32>
    %1831 = arith.addf %1830, %1829 : vector<8x32xf32>
    %1832 = arith.divf %1830, %1831 : vector<8x32xf32>
    %1833 = arith.mulf %1824, %1774 : vector<8x32xf32>
    %1834 = arith.mulf %1818, %1826 : vector<8x32xf32>
    %1835 = arith.addf %1833, %1834 : vector<8x32xf32>
    %1836 = math.tanh %1835 : vector<8x32xf32>
    %1837 = arith.mulf %1832, %1836 : vector<8x32xf32>
    %c28_i32 = arith.constant 28 : i32
    %c8_i32_371 = arith.constant 8 : i32
    %1838 = arith.muli %c28_i32, %c8_i32_371 : i32
    %1839 = tpu.assume_multiple %1838, 8 : i32
    %1840 = arith.index_cast %1839 : i32 to index
    %c0_372 = arith.constant 0 : index
    %1841 = vector.load %arg14[%1840, %c0_372] : memref<240x128xf32, #tpu.memory_space<vmem>>, vector<8x128xf32>
    %cst_373 = arith.constant dense<0.000000e+00> : vector<8x128xf32>
    %1842 = tpu.matmul %1807, %30, %cst_373 {dimension_numbers = #tpu.dot_dimension_numbers<[1], [0], [0], [1], [0, 0, 1, 1], [], []>} : vector<8x32xf32>, vector<32x128xf32>, vector<8x128xf32> -> vector<8x128xf32>
    %1843 = arith.addf %1841, %1842 : vector<8x128xf32>
    %1844 = vector.extract_strided_slice %1843 {offsets = [0, 0], sizes = [8, 32], strides = [1, 1]} : vector<8x128xf32> to vector<8x32xf32>
    %1845 = arith.negf %1844 : vector<8x32xf32>
    %1846 = math.exp %1845 : vector<8x32xf32>
    %cst_374 = arith.constant 1.000000e+00 : f32
    %1847 = vector.broadcast %cst_374 : f32 to vector<8x32xf32>
    %1848 = arith.addf %1847, %1846 : vector<8x32xf32>
    %1849 = arith.divf %1847, %1848 : vector<8x32xf32>
    %1850 = vector.extract_strided_slice %1843 {offsets = [0, 32], sizes = [8, 32], strides = [1, 1]} : vector<8x128xf32> to vector<8x32xf32>
    %1851 = arith.negf %1850 : vector<8x32xf32>
    %1852 = math.exp %1851 : vector<8x32xf32>
    %cst_375 = arith.constant 1.000000e+00 : f32
    %1853 = vector.broadcast %cst_375 : f32 to vector<8x32xf32>
    %1854 = arith.addf %1853, %1852 : vector<8x32xf32>
    %1855 = arith.divf %1853, %1854 : vector<8x32xf32>
    %1856 = vector.extract_strided_slice %1843 {offsets = [0, 64], sizes = [8, 32], strides = [1, 1]} : vector<8x128xf32> to vector<8x32xf32>
    %1857 = math.tanh %1856 : vector<8x32xf32>
    %1858 = vector.extract_strided_slice %1843 {offsets = [0, 96], sizes = [8, 32], strides = [1, 1]} : vector<8x128xf32> to vector<8x32xf32>
    %1859 = arith.negf %1858 : vector<8x32xf32>
    %1860 = math.exp %1859 : vector<8x32xf32>
    %cst_376 = arith.constant 1.000000e+00 : f32
    %1861 = vector.broadcast %cst_376 : f32 to vector<8x32xf32>
    %1862 = arith.addf %1861, %1860 : vector<8x32xf32>
    %1863 = arith.divf %1861, %1862 : vector<8x32xf32>
    %1864 = arith.mulf %1855, %1805 : vector<8x32xf32>
    %1865 = arith.mulf %1849, %1857 : vector<8x32xf32>
    %1866 = arith.addf %1864, %1865 : vector<8x32xf32>
    %1867 = math.tanh %1866 : vector<8x32xf32>
    %1868 = arith.mulf %1863, %1867 : vector<8x32xf32>
    %cst_377 = arith.constant dense<0.000000e+00> : vector<8x128xf32>
    %1869 = tpu.matmul %1868, %29, %cst_377 {dimension_numbers = #tpu.dot_dimension_numbers<[1], [0], [0], [1], [0, 0, 1, 1], [], []>} : vector<8x32xf32>, vector<32x128xf32>, vector<8x128xf32> -> vector<8x128xf32>
    %cst_378 = arith.constant dense<0.000000e+00> : vector<8x128xf32>
    %1870 = tpu.matmul %1837, %31, %cst_378 {dimension_numbers = #tpu.dot_dimension_numbers<[1], [0], [0], [1], [0, 0, 1, 1], [], []>} : vector<8x32xf32>, vector<32x128xf32>, vector<8x128xf32> -> vector<8x128xf32>
    %1871 = arith.addf %1869, %1870 : vector<8x128xf32>
    %1872 = vector.broadcast %33 : vector<1x128xf32> to vector<8x128xf32>
    %1873 = arith.addf %1871, %1872 : vector<8x128xf32>
    %1874 = vector.extract_strided_slice %1873 {offsets = [0, 0], sizes = [8, 32], strides = [1, 1]} : vector<8x128xf32> to vector<8x32xf32>
    %1875 = arith.negf %1874 : vector<8x32xf32>
    %1876 = math.exp %1875 : vector<8x32xf32>
    %cst_379 = arith.constant 1.000000e+00 : f32
    %1877 = vector.broadcast %cst_379 : f32 to vector<8x32xf32>
    %1878 = arith.addf %1877, %1876 : vector<8x32xf32>
    %1879 = arith.divf %1877, %1878 : vector<8x32xf32>
    %1880 = vector.extract_strided_slice %1873 {offsets = [0, 32], sizes = [8, 32], strides = [1, 1]} : vector<8x128xf32> to vector<8x32xf32>
    %1881 = arith.negf %1880 : vector<8x32xf32>
    %1882 = math.exp %1881 : vector<8x32xf32>
    %cst_380 = arith.constant 1.000000e+00 : f32
    %1883 = vector.broadcast %cst_380 : f32 to vector<8x32xf32>
    %1884 = arith.addf %1883, %1882 : vector<8x32xf32>
    %1885 = arith.divf %1883, %1884 : vector<8x32xf32>
    %1886 = vector.extract_strided_slice %1873 {offsets = [0, 64], sizes = [8, 32], strides = [1, 1]} : vector<8x128xf32> to vector<8x32xf32>
    %1887 = math.tanh %1886 : vector<8x32xf32>
    %1888 = vector.extract_strided_slice %1873 {offsets = [0, 96], sizes = [8, 32], strides = [1, 1]} : vector<8x128xf32> to vector<8x32xf32>
    %1889 = arith.negf %1888 : vector<8x32xf32>
    %1890 = math.exp %1889 : vector<8x32xf32>
    %cst_381 = arith.constant 1.000000e+00 : f32
    %1891 = vector.broadcast %cst_381 : f32 to vector<8x32xf32>
    %1892 = arith.addf %1891, %1890 : vector<8x32xf32>
    %1893 = arith.divf %1891, %1892 : vector<8x32xf32>
    %1894 = arith.mulf %1885, %1835 : vector<8x32xf32>
    %1895 = arith.mulf %1879, %1887 : vector<8x32xf32>
    %1896 = arith.addf %1894, %1895 : vector<8x32xf32>
    %1897 = math.tanh %1896 : vector<8x32xf32>
    %1898 = arith.mulf %1893, %1897 : vector<8x32xf32>
    %c29_i32 = arith.constant 29 : i32
    %c8_i32_382 = arith.constant 8 : i32
    %1899 = arith.muli %c29_i32, %c8_i32_382 : i32
    %1900 = tpu.assume_multiple %1899, 8 : i32
    %1901 = arith.index_cast %1900 : i32 to index
    %c0_383 = arith.constant 0 : index
    %1902 = vector.load %arg14[%1901, %c0_383] : memref<240x128xf32, #tpu.memory_space<vmem>>, vector<8x128xf32>
    %cst_384 = arith.constant dense<0.000000e+00> : vector<8x128xf32>
    %1903 = tpu.matmul %1868, %30, %cst_384 {dimension_numbers = #tpu.dot_dimension_numbers<[1], [0], [0], [1], [0, 0, 1, 1], [], []>} : vector<8x32xf32>, vector<32x128xf32>, vector<8x128xf32> -> vector<8x128xf32>
    %1904 = arith.addf %1902, %1903 : vector<8x128xf32>
    %1905 = vector.extract_strided_slice %1904 {offsets = [0, 0], sizes = [8, 32], strides = [1, 1]} : vector<8x128xf32> to vector<8x32xf32>
    %1906 = arith.negf %1905 : vector<8x32xf32>
    %1907 = math.exp %1906 : vector<8x32xf32>
    %cst_385 = arith.constant 1.000000e+00 : f32
    %1908 = vector.broadcast %cst_385 : f32 to vector<8x32xf32>
    %1909 = arith.addf %1908, %1907 : vector<8x32xf32>
    %1910 = arith.divf %1908, %1909 : vector<8x32xf32>
    %1911 = vector.extract_strided_slice %1904 {offsets = [0, 32], sizes = [8, 32], strides = [1, 1]} : vector<8x128xf32> to vector<8x32xf32>
    %1912 = arith.negf %1911 : vector<8x32xf32>
    %1913 = math.exp %1912 : vector<8x32xf32>
    %cst_386 = arith.constant 1.000000e+00 : f32
    %1914 = vector.broadcast %cst_386 : f32 to vector<8x32xf32>
    %1915 = arith.addf %1914, %1913 : vector<8x32xf32>
    %1916 = arith.divf %1914, %1915 : vector<8x32xf32>
    %1917 = vector.extract_strided_slice %1904 {offsets = [0, 64], sizes = [8, 32], strides = [1, 1]} : vector<8x128xf32> to vector<8x32xf32>
    %1918 = math.tanh %1917 : vector<8x32xf32>
    %1919 = vector.extract_strided_slice %1904 {offsets = [0, 96], sizes = [8, 32], strides = [1, 1]} : vector<8x128xf32> to vector<8x32xf32>
    %1920 = arith.negf %1919 : vector<8x32xf32>
    %1921 = math.exp %1920 : vector<8x32xf32>
    %cst_387 = arith.constant 1.000000e+00 : f32
    %1922 = vector.broadcast %cst_387 : f32 to vector<8x32xf32>
    %1923 = arith.addf %1922, %1921 : vector<8x32xf32>
    %1924 = arith.divf %1922, %1923 : vector<8x32xf32>
    %1925 = arith.mulf %1916, %1866 : vector<8x32xf32>
    %1926 = arith.mulf %1910, %1918 : vector<8x32xf32>
    %1927 = arith.addf %1925, %1926 : vector<8x32xf32>
    %1928 = math.tanh %1927 : vector<8x32xf32>
    %1929 = arith.mulf %1924, %1928 : vector<8x32xf32>
    %cst_388 = arith.constant dense<0.000000e+00> : vector<8x128xf32>
    %1930 = tpu.matmul %1929, %29, %cst_388 {dimension_numbers = #tpu.dot_dimension_numbers<[1], [0], [0], [1], [0, 0, 1, 1], [], []>} : vector<8x32xf32>, vector<32x128xf32>, vector<8x128xf32> -> vector<8x128xf32>
    %cst_389 = arith.constant dense<0.000000e+00> : vector<8x128xf32>
    %1931 = tpu.matmul %1898, %31, %cst_389 {dimension_numbers = #tpu.dot_dimension_numbers<[1], [0], [0], [1], [0, 0, 1, 1], [], []>} : vector<8x32xf32>, vector<32x128xf32>, vector<8x128xf32> -> vector<8x128xf32>
    %1932 = arith.addf %1930, %1931 : vector<8x128xf32>
    %1933 = vector.broadcast %33 : vector<1x128xf32> to vector<8x128xf32>
    %1934 = arith.addf %1932, %1933 : vector<8x128xf32>
    %1935 = vector.extract_strided_slice %1934 {offsets = [0, 0], sizes = [8, 32], strides = [1, 1]} : vector<8x128xf32> to vector<8x32xf32>
    %1936 = arith.negf %1935 : vector<8x32xf32>
    %1937 = math.exp %1936 : vector<8x32xf32>
    %cst_390 = arith.constant 1.000000e+00 : f32
    %1938 = vector.broadcast %cst_390 : f32 to vector<8x32xf32>
    %1939 = arith.addf %1938, %1937 : vector<8x32xf32>
    %1940 = arith.divf %1938, %1939 : vector<8x32xf32>
    %1941 = vector.extract_strided_slice %1934 {offsets = [0, 32], sizes = [8, 32], strides = [1, 1]} : vector<8x128xf32> to vector<8x32xf32>
    %1942 = arith.negf %1941 : vector<8x32xf32>
    %1943 = math.exp %1942 : vector<8x32xf32>
    %cst_391 = arith.constant 1.000000e+00 : f32
    %1944 = vector.broadcast %cst_391 : f32 to vector<8x32xf32>
    %1945 = arith.addf %1944, %1943 : vector<8x32xf32>
    %1946 = arith.divf %1944, %1945 : vector<8x32xf32>
    %1947 = vector.extract_strided_slice %1934 {offsets = [0, 64], sizes = [8, 32], strides = [1, 1]} : vector<8x128xf32> to vector<8x32xf32>
    %1948 = math.tanh %1947 : vector<8x32xf32>
    %1949 = vector.extract_strided_slice %1934 {offsets = [0, 96], sizes = [8, 32], strides = [1, 1]} : vector<8x128xf32> to vector<8x32xf32>
    %1950 = arith.negf %1949 : vector<8x32xf32>
    %1951 = math.exp %1950 : vector<8x32xf32>
    %cst_392 = arith.constant 1.000000e+00 : f32
    %1952 = vector.broadcast %cst_392 : f32 to vector<8x32xf32>
    %1953 = arith.addf %1952, %1951 : vector<8x32xf32>
    %1954 = arith.divf %1952, %1953 : vector<8x32xf32>
    %1955 = arith.mulf %1946, %1896 : vector<8x32xf32>
    %1956 = arith.mulf %1940, %1948 : vector<8x32xf32>
    %1957 = arith.addf %1955, %1956 : vector<8x32xf32>
    %1958 = math.tanh %1957 : vector<8x32xf32>
    %1959 = arith.mulf %1954, %1958 : vector<8x32xf32>
    %c30_i32 = arith.constant 30 : i32
    %c0_393 = arith.constant 0 : index
    %c0_394 = arith.constant 0 : index
    %1960 = vector.load %arg10[%c0_393, %c0_394] : memref<32x128xf32, #tpu.memory_space<vmem>>, vector<32x128xf32>
    %cst_395 = arith.constant dense<0.000000e+00> : vector<8x128xf32>
    %1961 = tpu.matmul %1959, %1960, %cst_395 {dimension_numbers = #tpu.dot_dimension_numbers<[1], [0], [0], [1], [0, 0, 1, 1], [], []>} : vector<8x32xf32>, vector<32x128xf32>, vector<8x128xf32> -> vector<8x128xf32>
    %c0_396 = arith.constant 0 : index
    %c0_397 = arith.constant 0 : index
    %1962 = vector.load %arg11[%c0_396, %c0_397] : memref<1x128xf32, #tpu.memory_space<vmem>>, vector<1x128xf32>
    %1963 = vector.broadcast %1962 : vector<1x128xf32> to vector<8x128xf32>
    %1964 = arith.addf %1961, %1963 : vector<8x128xf32>
    %c0_398 = arith.constant 0 : index
    %c0_399 = arith.constant 0 : index
    %1965 = vector.load %arg12[%c0_398, %c0_399] : memref<8x128xf32, #tpu.memory_space<vmem>>, vector<8x128xf32>
    tpu.vector_store %arg12[%c0_398, %c0_399], %1964 {strides = array<i32>} : memref<8x128xf32, #tpu.memory_space<vmem>>, vector<8x128xf32>,
    return
  }
  func.func @transform_0(%arg0: i32) -> (i32, i32, i32) {
    %c0_i32 = arith.constant 0 : i32
    %c0_i32_0 = arith.constant 0 : i32
    %c0_i32_1 = arith.constant 0 : i32
    %c0_i32_2 = arith.constant 0 : i32
    return %c0_i32, %c0_i32_0, %c0_i32_1 : i32, i32, i32
  }
  func.func @transform_1(%arg0: i32) -> (i32, i32, i32) {
    %c0_i32 = arith.constant 0 : i32
    %c0_i32_0 = arith.constant 0 : i32
    %c0_i32_1 = arith.constant 0 : i32
    %c0_i32_2 = arith.constant 0 : i32
    return %c0_i32, %c0_i32_0, %c0_i32_1 : i32, i32, i32
  }
  func.func @transform_2(%arg0: i32) -> (i32, i32, i32) {
    %c0_i32 = arith.constant 0 : i32
    %c0_i32_0 = arith.constant 0 : i32
    %c0_i32_1 = arith.constant 0 : i32
    %c0_i32_2 = arith.constant 0 : i32
    return %c0_i32, %c0_i32_0, %c0_i32_1 : i32, i32, i32
  }
  func.func @transform_3(%arg0: i32) -> (i32, i32) {
    %c0_i32 = arith.constant 0 : i32
    %c0_i32_0 = arith.constant 0 : i32
    %c0_i32_1 = arith.constant 0 : i32
    return %c0_i32, %c0_i32_0 : i32, i32
  }
  func.func @transform_4(%arg0: i32) -> (i32, i32) {
    %c0_i32 = arith.constant 0 : i32
    %c0_i32_0 = arith.constant 0 : i32
    %c0_i32_1 = arith.constant 0 : i32
    return %c0_i32, %c0_i32_0 : i32, i32
  }
  func.func @transform_5(%arg0: i32) -> (i32, i32) {
    %c0_i32 = arith.constant 0 : i32
    %c0_i32_0 = arith.constant 0 : i32
    %c0_i32_1 = arith.constant 0 : i32
    return %c0_i32, %c0_i32_0 : i32, i32
  }
  func.func @transform_6(%arg0: i32) -> (i32, i32) {
    %c0_i32 = arith.constant 0 : i32
    %c0_i32_0 = arith.constant 0 : i32
    %c0_i32_1 = arith.constant 0 : i32
    return %c0_i32, %c0_i32_0 : i32, i32
  }
  func.func @transform_7(%arg0: i32) -> (i32, i32) {
    %c0_i32 = arith.constant 0 : i32
    %c0_i32_0 = arith.constant 0 : i32
    %c0_i32_1 = arith.constant 0 : i32
    return %c0_i32, %c0_i32_0 : i32, i32
  }
  func.func @transform_8(%arg0: i32) -> (i32, i32) {
    %c0_i32 = arith.constant 0 : i32
    %c0_i32_0 = arith.constant 0 : i32
    %c0_i32_1 = arith.constant 0 : i32
    return %c0_i32, %c0_i32_0 : i32, i32
  }
  func.func @transform_9(%arg0: i32) -> (i32, i32) {
    %c0_i32 = arith.constant 0 : i32
    %c0_i32_0 = arith.constant 0 : i32
    %c0_i32_1 = arith.constant 0 : i32
    return %c0_i32, %c0_i32_0 : i32, i32
  }
  func.func @transform_10(%arg0: i32) -> (i32, i32) {
    %c0_i32 = arith.constant 0 : i32
    %c0_i32_0 = arith.constant 0 : i32
    %c0_i32_1 = arith.constant 0 : i32
    return %c0_i32, %c0_i32_0 : i32, i32
  }
  func.func @transform_11(%arg0: i32) -> (i32, i32) {
    %c0_i32 = arith.constant 0 : i32
    %c0_i32_0 = arith.constant 0 : i32
    %c0_i32_1 = arith.constant 0 : i32
    return %c0_i32, %c0_i32_0 : i32, i32
  }
}

</mosaic_0001>

<bundles_post_ra>
// kernel: lstm_model_forward.1
= control target key start
LH: loop header
LB: loop body
LE: loop exit
PB: predicated region body
PF: predicated region fallthrough
CT: control target
= control target key end

     0   :  { %vm68_vm0 = vcmask 130048   ;;  %v12590_v8 = vmov 0   ;;  %v1000_v47 = vlaneseq  ;;  %vm12592_vm1 = vmmov 0   ;;  %s12593_s23 = smov 64   ;;  %s12594_s24 = smov 32   ;;  %s15556_s0 = inlined_call_operand.vmem [shape: f32[30,8,16], index: 0, kind: input, shape index: {}]   ;;  %s15557_s1 = inlined_call_operand.vmem [shape: f32[30,1,1], index: 1, kind: input, shape index: {}]   ;;  %s15558_s2 = inlined_call_operand.vmem [shape: f32[30,1,1], index: 2, kind: input, shape index: {}]   ;;  %s15559_s4 = inlined_call_operand.vmem [shape: f32[32,128], index: 4, kind: input, shape index: {}]   ;;  %s15560_s3 = inlined_call_operand.vmem [shape: f32[16,128], index: 3, kind: input, shape index: {}]   ;;  %s15561_s5 = inlined_call_operand.vmem [shape: f32[1,128], index: 5, kind: input, shape index: {}]   ;;  %s15562_s7 = inlined_call_operand.vmem [shape: f32[32,128], index: 7, kind: input, shape index: {}]   ;;  %s15563_s6 = inlined_call_operand.vmem [shape: f32[32,128], index: 6, kind: input, shape index: {}]   ;;  %s15564_s8 = inlined_call_operand.vmem [shape: f32[1,128], index: 8, kind: input, shape index: {}]   ;;  %s15565_s9 = inlined_call_operand.vmem [shape: f32[32,128], index: 9, kind: input, shape index: {}]   ;;  %s15566_s10 = inlined_call_operand.vmem [shape: f32[1,128], index: 10, kind: input, shape index: {}]   ;;  %s15567_s11 = inlined_call_operand.vmem [shape: f32[8,128], index: 11, kind: output, shape index: {}]  }
   0x1   :  { %v12658_v0 = vld [vmem:[%s15556_s0] sm:$0xff]  ;;  %v12663_v1 = vld [vmem:[%s15556_s0 + $0x8] sm:$0xff]  ;;  %11966 = vset.pattern.permute.xlu0 %v12590_v8  ;;  %11967 = vset.pattern.permute.xlu1 %v12590_v8  ;;  %vm1988_vm2 = vcmask 261120  }
   0x2   :  { %v69_v2 = vsel %vm68_vm0, %v12658_v0, 0.0  ;;  %v339_v3 = vmul.f32 %v12658_v0, %v12658_v0  ;;  %v340_v4 = vmul.f32 %v12663_v1, %v12663_v1  ;;  %v72_v6 = vsel %vm68_vm0, %v12663_v1, 0.0  ;;  %v820_v49 = vld [vmem:[%s15557_s1] sm:$0x1]  ;;  %v821_v53 = vld [vmem:[%s15557_s1 + $0x1] sm:$0x1] }
   0x3   :  { %70 = vadd.xlane.f32.xlu0 %v69_v2  ;;  %v1001_v48 = vshrl.u32 %v1000_v47, 7  ;;  %v880_v57 = vld [vmem:[%s15558_s2] sm:$0x1]  ;;  %v881_v62 = vld [vmem:[%s15558_s2 + $0x1] sm:$0x1] }
   0x4   :  { %v369_v5 = vsel %vm68_vm0, %v339_v3, 0.0  ;;  %v372_v7 = vsel %vm68_vm0, %v340_v4, 0.0  ;;  %v15568_v4 = vmov 0.0   ;;  %v1570_v8 = vld [vmem:[%s15560_s3] sm:$0xff] }
   0x5   :  { %370 = vadd.xlane.f32.xlu1 %v369_v5  ;;  %v12678_v50 = vsub.s32 0, %v1001_v48  ;;  %10960 = vmatprep.subr.mxu1 %v15568_v4  ;;  %v12697_v5 = vld [vmem:[%s15559_s4 + $0x18] sm:$0xff] }
   0x6   :  { %10961 = vmatpush3.msra.mxu1 %v12697_v5  ;;  %10968 = vmatprep.mubr.msk.f32.mxu1 %vm12592_vm1, %v15568_v4 }
   0x7   :  { %73 = vadd.xlane.f32.xlu0 %v72_v6  ;;  %v1571_v6 = vld [vmem:[%s15560_s3 + $0x8] sm:$0xff]  ;;  %10962 = vmatprep.subr.mxu1 %v15568_v4 }
   0x8   :  { %10911 = vmatprep.subr.mxu0 %v1571_v6 }
   0x9   :  { %373 = vadd.xlane.f32.xlu1 %v372_v7  ;;  %10912 = vmatpush3.msra.mxu0 %v1571_v6  ;;  %v12707_v7 = vld [vmem:[%s15559_s4 + $0x10] sm:$0xff] }
   0xa   :  { %10963 = vmatpush3.msra.mxu1 %v12707_v7  ;;  %10913 = vmatprep.subr.mxu0 %v1570_v8 }
   0xb   :  { %10964 = vmatprep.subr.mxu1 %v15568_v4  ;;  %10914 = vmatpush3.msra.mxu0 %v1570_v8 }
   0xc   :  { %11037 = vmatprep.subr.mxu0 %v15568_v4 }
  0x8c   :  { %v71_v9 = vpop.xlane.xlu0 %70 }
  0x8d   :  { %v159_v10 = vrot.slane %v71_v9, 4 }
  0x8e   :  { %v371_v11 = vpop.xlane.xlu1 %370 }
  0x8f   :  { %v160_v12 = vadd.f32 %v159_v10, %v71_v9  ;;  %v459_v13 = vrot.slane %v371_v11, 4  ;;  %v12715_v9 = vld [vmem:[%s15559_s4 + $0x8] sm:$0xff]  ;;  %v12725_v10 = vld [vmem:[%s15559_s4] sm:$0xff] }
  0x90   :  { %v74_v14 = vpop.xlane.xlu0 %73  ;;  %10965 = vmatpush3.msra.mxu1 %v12715_v9 }
  0x91   :  { %v161_v15 = vrot.slane %v160_v12, 2  ;;  %v460_v16 = vadd.f32 %v459_v13, %v371_v11  ;;  %v165_v17 = vrot.slane %v74_v14, 4  ;;  %10966 = vmatprep.subr.mxu1 %v15568_v4 }
  0x92   :  { %v374_v18 = vpop.xlane.xlu1 %373  ;;  %10967 = vmatpush3.msra.mxu1 %v12725_v10 }
  0x93   :  { %v162_v19 = vadd.f32 %v161_v15, %v160_v12  ;;  %v461_v20 = vrot.slane %v460_v16, 2  ;;  %v166_v21 = vadd.f32 %v165_v17, %v74_v14  ;;  %v465_v22 = vrot.slane %v374_v18, 4  ;;  %10969 = vmatmul.mubr.f32.vlgmr.msra.gmra.mxu1 %v15568_v4  ;;  %10971 = vmatprep.subr.mxu1 %v15568_v4 }
  0x94   :  { %10979 = vmatprep.mubr.msk.f32.mxu1 %vm12592_vm1, %v15568_v4 }
  0x95   :  { %v163_v23 = vrot.slane %v162_v19, 1  ;;  %v462_v24 = vadd.f32 %v461_v20, %v460_v16  ;;  %v167_v25 = vrot.slane %v166_v21, 2  ;;  %v466_v26 = vadd.f32 %v465_v22, %v374_v18 }
  0x97   :  { %v164_v27 = vadd.f32 %v163_v23, %v162_v19  ;;  %v463_v28 = vrot.slane %v462_v24, 1  ;;  %v168_v29 = vadd.f32 %v167_v25, %v166_v21  ;;  %v467_v30 = vrot.slane %v466_v26, 2 }
  0x99   :  { %v640_v31 = vmul.f32 0.03125, %v164_v27  ;;  %v464_v32 = vadd.f32 %v463_v28, %v462_v24  ;;  %v169_v33 = vrot.slane %v168_v29, 1  ;;  %v468_v34 = vadd.f32 %v467_v30, %v466_v26 }
  0x9b   :  { %v700_v35 = vmul.f32 %v640_v31, %v640_v31  ;;  %v670_v36 = vmul.f32 0.03125, %v464_v32  ;;  %v170_v37 = vadd.f32 %v169_v33, %v168_v29  ;;  %v469_v38 = vrot.slane %v468_v34, 1 }
  0x9d   :  { %v730_v39 = vsub.f32 %v670_v36, %v700_v35  ;;  %v641_v40 = vmul.f32 0.03125, %v170_v37  ;;  %v470_v41 = vadd.f32 %v469_v38, %v468_v34  ;;  %v1583_v36 = vld [vmem:[%s15562_s7 + $0x18] sm:$0xff]  ;;  %v1582_v37 = vld [vmem:[%s15562_s7 + $0x10] sm:$0xff]  ;;  %v1581_v38 = vld [vmem:[%s15562_s7 + $0x8] sm:$0xff] }
  0x9e   :  { %10972 = vmatpush3.msra.mxu1 %v1583_v36 }
  0x9f   :  { %v760_v42 = vadd.f32 1e-05, %v730_v39  ;;  %v701_v43 = vmul.f32 %v641_v40, %v641_v40  ;;  %v671_v44 = vmul.f32 0.03125, %v470_v41  ;;  %10973 = vmatprep.subr.mxu1 %v15568_v4  ;;  %v1580_v39 = vld [vmem:[%s15562_s7] sm:$0xff]  ;;  %v12781_v41 = vld [vmem:[%s15563_s6 + $0x10] sm:$0xff] }
  0xa0   :  { %10974 = vmatpush3.msra.mxu1 %v1582_v37 }
  0xa1   :  { %11968 = vrsqrt.f32 %v760_v42  ;;  %v731_v45 = vsub.f32 %v671_v44, %v701_v43  ;;  %10975 = vmatprep.subr.mxu1 %v15568_v4  ;;  %v12791_v43 = vld [vmem:[%s15563_s6 + $0x8] sm:$0xff]  ;;  %v12799_v44 = vld [vmem:[%s15563_s6] sm:$0xff] }
  0xa2   :  { %10976 = vmatpush3.msra.mxu1 %v1581_v38 }
  0xa3   :  { %v761_v46 = vadd.f32 1e-05, %v731_v45  ;;  %10977 = vmatprep.subr.mxu1 %v15568_v4 }
  0xa4   :  { %10978 = vmatpush3.msra.mxu1 %v1580_v39 }
  0xa5   :  { %11970 = vrsqrt.f32 %v761_v46  ;;  %10980 = vmatmul.mubr.f32.vlgmr.msra.gmra.mxu1 %v15568_v4  ;;  %10982 = vmatprep.subr.mxu1 %v15568_v4 }
  0xa6   :  { %10990 = vmatprep.mubr.msk.f32.mxu1 %vm12592_vm1, %v15568_v4 }
  0xae   :  { %v11969_v51 = vpop.eup %11968 }
  0xaf   :  { %v850_v52 = vmul.f32 %v11969_v51, %v820_v49  ;;  %v12827_v51 = vld [vmem:[%s15564_s8] ss:$0 sm:$0xff] }
  0xb1   :  { %v1003_v54 = vrot.slane %v850_v52, %v12678_v50  ;;  %v910_v55 = vmul.f32 %v850_v52, %v640_v31 }
  0xb2   :  { %v11971_v56 = vpop.eup %11970 }
  0xb3   :  { %1121 = vperm.xlu0 %11966, %v1003_v54   ;;  %v851_v58 = vmul.f32 %v11971_v56, %v821_v53  ;;  %v940_v60 = vsub.f32 %v880_v57, %v910_v55 }
  0xb5   :  { %v1007_v59 = vrot.slane %v851_v58, %v12678_v50  ;;  %v911_v61 = vmul.f32 %v851_v58, %v641_v40  ;;  %v1303_v63 = vrot.slane %v940_v60, %v12678_v50  ;;  %v12773_v40 = vld [vmem:[%s15563_s6 + $0x18] sm:$0xff] }
  0xb6   :  { %10983 = vmatpush3.msra.mxu1 %v12773_v40 }
  0xb7   :  { %1125 = vperm.xlu1 %11967, %v1007_v59   ;;  %v941_v2 = vsub.f32 %v881_v62, %v911_v61  ;;  %10984 = vmatprep.subr.mxu1 %v15568_v4  ;;  %v12837_v62 = vld [vmem:[%s15556_s0 + $0x18] sm:$0xff] }
  0xb8   :  { %10985 = vmatpush3.msra.mxu1 %v12781_v41 }
  0xb9   :  { %v1307_v3 = vrot.slane %v941_v2, %v12678_v50  ;;  %10986 = vmatprep.subr.mxu1 %v15568_v4 }
  0xba   :  { %10987 = vmatpush3.msra.mxu1 %v12791_v43 }
  0xbb   :  { %1421 = vperm.xlu1 %11967, %v1303_v63   ;;  %10988 = vmatprep.subr.mxu1 %v15568_v4  ;;  %v78_v63 = vsel %vm68_vm0, %v12837_v62, 0.0 }
  0xbc   :  { %10989 = vmatpush3.msra.mxu1 %v12799_v44 }
  0xbd   :  { %10993 = vmatprep.subr.mxu1 %v15568_v4 }
  0xbf   :  { %1425 = vperm.xlu1 %11967, %v1307_v3  }
 0x12e   :  { %v1122_v11 = vpop.permute.xlu0 %1121 }
 0x12f   :  { %v1240_v13 = vmul.f32 %v1122_v11, %v12658_v0  ;;  %v12745_v0 = vld [vmem:[%s15561_s5] ss:$0 sm:$0xff] }
 0x132   :  { %v1126_v12 = vpop.permute.xlu1 %1125 }
 0x133   :  { %v1241_v16 = vmul.f32 %v1126_v12, %v12663_v1 }
 0x136   :  { %v1422_v14 = vpop.permute.xlu1 %1421 }
 0x137   :  { %v1540_v15 = vadd.f32 %v1422_v14, %v1240_v13 }
 0x139   :  { %1586 = vst.msk [vmem:[#allocation2] sm:$0xff] %vm68_vm0, %v1540_v15 }
 0x13a   :  { %v1426_v17 = vpop.permute.xlu1 %1425 }
 0x13b   :  { %v1541_v18 = vadd.f32 %v1426_v17, %v1241_v16 }
 0x13d   :  { %1587 = vst.msk [vmem:[#allocation2 + $0x8] sm:$0xff] %vm68_vm0, %v1541_v18 }
 0x140   :  { %v1616_v19 = vld [vmem:[#allocation2] sm:$0xff] }
 0x141   :  { %10915 = vmatprep.mubr.msk.f32.mxu0 %vm68_vm0, %v1616_v19  ;;  %v12852_v19 = vld [vmem:[%s15556_s0 + $0x10] sm:$0xff] }
 0x144   :  { %v1617_v20 = vld [vmem:[#allocation2 + $0x8] sm:$0xff] }
 0x145   :  { %10916 = vmatmul.mubr.msk.f32.vlgmr.msra.gmra.mxu0 %vm68_vm0, %v1617_v20  ;;  %v341_v20 = vmul.f32 %v12852_v19, %v12852_v19 }
 0x146   :  { %11038 = vmatpush3.msra.mxu0 %v1583_v36 }
 0x147   :  { %11039 = vmatprep.subr.mxu0 %v15568_v4 }
 0x148   :  { %11040 = vmatpush3.msra.mxu0 %v1582_v37 }
 0x149   :  { %11041 = vmatprep.subr.mxu0 %v15568_v4 }
 0x14a   :  { %11042 = vmatpush3.msra.mxu0 %v1581_v38 }
 0x14b   :  { %11043 = vmatprep.subr.mxu0 %v15568_v4 }
 0x14c   :  { %11044 = vmatpush3.msra.mxu0 %v1580_v39 }
 0x14d   :  { %11059 = vmatprep.subr.mxu0 %v15568_v4 }
 0x153   :  { %v2058_v21 = vpop.f32.mrf.mxu1 }
 0x155   :  { %v10970_v22 = vpop.f32.mrf.mxu1 }
 0x156   :  { %v342_v22 = vmul.f32 %v12837_v62, %v12837_v62 }
 0x165   :  { %v2153_v47 = vpop.f32.mrf.mxu1 }
 0x167   :  { %v10981_v48 = vpop.f32.mrf.mxu1 }
 0x205   :  { %v12740_v23 = vpop.f32.mrf.mxu0 }
 0x206   :  { %v1814_v56 = vadd.f32 %v12740_v23, %v12745_v0  ;;  %v375_v23 = vsel %vm68_vm0, %v341_v20, 0.0 }
 0x207   :  { %v1808_v1 = vpop.f32.mrf.mxu0 }
 0x208   :  { %v1809_v24 = vadd.f32 %v12745_v0, %v1808_v1  ;;  %v378_v1 = vsel %vm68_vm0, %v342_v22, 0.0 }
 0x20a   :  { %v2062_v25 = vadd.f32 %v2058_v21, %v1809_v24  ;;  %v75_v21 = vsel %vm68_vm0, %v12852_v19, 0.0 }
 0x20c   :  { %11972 = vtanh.f32 %v2062_v25  ;;  %v10273_v27 = vmul.f32 -1.442695, %v2062_v25 }
 0x20e   :  { %11974 = vpow2.f32 %v10273_v27 }
 0x219   :  { %v11973_v26 = vpop.eup %11972 }
 0x21a   :  { %2072 = vrot.lane.b32.xlu1 %v11973_v26, %s12593_s23 }
 0x21b   :  { %v11975_v28 = vpop.eup %11974 }
 0x21c   :  { %v2066_v29 = vadd.f32 1.0, %v11975_v28 }
 0x21e   :  { %11976 = vrcp.f32 %v2066_v29 }
 0x22b   :  { %v11977_v30 = vpop.eup %11976 }
 0x22c   :  { %v2070_v33 = vmul.f32 0.0, %v11977_v30 }
 0x28c   :  { %v2073_v31 = vpop.permute.xlu1 %2072 }
 0x28d   :  { %v2075_v32 = vmul.f32 %v11977_v30, %v2073_v31 }
 0x28f   :  { %2077 = vrot.lane.b32.xlu1 %v2075_v32, %s12594_s24 }
 0x301   :  { %v2078_v34 = vpop.permute.xlu1 %2077 }
 0x302   :  { %v12750_v35 = vadd.f32 %v2078_v34, %v2070_v33 }
 0x304   :  { %11978 = vtanh.f32 %v12750_v35 }
 0x311   :  { %v11979_v42 = vpop.eup %11978 }
 0x312   :  { %2083 = vrot.lane.b32.xlu1 %v11979_v42, %s12593_s23 }
 0x384   :  { %v2084_v45 = vpop.permute.xlu1 %2083 }
 0x385   :  { %v2086_v46 = vmul.f32 %v11977_v30, %v2084_v45 }
 0x387   :  { %2158 = vrot.lane.b32.xlu1 %v2086_v46, %s12594_s24 }
 0x3f9   :  { %v2159_v49 = vpop.permute.xlu1 %2158 }
 0x3fa   :  { %10991 = vmatmul.mubr.msk.f32.vlgmr.msra.gmra.mxu1 %vm1988_vm2, %v2159_v49 }
 0x3fb   :  { %10994 = vmatpush3.msra.mxu1 %v12697_v5  ;;  %11001 = vmatprep.mubr.msk.f32.mxu1 %vm12592_vm1, %v15568_v4 }
 0x3fc   :  { %10995 = vmatprep.subr.mxu1 %v15568_v4 }
 0x3fd   :  { %10996 = vmatpush3.msra.mxu1 %v12707_v7 }
 0x3fe   :  { %10997 = vmatprep.subr.mxu1 %v15568_v4 }
 0x3ff   :  { %10998 = vmatpush3.msra.mxu1 %v12715_v9 }
 0x400   :  { %10999 = vmatprep.subr.mxu1 %v15568_v4 }
 0x401   :  { %11000 = vmatpush3.msra.mxu1 %v12725_v10 }
 0x402   :  { %11002 = vmatmul.mubr.msk.f32.vlgmr.msra.gmra.mxu1 %vm1988_vm2, %v2159_v49  ;;  %11004 = vmatprep.subr.mxu1 %v15568_v4 }
 0x403   :  { %11005 = vmatpush3.msra.mxu1 %v1583_v36  ;;  %11012 = vmatprep.mubr.msk.f32.mxu1 %vm12592_vm1, %v15568_v4 }
 0x404   :  { %11006 = vmatprep.subr.mxu1 %v15568_v4 }
 0x405   :  { %11007 = vmatpush3.msra.mxu1 %v1582_v37 }
 0x406   :  { %11008 = vmatprep.subr.mxu1 %v15568_v4 }
 0x407   :  { %11009 = vmatpush3.msra.mxu1 %v1581_v38 }
 0x408   :  { %11010 = vmatprep.subr.mxu1 %v15568_v4 }
 0x409   :  { %11011 = vmatpush3.msra.mxu1 %v1580_v39 }
 0x40a   :  { %11015 = vmatprep.subr.mxu1 %v15568_v4 }
 0x4ba   :  { %v2228_v52 = vpop.f32.mrf.mxu1 }
 0x4bb   :  { %v2229_v53 = vadd.f32 %v2228_v52, %v2153_v47 }
 0x4bc   :  { %v10992_v54 = vpop.f32.mrf.mxu1 }
 0x4bd   :  { %v2238_v55 = vadd.f32 %v12827_v51, %v2229_v53 }
 0x4bf   :  { %11980 = vtanh.f32 %v2238_v55  ;;  %v10276_v2 = vmul.f32 -1.442695, %v2238_v55 }
 0x4c2   :  { %v2331_v57 = vpop.f32.mrf.mxu1 }
 0x4c3   :  { %v2335_v58 = vadd.f32 %v2331_v57, %v1814_v56 }
 0x4c4   :  { %v11003_v59 = vpop.f32.mrf.mxu1 }
 0x4c5   :  { %11982 = vtanh.f32 %v2335_v58  ;;  %v10278_v3 = vmul.f32 -1.442695, %v2335_v58 }
 0x4c6   :  { %11984 = vpow2.f32 %v10276_v2 }
 0x4c7   :  { %11986 = vpow2.f32 %v10278_v3 }
 0x4cc   :  { %v11981_v60 = vpop.eup %11980 }
 0x4cd   :  { %2248 = vrot.lane.b32.xlu1 %v11981_v60, %s12593_s23 }
 0x4d2   :  { %v11983_v61 = vpop.eup %11982 }
 0x4d3   :  { %2345 = vrot.lane.b32.xlu0 %v11983_v61, %s12593_s23  ;;  %v11985_v6 = vpop.eup %11984 }
 0x4d4   :  { %v2242_v8 = vadd.f32 1.0, %v11985_v6  ;;  %v11987_v11 = vpop.eup %11986 }
 0x4d5   :  { %v2339_v12 = vadd.f32 1.0, %v11987_v11 }
 0x4d6   :  { %11988 = vrcp.f32 %v2242_v8 }
 0x4d7   :  { %11990 = vrcp.f32 %v2339_v12 }
 0x4e3   :  { %v12841_v13 = vpop.eup %11988 }
 0x4e4   :  { %v12845_v16 = vpop.eup %11990  ;;  %v2246_v24 = vmul.f32 0.0, %v12841_v13 }
 0x4e5   :  { %v2343_v28 = vmul.f32 %v12845_v16, %v12750_v35 }
 0x4f2   :  { %79 = vadd.xlane.f32.xlu0 %v78_v63 }
 0x53f   :  { %v2249_v14 = vpop.permute.xlu1 %2248 }
 0x540   :  { %v2251_v15 = vmul.f32 %v12841_v13, %v2249_v14 }
 0x542   :  { %2253 = vrot.lane.b32.xlu1 %v2251_v15, %s12594_s24 }
 0x545   :  { %v2346_v17 = vpop.permute.xlu0 %2345 }
 0x546   :  { %v2348_v18 = vmul.f32 %v12845_v16, %v2346_v17 }
 0x548   :  { %2350 = vrot.lane.b32.xlu0 %v2348_v18, %s12594_s24 }
 0x566   :  { %76 = vadd.xlane.f32.xlu1 %v75_v21 }
 0x567   :  { %376 = vadd.xlane.f32.xlu0 %v375_v23  ;;  %v822_v23 = vld [vmem:[%s15557_s1 + $0x2] sm:$0x1] }
 0x56a   :  { %379 = vadd.xlane.f32.xlu1 %v378_v1 }
 0x57b   :  { %v80_v27 = vpop.xlane.xlu0 %79 }
 0x57c   :  { %v177_v33 = vrot.slane %v80_v27, 4 }
 0x57e   :  { %v178_v34 = vadd.f32 %v177_v33, %v80_v27  ;;  %v883_v33 = vld [vmem:[%s15558_s2 + $0x3] sm:$0x1] }
 0x580   :  { %v179_v36 = vrot.slane %v178_v34, 2 }
 0x582   :  { %v180_v38 = vadd.f32 %v179_v36, %v178_v34 }
 0x584   :  { %v181_v48 = vrot.slane %v180_v38, 1 }
 0x586   :  { %v182_v57 = vadd.f32 %v181_v48, %v180_v38  ;;  %v42_v48 = vld [vmem:[%s15556_s0 + $0x20] sm:$0xff] }
 0x588   :  { %v643_v3 = vmul.f32 0.03125, %v182_v57  ;;  %v44_v57 = vld [vmem:[%s15556_s0 + $0x30] sm:$0xff] }
 0x58a   :  { %v703_v15 = vmul.f32 %v643_v3, %v643_v3 }
 0x5b4   :  { %v2254_v25 = vpop.permute.xlu1 %2253 }
 0x5b5   :  { %v12863_v26 = vadd.f32 %v2254_v25, %v2246_v24  ;;  %v823_v24 = vld [vmem:[%s15557_s1 + $0x3] sm:$0x1] }
 0x5b7   :  { %15578 = vst [vmem:[#allocation4_spill] sm:$0xff] %v12863_v26  ;;  %11992 = vtanh.f32 %v12863_v26 }
 0x5ba   :  { %v2351_v29 = vpop.permute.xlu0 %2350 }
 0x5bb   :  { %v12868_v30 = vadd.f32 %v2351_v29, %v2343_v28  ;;  %v882_v28 = vld [vmem:[%s15558_s2 + $0x2] sm:$0x1] }
 0x5bd   :  { %15579 = vst [vmem:[#allocation5_spill] sm:$0xff] %v12868_v30  ;;  %11994 = vtanh.f32 %v12868_v30 }
 0x5c4   :  { %v11993_v31 = vpop.eup %11992 }
 0x5c5   :  { %2259 = vrot.lane.b32.xlu0 %v11993_v31, %s12593_s23 }
 0x5ca   :  { %v11995_v32 = vpop.eup %11994 }
 0x5cb   :  { %2356 = vrot.lane.b32.xlu1 %v11995_v32, %s12593_s23 }
 0x5ef   :  { %v77_v37 = vpop.xlane.xlu1 %76 }
 0x5f0   :  { %v171_v39 = vrot.slane %v77_v37, 4  ;;  %v377_v42 = vpop.xlane.xlu0 %376 }
 0x5f1   :  { %v471_v45 = vrot.slane %v377_v42, 4 }
 0x5f2   :  { %v172_v35 = vadd.f32 %v171_v39, %v77_v37 }
 0x5f3   :  { %v472_v46 = vadd.f32 %v471_v45, %v377_v42  ;;  %v380_v47 = vpop.xlane.xlu1 %379 }
 0x5f4   :  { %v173_v49 = vrot.slane %v172_v35, 2  ;;  %v477_v52 = vrot.slane %v380_v47, 4 }
 0x5f5   :  { %v473_v53 = vrot.slane %v472_v46, 2 }
 0x5f6   :  { %v174_v54 = vadd.f32 %v173_v49, %v172_v35  ;;  %v478_v55 = vadd.f32 %v477_v52, %v380_v47  ;;  %v43_v49 = vld [vmem:[%s15556_s0 + $0x28] sm:$0xff]  ;;  %v81_v52 = vsel %vm68_vm0, %v42_v48, 0.0 }
 0x5f7   :  { %v474_v56 = vadd.f32 %v473_v53, %v472_v46  ;;  %v344_v53 = vmul.f32 %v43_v49, %v43_v49 }
 0x5f8   :  { %v175_v58 = vrot.slane %v174_v54, 1  ;;  %v479_v59 = vrot.slane %v478_v55, 2 }
 0x5f9   :  { %v475_v60 = vrot.slane %v474_v56, 1 }
 0x5fa   :  { %v176_v61 = vadd.f32 %v175_v58, %v174_v54  ;;  %v480_v63 = vadd.f32 %v479_v59, %v478_v55  ;;  %v343_v54 = vmul.f32 %v42_v48, %v42_v48  ;;  %v55_v48 = vld [vmem:[%s15556_s0 + $0x88] sm:$0xff] }
 0x5fb   :  { %v476_v2 = vadd.f32 %v475_v60, %v474_v56  ;;  %v45_v56 = vld [vmem:[%s15556_s0 + $0x38] sm:$0xff]  ;;  %v87_v60 = vsel %vm68_vm0, %v44_v57, 0.0 }
 0x5fc   :  { %v642_v6 = vmul.f32 0.03125, %v176_v61  ;;  %v481_v8 = vrot.slane %v480_v63, 1  ;;  %v381_v55 = vsel %vm68_vm0, %v343_v54, 0.0  ;;  %v90_v58 = vsel %vm68_vm0, %v45_v56, 0.0 }
 0x5fd   :  { %v672_v11 = vmul.f32 0.03125, %v476_v2  ;;  %v346_v59 = vmul.f32 %v45_v56, %v45_v56  ;;  %v345_v61 = vmul.f32 %v44_v57, %v44_v57  ;;  %v57_v56 = vld [vmem:[%s15556_s0 + $0x98] sm:$0xff] }
 0x5fe   :  { %v702_v12 = vmul.f32 %v642_v6, %v642_v6  ;;  %v482_v14 = vadd.f32 %v481_v8, %v480_v63 }
 0x5ff   :  { %v390_v63 = vsel %vm68_vm0, %v346_v59, 0.0  ;;  %v387_v2 = vsel %vm68_vm0, %v345_v61, 0.0  ;;  %v358_v61 = vmul.f32 %v57_v56, %v57_v56 }
 0x600   :  { %v732_v17 = vsub.f32 %v672_v11, %v702_v12  ;;  %v673_v18 = vmul.f32 0.03125, %v482_v14 }
 0x602   :  { %v762_v20 = vadd.f32 1e-05, %v732_v17  ;;  %v733_v21 = vsub.f32 %v673_v18, %v703_v15  ;;  %v49_v18 = vld [vmem:[%s15556_s0 + $0x58] sm:$0xff] }
 0x604   :  { %11996 = vrsqrt.f32 %v762_v20  ;;  %v763_v22 = vadd.f32 1e-05, %v733_v21  ;;  %v48_v20 = vld [vmem:[%s15556_s0 + $0x50] sm:$0xff]  ;;  %v102_v21 = vsel %vm68_vm0, %v49_v18, 0.0 }
 0x606   :  { %11998 = vrsqrt.f32 %v763_v22  ;;  %v350_v22 = vmul.f32 %v49_v18, %v49_v18  ;;  %v58_v18 = vld [vmem:[%s15556_s0 + $0xa0] sm:$0xff] }
 0x611   :  { %v11997_v1 = vpop.eup %11996 }
 0x612   :  { %v852_v25 = vmul.f32 %v11997_v1, %v822_v23  ;;  %v99_v23 = vsel %vm68_vm0, %v48_v20, 0.0  ;;  %v349_v1 = vmul.f32 %v48_v20, %v48_v20 }
 0x613   :  { %v11999_v27 = vpop.eup %11998 }
 0x614   :  { %v1011_v29 = vrot.slane %v852_v25, %v12678_v50  ;;  %v853_v31 = vmul.f32 %v11999_v27, %v823_v24  ;;  %v912_v32 = vmul.f32 %v852_v25, %v642_v6  ;;  %v46_v6 = vld [vmem:[%s15556_s0 + $0x40] sm:$0xff]  ;;  %v402_v24 = vsel %vm68_vm0, %v350_v22, 0.0  ;;  %v51_v27 = vld [vmem:[%s15556_s0 + $0x68] sm:$0xff] }
 0x615   :  { %v93_v12 = vsel %vm68_vm0, %v46_v6, 0.0  ;;  %v347_v14 = vmul.f32 %v46_v6, %v46_v6  ;;  %v399_v25 = vsel %vm68_vm0, %v349_v1, 0.0  ;;  %v359_v22 = vmul.f32 %v58_v18, %v58_v18 }
 0x616   :  { %1129 = vperm.xlu1 %11967, %v1011_v29   ;;  %v1015_v34 = vrot.slane %v853_v31, %v12678_v50  ;;  %v942_v36 = vsub.f32 %v882_v28, %v912_v32  ;;  %v913_v37 = vmul.f32 %v853_v31, %v643_v3  ;;  %v47_v3 = vld [vmem:[%s15556_s0 + $0x48] sm:$0xff]  ;;  %v50_v28 = vld [vmem:[%s15556_s0 + $0x60] sm:$0xff]  ;;  %v108_v29 = vsel %vm68_vm0, %v51_v27, 0.0 }
 0x617   :  { %v96_v8 = vsel %vm68_vm0, %v47_v3, 0.0  ;;  %v348_v11 = vmul.f32 %v47_v3, %v47_v3  ;;  %v393_v17 = vsel %vm68_vm0, %v347_v14, 0.0  ;;  %v352_v31 = vmul.f32 %v51_v27, %v51_v27 }
 0x618   :  { %1133 = vperm.xlu0 %11966, %v1015_v34   ;;  %v1311_v38 = vrot.slane %v942_v36, %v12678_v50  ;;  %v943_v39 = vsub.f32 %v883_v33, %v913_v37  ;;  %v105_v32 = vsel %vm68_vm0, %v50_v28, 0.0  ;;  %v351_v33 = vmul.f32 %v50_v28, %v50_v28  ;;  %v53_v37 = vld [vmem:[%s15556_s0 + $0x78] sm:$0xff]  ;;  %v60_v28 = vld [vmem:[%s15556_s0 + $0xb0] sm:$0xff] }
 0x619   :  { %v396_v15 = vsel %vm68_vm0, %v348_v11, 0.0  ;;  %v408_v34 = vsel %vm68_vm0, %v352_v31, 0.0  ;;  %v426_v14 = vsel %vm68_vm0, %v358_v61, 0.0 }
 0x61a   :  { %1429 = vperm.xlu1 %11967, %v1311_v38   ;;  %v1315_v42 = vrot.slane %v943_v39, %v12678_v50  ;;  %v405_v36 = vsel %vm68_vm0, %v351_v33, 0.0  ;;  %v52_v38 = vld [vmem:[%s15556_s0 + $0x70] sm:$0xff]  ;;  %v114_v39 = vsel %vm68_vm0, %v53_v37, 0.0  ;;  %v361_v33 = vmul.f32 %v60_v28, %v60_v28 }
 0x61c   :  { %1433 = vperm.xlu0 %11966, %v1315_v42   ;;  %v354_v42 = vmul.f32 %v53_v37, %v53_v37  ;;  %v62_v37 = vld [vmem:[%s15556_s0 + $0xc0] sm:$0xff] }
 0x637   :  { %v2260_v45 = vpop.permute.xlu0 %2259 }
 0x638   :  { %v2262_v35 = vmul.f32 %v12841_v13, %v2260_v45  ;;  %v84_v13 = vsel %vm68_vm0, %v43_v49, 0.0  ;;  %v111_v45 = vsel %vm68_vm0, %v52_v38, 0.0  ;;  %v54_v49 = vld [vmem:[%s15556_s0 + $0x80] sm:$0xff] }
 0x639   :  { %v355_v54 = vmul.f32 %v54_v49, %v54_v49 }
 0x63a   :  { %2361 = vrot.lane.b32.xlu1 %v2262_v35, %s12594_s24  ;;  %v353_v35 = vmul.f32 %v52_v38, %v52_v38  ;;  %v63_v38 = vld [vmem:[%s15556_s0 + $0xc8] sm:$0xff] }
 0x63d   :  { %v2357_v46 = vpop.permute.xlu1 %2356 }
 0x63e   :  { %v2359_v47 = vmul.f32 %v12845_v16, %v2357_v46  ;;  %v384_v16 = vsel %vm68_vm0, %v344_v53, 0.0  ;;  %v414_v46 = vsel %vm68_vm0, %v354_v42, 0.0  ;;  %v356_v53 = vmul.f32 %v55_v48, %v55_v48 }
 0x63f   :  { %v141_v42 = vsel %vm68_vm0, %v62_v37, 0.0 }
 0x640   :  { %2436 = vrot.lane.b32.xlu0 %v2359_v47, %s12594_s24  ;;  %v411_v47 = vsel %vm68_vm0, %v353_v35, 0.0  ;;  %v144_v35 = vsel %vm68_vm0, %v63_v38, 0.0 }
 0x65e   :  { %82 = vadd.xlane.f32.xlu1 %v81_v52  ;;  %v120_v52 = vsel %vm68_vm0, %v55_v48, 0.0 }
 0x65f   :  { %85 = vadd.xlane.f32.xlu0 %v84_v13  ;;  %v117_v13 = vsel %vm68_vm0, %v54_v49, 0.0  ;;  %v64_v49 = vld [vmem:[%s15556_s0 + $0xd0] sm:$0xff] }
 0x662   :  { %385 = vadd.xlane.f32.xlu1 %v384_v16  ;;  %v420_v16 = vsel %vm68_vm0, %v356_v53, 0.0  ;;  %v147_v53 = vsel %vm68_vm0, %v64_v49, 0.0 }
 0x663   :  { %382 = vadd.xlane.f32.xlu0 %v381_v55  ;;  %v417_v55 = vsel %vm68_vm0, %v355_v54, 0.0 }
 0x666   :  { %91 = vadd.xlane.f32.xlu1 %v90_v58  ;;  %v56_v58 = vld [vmem:[%s15556_s0 + $0x90] sm:$0xff] }
 0x667   :  { %88 = vadd.xlane.f32.xlu0 %v87_v60  ;;  %v126_v60 = vsel %vm68_vm0, %v57_v56, 0.0  ;;  %v357_v3 = vmul.f32 %v56_v58, %v56_v58 }
 0x66a   :  { %391 = vadd.xlane.f32.xlu1 %v390_v63 }
 0x66b   :  { %388 = vadd.xlane.f32.xlu0 %v387_v2  ;;  %v123_v2 = vsel %vm68_vm0, %v56_v58, 0.0 }
 0x66e   :  { %97 = vadd.xlane.f32.xlu1 %v96_v8 }
 0x66f   :  { %94 = vadd.xlane.f32.xlu0 %v93_v12 }
 0x672   :  { %397 = vadd.xlane.f32.xlu1 %v396_v15 }
 0x673   :  { %394 = vadd.xlane.f32.xlu0 %v393_v17  ;;  %v423_v17 = vsel %vm68_vm0, %v357_v3, 0.0 }
 0x676   :  { %103 = vadd.xlane.f32.xlu1 %v102_v21  ;;  %v129_v21 = vsel %vm68_vm0, %v58_v18, 0.0 }
 0x677   :  { %100 = vadd.xlane.f32.xlu0 %v99_v23 }
 0x67a   :  { %403 = vadd.xlane.f32.xlu1 %v402_v24  ;;  %v429_v24 = vsel %vm68_vm0, %v359_v22, 0.0 }
 0x67b   :  { %400 = vadd.xlane.f32.xlu0 %v399_v25  ;;  %v61_v25 = vld [vmem:[%s15556_s0 + $0xb8] sm:$0xff] }
 0x67c   :  { %v362_v31 = vmul.f32 %v61_v25, %v61_v25 }
 0x67e   :  { %109 = vadd.xlane.f32.xlu1 %v108_v29  ;;  %v138_v29 = vsel %vm68_vm0, %v61_v25, 0.0 }
 0x67f   :  { %106 = vadd.xlane.f32.xlu0 %v105_v32  ;;  %v135_v32 = vsel %vm68_vm0, %v60_v28, 0.0 }
 0x682   :  { %409 = vadd.xlane.f32.xlu1 %v408_v34  ;;  %v438_v34 = vsel %vm68_vm0, %v362_v31, 0.0 }
 0x683   :  { %406 = vadd.xlane.f32.xlu0 %v405_v36  ;;  %v435_v36 = vsel %vm68_vm0, %v361_v33, 0.0 }
 0x686   :  { %115 = vadd.xlane.f32.xlu1 %v114_v39 }
 0x687   :  { %112 = vadd.xlane.f32.xlu0 %v111_v45  ;;  %v363_v45 = vmul.f32 %v62_v37, %v62_v37 }
 0x68a   :  { %415 = vadd.xlane.f32.xlu1 %v414_v46  ;;  %v364_v46 = vmul.f32 %v63_v38, %v63_v38 }
 0x68b   :  { %412 = vadd.xlane.f32.xlu0 %v411_v47  ;;  %v441_v47 = vsel %vm68_vm0, %v363_v45, 0.0 }
 0x68c   :  { %v444_v48 = vsel %vm68_vm0, %v364_v46, 0.0 }
 0x68e   :  { %121 = vadd.xlane.f32.xlu1 %v120_v52 }
 0x68f   :  { %118 = vadd.xlane.f32.xlu0 %v117_v13  ;;  %v365_v13 = vmul.f32 %v64_v49, %v64_v49 }
 0x691   :  { %v1130_v57 = vpop.permute.xlu1 %1129  ;;  %v447_v54 = vsel %vm68_vm0, %v365_v13, 0.0 }
 0x692   :  { %421 = vadd.xlane.f32.xlu1 %v420_v16  ;;  %v1242_v63 = vmul.f32 %v1130_v57, %v12852_v19  ;;  %v59_v19 = vld [vmem:[%s15556_s0 + $0xa8] sm:$0xff] }
 0x693   :  { %v1134_v59 = vpop.permute.xlu0 %1133  ;;  %418 = vadd.xlane.f32.xlu0 %v417_v55  ;;  %v360_v20 = vmul.f32 %v59_v19, %v59_v19 }
 0x694   :  { %v1243_v8 = vmul.f32 %v1134_v59, %v12837_v62  ;;  %v132_v62 = vsel %vm68_vm0, %v59_v19, 0.0 }
 0x695   :  { %v1430_v6 = vpop.permute.xlu1 %1429  ;;  %v432_v1 = vsel %vm68_vm0, %v360_v20, 0.0 }
 0x696   :  { %v1542_v11 = vadd.f32 %v1430_v6, %v1242_v63  ;;  %127 = vadd.xlane.f32.xlu1 %v126_v60 }
 0x697   :  { %v1434_v12 = vpop.permute.xlu0 %1433  ;;  %124 = vadd.xlane.f32.xlu0 %v123_v2 }
 0x698   :  { %1588 = vst.msk [vmem:[#allocation2 + $0x10] sm:$0xff] %vm68_vm0, %v1542_v11  ;;  %v1543_v15 = vadd.f32 %v1434_v12, %v1243_v8 }
 0x69a   :  { %1589 = vst.msk [vmem:[#allocation2 + $0x18] sm:$0xff] %vm68_vm0, %v1543_v15  ;;  %427 = vadd.xlane.f32.xlu1 %v426_v14 }
 0x69b   :  { %424 = vadd.xlane.f32.xlu0 %v423_v17 }
 0x69e   :  { %133 = vadd.xlane.f32.xlu1 %v132_v62 }
 0x69f   :  { %v1618_v23 = vld [vmem:[#allocation2 + $0x10] sm:$0xff]  ;;  %130 = vadd.xlane.f32.xlu0 %v129_v21 }
 0x6a0   :  { %10918 = vmatprep.mubr.msk.f32.mxu0 %vm68_vm0, %v1618_v23 }
 0x6a1   :  { %v1619_v27 = vld [vmem:[#allocation2 + $0x18] sm:$0xff] }
 0x6a2   :  { %10919 = vmatmul.mubr.msk.f32.gmra.mxu0 %vm68_vm0, %v1619_v27  ;;  %433 = vadd.xlane.f32.xlu1 %v432_v1 }
 0x6a3   :  { %430 = vadd.xlane.f32.xlu0 %v429_v24 }
 0x6a6   :  { %139 = vadd.xlane.f32.xlu1 %v138_v29 }
 0x6a7   :  { %136 = vadd.xlane.f32.xlu0 %v135_v32 }
 0x6aa   :  { %439 = vadd.xlane.f32.xlu1 %v438_v34 }
 0x6ab   :  { %436 = vadd.xlane.f32.xlu0 %v435_v36 }
 0x6ac   :  { %v2362_v39 = vpop.permute.xlu1 %2361 }
 0x6ad   :  { %11013 = vmatmul.mubr.msk.f32.vlgmr.msra.gmra.mxu1 %vm1988_vm2, %v2362_v39 }
 0x6ae   :  { %11016 = vmatpush3.msra.mxu1 %v12773_v40  ;;  %11023 = vmatprep.mubr.msk.f32.mxu1 %vm12592_vm1, %v15568_v4 }
 0x6af   :  { %11017 = vmatprep.subr.mxu1 %v15568_v4  ;;  %142 = vadd.xlane.f32.xlu0 %v141_v42 }
 0x6b0   :  { %11018 = vmatpush3.msra.mxu1 %v12781_v41  ;;  %145 = vadd.xlane.f32.xlu1 %v144_v35 }
 0x6b1   :  { %11019 = vmatprep.subr.mxu1 %v15568_v4 }
 0x6b2   :  { %11020 = vmatpush3.msra.mxu1 %v12791_v43  ;;  %v2437_v52 = vpop.permute.xlu0 %2436 }
 0x6b3   :  { %11021 = vmatprep.subr.mxu1 %v15568_v4  ;;  %442 = vadd.xlane.f32.xlu0 %v441_v47 }
 0x6b4   :  { %11022 = vmatpush3.msra.mxu1 %v12799_v44  ;;  %445 = vadd.xlane.f32.xlu1 %v444_v48 }
 0x6b5   :  { %11024 = vmatmul.mubr.msk.f32.vlgmr.msra.gmra.mxu1 %vm1988_vm2, %v2437_v52  ;;  %11026 = vmatprep.subr.mxu1 %v15568_v4 }
 0x6b6   :  { %11027 = vmatpush3.msra.mxu1 %v12697_v5  ;;  %11034 = vmatprep.mubr.msk.f32.mxu1 %vm12592_vm1, %v15568_v4  ;;  %v13050_v5 = vld [vmem:[%s15556_s0 + $0xd8] sm:$0xff] }
 0x6b7   :  { %11028 = vmatprep.subr.mxu1 %v15568_v4  ;;  %148 = vadd.xlane.f32.xlu0 %v147_v53 }
 0x6b8   :  { %11029 = vmatpush3.msra.mxu1 %v12707_v7  ;;  %v366_v7 = vmul.f32 %v13050_v5, %v13050_v5 }
 0x6b9   :  { %11030 = vmatprep.subr.mxu1 %v15568_v4 }
 0x6ba   :  { %11031 = vmatpush3.msra.mxu1 %v12715_v9  ;;  %v450_v9 = vsel %vm68_vm0, %v366_v7, 0.0 }
 0x6bb   :  { %11032 = vmatprep.subr.mxu1 %v15568_v4  ;;  %448 = vadd.xlane.f32.xlu0 %v447_v54 }
 0x6bc   :  { %11033 = vmatpush3.msra.mxu1 %v12725_v10  ;;  %v13058_v10 = vld [vmem:[%s15556_s0 + $0xe0] sm:$0xff] }
 0x6bd   :  { %11035 = vmatmul.mubr.msk.f32.vlgmr.msra.gmra.mxu1 %vm1988_vm2, %v2437_v52  ;;  %11048 = vmatprep.subr.mxu1 %v15568_v4 }
 0x6be   :  { %11049 = vmatpush3.msra.mxu1 %v12773_v40  ;;  %11056 = vmatprep.mubr.msk.f32.mxu1 %vm12592_vm1, %v15568_v4  ;;  %v153_v40 = vsel %vm68_vm0, %v13058_v10, 0.0 }
 0x6bf   :  { %11050 = vmatprep.subr.mxu1 %v15568_v4  ;;  %451 = vadd.xlane.f32.xlu0 %v450_v9 }
 0x6c0   :  { %11051 = vmatpush3.msra.mxu1 %v12781_v41  ;;  %v13065_v41 = vld [vmem:[%s15556_s0 + $0xe8] sm:$0xff] }
 0x6c1   :  { %11052 = vmatprep.subr.mxu1 %v15568_v4 }
 0x6c2   :  { %11053 = vmatpush3.msra.mxu1 %v12791_v43  ;;  %v156_v43 = vsel %vm68_vm0, %v13065_v41, 0.0 }
 0x6c3   :  { %11054 = vmatprep.subr.mxu1 %v15568_v4  ;;  %154 = vadd.xlane.f32.xlu0 %v153_v40 }
 0x6c4   :  { %11055 = vmatpush3.msra.mxu1 %v12799_v44 }
 0x6c5   :  { %11070 = vmatprep.subr.mxu1 %v15568_v4 }
 0x6c7   :  { %157 = vadd.xlane.f32.xlu0 %v156_v43 }
 0x6e7   :  { %v83_v8 = vpop.xlane.xlu1 %82 }
 0x6e8   :  { %v86_v44 = vpop.xlane.xlu0 %85  ;;  %v183_v62 = vrot.slane %v83_v8, 4 }
 0x6e9   :  { %v189_v1 = vrot.slane %v86_v44, 4 }
 0x6ea   :  { %v184_v21 = vadd.f32 %v183_v62, %v83_v8 }
 0x6eb   :  { %v386_v19 = vpop.xlane.xlu1 %385  ;;  %v190_v28 = vadd.f32 %v189_v1, %v86_v44 }
 0x6ec   :  { %v383_v16 = vpop.xlane.xlu0 %382  ;;  %v185_v25 = vrot.slane %v184_v21, 2  ;;  %v489_v29 = vrot.slane %v386_v19, 4 }
 0x6ed   :  { %v483_v22 = vrot.slane %v383_v16, 4  ;;  %v191_v36 = vrot.slane %v190_v28, 2 }
 0x6ee   :  { %v186_v33 = vadd.f32 %v185_v25, %v184_v21  ;;  %v490_v37 = vadd.f32 %v489_v29, %v386_v19  ;;  %v150_v19 = vsel %vm68_vm0, %v13050_v5, 0.0 }
 0x6ef   :  { %v13087_v18 = vpop.xlane.xlu1 %91  ;;  %v484_v27 = vadd.f32 %v483_v22, %v383_v16  ;;  %v192_v35 = vadd.f32 %v191_v36, %v190_v28  ;;  %v824_v28 = vld [vmem:[%s15557_s1 + $0x4] sm:$0x1] }
 0x6f0   :  { %v13069_v55 = vpop.xlane.xlu0 %88  ;;  %v187_v38 = vrot.slane %v186_v33, 1  ;;  %v491_v46 = vrot.slane %v490_v37, 2 }
 0x6f1   :  { %v485_v34 = vrot.slane %v484_v27, 2  ;;  %v193_v49 = vrot.slane %v192_v35, 1 }
 0x6f2   :  { %v188_v47 = vadd.f32 %v187_v38, %v186_v33  ;;  %v492_v52 = vadd.f32 %v491_v46, %v490_v37  ;;  %v825_v38 = vld [vmem:[%s15557_s1 + $0x5] sm:$0x1] }
 0x6f3   :  { %v486_v39 = vadd.f32 %v485_v34, %v484_v27  ;;  %v194_v9 = vadd.f32 %v193_v49, %v192_v35 }
 0x6f4   :  { %v13071_v58 = vpop.xlane.xlu0 %388  ;;  %v13109_v54 = vmul.f32 0.03125, %v188_v47  ;;  %v493_v40 = vrot.slane %v492_v52, 1 }
 0x6f5   :  { %v487_v48 = vrot.slane %v486_v39, 1 }
 0x6f6   :  { %v704_v43 = vmul.f32 %v13109_v54, %v13109_v54 }
 0x6f7   :  { %v488_v7 = vadd.f32 %v487_v48, %v486_v39  ;;  %v195_v48 = vrot.slane %v13069_v55, 4 }
 0x6f8   :  { %v13078_v3 = vpop.xlane.xlu0 %94 }
 0x6f9   :  { %v674_v44 = vmul.f32 0.03125, %v488_v7  ;;  %v196_v49 = vadd.f32 %v195_v48, %v13069_v55 }
 0x6fc   :  { %v13084_v15 = vpop.xlane.xlu0 %394 }
 0x762   :  { %v13073_v59 = vpop.f32.mrf.mxu0 }
 0x763   :  { %15580 = vst [vmem:[#allocation6_spill] sm:$0xff] %v13073_v59 }
 0x764   :  { %v1818_v6 = vpop.f32.mrf.mxu0 }
 0x765   :  { %v1819_v11 = vadd.f32 %v12745_v0, %v1818_v6  ;;  %v13092_v0 = vpop.xlane.xlu1 %391 }
 0x769   :  { %v13097_v31 = vpop.xlane.xlu1 %97 }
 0x76d   :  { %v2431_v56 = vpop.f32.mrf.mxu1  ;;  %v13101_v42 = vpop.xlane.xlu1 %397 }
 0x76f   :  { %v11014_v57 = vpop.f32.mrf.mxu1 }
 0x770   :  { %v13117_v57 = vmul.f32 0.03125, %v194_v9 }
 0x771   :  { %v13105_v53 = vpop.xlane.xlu1 %103 }
 0x772   :  { %v705_v6 = vmul.f32 %v13117_v57, %v13117_v57 }
 0x775   :  { %v2506_v60 = vpop.f32.mrf.mxu1  ;;  %v13113_v16 = vpop.xlane.xlu1 %403 }
 0x776   :  { %v2507_v61 = vadd.f32 %v2506_v60, %v2431_v56  ;;  %v494_v60 = vadd.f32 %v493_v40, %v492_v52  ;;  %v495_v52 = vrot.slane %v13071_v58, 4  ;;  %v201_v40 = vrot.slane %v13087_v18, 4 }
 0x777   :  { %v11025_v63 = vpop.f32.mrf.mxu1 }
 0x778   :  { %v13076_v2 = vadd.f32 %v12827_v51, %v2507_v61  ;;  %v13089_v51 = vpop.xlane.xlu0 %100  ;;  %v734_v61 = vsub.f32 %v674_v44, %v704_v43  ;;  %v367_v63 = vmul.f32 %v13058_v10, %v13058_v10  ;;  %v675_v8 = vmul.f32 0.03125, %v494_v60 }
 0x779   :  { %v197_v43 = vrot.slane %v196_v49, 2  ;;  %v496_v44 = vadd.f32 %v495_v52, %v13071_v58  ;;  %v202_v60 = vadd.f32 %v201_v40, %v13087_v18  ;;  %v213_v58 = vrot.slane %v13097_v31, 4 }
 0x77a   :  { %12000 = vtanh.f32 %v13076_v2  ;;  %v453_v62 = vsel %vm68_vm0, %v367_v63, 0.0  ;;  %v513_v52 = vrot.slane %v13101_v42, 4 }
 0x77b   :  { %v198_v55 = vadd.f32 %v197_v43, %v196_v49 }
 0x77c   :  { %v13094_v23 = vpop.xlane.xlu0 %400 }
 0x77d   :  { %v2603_v12 = vpop.f32.mrf.mxu1 }
 0x77e   :  { %v13082_v14 = vadd.f32 %v2603_v12, %v1819_v11  ;;  %v13123_v11 = vpop.xlane.xlu1 %109 }
 0x77f   :  { %v11036_v17 = vpop.f32.mrf.mxu1 }
 0x780   :  { %12002 = vtanh.f32 %v13082_v14  ;;  %v13099_v32 = vpop.xlane.xlu0 %106  ;;  %v764_v17 = vadd.f32 1e-05, %v734_v61  ;;  %v501_v61 = vrot.slane %v13092_v0, 4 }
 0x782   :  { %12004 = vrsqrt.f32 %v764_v17  ;;  %v13130_v21 = vpop.xlane.xlu1 %409  ;;  %v10281_v17 = vmul.f32 -1.442695, %v13076_v2 }
 0x784   :  { %v13103_v45 = vpop.xlane.xlu0 %406 }
 0x786   :  { %v13134_v1 = vpop.xlane.xlu1 %115 }
 0x787   :  { %v12001_v20 = vpop.eup %12000 }
 0x788   :  { %2520 = vrot.lane.b32.xlu1 %v12001_v20, %s12593_s23  ;;  %v13107_v13 = vpop.xlane.xlu0 %112  ;;  %v735_v20 = vsub.f32 %v675_v8, %v705_v6  ;;  %v497_v8 = vrot.slane %v496_v44, 2 }
 0x78a   :  { %v765_v22 = vadd.f32 1e-05, %v735_v20  ;;  %v13138_v27 = vpop.xlane.xlu1 %415  ;;  %v502_v20 = vadd.f32 %v501_v61, %v13092_v0  ;;  %v214_v0 = vadd.f32 %v213_v58, %v13097_v31  ;;  %v514_v31 = vadd.f32 %v513_v52, %v13101_v42 }
 0x78b   :  { %v525_v42 = vrot.slane %v13113_v16, 4 }
 0x78c   :  { %v13115_v56 = vpop.xlane.xlu0 %412  ;;  %12006 = vrsqrt.f32 %v765_v22  ;;  %v199_v22 = vrot.slane %v198_v55, 1  ;;  %v503_v2 = vrot.slane %v502_v20, 2 }
 0x78d   :  { %v12003_v24 = vpop.eup %12002  ;;  %12008 = vpow2.f32 %v10281_v17  ;;  %v526_v30 = vadd.f32 %v525_v42, %v13113_v16  ;;  %v531_v16 = vrot.slane %v13103_v45, 4 }
 0x78e   :  { %2617 = vrot.lane.b32.xlu0 %v12003_v24, %s12593_s23  ;;  %v13149_v36 = vpop.xlane.xlu1 %121  ;;  %v200_v48 = vadd.f32 %v199_v22, %v198_v55  ;;  %v215_v55 = vrot.slane %v214_v0, 2 }
 0x78f   :  { %v12005_v25 = vpop.eup %12004 }
 0x790   :  { %v13125_v12 = vpop.xlane.xlu0 %118  ;;  %v13145_v29 = vmul.f32 %v12005_v25, %v824_v28  ;;  %v498_v25 = vadd.f32 %v497_v8, %v496_v44  ;;  %v219_v44 = vrot.slane %v13089_v51, 4  ;;  %v504_v8 = vadd.f32 %v503_v2, %v502_v20 }
 0x791   :  { %v216_v4 = vadd.f32 %v215_v55, %v214_v0  ;;  %v231_v0 = vrot.slane %v13099_v32, 4 }
 0x792   :  { %v1019_v33 = vrot.slane %v13145_v29, %v12678_v50  ;;  %v13160_v46 = vpop.xlane.xlu1 %421  ;;  %v499_v49 = vrot.slane %v498_v25, 1 }
 0x793   :  { %v217_v55 = vrot.slane %v216_v4, 1 }
 0x794   :  { %v13132_v10 = vpop.xlane.xlu0 %418 }
 0x796   :  { %v13167_v7 = vpop.xlane.xlu1 %127 }
 0x798   :  { %v13136_v24 = vpop.xlane.xlu0 %124 }
 0x799   :  { %v12007_v34 = vpop.eup %12006 }
 0x79a   :  { %v13156_v39 = vmul.f32 %v12007_v34, %v825_v38  ;;  %v13175_v63 = vpop.xlane.xlu1 %427  ;;  %v507_v34 = vrot.slane %v13084_v15, 4 }
 0x79c   :  { %v13140_v5 = vpop.xlane.xlu0 %424  ;;  %v1023_v35 = vrot.slane %v13156_v39, %v12678_v50  ;;  %v508_v43 = vadd.f32 %v507_v34, %v13084_v15  ;;  %v220_v15 = vadd.f32 %v219_v44, %v13089_v51  ;;  %v505_v34 = vrot.slane %v504_v8, 1 }
 0x79e   :  { %v13183_v18 = vpop.xlane.xlu1 %133  ;;  %v509_v22 = vrot.slane %v508_v43, 2 }
 0x79f   :  { %15581 = vst [vmem:[#allocation7_spill] sm:$0xff] %v13183_v18 }
 0x7a0   :  { %v13151_v37 = vpop.xlane.xlu0 %130  ;;  %v510_v51 = vadd.f32 %v509_v22, %v508_v43 }
 0x7a4   :  { %v13162_v47 = vpop.xlane.xlu0 %430 }
 0x7a8   :  { %v13169_v9 = vpop.xlane.xlu0 %136 }
 0x7ac   :  { %151 = vadd.xlane.f32.xlu1 %v150_v19  ;;  %v13177_v6 = vpop.xlane.xlu0 %436  ;;  %v207_v19 = vrot.slane %v13078_v3, 4 }
 0x7ad   :  { %454 = vadd.xlane.f32.xlu0 %v453_v62  ;;  %v203_v62 = vrot.slane %v202_v60, 2 }
 0x7af   :  { %v204_v38 = vadd.f32 %v203_v62, %v202_v60  ;;  %v13198_v60 = vmul.f32 0.03125, %v200_v48 }
 0x7b0   :  { %v13185_v28 = vpop.xlane.xlu0 %142 }
 0x7b1   :  { %v205_v61 = vrot.slane %v204_v38, 1  ;;  %v706_v20 = vmul.f32 %v13198_v60, %v13198_v60 }
 0x7b3   :  { %v206_v58 = vadd.f32 %v205_v61, %v204_v38  ;;  %v221_v38 = vrot.slane %v220_v15, 2  ;;  %v506_v61 = vadd.f32 %v505_v34, %v504_v8  ;;  %v232_v8 = vadd.f32 %v231_v0, %v13099_v32 }
 0x7b4   :  { %v13196_v17 = vpop.xlane.xlu0 %442  ;;  %v537_v0 = vrot.slane %v13130_v21, 4 }
 0x7b5   :  { %v13212_v44 = vmul.f32 0.03125, %v206_v58  ;;  %v222_v18 = vadd.f32 %v221_v38, %v220_v15  ;;  %v677_v22 = vmul.f32 0.03125, %v506_v61  ;;  %v237_v58 = vrot.slane %v13123_v11, 4 }
 0x7b7   :  { %v707_v43 = vmul.f32 %v13212_v44, %v13212_v44  ;;  %v223_v32 = vrot.slane %v222_v18, 1  ;;  %v238_v61 = vadd.f32 %v237_v58, %v13123_v11 }
 0x7b9   :  { %v737_v38 = vsub.f32 %v677_v22, %v707_v43  ;;  %v224_v43 = vadd.f32 %v223_v32, %v222_v18  ;;  %v243_v22 = vrot.slane %v13107_v13, 4 }
 0x7bb   :  { %v767_v18 = vadd.f32 1e-05, %v737_v38 }
 0x7c3   :  { %1137 = vperm.xlu0 %11966, %v1019_v33   ;;  %v208_v33 = vadd.f32 %v207_v19, %v13078_v3  ;;  %v13194_v3 = vpop.xlane.xlu1 %433  ;;  %v225_v19 = vrot.slane %v13105_v53, 4 }
 0x7c4   :  { %15582 = vst [vmem:[#allocation8_spill] sm:$0xff] %v13194_v3  ;;  %v511_v3 = vrot.slane %v510_v51, 1 }
 0x7c5   :  { %v209_v40 = vrot.slane %v208_v33, 2  ;;  %v226_v48 = vadd.f32 %v225_v19, %v13105_v53 }
 0x7c7   :  { %1141 = vperm.xlu0 %11966, %v1023_v35   ;;  %v10283_v35 = vmul.f32 -1.442695, %v13082_v14  ;;  %v500_v14 = vadd.f32 %v499_v49, %v498_v25  ;;  %v210_v62 = vadd.f32 %v209_v40, %v208_v33  ;;  %v519_v25 = vrot.slane %v13094_v23, 4  ;;  %v13208_v49 = vpop.xlane.xlu1 %139  ;;  %v13210_v33 = vpop.xlane.xlu0 %148 }
 0x7c8   :  { %15583 = vst [vmem:[#allocation9_spill] sm:$0xff] %v13208_v49  ;;  %v12009_v40 = vpop.eup %12008  ;;  %v227_v19 = vrot.slane %v226_v48, 2 }
 0x7c9   :  { %12010 = vpow2.f32 %v10283_v35  ;;  %v676_v2 = vmul.f32 0.03125, %v500_v14  ;;  %v515_v35 = vrot.slane %v514_v31, 2  ;;  %v211_v52 = vrot.slane %v210_v62, 1 }
 0x7ca   :  { %v520_v59 = vadd.f32 %v519_v25, %v13094_v23  ;;  %v2514_v26 = vadd.f32 1.0, %v12009_v40  ;;  %v218_v23 = vadd.f32 %v217_v55, %v216_v4  ;;  %v527_v25 = vrot.slane %v526_v30, 2 }
 0x7cb   :  { %v736_v14 = vsub.f32 %v676_v2, %v706_v20  ;;  %v516_v53 = vadd.f32 %v515_v35, %v514_v31  ;;  %v212_v49 = vadd.f32 %v211_v52, %v210_v62  ;;  %v13221_v34 = vpop.xlane.xlu1 %439  ;;  %v13223_v31 = vpop.xlane.xlu0 %448  ;;  %v228_v35 = vadd.f32 %v227_v19, %v226_v48 }
 0x7cc   :  { %15584 = vst [vmem:[#allocation10_spill] sm:$0xff] %v13221_v34  ;;  %v521_v15 = vrot.slane %v520_v59, 2  ;;  %12012 = vrcp.f32 %v2514_v26  ;;  %v512_v52 = vadd.f32 %v511_v3, %v510_v51  ;;  %v233_v40 = vrot.slane %v232_v8, 2 }
 0x7cd   :  { %v766_v20 = vadd.f32 1e-05, %v736_v14  ;;  %v517_v62 = vrot.slane %v516_v53, 1  ;;  %v13226_v42 = vmul.f32 0.03125, %v212_v49  ;;  %v13232_v55 = vmul.f32 0.03125, %v218_v23 }
 0x7ce   :  { %v532_v48 = vadd.f32 %v531_v16, %v13103_v45  ;;  %v229_v26 = vrot.slane %v228_v35, 1  ;;  %v522_v49 = vadd.f32 %v521_v15, %v520_v59  ;;  %v528_v34 = vadd.f32 %v527_v25, %v526_v30 }
 0x7cf   :  { %v13230_v14 = vpop.xlane.xlu0 %451  ;;  %12014 = vrsqrt.f32 %v766_v20  ;;  %v518_v19 = vadd.f32 %v517_v62, %v516_v53  ;;  %v13235_v3 = vpop.xlane.xlu1 %145  ;;  %v708_v51 = vmul.f32 %v13226_v42, %v13226_v42  ;;  %v678_v11 = vmul.f32 0.03125, %v512_v52 }
 0x7d0   :  { %15585 = vst [vmem:[#allocation11_spill] sm:$0xff] %v13230_v14  ;;  %15586 = vst [vmem:[#allocation12_spill] sm:$0xff] %v13235_v3  ;;  %v234_v58 = vadd.f32 %v233_v40, %v232_v8  ;;  %v538_v20 = vadd.f32 %v537_v0, %v13130_v21  ;;  %v249_v23 = vrot.slane %v13134_v1, 4  ;;  %v709_v59 = vmul.f32 %v13232_v55, %v13232_v55 }
 0x7d1   :  { %v533_v30 = vrot.slane %v532_v48, 2  ;;  %v679_v45 = vmul.f32 0.03125, %v518_v19  ;;  %v230_v53 = vadd.f32 %v229_v26, %v228_v35  ;;  %v523_v16 = vrot.slane %v522_v49, 1 }
 0x7d2   :  { %v529_v62 = vrot.slane %v528_v34, 1  ;;  %v738_v25 = vsub.f32 %v678_v11, %v708_v51  ;;  %v13246_v52 = vmul.f32 0.03125, %v224_v43  ;;  %v244_v8 = vadd.f32 %v243_v22, %v13107_v13 }
 0x7d3   :  { %v13244_v15 = vpop.xlane.xlu0 %154  ;;  %v235_v21 = vrot.slane %v234_v58, 1  ;;  %v539_v40 = vrot.slane %v538_v20, 2  ;;  %v250_v0 = vadd.f32 %v249_v23, %v13134_v1  ;;  %v534_v14 = vadd.f32 %v533_v30, %v532_v48 }
 0x7d4   :  { %v543_v35 = vrot.slane %v13115_v56, 4  ;;  %v739_v19 = vsub.f32 %v679_v45, %v709_v59  ;;  %v13253_v26 = vmul.f32 0.03125, %v230_v53  ;;  %v524_v3 = vadd.f32 %v523_v16, %v522_v49 }
 0x7d5   :  { %v530_v38 = vadd.f32 %v529_v62, %v528_v34  ;;  %v768_v51 = vadd.f32 1e-05, %v738_v25  ;;  %v710_v13 = vmul.f32 %v13246_v52, %v13246_v52  ;;  %v245_v11 = vrot.slane %v244_v8, 2 }
 0x7d6   :  { %v12011_v2 = vpop.eup %12010  ;;  %v236_v43 = vadd.f32 %v235_v21, %v234_v58  ;;  %v540_v22 = vadd.f32 %v539_v40, %v538_v20  ;;  %v535_v59 = vrot.slane %v534_v14, 1  ;;  %v544_v30 = vadd.f32 %v543_v35, %v13115_v56  ;;  %v884_v35 = vld [vmem:[%s15558_s2 + $0x4] sm:$0x1] }
 0x7d7   :  { %v2611_v4 = vadd.f32 1.0, %v12011_v2  ;;  %v239_v2 = vrot.slane %v238_v61, 2  ;;  %v13259_v23 = vpop.xlane.xlu0 %157  ;;  %v255_v34 = vrot.slane %v13125_v12, 4  ;;  %v769_v53 = vadd.f32 1e-05, %v739_v19 }
 0x7d8   :  { %v711_v16 = vmul.f32 %v13253_v26, %v13253_v26  ;;  %v680_v62 = vmul.f32 0.03125, %v524_v3  ;;  %v681_v58 = vmul.f32 0.03125, %v530_v38  ;;  %v246_v20 = vadd.f32 %v245_v11, %v244_v8 }
 0x7d9   :  { %12016 = vrcp.f32 %v2611_v4  ;;  %v240_v32 = vadd.f32 %v239_v2, %v238_v61  ;;  %v13250_v4 = vpop.xlane.xlu1 %445  ;;  %v13257_v61 = vpop.eup %12012  ;;  %v251_v2 = vrot.slane %v250_v0, 2  ;;  %v13269_v25 = vmul.f32 0.03125, %v236_v43 }
 0x7da   :  { %12018 = vrsqrt.f32 %v767_v18  ;;  %v914_v18 = vmul.f32 %v13145_v29, %v13109_v54  ;;  %v541_v21 = vrot.slane %v540_v22, 1  ;;  %v536_v19 = vadd.f32 %v535_v59, %v534_v14 }
 0x7db   :  { %v241_v1 = vrot.slane %v240_v32, 1  ;;  %12020 = vrsqrt.f32 %v768_v51  ;;  %v252_v40 = vadd.f32 %v251_v2, %v250_v0  ;;  %v549_v3 = vrot.slane %v13138_v27, 4 }
 0x7dc   :  { %v12015_v45 = vpop.eup %12014  ;;  %v256_v8 = vadd.f32 %v255_v34, %v13125_v12  ;;  %12022 = vrsqrt.f32 %v769_v53  ;;  %v740_v51 = vsub.f32 %v680_v62, %v710_v13  ;;  %v741_v54 = vsub.f32 %v681_v58, %v711_v16  ;;  %v885_v13 = vld [vmem:[%s15558_s2 + $0x5] sm:$0x1]  ;;  %v826_v34 = vld [vmem:[%s15557_s1 + $0x6] sm:$0x1] }
 0x7dd   :  { %v242_v56 = vadd.f32 %v241_v1, %v240_v32  ;;  %v555_v29 = vrot.slane %v13132_v10, 4  ;;  %v247_v11 = vrot.slane %v246_v20, 1  ;;  %v944_v43 = vsub.f32 %v884_v35, %v914_v18 }
 0x7de   :  { %v915_v14 = vmul.f32 %v13156_v39, %v13117_v57  ;;  %v712_v1 = vmul.f32 %v13269_v25, %v13269_v25  ;;  %v542_v12 = vadd.f32 %v541_v21, %v540_v22  ;;  %v253_v59 = vrot.slane %v252_v40, 1 }
 0x7df   :  { %v13284_v2 = vmul.f32 0.03125, %v242_v56  ;;  %v550_v16 = vadd.f32 %v549_v3, %v13138_v27  ;;  %v257_v57 = vrot.slane %v256_v8, 2  ;;  %v770_v39 = vadd.f32 1e-05, %v740_v51 }
 0x7e0   :  { %v771_v62 = vadd.f32 1e-05, %v741_v54  ;;  %v556_v22 = vadd.f32 %v555_v29, %v13132_v10  ;;  %v267_v58 = vrot.slane %v13136_v24, 4  ;;  %v248_v18 = vadd.f32 %v247_v11, %v246_v20  ;;  %v827_v10 = vld [vmem:[%s15557_s1 + $0x7] sm:$0x1] }
 0x7e1   :  { %v1319_v56 = vrot.slane %v944_v43, %v12678_v50  ;;  %v945_v21 = vsub.f32 %v885_v13, %v915_v14  ;;  %v13297_v35 = vmul.f32 %v12015_v45, %v826_v34  ;;  %v683_v27 = vmul.f32 0.03125, %v542_v12 }
 0x7e2   :  { %v551_v20 = vrot.slane %v550_v16, 2  ;;  %v258_v54 = vadd.f32 %v257_v57, %v256_v8  ;;  %12024 = vrsqrt.f32 %v770_v39  ;;  %v557_v45 = vrot.slane %v556_v22, 2 }
 0x7e3   :  { %v268_v29 = vadd.f32 %v267_v58, %v13136_v24  ;;  %v567_v11 = vrot.slane %v13140_v5, 4  ;;  %v916_v14 = vmul.f32 %v13297_v35, %v13198_v60  ;;  %12026 = vrsqrt.f32 %v771_v62  ;;  %v886_v24 = vld [vmem:[%s15558_s2 + $0x6] sm:$0x1] }
 0x7e4   :  { %v259_v57 = vrot.slane %v258_v54, 1  ;;  %v558_v39 = vadd.f32 %v557_v45, %v556_v22  ;;  %v279_v62 = vrot.slane %v13151_v37, 4  ;;  %v579_v45 = vrot.slane %v13162_v47, 4 }
 0x7e5   :  { %v269_v58 = vrot.slane %v268_v29, 2  ;;  %v568_v60 = vadd.f32 %v567_v11, %v13140_v5 }
 0x7e6   :  { %v13276_v38 = vpop.eup %12016 }
 0x7fa   :  { %v2521_v48 = vpop.permute.xlu1 %2520 }
 0x7fb   :  { %v2523_v49 = vmul.f32 %v13257_v61, %v2521_v48  ;;  %v545_v48 = vrot.slane %v544_v30, 2 }
 0x7fd   :  { %2525 = vrot.lane.b32.xlu1 %v2523_v49, %s12594_s24  ;;  %v682_v49 = vmul.f32 0.03125, %v536_v19  ;;  %v546_v53 = vadd.f32 %v545_v48, %v544_v30  ;;  %v713_v30 = vmul.f32 %v13284_v2, %v13284_v2  ;;  %v254_v19 = vadd.f32 %v253_v59, %v252_v40 }
 0x7fe   :  { %v261_v48 = vrot.slane %v13149_v36, 4  ;;  %v1323_v40 = vrot.slane %v945_v21, %v12678_v50  ;;  %v946_v21 = vsub.f32 %v886_v24, %v916_v14  ;;  %v291_v24 = vrot.slane %v13169_v9, 4 }
 0x7ff   :  { %v742_v3 = vsub.f32 %v682_v49, %v712_v1  ;;  %v547_v51 = vrot.slane %v546_v53, 1  ;;  %v743_v1 = vsub.f32 %v683_v27, %v713_v30  ;;  %v13312_v59 = vmul.f32 0.03125, %v254_v19  ;;  %v828_v27 = vld [vmem:[%s15557_s1 + $0x8] sm:$0x1] }
 0x800   :  { %v2618_v32 = vpop.permute.xlu0 %2617  ;;  %v262_v8 = vadd.f32 %v261_v48, %v13149_v36  ;;  %v552_v49 = vadd.f32 %v551_v20, %v550_v16  ;;  %v561_v30 = vrot.slane %v13160_v46, 4  ;;  %v280_v20 = vadd.f32 %v279_v62, %v13151_v37 }
 0x801   :  { %v2620_v0 = vmul.f32 %v13276_v38, %v2618_v32  ;;  %v12019_v32 = vpop.eup %12018  ;;  %v772_v13 = vadd.f32 1e-05, %v742_v3  ;;  %v548_v34 = vadd.f32 %v547_v51, %v546_v53  ;;  %v887_v53 = vld [vmem:[%s15558_s2 + $0x7] sm:$0x1]  ;;  %v13329_v22 = vmul.f32 %v13312_v59, %v13312_v59 }
 0x802   :  { %v857_v43 = vmul.f32 %v12019_v32, %v827_v10  ;;  %v12021_v12 = vpop.eup %12020  ;;  %v773_v32 = vadd.f32 1e-05, %v743_v1  ;;  %v263_v5 = vrot.slane %v262_v8, 2  ;;  %v553_v48 = vrot.slane %v552_v49, 1 }
 0x803   :  { %2622 = vrot.lane.b32.xlu0 %v2620_v0, %s12594_s24  ;;  %v13307_v0 = vmul.f32 0.03125, %v248_v18  ;;  %v12023_v18 = vpop.eup %12022  ;;  %12028 = vrsqrt.f32 %v772_v13  ;;  %v684_v19 = vmul.f32 0.03125, %v548_v34  ;;  %v260_v10 = vadd.f32 %v259_v57, %v258_v54  ;;  %v829_v54 = vld [vmem:[%s15557_s1 + $0x9] sm:$0x1] }
 0x804   :  { %v1031_v36 = vrot.slane %v857_v43, %v12678_v50  ;;  %v917_v16 = vmul.f32 %v857_v43, %v13212_v44  ;;  %v559_v3 = vrot.slane %v558_v39, 1  ;;  %v270_v51 = vadd.f32 %v269_v58, %v268_v29  ;;  %v13348_v62 = vpop.eup %12024 }
 0x805   :  { %v569_v44 = vrot.slane %v568_v60, 2  ;;  %v1327_v11 = vrot.slane %v946_v21, %v12678_v50  ;;  %v858_v43 = vmul.f32 %v12021_v12, %v828_v27  ;;  %12030 = vrsqrt.f32 %v773_v32 }
 0x806   :  { %v264_v14 = vadd.f32 %v263_v5, %v262_v8  ;;  %v562_v1 = vadd.f32 %v561_v30, %v13160_v46  ;;  %v13343_v13 = vadd.f32 %v553_v48, %v552_v49  ;;  %v13345_v37 = vmul.f32 0.03125, %v260_v10 }
 0x807   :  { %1437 = vperm.xlu0 %11966, %v1319_v56   ;;  %v714_v56 = vmul.f32 %v13307_v0, %v13307_v0  ;;  %v273_v34 = vrot.slane %v13167_v7, 4  ;;  %v560_v57 = vadd.f32 %v559_v3, %v558_v39  ;;  %v271_v12 = vrot.slane %v270_v51, 1  ;;  %v888_v39 = vld [vmem:[%s15558_s2 + $0x8] sm:$0x1] }
 0x808   :  { %v570_v58 = vadd.f32 %v569_v44, %v568_v60  ;;  %v281_v8 = vrot.slane %v280_v20, 2  ;;  %v580_v46 = vadd.f32 %v579_v45, %v13162_v47  ;;  %v918_v21 = vmul.f32 %v858_v43, %v13226_v42  ;;  %v12027_v60 = vpop.eup %12026 }
 0x809   :  { %v744_v29 = vsub.f32 %v684_v19, %v714_v56  ;;  %v13353_v56 = vmul.f32 %v12023_v18, %v829_v54  ;;  %v265_v49 = vrot.slane %v264_v14, 1  ;;  %v591_v32 = vrot.slane %v13177_v6, 4 }
 0x80a   :  { %v716_v47 = vmul.f32 %v13345_v37, %v13345_v37  ;;  %v274_v30 = vadd.f32 %v273_v34, %v13167_v7  ;;  %v573_v42 = vrot.slane %v13175_v63, 4  ;;  %v686_v18 = vmul.f32 0.03125, %v560_v57 }
 0x80b   :  { %1441 = vperm.xlu0 %11966, %v1323_v40   ;;  %v947_v40 = vsub.f32 %v887_v53, %v917_v16  ;;  %v563_v53 = vrot.slane %v562_v1, 2  ;;  %v292_v16 = vadd.f32 %v291_v24, %v13169_v9  ;;  %v774_v5 = vadd.f32 1e-05, %v744_v29 }
 0x80c   :  { %v272_v27 = vadd.f32 %v271_v12, %v270_v51  ;;  %v571_v19 = vrot.slane %v570_v58, 1  ;;  %v282_v9 = vadd.f32 %v281_v8, %v280_v20  ;;  %v581_v48 = vrot.slane %v580_v46, 2  ;;  %v889_v51 = vld [vmem:[%s15558_s2 + $0x9] sm:$0x1]  ;;  %v831_v20 = vld [vmem:[%s15557_s1 + $0xb] sm:$0x1] }
 0x80d   :  { %v1035_v10 = vrot.slane %v858_v43, %v12678_v50  ;;  %v948_v3 = vsub.f32 %v888_v39, %v918_v21  ;;  %v919_v44 = vmul.f32 %v13353_v56, %v13232_v55  ;;  %v293_v45 = vrot.slane %v292_v16, 2 }
 0x80e   :  { %v368_v7 = vmul.f32 %v13065_v41, %v13065_v41  ;;  %12032 = vrsqrt.f32 %v774_v5  ;;  %v564_v43 = vadd.f32 %v563_v53, %v562_v1  ;;  %v275_v24 = vrot.slane %v274_v30, 2 }
 0x80f   :  { %1149 = vperm.xlu0 %11966, %v1031_v36   ;;  %v1331_v36 = vrot.slane %v947_v40, %v12678_v50  ;;  %v303_v40 = vrot.slane %v13185_v28, 4  ;;  %v574_v55 = vadd.f32 %v573_v42, %v13175_v63  ;;  %v746_v54 = vsub.f32 %v686_v18, %v716_v47 }
 0x810   :  { %v13378_v29 = vmul.f32 0.03125, %v272_v27  ;;  %v572_v34 = vadd.f32 %v571_v19, %v570_v58  ;;  %v283_v41 = vrot.slane %v282_v9, 1  ;;  %v582_v57 = vadd.f32 %v581_v48, %v580_v46 }
 0x811   :  { %v1335_v12 = vrot.slane %v948_v3, %v12678_v50  ;;  %v949_v8 = vsub.f32 %v889_v51, %v919_v44  ;;  %v294_v21 = vadd.f32 %v293_v45, %v292_v16  ;;  %v304_v39 = vadd.f32 %v303_v40, %v13185_v28 }
 0x812   :  { %v456_v1 = vsel %vm68_vm0, %v368_v7, 0.0  ;;  %v266_v63 = vadd.f32 %v265_v49, %v264_v14  ;;  %v565_v5 = vrot.slane %v564_v43, 1  ;;  %v276_v47 = vadd.f32 %v275_v24, %v274_v30  ;;  %v891_v14 = vld [vmem:[%s15558_s2 + $0xb] sm:$0x1] }
 0x813   :  { %1445 = vperm.xlu0 %11966, %v1327_v11   ;;  %v592_v11 = vadd.f32 %v591_v32, %v13177_v6  ;;  %v12029_v6 = vpop.eup %12028  ;;  %v603_v42 = vrot.slane %v13196_v17, 4  ;;  %v776_v58 = vadd.f32 1e-05, %v746_v54  ;;  %v718_v46 = vmul.f32 %v13378_v29, %v13378_v29 }
 0x814   :  { %v13383_v53 = vpop.eup %12030  ;;  %v688_v18 = vmul.f32 0.03125, %v572_v34  ;;  %v685_v16 = vmul.f32 0.03125, %v13343_v13  ;;  %v583_v27 = vrot.slane %v582_v57, 1  ;;  %v1339_v28 = vrot.slane %v949_v8, %v12678_v50 }
 0x815   :  { %v593_v32 = vrot.slane %v592_v11, 2  ;;  %v575_v30 = vrot.slane %v574_v55, 2  ;;  %v295_v19 = vrot.slane %v294_v21, 1  ;;  %v13397_v3 = vmul.f32 0.03125, %v266_v63 }
 0x816   :  { %v566_v13 = vadd.f32 %v565_v5, %v564_v43  ;;  %v277_v44 = vrot.slane %v276_v47, 1  ;;  %v604_v45 = vadd.f32 %v603_v42, %v13196_v17  ;;  %12034 = vrsqrt.f32 %v776_v58 }
 0x817   :  { %1449 = vperm.xlu0 %11966, %v1331_v36   ;;  %v861_v36 = vmul.f32 %v12027_v60, %v831_v20  ;;  %v284_v60 = vadd.f32 %v283_v41, %v282_v9  ;;  %v594_v48 = vadd.f32 %v593_v32, %v592_v11  ;;  %v832_v9 = vld [vmem:[%s15557_s1 + $0xc] sm:$0x1]  ;;  %v748_v40 = vsub.f32 %v688_v18, %v718_v46 }
 0x818   :  { %v584_v51 = vadd.f32 %v583_v27, %v582_v57  ;;  %v862_v24 = vmul.f32 %v12029_v6, %v832_v9  ;;  %v576_v54 = vadd.f32 %v575_v30, %v574_v55  ;;  %v296_v34 = vadd.f32 %v295_v19, %v294_v21 }
 0x819   :  { %v921_v49 = vmul.f32 %v861_v36, %v13253_v26  ;;  %v13400_v7 = vmul.f32 0.03125, %v284_v60  ;;  %v315_v26 = vrot.slane %v13210_v33, 4  ;;  %v1047_v11 = vrot.slane %v861_v36, %v12678_v50 }
 0x81a   :  { %v595_v41 = vrot.slane %v594_v48, 1  ;;  %v745_v43 = vsub.f32 %v685_v16, %v13329_v22  ;;  %v717_v17 = vmul.f32 %v13397_v3, %v13397_v3  ;;  %v605_v8 = vrot.slane %v604_v45, 2  ;;  %v892_v22 = vld [vmem:[%s15558_s2 + $0xc] sm:$0x1] }
 0x81b   :  { %1153 = vperm.xlu0 %11966, %v1035_v10   ;;  %v305_v10 = vrot.slane %v304_v39, 2  ;;  %v951_v20 = vsub.f32 %v891_v14, %v921_v49  ;;  %v615_v32 = vrot.slane %v13223_v31, 4  ;;  %v687_v63 = vmul.f32 0.03125, %v566_v13 }
 0x81c   :  { %v278_v57 = vadd.f32 %v277_v44, %v276_v47  ;;  %v778_v5 = vadd.f32 1e-05, %v748_v40  ;;  %v316_v36 = vadd.f32 %v315_v26, %v13210_v33  ;;  %v720_v55 = vmul.f32 %v13400_v7, %v13400_v7  ;;  %v834_v33 = vld [vmem:[%s15557_s1 + $0xe] sm:$0x1] }
 0x81d   :  { %v690_v6 = vmul.f32 0.03125, %v584_v51  ;;  %v1347_v21 = vrot.slane %v951_v20, %v12678_v50  ;;  %v577_v42 = vrot.slane %v576_v54, 1  ;;  %v13416_v58 = vmul.f32 0.03125, %v296_v34 }
 0x81e   :  { %v596_v46 = vadd.f32 %v595_v41, %v594_v48  ;;  %v775_v18 = vadd.f32 1e-05, %v745_v43  ;;  %v606_v60 = vadd.f32 %v605_v8, %v604_v45  ;;  %v616_v16 = vadd.f32 %v615_v32, %v13223_v31  ;;  %v830_v48 = vld [vmem:[%s15557_s1 + $0xa] sm:$0x1] }
 0x81f   :  { %1453 = vperm.xlu0 %11966, %v1335_v12   ;;  %v306_v12 = vadd.f32 %v305_v10, %v304_v39  ;;  %v922_v39 = vmul.f32 %v862_v24, %v13269_v25  ;;  %v747_v27 = vsub.f32 %v687_v63, %v717_v17  ;;  %12036 = vrsqrt.f32 %v778_v5 }
 0x820   :  { %v317_v14 = vrot.slane %v316_v36, 2  ;;  %v750_v25 = vsub.f32 %v690_v6, %v720_v55  ;;  %v1051_v49 = vrot.slane %v862_v24, %v12678_v50  ;;  %v578_v10 = vadd.f32 %v577_v42, %v576_v54  ;;  %v890_v6 = vld [vmem:[%s15558_s2 + $0xa] sm:$0x1] }
 0x821   :  { %457 = vadd.xlane.f32.xlu1 %v456_v1  ;;  %v12033_v1 = vpop.eup %12032  ;;  %v307_v47 = vrot.slane %v306_v12, 1  ;;  %v952_v30 = vsub.f32 %v892_v22, %v922_v39  ;;  %v722_v9 = vmul.f32 %v13416_v58, %v13416_v58  ;;  %v692_v31 = vmul.f32 0.03125, %v596_v46 }
 0x822   :  { %v864_v19 = vmul.f32 %v12033_v1, %v834_v33  ;;  %v607_v44 = vrot.slane %v606_v60, 1  ;;  %v617_v45 = vrot.slane %v616_v16, 2  ;;  %v327_v40 = vrot.slane %v13244_v15, 4 }
 0x823   :  { %1457 = vperm.xlu0 %11966, %v1339_v28   ;;  %v13422_v28 = vmul.f32 0.03125, %v278_v57  ;;  %v308_v13 = vadd.f32 %v307_v47, %v306_v12  ;;  %12038 = vrsqrt.f32 %v775_v18  ;;  %v318_v26 = vadd.f32 %v317_v14, %v316_v36  ;;  %v12035_v20 = vpop.eup %12034 }
 0x824   :  { %v1027_v51 = vrot.slane %v13297_v35, %v12678_v50  ;;  %v777_v24 = vadd.f32 1e-05, %v747_v27  ;;  %v780_v54 = vadd.f32 1e-05, %v750_v25  ;;  %v1351_v34 = vrot.slane %v952_v30, %v12678_v50  ;;  %v894_v35 = vld [vmem:[%s15558_s2 + $0xe] sm:$0x1] }
 0x825   :  { %v924_v41 = vmul.f32 %v864_v19, %v13307_v0  ;;  %v719_v12 = vmul.f32 %v13422_v28, %v13422_v28  ;;  %v689_v43 = vmul.f32 0.03125, %v578_v10  ;;  %v752_v17 = vsub.f32 %v692_v31, %v722_v9  ;;  %v838_v10 = vld [vmem:[%s15557_s1 + $0x12] sm:$0x1] }
 0x826   :  { %v13438_v8 = vmul.f32 0.03125, %v308_v13  ;;  %v608_v32 = vadd.f32 %v607_v44, %v606_v60  ;;  %v618_v1 = vadd.f32 %v617_v45, %v616_v16  ;;  %v328_v0 = vadd.f32 %v327_v40, %v13244_v15  ;;  %v833_v15 = vld [vmem:[%s15557_s1 + $0xd] sm:$0x1] }
 0x827   :  { %1165 = vperm.xlu0 %11966, %v1047_v11   ;;  %v860_v11 = vmul.f32 %v13348_v62, %v830_v48  ;;  %v836_v62 = vld [vmem:[%s15557_s1 + $0x10] sm:$0x1]  ;;  %v319_v63 = vrot.slane %v318_v26, 1  ;;  %v1039_v57 = vrot.slane %v13353_v56, %v12678_v50  ;;  %12040 = vrsqrt.f32 %v780_v54  ;;  %v835_v54 = vld [vmem:[%s15557_s1 + $0xf] sm:$0x1] }
 0x828   :  { %v1059_v36 = vrot.slane %v864_v19, %v12678_v50  ;;  %v954_v55 = vsub.f32 %v894_v35, %v924_v41  ;;  %12042 = vrsqrt.f32 %v777_v24  ;;  %v749_v22 = vsub.f32 %v689_v43, %v719_v12  ;;  %v896_v48 = vld [vmem:[%s15558_s2 + $0x10] sm:$0x1] }
 0x829   :  { %v920_v5 = vmul.f32 %v860_v11, %v13246_v52  ;;  %v782_v39 = vadd.f32 1e-05, %v752_v17  ;;  %v724_v56 = vmul.f32 %v13438_v8, %v13438_v8  ;;  %v694_v42 = vmul.f32 0.03125, %v608_v32 }
 0x82a   :  { %v619_v46 = vrot.slane %v618_v1, 1  ;;  %v329_v47 = vrot.slane %v328_v0, 2  ;;  %v320_v18 = vadd.f32 %v319_v63, %v318_v26  ;;  %v1043_v60 = vrot.slane %v860_v11, %v12678_v50  ;;  %v898_v63 = vld [vmem:[%s15558_s2 + $0x12] sm:$0x1] }
 0x82b   :  { %1465 = vperm.xlu0 %11966, %v1347_v21   ;;  %v866_v21 = vmul.f32 %v12035_v20, %v836_v62  ;;  %v950_v16 = vsub.f32 %v890_v6, %v920_v5  ;;  %v863_v27 = vmul.f32 %v13383_v53, %v833_v15  ;;  %v779_v19 = vadd.f32 1e-05, %v749_v22  ;;  %v893_v20 = vld [vmem:[%s15558_s2 + $0xd] sm:$0x1] }
 0x82c   :  { %v12037_v14 = vpop.eup %12036  ;;  %v754_v9 = vsub.f32 %v694_v42, %v724_v56  ;;  %v620_v31 = vadd.f32 %v619_v46, %v618_v1  ;;  %v330_v13 = vadd.f32 %v329_v47, %v328_v0  ;;  %12044 = vrsqrt.f32 %v782_v39  ;;  %v837_v46 = vld [vmem:[%s15557_s1 + $0x11] sm:$0x1] }
 0x82d   :  { %v926_v30 = vmul.f32 %v866_v21, %v13345_v37  ;;  %v13469_v44 = vmul.f32 0.03125, %v320_v18  ;;  %v1343_v37 = vrot.slane %v950_v16, %v12678_v50  ;;  %v923_v45 = vmul.f32 %v863_v27, %v13284_v2 }
 0x82e   :  { %v868_v24 = vmul.f32 %v12037_v14, %v838_v10  ;;  %12046 = vrsqrt.f32 %v779_v19  ;;  %v696_v41 = vmul.f32 0.03125, %v620_v31  ;;  %v331_v12 = vrot.slane %v330_v13, 1  ;;  %v842_v10 = vld [vmem:[%s15557_s1 + $0x16] sm:$0x1] }
 0x82f   :  { %1169 = vperm.xlu0 %11966, %v1051_v49   ;;  %v1359_v49 = vrot.slane %v954_v55, %v12678_v50  ;;  %v956_v11 = vsub.f32 %v896_v48, %v926_v30  ;;  %v726_v2 = vmul.f32 %v13469_v44, %v13469_v44  ;;  %v1055_v43 = vrot.slane %v863_v27, %v12678_v50  ;;  %v900_v48 = vld [vmem:[%s15558_s2 + $0x14] sm:$0x1] }
 0x830   :  { %v12039_v40 = vpop.eup %12038  ;;  %v953_v17 = vsub.f32 %v893_v20, %v923_v45  ;;  %v928_v1 = vmul.f32 %v868_v24, %v13378_v29  ;;  %v332_v6 = vadd.f32 %v331_v12, %v330_v13  ;;  %v1075_v39 = vrot.slane %v868_v24, %v12678_v50  ;;  %v15589_v13 = vld [vmem:[#allocation9_spill] sm:$0xff]  ;;  %v897_v20 = vld [vmem:[%s15558_s2 + $0x11] sm:$0x1] }
 0x831   :  { %v865_v35 = vmul.f32 %v12039_v40, %v835_v54  ;;  %v1367_v32 = vrot.slane %v956_v11, %v12678_v50  ;;  %v839_v54 = vld [vmem:[%s15557_s1 + $0x13] sm:$0x1] }
 0x832   :  { %1145 = vperm.xlu1 %11967, %v1027_v51   ;;  %v1067_v51 = vrot.slane %v866_v21, %v12678_v50  ;;  %v756_v21 = vsub.f32 %v696_v41, %v726_v2  ;;  %v1355_v15 = vrot.slane %v953_v17, %v12678_v50  ;;  %v958_v56 = vsub.f32 %v898_v63, %v928_v1  ;;  %v902_v63 = vld [vmem:[%s15558_s2 + $0x16] sm:$0x1] }
 0x833   :  { %1469 = vperm.xlu0 %11966, %v1351_v34   ;;  %v784_v34 = vadd.f32 1e-05, %v754_v9  ;;  %v925_v29 = vmul.f32 %v865_v35, %v13312_v59  ;;  %v1063_v16 = vrot.slane %v865_v35, %v12678_v50 }
 0x834   :  { %v12041_v0 = vpop.eup %12040  ;;  %v786_v59 = vadd.f32 1e-05, %v756_v21  ;;  %v1375_v30 = vrot.slane %v958_v56, %v12678_v50  ;;  %v15591_v56 = vld [vmem:[#allocation12_spill] sm:$0xff] }
 0x835   :  { %v12043_v5 = vpop.eup %12042  ;;  %12048 = vrsqrt.f32 %v784_v34 }
 0x836   :  { %1157 = vperm.xlu1 %11967, %v1039_v57   ;;  %v455_v52 = vpop.xlane.xlu0 %454  ;;  %v840_v57 = vld [vmem:[%s15557_s1 + $0x14] sm:$0x1]  ;;  %v867_v14 = vmul.f32 %v12043_v5, %v837_v46  ;;  %12050 = vrsqrt.f32 %v786_v59 }
 0x837   :  { %v627_v33 = vrot.slane %v455_v52, 4  ;;  %1177 = vperm.xlu0 %11966, %v1059_v36   ;;  %v15587_v36 = vld [vmem:[#allocation7_spill] sm:$0xff]  ;;  %v870_v42 = vmul.f32 %v12041_v0, %v840_v57  ;;  %v844_v57 = vld [vmem:[%s15557_s1 + $0x18] sm:$0x1] }
 0x838   :  { %v285_v55 = vrot.slane %v15587_v36, 4  ;;  %v927_v40 = vmul.f32 %v867_v14, %v13397_v3  ;;  %v15590_v3 = vld [vmem:[#allocation10_spill] sm:$0xff] }
 0x839   :  { %v628_v25 = vadd.f32 %v627_v33, %v455_v52  ;;  %v895_v52 = vld [vmem:[%s15558_s2 + $0xf] sm:$0x1]  ;;  %v15588_v33 = vld [vmem:[#allocation8_spill] sm:$0xff]  ;;  %v930_v19 = vmul.f32 %v870_v42, %v13400_v7  ;;  %v597_v2 = vrot.slane %v15590_v3, 4 }
 0x83a   :  { %1161 = vperm.xlu1 %11967, %v1043_v60   ;;  %v286_v47 = vadd.f32 %v285_v55, %v15587_v36  ;;  %v585_v18 = vrot.slane %v15588_v33, 4  ;;  %v13503_v60 = vmul.f32 0.03125, %v332_v6  ;;  %v955_v27 = vsub.f32 %v895_v52, %v925_v29 }
 0x83b   :  { %v629_v53 = vrot.slane %v628_v25, 2  ;;  %1477 = vperm.xlu0 %11966, %v1359_v49   ;;  %v960_v11 = vsub.f32 %v900_v48, %v930_v19  ;;  %v957_v17 = vsub.f32 %v897_v20, %v927_v40  ;;  %v598_v6 = vadd.f32 %v597_v2, %v15590_v3  ;;  %v152_v19 = vpop.xlane.xlu1 %151  ;;  %v848_v2 = vld [vmem:[%s15557_s1 + $0x1c] sm:$0x1] }
 0x83c   :  { %v287_v9 = vrot.slane %v286_v47, 2  ;;  %v586_v31 = vadd.f32 %v585_v18, %v15588_v33  ;;  %v1363_v7 = vrot.slane %v955_v27, %v12678_v50  ;;  %v309_v52 = vrot.slane %v15591_v56, 4 }
 0x83d   :  { %v630_v26 = vadd.f32 %v629_v53, %v628_v25  ;;  %v12045_v25 = vpop.eup %12044  ;;  %v297_v53 = vrot.slane %v15589_v13, 4  ;;  %v1383_v1 = vrot.slane %v960_v11, %v12678_v50  ;;  %v1371_v21 = vrot.slane %v957_v17, %v12678_v50 }
 0x83e   :  { %1461 = vperm.xlu1 %11967, %v1343_v37   ;;  %v728_v37 = vmul.f32 %v13503_v60, %v13503_v60  ;;  %v12047_v45 = vpop.eup %12046  ;;  %v872_v24 = vmul.f32 %v12045_v25, %v842_v10  ;;  %v288_v34 = vadd.f32 %v287_v9, %v286_v47  ;;  %v587_v41 = vrot.slane %v586_v31, 2 }
 0x83f   :  { %1185 = vperm.xlu0 %11966, %v1067_v51   ;;  %v631_v62 = vrot.slane %v630_v26, 1  ;;  %v1083_v51 = vrot.slane %v870_v42, %v12678_v50  ;;  %v298_v12 = vadd.f32 %v297_v53, %v15589_v13  ;;  %v869_v35 = vmul.f32 %v12047_v45, %v839_v54 }
 0x840   :  { %v932_v0 = vmul.f32 %v872_v24, %v13416_v58  ;;  %v289_v5 = vrot.slane %v288_v34, 1  ;;  %v588_v36 = vadd.f32 %v587_v41, %v586_v31  ;;  %v1091_v58 = vrot.slane %v872_v24, %v12678_v50 }
 0x841   :  { %v632_v22 = vadd.f32 %v631_v62, %v630_v26  ;;  %v299_v55 = vrot.slane %v298_v12, 2  ;;  %v1079_v33 = vrot.slane %v869_v35, %v12678_v50  ;;  %v599_v59 = vrot.slane %v598_v6, 2 }
 0x842   :  { %1173 = vperm.xlu1 %11967, %v1055_v43   ;;  %v1071_v43 = vrot.slane %v867_v14, %v12678_v50  ;;  %v12049_v62 = vpop.eup %12048  ;;  %v962_v29 = vsub.f32 %v902_v63, %v932_v0  ;;  %v290_v42 = vadd.f32 %v289_v5, %v288_v34  ;;  %v589_v46 = vrot.slane %v588_v36, 1 }
 0x843   :  { %1485 = vperm.xlu0 %11966, %v1367_v32   ;;  %v698_v49 = vmul.f32 0.03125, %v632_v22  ;;  %v899_v22 = vld [vmem:[%s15558_s2 + $0x13] sm:$0x1]  ;;  %v300_v47 = vadd.f32 %v299_v55, %v298_v12  ;;  %v310_v14 = vadd.f32 %v309_v52, %v15591_v56  ;;  %v609_v25 = vrot.slane %v13250_v4, 4  ;;  %v908_v56 = vld [vmem:[%s15558_s2 + $0x1c] sm:$0x1]  ;;  %v1138_v52 = vpop.permute.xlu0 %1137 }
 0x844   :  { %v13557_v48 = vmul.f32 0.03125, %v290_v42  ;;  %v590_v10 = vadd.f32 %v589_v46, %v588_v36  ;;  %v600_v31 = vadd.f32 %v599_v59, %v598_v6  ;;  %v321_v40 = vrot.slane %v152_v19, 4 }
 0x845   :  { %v758_v26 = vsub.f32 %v698_v49, %v728_v37  ;;  %v904_v49 = vld [vmem:[%s15558_s2 + $0x18] sm:$0x1]  ;;  %v301_v9 = vrot.slane %v300_v47, 1  ;;  %v311_v45 = vrot.slane %v310_v14, 2 }
 0x846   :  { %1473 = vperm.xlu1 %11967, %v1355_v15   ;;  %v929_v15 = vmul.f32 %v869_v35, %v13422_v28  ;;  %v12051_v28 = vpop.eup %12050  ;;  %v601_v20 = vrot.slane %v600_v31, 1  ;;  %v322_v3 = vadd.f32 %v321_v40, %v152_v19  ;;  %v15592_v35 = vld [vmem:[#allocation11_spill] sm:$0xff] }
 0x847   :  { %1193 = vperm.xlu0 %11966, %v1075_v39   ;;  %v788_v32 = vadd.f32 1e-05, %v758_v26  ;;  %v874_v39 = vmul.f32 %v12049_v62, %v844_v57  ;;  %v721_v26 = vmul.f32 %v13557_v48, %v13557_v48  ;;  %v302_v11 = vadd.f32 %v301_v9, %v300_v47 }
 0x848   :  { %v959_v18 = vsub.f32 %v899_v22, %v929_v15  ;;  %v312_v41 = vadd.f32 %v311_v45, %v310_v14  ;;  %v621_v62 = vrot.slane %v15592_v35, 4  ;;  %v323_v5 = vrot.slane %v322_v3, 2 }
 0x849   :  { %12052 = vrsqrt.f32 %v788_v32  ;;  %v934_v27 = vmul.f32 %v874_v39, %v13438_v8  ;;  %v1099_v13 = vrot.slane %v874_v39, %v12678_v50  ;;  %v13572_v17 = vmul.f32 0.03125, %v302_v11 }
 0x84a   :  { %1181 = vperm.xlu1 %11967, %v1063_v16   ;;  %v1391_v16 = vrot.slane %v962_v29, %v12678_v50  ;;  %v1379_v8 = vrot.slane %v959_v18, %v12678_v50  ;;  %v602_v32 = vadd.f32 %v601_v20, %v600_v31  ;;  %v313_v63 = vrot.slane %v312_v41, 1 }
 0x84b   :  { %1493 = vperm.xlu0 %11966, %v1375_v30   ;;  %v846_v30 = vld [vmem:[%s15557_s1 + $0x1a] sm:$0x1]  ;;  %v964_v53 = vsub.f32 %v904_v49, %v934_v27  ;;  %v622_v55 = vadd.f32 %v621_v62, %v15592_v35  ;;  %v723_v6 = vmul.f32 %v13572_v17, %v13572_v17  ;;  %v324_v39 = vadd.f32 %v323_v5, %v322_v3  ;;  %v12508_v3 = vld [vmem:[%s15556_s0 + $0x20] sm:$0xff] }
 0x84c   :  { %v876_v37 = vmul.f32 %v12051_v28, %v846_v30  ;;  %v314_v29 = vadd.f32 %v313_v63, %v312_v41  ;;  %v1142_v30 = vpop.permute.xlu0 %1141  ;;  %v12509_v63 = vld [vmem:[%s15556_s0 + $0x28] sm:$0xff] }
 0x84d   :  { %v1399_v24 = vrot.slane %v964_v53, %v12678_v50  ;;  %v623_v42 = vrot.slane %v622_v55, 2  ;;  %v325_v59 = vrot.slane %v324_v39, 1 }
 0x84e   :  { %1481 = vperm.xlu1 %11967, %v1363_v7   ;;  %v610_v7 = vadd.f32 %v609_v25, %v13250_v4  ;;  %v936_v54 = vmul.f32 %v876_v37, %v13469_v44  ;;  %v906_v4 = vld [vmem:[%s15558_s2 + $0x1a] sm:$0x1]  ;;  %v1107_v44 = vrot.slane %v876_v37, %v12678_v50  ;;  %v13585_v18 = vmul.f32 0.03125, %v314_v29 }
 0x84f   :  { %1201 = vperm.xlu0 %11966, %v1083_v51   ;;  %v691_v51 = vmul.f32 0.03125, %v590_v10  ;;  %v624_v14 = vadd.f32 %v623_v42, %v622_v55 }
 0x850   :  { %v611_v12 = vrot.slane %v610_v7, 2  ;;  %v725_v10 = vmul.f32 %v13585_v18, %v13585_v18 }
 0x851   :  { %v625_v31 = vrot.slane %v624_v14, 1 }
 0x852   :  { %1189 = vperm.xlu1 %11967, %v1071_v43   ;;  %v751_v43 = vsub.f32 %v691_v51, %v721_v26  ;;  %v612_v57 = vadd.f32 %v611_v12, %v610_v7 }
 0x853   :  { %1501 = vperm.xlu0 %11966, %v1383_v1   ;;  %v966_v1 = vsub.f32 %v906_v4, %v936_v54  ;;  %v626_v26 = vadd.f32 %v625_v31, %v624_v14  ;;  %v1244_v4 = vmul.f32 %v12508_v3, %v1138_v52 }
 0x854   :  { %v781_v36 = vadd.f32 1e-05, %v751_v43  ;;  %v613_v22 = vrot.slane %v612_v57, 1 }
 0x855   :  { %v1407_v15 = vrot.slane %v966_v1, %v12678_v50  ;;  %v697_v54 = vmul.f32 0.03125, %v626_v26  ;;  %v901_v1 = vld [vmem:[%s15558_s2 + $0x15] sm:$0x1] }
 0x856   :  { %1489 = vperm.xlu1 %11967, %v1371_v21   ;;  %v12053_v34 = vpop.eup %12052  ;;  %v693_v21 = vmul.f32 0.03125, %v602_v32  ;;  %12054 = vrsqrt.f32 %v781_v36  ;;  %v614_v28 = vadd.f32 %v613_v22, %v612_v57  ;;  %v1245_v57 = vmul.f32 %v12509_v63, %v1142_v30  ;;  %v903_v22 = vld [vmem:[%s15558_s2 + $0x17] sm:$0x1]  ;;  %v847_v30 = vld [vmem:[%s15557_s1 + $0x1b] sm:$0x1] }
 0x857   :  { %1209 = vperm.xlu0 %11966, %v1091_v58   ;;  %v878_v0 = vmul.f32 %v12053_v34, %v848_v2 }
 0x858   :  { %v753_v46 = vsub.f32 %v693_v21, %v723_v6  ;;  %v695_v9 = vmul.f32 0.03125, %v614_v28 }
 0x859   :  { %v938_v58 = vmul.f32 %v878_v0, %v13503_v60  ;;  %v1115_v47 = vrot.slane %v878_v0, %v12678_v50  ;;  %v15593_v60 = vld [vmem:[#allocation4_spill] sm:$0xff] }
 0x85a   :  { %1197 = vperm.xlu1 %11967, %v1079_v33   ;;  %v783_v49 = vadd.f32 1e-05, %v753_v46  ;;  %v755_v45 = vsub.f32 %v695_v9, %v725_v10  ;;  %v843_v0 = vld [vmem:[%s15557_s1 + $0x17] sm:$0x1] }
 0x85b   :  { %1509 = vperm.xlu0 %11966, %v1391_v16   ;;  %v968_v33 = vsub.f32 %v908_v56, %v938_v58  ;;  %v2518_v16 = vmul.f32 %v13257_v61, %v15593_v60 }
 0x85c   :  { %v785_v11 = vadd.f32 1e-05, %v755_v45  ;;  %v333_v45 = vrot.slane %v13259_v23, 4 }
 0x85d   :  { %v1415_v19 = vrot.slane %v968_v33, %v12678_v50  ;;  %v12510_v33 = vld [vmem:[%s15556_s0 + $0x38] sm:$0xff] }
 0x85e   :  { %1497 = vperm.xlu1 %11967, %v1379_v8   ;;  %v326_v8 = vadd.f32 %v325_v59, %v324_v39  ;;  %v845_v39 = vld [vmem:[%s15557_s1 + $0x19] sm:$0x1] }
 0x85f   :  { %1217 = vperm.xlu0 %11966, %v1099_v13   ;;  %v15594_v13 = vld [vmem:[#allocation5_spill] sm:$0xff] }
 0x860   :  { %v2615_v53 = vmul.f32 %v13276_v38, %v15594_v13  ;;  %v13597_v7 = vmul.f32 0.03125, %v326_v8 }
 0x862   :  { %v727_v20 = vmul.f32 %v13597_v7, %v13597_v7 }
 0x863   :  { %1517 = vperm.xlu0 %11966, %v1399_v24   ;;  %v12055_v51 = vpop.eup %12054  ;;  %v841_v24 = vld [vmem:[%s15557_s1 + $0x15] sm:$0x1] }
 0x864   :  { %v757_v34 = vsub.f32 %v697_v54, %v727_v20  ;;  %v871_v41 = vmul.f32 %v12055_v51, %v841_v24  ;;  %v907_v51 = vld [vmem:[%s15558_s2 + $0x1b] sm:$0x1]  ;;  %v334_v54 = vadd.f32 %v333_v45, %v13259_v23 }
 0x866   :  { %v787_v2 = vadd.f32 1e-05, %v757_v34  ;;  %v1087_v35 = vrot.slane %v871_v41, %v12678_v50  ;;  %v931_v62 = vmul.f32 %v871_v41, %v13557_v48  ;;  %v335_v41 = vrot.slane %v334_v54, 2 }
 0x867   :  { %1225 = vperm.xlu0 %11966, %v1107_v44  }
 0x868   :  { %v961_v5 = vsub.f32 %v901_v1, %v931_v62  ;;  %v12513_v1 = vld [vmem:[%s15556_s0 + $0x60] sm:$0xff] }
 0x86b   :  { %1525 = vperm.xlu0 %11966, %v1407_v15   ;;  %v1387_v15 = vrot.slane %v961_v5, %v12678_v50 }
 0x86f   :  { %v2526_v27 = vpop.permute.xlu1 %2525  ;;  %1233 = vperm.xlu0 %11966, %v1115_v47  }
 0x870   :  { %v13589_v25 = vadd.f32 %v2526_v27, %v2518_v16 }
 0x872   :  { %12056 = vtanh.f32 %v13589_v25 }
 0x873   :  { %1533 = vperm.xlu0 %11966, %v1415_v19   ;;  %12058 = vrsqrt.f32 %v783_v49  ;;  %v905_v49 = vld [vmem:[%s15558_s2 + $0x19] sm:$0x1] }
 0x875   :  { %v2623_v37 = vpop.permute.xlu0 %2622 }
 0x876   :  { %v13599_v40 = vadd.f32 %v2623_v37, %v2615_v53 }
 0x878   :  { %12060 = vtanh.f32 %v13599_v40 }
 0x879   :  { %12062 = vrsqrt.f32 %v785_v11 }
 0x87a   :  { %12064 = vrsqrt.f32 %v787_v2  ;;  %v336_v2 = vadd.f32 %v335_v41, %v334_v54  ;;  %v12520_v41 = vld [vmem:[%s15556_s0 + $0x90] sm:$0xff] }
 0x87f   :  { %v12057_v12 = vpop.eup %12056 }
 0x880   :  { %2531 = vrot.lane.b32.xlu1 %v12057_v12, %s12593_s23  ;;  %v12059_v32 = vpop.eup %12058  ;;  %v12512_v12 = vld [vmem:[%s15556_s0 + $0x58] sm:$0xff] }
 0x881   :  { %v873_v36 = vmul.f32 %v12059_v32, %v843_v0  ;;  %v337_v32 = vrot.slane %v336_v2, 1 }
 0x882   :  { %v1438_v43 = vpop.permute.xlu0 %1437 }
 0x883   :  { %v1544_v44 = vadd.f32 %v1438_v43, %v1244_v4  ;;  %v933_v58 = vmul.f32 %v873_v36, %v13572_v17  ;;  %v1095_v42 = vrot.slane %v873_v36, %v12678_v50  ;;  %v12514_v36 = vld [vmem:[%s15556_s0 + $0x30] sm:$0xff] }
 0x884   :  { %1205 = vperm.xlu1 %11967, %v1087_v35  }
 0x885   :  { %1590 = vst.msk [vmem:[#allocation2 + $0x20] sm:$0xff] %vm68_vm0, %v1544_v44  ;;  %v12061_v55 = vpop.eup %12060  ;;  %v963_v46 = vsub.f32 %v903_v22, %v933_v58 }
 0x886   :  { %v1442_v48 = vpop.permute.xlu0 %1441  ;;  %v12063_v29 = vpop.eup %12062 }
 0x887   :  { %v1545_v6 = vadd.f32 %v1442_v48, %v1245_v57  ;;  %v875_v47 = vmul.f32 %v12063_v29, %v845_v39  ;;  %v1395_v60 = vrot.slane %v963_v46, %v12678_v50  ;;  %v12065_v27 = vpop.eup %12064  ;;  %v338_v48 = vadd.f32 %v337_v32, %v336_v2  ;;  %v12521_v32 = vld [vmem:[%s15556_s0 + $0x78] sm:$0xff] }
 0x888   :  { %2628 = vrot.lane.b32.xlu1 %v12061_v55, %s12593_s23  ;;  %v877_v8 = vmul.f32 %v12065_v27, %v847_v30 }
 0x889   :  { %1591 = vst.msk [vmem:[#allocation2 + $0x28] sm:$0xff] %vm68_vm0, %v1545_v6  ;;  %v935_v16 = vmul.f32 %v875_v47, %v13585_v18  ;;  %v1103_v10 = vrot.slane %v875_v47, %v12678_v50  ;;  %v12511_v18 = vld [vmem:[%s15556_s0 + $0x40] sm:$0xff]  ;;  %v13676_v22 = vmul.f32 0.03125, %v338_v48 }
 0x88a   :  { %v1150_v21 = vpop.permute.xlu0 %1149  ;;  %v937_v37 = vmul.f32 %v877_v8, %v13597_v7  ;;  %v1111_v20 = vrot.slane %v877_v8, %v12678_v50 }
 0x88b   :  { %v1247_v28 = vmul.f32 %v12510_v33, %v1150_v21  ;;  %v965_v9 = vsub.f32 %v905_v49, %v935_v16 }
 0x88c   :  { %1505 = vperm.xlu1 %11967, %v1387_v15   ;;  %v1620_v56 = vld [vmem:[#allocation2 + $0x20] sm:$0xff]  ;;  %v967_v24 = vsub.f32 %v907_v51, %v937_v37 }
 0x88d   :  { %10921 = vmatprep.mubr.msk.f32.mxu0 %vm68_vm0, %v1620_v56  ;;  %v1403_v53 = vrot.slane %v965_v9, %v12678_v50  ;;  %v12515_v56 = vld [vmem:[%s15556_s0 + $0x48] sm:$0xff] }
 0x88e   :  { %v13634_v52 = vpop.permute.xlu0 %1445  ;;  %v1411_v7 = vrot.slane %v967_v24, %v12678_v50 }
 0x890   :  { %1213 = vperm.xlu1 %11967, %v1095_v42   ;;  %v1621_v17 = vld [vmem:[#allocation2 + $0x28] sm:$0xff] }
 0x891   :  { %10922 = vmatmul.mubr.msk.f32.gmra.mxu0 %vm68_vm0, %v1621_v17 }
 0x892   :  { %v1450_v59 = vpop.permute.xlu0 %1449 }
 0x893   :  { %v1547_v14 = vadd.f32 %v1450_v59, %v1247_v28  ;;  %v729_v59 = vmul.f32 %v13676_v22, %v13676_v22 }
 0x894   :  { %1513 = vperm.xlu1 %11967, %v1395_v60  }
 0x895   :  { %1593 = vst.msk [vmem:[#allocation2 + $0x38] sm:$0xff] %vm68_vm0, %v1547_v14  ;;  %v12517_v14 = vld [vmem:[%s15556_s0 + $0x50] sm:$0xff] }
 0x896   :  { %v1154_v19 = vpop.permute.xlu0 %1153 }
 0x897   :  { %v1248_v31 = vmul.f32 %v12511_v18, %v1154_v19 }
 0x898   :  { %1221 = vperm.xlu1 %11967, %v1103_v10  }
 0x89a   :  { %v1454_v13 = vpop.permute.xlu0 %1453 }
 0x89b   :  { %v1548_v26 = vadd.f32 %v1454_v13, %v1248_v31  ;;  %v12518_v13 = vld [vmem:[%s15556_s0 + $0x80] sm:$0xff] }
 0x89c   :  { %1521 = vperm.xlu1 %11967, %v1403_v53   ;;  %v1623_v18 = vld [vmem:[#allocation2 + $0x38] sm:$0xff] }
 0x89d   :  { %1594 = vst.msk [vmem:[#allocation2 + $0x40] sm:$0xff] %vm68_vm0, %v1548_v26 }
 0x89e   :  { %v1458_v11 = vpop.permute.xlu0 %1457 }
 0x8a0   :  { %1229 = vperm.xlu1 %11967, %v1111_v20  }
 0x8a2   :  { %v1166_v34 = vpop.permute.xlu0 %1165 }
 0x8a3   :  { %v1251_v3 = vmul.f32 %v12512_v12, %v1166_v34 }
 0x8a4   :  { %1529 = vperm.xlu1 %11967, %v1411_v7   ;;  %v1624_v31 = vld [vmem:[#allocation2 + $0x40] sm:$0xff] }
 0x8a6   :  { %v1466_v4 = vpop.permute.xlu0 %1465 }
 0x8a7   :  { %v1551_v43 = vadd.f32 %v1466_v4, %v1251_v3 }
 0x8a9   :  { %1597 = vst.msk [vmem:[#allocation2 + $0x58] sm:$0xff] %vm68_vm0, %v1551_v43 }
 0x8aa   :  { %v458_v35 = vpop.xlane.xlu1 %457  ;;  %v1170_v62 = vpop.permute.xlu0 %1169 }
 0x8ab   :  { %v633_v23 = vrot.slane %v458_v35, 4  ;;  %v1252_v0 = vmul.f32 %v12513_v1, %v1170_v62  ;;  %v849_v62 = vld [vmem:[%s15557_s1 + $0x1d] sm:$0x1] }
 0x8ad   :  { %v634_v44 = vadd.f32 %v633_v23, %v458_v35 }
 0x8ae   :  { %v1146_v63 = vpop.permute.xlu1 %1145  ;;  %v1470_v57 = vpop.permute.xlu0 %1469 }
 0x8af   :  { %v635_v5 = vrot.slane %v634_v44, 2  ;;  %v1246_v55 = vmul.f32 %v12514_v36, %v1146_v63  ;;  %v1552_v6 = vadd.f32 %v1470_v57, %v1252_v0  ;;  %v12522_v36 = vld [vmem:[%s15556_s0 + $0xa0] sm:$0xff] }
 0x8b0   :  { %v1627_v3 = vld [vmem:[#allocation2 + $0x58] sm:$0xff] }
 0x8b1   :  { %v636_v21 = vadd.f32 %v635_v5, %v634_v44  ;;  %v1546_v15 = vadd.f32 %v13634_v52, %v1246_v55  ;;  %1598 = vst.msk [vmem:[#allocation2 + $0x60] sm:$0xff] %vm68_vm0, %v1552_v6  ;;  %v12516_v52 = vld [vmem:[%s15556_s0 + $0x70] sm:$0xff]  ;;  %v909_v5 = vld [vmem:[%s15558_s2 + $0x1d] sm:$0x1] }
 0x8b2   :  { %v1158_v58 = vpop.permute.xlu1 %1157  ;;  %v1178_v29 = vpop.permute.xlu0 %1177 }
 0x8b3   :  { %v637_v39 = vrot.slane %v636_v21, 1  ;;  %1592 = vst.msk [vmem:[#allocation2 + $0x30] sm:$0xff] %vm68_vm0, %v1546_v15  ;;  %v1249_v42 = vmul.f32 %v12515_v56, %v1158_v58  ;;  %v1254_v17 = vmul.f32 %v12516_v52, %v1178_v29 }
 0x8b5   :  { %v638_v46 = vadd.f32 %v637_v39, %v636_v21  ;;  %v1549_v47 = vadd.f32 %v1458_v11, %v1249_v42  ;;  %v12519_v11 = vld [vmem:[%s15556_s0 + $0x68] sm:$0xff] }
 0x8b6   :  { %v1162_v33 = vpop.permute.xlu1 %1161  ;;  %v1478_v28 = vpop.permute.xlu0 %1477  ;;  %v12523_v42 = vld [vmem:[%s15556_s0 + $0x88] sm:$0xff] }
 0x8b7   :  { %v699_v60 = vmul.f32 0.03125, %v638_v46  ;;  %1595 = vst.msk [vmem:[#allocation2 + $0x48] sm:$0xff] %vm68_vm0, %v1549_v47  ;;  %v1554_v16 = vadd.f32 %v1478_v28, %v1254_v17  ;;  %v1250_v49 = vmul.f32 %v12517_v14, %v1162_v33  ;;  %v12524_v28 = vld [vmem:[%s15556_s0 + $0xb0] sm:$0xff]  ;;  %v12525_v14 = vld [vmem:[%s15556_s0 + $0x98] sm:$0xff] }
 0x8b8   :  { %v1628_v43 = vld [vmem:[#allocation2 + $0x60] sm:$0xff] }
 0x8b9   :  { %v759_v27 = vsub.f32 %v699_v60, %v729_v59  ;;  %1600 = vst.msk [vmem:[#allocation2 + $0x70] sm:$0xff] %vm68_vm0, %v1554_v16 }
 0x8ba   :  { %v1462_v30 = vpop.permute.xlu1 %1461  ;;  %v1186_v19 = vpop.permute.xlu0 %1185  ;;  %v1622_v10 = vld [vmem:[#allocation2 + $0x30] sm:$0xff] }
 0x8bb   :  { %v789_v9 = vadd.f32 1e-05, %v759_v27  ;;  %v1550_v8 = vadd.f32 %v1462_v30, %v1250_v49  ;;  %10924 = vmatprep.mubr.msk.f32.mxu0 %vm68_vm0, %v1622_v10  ;;  %v1256_v53 = vmul.f32 %v12518_v13, %v1186_v19 }
 0x8bc   :  { %10925 = vmatmul.mubr.msk.f32.gmra.mxu0 %vm68_vm0, %v1623_v18 }
 0x8bd   :  { %12066 = vrsqrt.f32 %v789_v9  ;;  %1596 = vst.msk [vmem:[#allocation2 + $0x50] sm:$0xff] %vm68_vm0, %v1550_v8  ;;  %10927 = vmatprep.mubr.msk.f32.mxu0 %vm68_vm0, %v1624_v31  ;;  %v12526_v8 = vld [vmem:[%s15556_s0 + $0xc0] sm:$0xff] }
 0x8be   :  { %v1174_v37 = vpop.permute.xlu1 %1173  ;;  %v1486_v45 = vpop.permute.xlu0 %1485  ;;  %v1625_v26 = vld [vmem:[#allocation2 + $0x48] sm:$0xff] }
 0x8bf   :  { %v1556_v51 = vadd.f32 %v1486_v45, %v1256_v53  ;;  %v1253_v20 = vmul.f32 %v12519_v11, %v1174_v37 }
 0x8c0   :  { %10928 = vmatmul.mubr.msk.f32.gmra.mxu0 %vm68_vm0, %v1625_v26  ;;  %v1630_v6 = vld [vmem:[#allocation2 + $0x70] sm:$0xff] }
 0x8c1   :  { %1602 = vst.msk [vmem:[#allocation2 + $0x80] sm:$0xff] %vm68_vm0, %v1556_v51  ;;  %v12527_v26 = vld [vmem:[%s15556_s0 + $0xd0] sm:$0xff] }
 0x8c2   :  { %v1474_v24 = vpop.permute.xlu1 %1473  ;;  %v1194_v54 = vpop.permute.xlu0 %1193 }
 0x8c3   :  { %v1553_v34 = vadd.f32 %v1474_v24, %v1253_v20  ;;  %v1258_v12 = vmul.f32 %v12520_v41, %v1194_v54 }
 0x8c4   :  { %v1626_v7 = vld [vmem:[#allocation2 + $0x50] sm:$0xff] }
 0x8c5   :  { %1599 = vst.msk [vmem:[#allocation2 + $0x68] sm:$0xff] %vm68_vm0, %v1553_v34  ;;  %10930 = vmatprep.mubr.msk.f32.mxu0 %vm68_vm0, %v1626_v7  ;;  %v12528_v34 = vld [vmem:[%s15556_s0 + $0xe0] sm:$0xff] }
 0x8c6   :  { %v1182_v4 = vpop.permute.xlu1 %1181  ;;  %10931 = vmatmul.mubr.msk.f32.gmra.mxu0 %vm68_vm0, %v1627_v3  ;;  %v1494_v2 = vpop.permute.xlu0 %1493 }
 0x8c7   :  { %v1558_v35 = vadd.f32 %v1494_v2, %v1258_v12  ;;  %10933 = vmatprep.mubr.msk.f32.mxu0 %vm68_vm0, %v1628_v43  ;;  %v1255_v23 = vmul.f32 %v12521_v32, %v1182_v4 }
 0x8c8   :  { %v1632_v60 = vld [vmem:[#allocation2 + $0x80] sm:$0xff] }
 0x8c9   :  { %1604 = vst.msk [vmem:[#allocation2 + $0x90] sm:$0xff] %vm68_vm0, %v1558_v35 }
 0x8ca   :  { %v12067_v44 = vpop.eup %12066  ;;  %v1482_v1 = vpop.permute.xlu1 %1481 }
 0x8cb   :  { %v1202_v0 = vpop.permute.xlu0 %1201  ;;  %v1555_v63 = vadd.f32 %v1482_v1, %v1255_v23  ;;  %v879_v57 = vmul.f32 %v12067_v44, %v849_v62  ;;  %v12529_v62 = vld [vmem:[%s15556_s0 + $0xa8] sm:$0xff] }
 0x8cc   :  { %v1629_v48 = vld [vmem:[#allocation2 + $0x68] sm:$0xff]  ;;  %v1260_v55 = vmul.f32 %v12522_v36, %v1202_v0 }
 0x8cd   :  { %1601 = vst.msk [vmem:[#allocation2 + $0x78] sm:$0xff] %vm68_vm0, %v1555_v63  ;;  %10934 = vmatmul.mubr.msk.f32.gmra.mxu0 %vm68_vm0, %v1629_v48  ;;  %v1119_v21 = vrot.slane %v879_v57, %v12678_v50  ;;  %v939_v15 = vmul.f32 %v879_v57, %v13676_v22  ;;  %v12531_v36 = vld [vmem:[%s15556_s0 + $0xc8] sm:$0xff] }
 0x8ce   :  { %v1190_v58 = vpop.permute.xlu1 %1189  ;;  %10936 = vmatprep.mubr.msk.f32.mxu0 %vm68_vm0, %v1630_v6 }
 0x8cf   :  { %v1502_v29 = vpop.permute.xlu0 %1501  ;;  %1237 = vperm.xlu1 %11967, %v1119_v21   ;;  %v969_v56 = vsub.f32 %v909_v5, %v939_v15  ;;  %v1257_v46 = vmul.f32 %v12523_v42, %v1190_v58 }
 0x8d0   :  { %v1560_v39 = vadd.f32 %v1502_v29, %v1260_v55  ;;  %v1634_v31 = vld [vmem:[#allocation2 + $0x90] sm:$0xff] }
 0x8d1   :  { %v1419_v47 = vrot.slane %v969_v56, %v12678_v50 }
 0x8d2   :  { %1606 = vst.msk [vmem:[#allocation2 + $0xa0] sm:$0xff] %vm68_vm0, %v1560_v39  ;;  %v1490_v52 = vpop.permute.xlu1 %1489  ;;  %v12532_v39 = vld [vmem:[%s15556_s0 + $0xd8] sm:$0xff] }
 0x8d3   :  { %v1210_v17 = vpop.permute.xlu0 %1209  ;;  %v1557_v33 = vadd.f32 %v1490_v52, %v1257_v46  ;;  %1537 = vperm.xlu1 %11967, %v1419_v47  }
 0x8d4   :  { %v1631_v22 = vld [vmem:[#allocation2 + $0x78] sm:$0xff]  ;;  %v1262_v59 = vmul.f32 %v12524_v28, %v1210_v17  ;;  %v12533_v28 = vld [vmem:[%s15556_s0 + $0xe8] sm:$0xff] }
 0x8d5   :  { %1603 = vst.msk [vmem:[#allocation2 + $0x88] sm:$0xff] %vm68_vm0, %v1557_v33  ;;  %10937 = vmatmul.mubr.msk.f32.gmra.mxu0 %vm68_vm0, %v1631_v22 }
 0x8d6   :  { %v1198_v16 = vpop.permute.xlu1 %1197  ;;  %10939 = vmatprep.mubr.msk.f32.mxu0 %vm68_vm0, %v1632_v60 }
 0x8d7   :  { %v1510_v27 = vpop.permute.xlu0 %1509  ;;  %v1259_v49 = vmul.f32 %v12525_v14, %v1198_v16 }
 0x8d8   :  { %v1562_v50 = vadd.f32 %v1510_v27, %v1262_v59 }
 0x8d9   :  { %v1636_v11 = vld [vmem:[#allocation2 + $0xa0] sm:$0xff] }
 0x8da   :  { %1608 = vst.msk [vmem:[#allocation2 + $0xb0] sm:$0xff] %vm68_vm0, %v1562_v50  ;;  %v1498_v30 = vpop.permute.xlu1 %1497  ;;  %v15595_v50 = vmov 0.0  }
 0x8db   :  { %v1218_v19 = vpop.permute.xlu0 %1217  ;;  %v1559_v10 = vadd.f32 %v1498_v30, %v1259_v49  ;;  %v13800_v49 = vld [vmem:[%s15559_s4 + $0x18] sm:$0xff]  ;;  %v13809_v30 = vld [vmem:[%s15559_s4 + $0x10] sm:$0xff] }
 0x8dc   :  { %v1633_v9 = vld [vmem:[#allocation2 + $0x88] sm:$0xff]  ;;  %v1264_v18 = vmul.f32 %v12526_v8, %v1218_v19  ;;  %v13832_v8 = vld [vmem:[%s15563_s6 + $0x18] sm:$0xff] }
 0x8dd   :  { %1605 = vst.msk [vmem:[#allocation2 + $0x98] sm:$0xff] %vm68_vm0, %v1559_v10  ;;  %10940 = vmatmul.mubr.msk.f32.gmra.mxu0 %vm68_vm0, %v1633_v9  ;;  %v13816_v19 = vld [vmem:[%s15559_s4 + $0x8] sm:$0xff]  ;;  %v13823_v10 = vld [vmem:[%s15559_s4] sm:$0xff] }
 0x8de   :  { %10942 = vmatprep.mubr.msk.f32.mxu0 %vm68_vm0, %v1634_v31  ;;  %v13846_v31 = vld [vmem:[%s15563_s6 + $0x10] sm:$0xff] }
 0x8df   :  { %v1518_v13 = vpop.permute.xlu0 %1517 }
 0x8e0   :  { %v1564_v53 = vadd.f32 %v1518_v13, %v1264_v18  ;;  %v13838_v18 = vld [vmem:[%s15562_s7 + $0x18] sm:$0xff]  ;;  %v13852_v13 = vld [vmem:[%s15562_s7 + $0x10] sm:$0xff] }
 0x8e1   :  { %v1638_v48 = vld [vmem:[#allocation2 + $0xb0] sm:$0xff] }
 0x8e2   :  { %1610 = vst.msk [vmem:[#allocation2 + $0xc0] sm:$0xff] %vm68_vm0, %v1564_v53  ;;  %v13860_v53 = vld [vmem:[%s15563_s6 + $0x8] sm:$0xff] }
 0x8e3   :  { %v1226_v37 = vpop.permute.xlu0 %1225 }
 0x8e4   :  { %v1635_v45 = vld [vmem:[#allocation2 + $0x98] sm:$0xff]  ;;  %v1266_v51 = vmul.f32 %v12527_v26, %v1226_v37  ;;  %v13866_v37 = vld [vmem:[%s15562_s7 + $0x8] sm:$0xff]  ;;  %v13882_v26 = vld [vmem:[%s15562_s7] sm:$0xff] }
 0x8e5   :  { %10943 = vmatmul.mubr.msk.f32.gmra.mxu0 %vm68_vm0, %v1635_v45  ;;  %v13875_v45 = vld [vmem:[%s15563_s6] sm:$0xff] }
 0x8e6   :  { %10945 = vmatprep.mubr.msk.f32.mxu0 %vm68_vm0, %v1636_v11 }
 0x8e7   :  { %v1526_v20 = vpop.permute.xlu0 %1525 }
 0x8e8   :  { %v1566_v24 = vadd.f32 %v1526_v20, %v1266_v51 }
 0x8e9   :  { %v1640_v58 = vld [vmem:[#allocation2 + $0xc0] sm:$0xff] }
 0x8ea   :  { %1612 = vst.msk [vmem:[#allocation2 + $0xd0] sm:$0xff] %vm68_vm0, %v1566_v24 }
 0x8eb   :  { %v1234_v54 = vpop.permute.xlu0 %1233 }
 0x8ec   :  { %v1268_v7 = vmul.f32 %v12528_v34, %v1234_v54 }
 0x8ef   :  { %v1534_v41 = vpop.permute.xlu0 %1533 }
 0x8f0   :  { %v1568_v12 = vadd.f32 %v1534_v41, %v1268_v7 }
 0x8f1   :  { %v1642_v52 = vld [vmem:[#allocation2 + $0xd0] sm:$0xff] }
 0x8f2   :  { %1614 = vst.msk [vmem:[#allocation2 + $0xe0] sm:$0xff] %vm68_vm0, %v1568_v12  ;;  %v2532_v3 = vpop.permute.xlu1 %2531 }
 0x8f3   :  { %v2534_v4 = vmul.f32 %v13257_v61, %v2532_v3  ;;  %v12530_v61 = vld [vmem:[%s15556_s0 + $0xb8] sm:$0xff] }
 0x8f5   :  { %2633 = vrot.lane.b32.xlu0 %v2534_v4, %s12594_s24 }
 0x8f9   :  { %v1644_v33 = vld [vmem:[#allocation2 + $0xe0] sm:$0xff] }
 0x8ff   :  { %v1206_v2 = vpop.permute.xlu1 %1205 }
 0x900   :  { %v1261_v32 = vmul.f32 %v12529_v62, %v1206_v2 }
 0x903   :  { %v2629_v43 = vpop.permute.xlu1 %2628 }
 0x904   :  { %v2631_v35 = vmul.f32 %v13276_v38, %v2629_v43 }
 0x906   :  { %2708 = vrot.lane.b32.xlu1 %v2631_v35, %s12594_s24 }
 0x907   :  { %v1506_v23 = vpop.permute.xlu1 %1505 }
 0x908   :  { %v1561_v44 = vadd.f32 %v1506_v23, %v1261_v32 }
 0x90a   :  { %1607 = vst.msk [vmem:[#allocation2 + $0xa8] sm:$0xff] %vm68_vm0, %v1561_v44 }
 0x90b   :  { %v1214_v1 = vpop.permute.xlu1 %1213 }
 0x90c   :  { %v1263_v0 = vmul.f32 %v12530_v61, %v1214_v1 }
 0x90f   :  { %v1514_v63 = vpop.permute.xlu1 %1513 }
 0x910   :  { %v1563_v57 = vadd.f32 %v1514_v63, %v1263_v0 }
 0x911   :  { %v1637_v38 = vld [vmem:[#allocation2 + $0xa8] sm:$0xff] }
 0x912   :  { %1609 = vst.msk [vmem:[#allocation2 + $0xb8] sm:$0xff] %vm68_vm0, %v1563_v57  ;;  %10946 = vmatmul.mubr.msk.f32.gmra.mxu0 %vm68_vm0, %v1637_v38 }
 0x913   :  { %10948 = vmatprep.mubr.msk.f32.mxu0 %vm68_vm0, %v1638_v48  ;;  %v1222_v5 = vpop.permute.xlu1 %1221 }
 0x914   :  { %v1265_v55 = vmul.f32 %v12531_v36, %v1222_v5 }
 0x917   :  { %v1522_v6 = vpop.permute.xlu1 %1521 }
 0x918   :  { %v1565_v21 = vadd.f32 %v1522_v6, %v1265_v55  ;;  %v13944_v6 = vld [vmem:[%s15561_s5] ss:$0 sm:$0xff] }
 0x919   :  { %v1639_v15 = vld [vmem:[#allocation2 + $0xb8] sm:$0xff] }
 0x91a   :  { %1611 = vst.msk [vmem:[#allocation2 + $0xc8] sm:$0xff] %vm68_vm0, %v1565_v21  ;;  %10949 = vmatmul.mubr.msk.f32.gmra.mxu0 %vm68_vm0, %v1639_v15  ;;  %v15596_v21 = vld [vmem:[#allocation6_spill] sm:$0xff] }
 0x91b   :  { %10951 = vmatprep.mubr.msk.f32.mxu0 %vm68_vm0, %v1640_v58  ;;  %v1230_v29 = vpop.permute.xlu1 %1229  ;;  %v1824_v15 = vadd.f32 %v13944_v6, %v15596_v21 }
 0x91c   :  { %v1267_v56 = vmul.f32 %v12532_v39, %v1230_v29 }
 0x91f   :  { %v1530_v42 = vpop.permute.xlu1 %1529 }
 0x920   :  { %v1567_v46 = vadd.f32 %v1530_v42, %v1267_v56 }
 0x921   :  { %v1641_v47 = vld [vmem:[#allocation2 + $0xc8] sm:$0xff] }
 0x922   :  { %1613 = vst.msk [vmem:[#allocation2 + $0xd8] sm:$0xff] %vm68_vm0, %v1567_v46  ;;  %10952 = vmatmul.mubr.msk.f32.gmra.mxu0 %vm68_vm0, %v1641_v47  ;;  %v13951_v47 = vld [vmem:[%s15564_s8] ss:$0 sm:$0xff] }
 0x923   :  { %10954 = vmatprep.mubr.msk.f32.mxu0 %vm68_vm0, %v1642_v52 }
 0x929   :  { %v1643_v17 = vld [vmem:[#allocation2 + $0xd8] sm:$0xff] }
 0x92a   :  { %10955 = vmatmul.mubr.msk.f32.gmra.mxu0 %vm68_vm0, %v1643_v17 }
 0x92b   :  { %10957 = vmatprep.mubr.msk.f32.mxu0 %vm68_vm0, %v1644_v33 }
 0x94a   :  { %v1238_v22 = vpop.permute.xlu1 %1237 }
 0x94b   :  { %v1269_v59 = vmul.f32 %v12533_v28, %v1238_v22 }
 0x94e   :  { %v1538_v60 = vpop.permute.xlu1 %1537 }
 0x94f   :  { %v1569_v16 = vadd.f32 %v1538_v60, %v1269_v59 }
 0x951   :  { %1615 = vst.msk [vmem:[#allocation2 + $0xe8] sm:$0xff] %vm68_vm0, %v1569_v16  ;;  %v13889_v51 = vpop.f32.mrf.mxu0 }
 0x953   :  { %v13891_v11 = vpop.f32.mrf.mxu0 }
 0x958   :  { %v1645_v27 = vld [vmem:[#allocation2 + $0xe8] sm:$0xff] }
 0x959   :  { %10958 = vmatmul.mubr.msk.f32.gmra.mxu0 %vm68_vm0, %v1645_v27 }
 0x95a   :  { %11045 = vmatprep.mubr.msk.f32.mxu0 %vm12592_vm1, %v15595_v50 }
 0x967   :  { %v2634_v14 = vpop.permute.xlu0 %2633 }
 0x968   :  { %11046 = vmatmul.mubr.msk.f32.vlgmr.msra.gmra.mxu0 %vm1988_vm2, %v2634_v14 }
 0x969   :  { %11060 = vmatpush3.msra.mxu0 %v13800_v49  ;;  %11067 = vmatprep.mubr.msk.f32.mxu0 %vm12592_vm1, %v15595_v50 }
 0x96a   :  { %11061 = vmatprep.subr.mxu0 %v15595_v50 }
 0x96b   :  { %11062 = vmatpush3.msra.mxu0 %v13809_v30 }
 0x96c   :  { %11063 = vmatprep.subr.mxu0 %v15595_v50 }
 0x96d   :  { %11064 = vmatpush3.msra.mxu0 %v13816_v19 }
 0x96e   :  { %11065 = vmatprep.subr.mxu0 %v15595_v50 }
 0x96f   :  { %11066 = vmatpush3.msra.mxu0 %v13823_v10 }
 0x970   :  { %11081 = vmatprep.subr.mxu0 %v15595_v50 }
 0x978   :  { %v2709_v9 = vpop.permute.xlu1 %2708 }
 0x979   :  { %11057 = vmatmul.mubr.msk.f32.vlgmr.msra.gmra.mxu1 %vm1988_vm2, %v2709_v9  ;;  %11068 = vmatmul.mubr.msk.f32.vlgmr.msra.gmra.mxu0 %vm1988_vm2, %v2709_v9 }
 0x97a   :  { %11082 = vmatpush3.msra.mxu0 %v13832_v8  ;;  %11071 = vmatpush3.msra.mxu1 %v13838_v18 }
 0x97b   :  { %11083 = vmatprep.subr.mxu0 %v15595_v50  ;;  %11072 = vmatprep.subr.mxu1 %v15595_v50 }
 0x97c   :  { %11084 = vmatpush3.msra.mxu0 %v13846_v31  ;;  %11073 = vmatpush3.msra.mxu1 %v13852_v13  ;;  %v13893_v20 = vpop.f32.mrf.mxu0 }
 0x97d   :  { %11085 = vmatprep.subr.mxu0 %v15595_v50  ;;  %11074 = vmatprep.subr.mxu1 %v15595_v50 }
 0x97e   :  { %11086 = vmatpush3.msra.mxu0 %v13860_v53  ;;  %11075 = vmatpush3.msra.mxu1 %v13866_v37  ;;  %v13895_v24 = vpop.f32.mrf.mxu0 }
 0x97f   :  { %11087 = vmatprep.subr.mxu0 %v15595_v50  ;;  %11089 = vmatprep.mubr.msk.f32.mxu0 %vm12592_vm1, %v15595_v50 }
 0x980   :  { %11088 = vmatpush3.msra.mxu0 %v13875_v45  ;;  %11076 = vmatprep.subr.mxu1 %v15595_v50  ;;  %v13897_v54 = vpop.f32.mrf.mxu0 }
 0x981   :  { %11077 = vmatpush3.msra.mxu1 %v13882_v26  ;;  %11078 = vmatprep.mubr.msk.f32.mxu1 %vm12592_vm1, %v15595_v50 }
 0x982   :  { %11092 = vmatprep.subr.mxu1 %v15595_v50  ;;  %11103 = vmatprep.subr.mxu0 %v15595_v50  ;;  %v13899_v34 = vpop.f32.mrf.mxu0 }
 0x986   :  { %v13901_v7 = vpop.f32.mrf.mxu0 }
 0x988   :  { %v13903_v41 = vpop.f32.mrf.mxu0 }
 0x98d   :  { %v13905_v12 = vpop.f32.mrf.mxu0 }
 0x98f   :  { %v13907_v3 = vpop.f32.mrf.mxu0 }
 0x995   :  { %v13909_v4 = vpop.f32.mrf.mxu0 }
 0x997   :  { %v13911_v2 = vpop.f32.mrf.mxu0 }
 0x99d   :  { %v13913_v43 = vpop.f32.mrf.mxu0 }
 0x99f   :  { %v13915_v35 = vpop.f32.mrf.mxu0 }
 0x9a5   :  { %v13917_v62 = vpop.f32.mrf.mxu0 }
 0x9a7   :  { %v13919_v32 = vpop.f32.mrf.mxu0 }
 0x9d2   :  { %v13921_v23 = vpop.f32.mrf.mxu0 }
 0x9d4   :  { %v13923_v44 = vpop.f32.mrf.mxu0 }
 0x9da   :  { %v13925_v1 = vpop.f32.mrf.mxu0 }
 0x9dc   :  { %v13927_v61 = vpop.f32.mrf.mxu0 }
 0x9e2   :  { %v13929_v0 = vpop.f32.mrf.mxu0 }
 0x9e4   :  { %v13931_v63 = vpop.f32.mrf.mxu0 }
 0x9ea   :  { %v13933_v57 = vpop.f32.mrf.mxu0 }
 0x9ec   :  { %v13935_v38 = vpop.f32.mrf.mxu0 }
 0xa19   :  { %v13937_v48 = vpop.f32.mrf.mxu0 }
 0xa1b   :  { %v13939_v5 = vpop.f32.mrf.mxu0 }
 0xa28   :  { %v2703_v36 = vpop.f32.mrf.mxu0 }
 0xa2a   :  { %v11047_v55 = vpop.f32.mrf.mxu0 }
 0xa39   :  { %v2778_v58 = vpop.f32.mrf.mxu1  ;;  %v2875_v29 = vpop.f32.mrf.mxu0 }
 0xa3a   :  { %v2779_v39 = vadd.f32 %v2778_v58, %v2703_v36  ;;  %v2879_v56 = vadd.f32 %v2875_v29, %v1824_v15 }
 0xa3b   :  { %v11058_v42 = vpop.f32.mrf.mxu1  ;;  %v11069_v46 = vpop.f32.mrf.mxu0 }
 0xa3c   :  { %v2782_v52 = vadd.f32 %v13951_v47, %v2779_v39  ;;  %12068 = vtanh.f32 %v2879_v56  ;;  %v10288_v22 = vmul.f32 -1.442695, %v2879_v56 }
 0xa3e   :  { %12070 = vtanh.f32 %v2782_v52  ;;  %v10286_v28 = vmul.f32 -1.442695, %v2782_v52 }
 0xa3f   :  { %12072 = vpow2.f32 %v10288_v22 }
 0xa40   :  { %12074 = vpow2.f32 %v10286_v28 }
 0xa49   :  { %v12069_v17 = vpop.eup %12068 }
 0xa4a   :  { %2889 = vrot.lane.b32.xlu1 %v12069_v17, %s12593_s23 }
 0xa4b   :  { %v12071_v33 = vpop.eup %12070 }
 0xa4c   :  { %2792 = vrot.lane.b32.xlu0 %v12071_v33, %s12593_s23  ;;  %v12073_v59 = vpop.eup %12072 }
 0xa4d   :  { %v12075_v60 = vpop.eup %12074  ;;  %v2883_v16 = vadd.f32 1.0, %v12073_v59 }
 0xa4e   :  { %v2786_v27 = vadd.f32 1.0, %v12075_v60 }
 0xa4f   :  { %12076 = vrcp.f32 %v2883_v16 }
 0xa50   :  { %12078 = vrcp.f32 %v2786_v27 }
 0xa5c   :  { %v12077_v14 = vpop.eup %12076 }
 0xa5d   :  { %v12079_v55 = vpop.eup %12078  ;;  %v2887_v58 = vmul.f32 %v12077_v14, %v13599_v40 }
 0xa5e   :  { %v2790_v56 = vmul.f32 %v12079_v55, %v13589_v25 }
 0xabc   :  { %v2890_v9 = vpop.permute.xlu1 %2889 }
 0xabd   :  { %v2892_v36 = vmul.f32 %v12077_v14, %v2890_v9 }
 0xabe   :  { %v2793_v21 = vpop.permute.xlu0 %2792 }
 0xabf   :  { %v2795_v15 = vmul.f32 %v12079_v55, %v2793_v21  ;;  %2894 = vrot.lane.b32.xlu1 %v2892_v36, %s12594_s24 }
 0xac1   :  { %2797 = vrot.lane.b32.xlu0 %v2795_v15, %s12594_s24 }
 0xb31   :  { %v2895_v29 = vpop.permute.xlu1 %2894 }
 0xb32   :  { %v13959_v39 = vadd.f32 %v2895_v29, %v2887_v58 }
 0xb33   :  { %v2798_v42 = vpop.permute.xlu0 %2797 }
 0xb34   :  { %12080 = vtanh.f32 %v13959_v39  ;;  %v13963_v46 = vadd.f32 %v2798_v42, %v2790_v56 }
 0xb36   :  { %12082 = vtanh.f32 %v13963_v46 }
 0xb41   :  { %v12081_v52 = vpop.eup %12080 }
 0xb42   :  { %2900 = vrot.lane.b32.xlu1 %v12081_v52, %s12593_s23 }
 0xb43   :  { %v12083_v17 = vpop.eup %12082 }
 0xb44   :  { %2803 = vrot.lane.b32.xlu0 %v12083_v17, %s12593_s23 }
 0xbb4   :  { %v2901_v33 = vpop.permute.xlu1 %2900 }
 0xbb5   :  { %v2903_v40 = vmul.f32 %v12077_v14, %v2901_v33 }
 0xbb6   :  { %v2804_v22 = vpop.permute.xlu0 %2803 }
 0xbb7   :  { %v2806_v28 = vmul.f32 %v12079_v55, %v2804_v22  ;;  %2980 = vrot.lane.b32.xlu1 %v2903_v40, %s12594_s24  ;;  %v1829_v55 = vadd.f32 %v13944_v6, %v13891_v11 }
 0xbb9   :  { %2905 = vrot.lane.b32.xlu0 %v2806_v28, %s12594_s24 }
 0xc29   :  { %v2981_v25 = vpop.permute.xlu1 %2980 }
 0xc2a   :  { %11090 = vmatmul.mubr.msk.f32.vlgmr.msra.gmra.mxu0 %vm1988_vm2, %v2981_v25 }
 0xc2b   :  { %v2906_v59 = vpop.permute.xlu0 %2905  ;;  %11104 = vmatpush3.msra.mxu0 %v13838_v18  ;;  %11111 = vmatprep.mubr.msk.f32.mxu0 %vm12592_vm1, %v15595_v50 }
 0xc2c   :  { %11079 = vmatmul.mubr.msk.f32.vlgmr.msra.gmra.mxu1 %vm1988_vm2, %v2906_v59  ;;  %11105 = vmatprep.subr.mxu0 %v15595_v50 }
 0xc2d   :  { %11093 = vmatpush3.msra.mxu1 %v13800_v49  ;;  %11100 = vmatprep.mubr.msk.f32.mxu1 %vm12592_vm1, %v15595_v50 }
 0xc2e   :  { %11094 = vmatprep.subr.mxu1 %v15595_v50  ;;  %11106 = vmatpush3.msra.mxu0 %v13852_v13 }
 0xc2f   :  { %11095 = vmatpush3.msra.mxu1 %v13809_v30  ;;  %11107 = vmatprep.subr.mxu0 %v15595_v50 }
 0xc30   :  { %11096 = vmatprep.subr.mxu1 %v15595_v50  ;;  %11108 = vmatpush3.msra.mxu0 %v13866_v37 }
 0xc31   :  { %11097 = vmatpush3.msra.mxu1 %v13816_v19  ;;  %11109 = vmatprep.subr.mxu0 %v15595_v50 }
 0xc32   :  { %11098 = vmatprep.subr.mxu1 %v15595_v50  ;;  %11110 = vmatpush3.msra.mxu0 %v13882_v26 }
 0xc33   :  { %11099 = vmatpush3.msra.mxu1 %v13823_v10  ;;  %11125 = vmatprep.subr.mxu0 %v15595_v50 }
 0xc34   :  { %11101 = vmatmul.mubr.msk.f32.vlgmr.msra.gmra.mxu1 %vm1988_vm2, %v2981_v25  ;;  %11114 = vmatprep.subr.mxu1 %v15595_v50 }
 0xc35   :  { %11115 = vmatpush3.msra.mxu1 %v13832_v8  ;;  %11122 = vmatprep.mubr.msk.f32.mxu1 %vm12592_vm1, %v15595_v50 }
 0xc36   :  { %11116 = vmatprep.subr.mxu1 %v15595_v50 }
 0xc37   :  { %11117 = vmatpush3.msra.mxu1 %v13846_v31 }
 0xc38   :  { %11118 = vmatprep.subr.mxu1 %v15595_v50 }
 0xc39   :  { %11119 = vmatpush3.msra.mxu1 %v13860_v53 }
 0xc3a   :  { %11120 = vmatprep.subr.mxu1 %v15595_v50 }
 0xc3b   :  { %11121 = vmatpush3.msra.mxu1 %v13875_v45 }
 0xc3c   :  { %11136 = vmatprep.subr.mxu1 %v15595_v50 }
 0xcea   :  { %v3050_v60 = vpop.f32.mrf.mxu0 }
 0xcec   :  { %v2975_v16 = vpop.f32.mrf.mxu1  ;;  %v11091_v27 = vpop.f32.mrf.mxu0 }
 0xced   :  { %v3051_v14 = vadd.f32 %v3050_v60, %v2975_v16 }
 0xcee   :  { %v11080_v9 = vpop.f32.mrf.mxu1 }
 0xcef   :  { %v3054_v36 = vadd.f32 %v13951_v47, %v3051_v14 }
 0xcf1   :  { %12084 = vtanh.f32 %v3054_v36  ;;  %v10291_v42 = vmul.f32 -1.442695, %v3054_v36 }
 0xcf4   :  { %v3147_v21 = vpop.f32.mrf.mxu1 }
 0xcf5   :  { %v3151_v15 = vadd.f32 %v3147_v21, %v1829_v55 }
 0xcf6   :  { %v11102_v58 = vpop.f32.mrf.mxu1 }
 0xcf7   :  { %12086 = vtanh.f32 %v3151_v15  ;;  %v10293_v52 = vmul.f32 -1.442695, %v3151_v15 }
 0xcf8   :  { %12088 = vpow2.f32 %v10291_v42 }
 0xcf9   :  { %12090 = vpow2.f32 %v10293_v52 }
 0xcfe   :  { %v12085_v29 = vpop.eup %12084 }
 0xcff   :  { %3064 = vrot.lane.b32.xlu0 %v12085_v29, %s12593_s23 }
 0xd04   :  { %v12087_v56 = vpop.eup %12086 }
 0xd05   :  { %3161 = vrot.lane.b32.xlu1 %v12087_v56, %s12593_s23  ;;  %v12089_v17 = vpop.eup %12088 }
 0xd06   :  { %v3058_v33 = vadd.f32 1.0, %v12089_v17  ;;  %v12091_v40 = vpop.eup %12090 }
 0xd07   :  { %v3155_v22 = vadd.f32 1.0, %v12091_v40 }
 0xd08   :  { %12092 = vrcp.f32 %v3058_v33 }
 0xd09   :  { %12094 = vrcp.f32 %v3155_v22  ;;  %v1834_v22 = vadd.f32 %v13944_v6, %v13889_v51 }
 0xd15   :  { %v12093_v11 = vpop.eup %12092 }
 0xd16   :  { %v12095_v59 = vpop.eup %12094  ;;  %v3062_v27 = vmul.f32 %v12093_v11, %v13963_v46 }
 0xd17   :  { %v3159_v36 = vmul.f32 %v12095_v59, %v13959_v39 }
 0xd71   :  { %v3065_v28 = vpop.permute.xlu0 %3064 }
 0xd72   :  { %v3067_v25 = vmul.f32 %v12093_v11, %v3065_v28 }
 0xd74   :  { %3069 = vrot.lane.b32.xlu0 %v3067_v25, %s12594_s24 }
 0xd77   :  { %v3162_v60 = vpop.permute.xlu1 %3161 }
 0xd78   :  { %v3164_v16 = vmul.f32 %v12095_v59, %v3162_v60 }
 0xd7a   :  { %3166 = vrot.lane.b32.xlu1 %v3164_v16, %s12594_s24 }
 0xde6   :  { %v3070_v14 = vpop.permute.xlu0 %3069 }
 0xde7   :  { %v14011_v9 = vadd.f32 %v3070_v14, %v3062_v27 }
 0xde9   :  { %12096 = vtanh.f32 %v14011_v9 }
 0xdec   :  { %v3167_v55 = vpop.permute.xlu1 %3166 }
 0xded   :  { %v14015_v21 = vadd.f32 %v3167_v55, %v3159_v36 }
 0xdef   :  { %12098 = vtanh.f32 %v14015_v21 }
 0xdf6   :  { %v12097_v15 = vpop.eup %12096 }
 0xdf7   :  { %3075 = vrot.lane.b32.xlu0 %v12097_v15, %s12593_s23 }
 0xdfc   :  { %v12099_v58 = vpop.eup %12098 }
 0xdfd   :  { %3172 = vrot.lane.b32.xlu1 %v12099_v58, %s12593_s23 }
 0xe69   :  { %v3076_v29 = vpop.permute.xlu0 %3075 }
 0xe6a   :  { %v3078_v46 = vmul.f32 %v12093_v11, %v3076_v29 }
 0xe6c   :  { %3177 = vrot.lane.b32.xlu0 %v3078_v46, %s12594_s24 }
 0xe6f   :  { %v3173_v56 = vpop.permute.xlu1 %3172 }
 0xe70   :  { %v3175_v42 = vmul.f32 %v12095_v59, %v3173_v56 }
 0xe72   :  { %3252 = vrot.lane.b32.xlu1 %v3175_v42, %s12594_s24 }
 0xede   :  { %v3178_v39 = vpop.permute.xlu0 %3177 }
 0xedf   :  { %11112 = vmatmul.mubr.msk.f32.vlgmr.msra.gmra.mxu0 %vm1988_vm2, %v3178_v39 }
 0xee0   :  { %11126 = vmatpush3.msra.mxu0 %v13800_v49  ;;  %11133 = vmatprep.mubr.msk.f32.mxu0 %vm12592_vm1, %v15595_v50 }
 0xee1   :  { %11127 = vmatprep.subr.mxu0 %v15595_v50 }
 0xee2   :  { %11128 = vmatpush3.msra.mxu0 %v13809_v30 }
 0xee3   :  { %11129 = vmatprep.subr.mxu0 %v15595_v50 }
 0xee4   :  { %11130 = vmatpush3.msra.mxu0 %v13816_v19  ;;  %v3253_v52 = vpop.permute.xlu1 %3252 }
 0xee5   :  { %11123 = vmatmul.mubr.msk.f32.vlgmr.msra.gmra.mxu1 %vm1988_vm2, %v3253_v52  ;;  %11131 = vmatprep.subr.mxu0 %v15595_v50 }
 0xee6   :  { %11132 = vmatpush3.msra.mxu0 %v13823_v10  ;;  %11137 = vmatpush3.msra.mxu1 %v13838_v18 }
 0xee7   :  { %11134 = vmatmul.mubr.msk.f32.vlgmr.msra.gmra.mxu0 %vm1988_vm2, %v3253_v52  ;;  %11147 = vmatprep.subr.mxu0 %v15595_v50 }
 0xee8   :  { %11138 = vmatprep.subr.mxu1 %v15595_v50  ;;  %11148 = vmatpush3.msra.mxu0 %v13832_v8 }
 0xee9   :  { %11139 = vmatpush3.msra.mxu1 %v13852_v13  ;;  %11149 = vmatprep.subr.mxu0 %v15595_v50 }
 0xeea   :  { %11140 = vmatprep.subr.mxu1 %v15595_v50  ;;  %11150 = vmatpush3.msra.mxu0 %v13846_v31 }
 0xeeb   :  { %11141 = vmatpush3.msra.mxu1 %v13866_v37  ;;  %11151 = vmatprep.subr.mxu0 %v15595_v50 }
 0xeec   :  { %11142 = vmatprep.subr.mxu1 %v15595_v50  ;;  %11152 = vmatpush3.msra.mxu0 %v13860_v53 }
 0xeed   :  { %11143 = vmatpush3.msra.mxu1 %v13882_v26  ;;  %11153 = vmatprep.subr.mxu0 %v15595_v50 }
 0xeee   :  { %11154 = vmatpush3.msra.mxu0 %v13875_v45  ;;  %11155 = vmatprep.mubr.msk.f32.mxu0 %vm12592_vm1, %v15595_v50 }
 0xeef   :  { %11144 = vmatprep.mubr.msk.f32.mxu1 %vm12592_vm1, %v15595_v50  ;;  %11158 = vmatprep.subr.mxu1 %v15595_v50 }
 0xef0   :  { %11169 = vmatprep.subr.mxu0 %v15595_v50 }
 0xf9f   :  { %v3247_v17 = vpop.f32.mrf.mxu0 }
 0xfa1   :  { %v11113_v33 = vpop.f32.mrf.mxu0 }
 0xfa5   :  { %v3322_v40 = vpop.f32.mrf.mxu1 }
 0xfa6   :  { %v3323_v11 = vadd.f32 %v3322_v40, %v3247_v17 }
 0xfa7   :  { %v11124_v28 = vpop.f32.mrf.mxu1  ;;  %v3419_v25 = vpop.f32.mrf.mxu0 }
 0xfa8   :  { %v3326_v59 = vadd.f32 %v13951_v47, %v3323_v11  ;;  %v3423_v60 = vadd.f32 %v3419_v25, %v1834_v22 }
 0xfa9   :  { %v11135_v16 = vpop.f32.mrf.mxu0 }
 0xfaa   :  { %12100 = vtanh.f32 %v3326_v59  ;;  %v10296_v36 = vmul.f32 -1.442695, %v3326_v59  ;;  %v10298_v55 = vmul.f32 -1.442695, %v3423_v60 }
 0xfab   :  { %12102 = vtanh.f32 %v3423_v60 }
 0xfac   :  { %12104 = vpow2.f32 %v10296_v36 }
 0xfad   :  { %12106 = vpow2.f32 %v10298_v55 }
 0xfb7   :  { %v12101_v27 = vpop.eup %12100 }
 0xfb8   :  { %v12103_v14 = vpop.eup %12102  ;;  %3336 = vrot.lane.b32.xlu0 %v12101_v27, %s12593_s23 }
 0xfb9   :  { %3433 = vrot.lane.b32.xlu1 %v12103_v14, %s12593_s23  ;;  %v12105_v51 = vpop.eup %12104 }
 0xfba   :  { %v12107_v15 = vpop.eup %12106  ;;  %v3330_v58 = vadd.f32 1.0, %v12105_v51 }
 0xfbb   :  { %v3427_v29 = vadd.f32 1.0, %v12107_v15 }
 0xfbc   :  { %12108 = vrcp.f32 %v3330_v58 }
 0xfbd   :  { %12110 = vrcp.f32 %v3427_v29 }
 0xfc9   :  { %v12109_v46 = vpop.eup %12108 }
 0xfca   :  { %v12111_v42 = vpop.eup %12110  ;;  %v3334_v33 = vmul.f32 %v12109_v46, %v14011_v9 }
 0xfcb   :  { %v3431_v40 = vmul.f32 %v12111_v42, %v14015_v21 }
0x102a   :  { %v3337_v56 = vpop.permute.xlu0 %3336 }
0x102b   :  { %v3434_v39 = vpop.permute.xlu1 %3433  ;;  %v3339_v52 = vmul.f32 %v12109_v46, %v3337_v56  ;;  %v1839_v56 = vadd.f32 %v13944_v6, %v13895_v24 }
0x102c   :  { %v3436_v17 = vmul.f32 %v12111_v42, %v3434_v39 }
0x102d   :  { %3341 = vrot.lane.b32.xlu0 %v3339_v52, %s12594_s24 }
0x102e   :  { %3438 = vrot.lane.b32.xlu1 %v3436_v17, %s12594_s24 }
0x109f   :  { %v3342_v22 = vpop.permute.xlu0 %3341 }
0x10a0   :  { %v3439_v11 = vpop.permute.xlu1 %3438  ;;  %v14064_v28 = vadd.f32 %v3342_v22, %v3334_v33 }
0x10a1   :  { %v14066_v25 = vadd.f32 %v3439_v11, %v3431_v40 }
0x10a2   :  { %12112 = vtanh.f32 %v14064_v28 }
0x10a3   :  { %12114 = vtanh.f32 %v14066_v25 }
0x10af   :  { %v12113_v59 = vpop.eup %12112 }
0x10b0   :  { %v12115_v60 = vpop.eup %12114  ;;  %3347 = vrot.lane.b32.xlu0 %v12113_v59, %s12593_s23 }
0x10b1   :  { %3444 = vrot.lane.b32.xlu1 %v12115_v60, %s12593_s23 }
0x1122   :  { %v3348_v16 = vpop.permute.xlu0 %3347 }
0x1123   :  { %v3445_v9 = vpop.permute.xlu1 %3444  ;;  %v3350_v27 = vmul.f32 %v12109_v46, %v3348_v16 }
0x1124   :  { %v3447_v21 = vmul.f32 %v12111_v42, %v3445_v9 }
0x1125   :  { %3449 = vrot.lane.b32.xlu0 %v3350_v27, %s12594_s24 }
0x1126   :  { %3524 = vrot.lane.b32.xlu1 %v3447_v21, %s12594_s24 }
0x1197   :  { %v3450_v14 = vpop.permute.xlu0 %3449 }
0x1198   :  { %v3525_v36 = vpop.permute.xlu1 %3524  ;;  %11145 = vmatmul.mubr.msk.f32.vlgmr.msra.gmra.mxu1 %vm1988_vm2, %v3450_v14 }
0x1199   :  { %11156 = vmatmul.mubr.msk.f32.vlgmr.msra.gmra.mxu0 %vm1988_vm2, %v3525_v36  ;;  %11159 = vmatpush3.msra.mxu1 %v13800_v49 }
0x119a   :  { %11160 = vmatprep.subr.mxu1 %v15595_v50  ;;  %11166 = vmatprep.mubr.msk.f32.mxu1 %vm12592_vm1, %v15595_v50 }
0x119b   :  { %11161 = vmatpush3.msra.mxu1 %v13809_v30  ;;  %11170 = vmatpush3.msra.mxu0 %v13838_v18 }
0x119c   :  { %11162 = vmatprep.subr.mxu1 %v15595_v50  ;;  %11171 = vmatprep.subr.mxu0 %v15595_v50 }
0x119d   :  { %11163 = vmatpush3.msra.mxu1 %v13816_v19  ;;  %11172 = vmatpush3.msra.mxu0 %v13852_v13 }
0x119e   :  { %11164 = vmatprep.subr.mxu1 %v15595_v50  ;;  %11173 = vmatprep.subr.mxu0 %v15595_v50 }
0x119f   :  { %11165 = vmatpush3.msra.mxu1 %v13823_v10  ;;  %11174 = vmatpush3.msra.mxu0 %v13866_v37 }
0x11a0   :  { %11167 = vmatmul.mubr.msk.f32.vlgmr.msra.gmra.mxu1 %vm1988_vm2, %v3525_v36  ;;  %11175 = vmatprep.subr.mxu0 %v15595_v50 }
0x11a1   :  { %11180 = vmatprep.subr.mxu1 %v15595_v50  ;;  %11176 = vmatpush3.msra.mxu0 %v13882_v26 }
0x11a2   :  { %11181 = vmatpush3.msra.mxu1 %v13832_v8  ;;  %11177 = vmatprep.mubr.msk.f32.mxu0 %vm12592_vm1, %v15595_v50 }
0x11a3   :  { %11182 = vmatprep.subr.mxu1 %v15595_v50  ;;  %11191 = vmatprep.subr.mxu0 %v15595_v50 }
0x11a4   :  { %11183 = vmatpush3.msra.mxu1 %v13846_v31  ;;  %11188 = vmatprep.mubr.msk.f32.mxu1 %vm12592_vm1, %v15595_v50 }
0x11a5   :  { %11184 = vmatprep.subr.mxu1 %v15595_v50 }
0x11a6   :  { %11185 = vmatpush3.msra.mxu1 %v13860_v53 }
0x11a7   :  { %11186 = vmatprep.subr.mxu1 %v15595_v50 }
0x11a8   :  { %11187 = vmatpush3.msra.mxu1 %v13875_v45 }
0x11a9   :  { %11202 = vmatprep.subr.mxu1 %v15595_v50 }
0x1258   :  { %v3519_v55 = vpop.f32.mrf.mxu1 }
0x1259   :  { %v3594_v51 = vpop.f32.mrf.mxu0 }
0x125a   :  { %v3595_v15 = vadd.f32 %v3594_v51, %v3519_v55  ;;  %v11146_v58 = vpop.f32.mrf.mxu1 }
0x125b   :  { %v11157_v29 = vpop.f32.mrf.mxu0 }
0x125c   :  { %v3598_v46 = vadd.f32 %v13951_v47, %v3595_v15 }
0x125e   :  { %12116 = vtanh.f32 %v3598_v46  ;;  %v10301_v40 = vmul.f32 -1.442695, %v3598_v46 }
0x1260   :  { %v3691_v42 = vpop.f32.mrf.mxu1 }
0x1261   :  { %v3695_v39 = vadd.f32 %v3691_v42, %v1839_v56 }
0x1262   :  { %v11168_v52 = vpop.f32.mrf.mxu1 }
0x1263   :  { %12118 = vtanh.f32 %v3695_v39  ;;  %v10303_v22 = vmul.f32 -1.442695, %v3695_v39 }
0x1264   :  { %12120 = vpow2.f32 %v10301_v40 }
0x1265   :  { %12122 = vpow2.f32 %v10303_v22 }
0x126b   :  { %v12117_v17 = vpop.eup %12116 }
0x126c   :  { %3608 = vrot.lane.b32.xlu0 %v12117_v17, %s12593_s23 }
0x1270   :  { %v12119_v33 = vpop.eup %12118 }
0x1271   :  { %3705 = vrot.lane.b32.xlu1 %v12119_v33, %s12593_s23  ;;  %v12121_v11 = vpop.eup %12120 }
0x1272   :  { %v3602_v59 = vadd.f32 1.0, %v12121_v11  ;;  %v12123_v60 = vpop.eup %12122 }
0x1273   :  { %v3699_v16 = vadd.f32 1.0, %v12123_v60  ;;  %v1844_v60 = vadd.f32 %v13944_v6, %v13893_v20 }
0x1274   :  { %12124 = vrcp.f32 %v3602_v59 }
0x1275   :  { %12126 = vrcp.f32 %v3699_v16 }
0x1281   :  { %v12125_v24 = vpop.eup %12124 }
0x1282   :  { %v12127_v21 = vpop.eup %12126  ;;  %v3606_v55 = vmul.f32 %v12125_v24, %v14064_v28 }
0x1283   :  { %v3703_v58 = vmul.f32 %v12127_v21, %v14066_v25 }
0x12de   :  { %v3609_v9 = vpop.permute.xlu0 %3608 }
0x12df   :  { %v3611_v27 = vmul.f32 %v12125_v24, %v3609_v9 }
0x12e1   :  { %3613 = vrot.lane.b32.xlu0 %v3611_v27, %s12594_s24 }
0x12e3   :  { %v3706_v14 = vpop.permute.xlu1 %3705 }
0x12e4   :  { %v3708_v36 = vmul.f32 %v12127_v21, %v3706_v14 }
0x12e6   :  { %3710 = vrot.lane.b32.xlu1 %v3708_v36, %s12594_s24 }
0x1353   :  { %v3614_v51 = vpop.permute.xlu0 %3613 }
0x1354   :  { %v14115_v15 = vadd.f32 %v3614_v51, %v3606_v55 }
0x1356   :  { %12128 = vtanh.f32 %v14115_v15 }
0x1358   :  { %v3711_v29 = vpop.permute.xlu1 %3710 }
0x1359   :  { %v14119_v46 = vadd.f32 %v3711_v29, %v3703_v58 }
0x135b   :  { %12130 = vtanh.f32 %v14119_v46 }
0x1363   :  { %v12129_v56 = vpop.eup %12128 }
0x1364   :  { %3619 = vrot.lane.b32.xlu0 %v12129_v56, %s12593_s23 }
0x1368   :  { %v12131_v42 = vpop.eup %12130 }
0x1369   :  { %3716 = vrot.lane.b32.xlu1 %v12131_v42, %s12593_s23 }
0x13d6   :  { %v3620_v39 = vpop.permute.xlu0 %3619 }
0x13d7   :  { %v3622_v28 = vmul.f32 %v12125_v24, %v3620_v39 }
0x13d9   :  { %3721 = vrot.lane.b32.xlu0 %v3622_v28, %s12594_s24 }
0x13db   :  { %v3717_v52 = vpop.permute.xlu1 %3716 }
0x13dc   :  { %v3719_v17 = vmul.f32 %v12127_v21, %v3717_v52 }
0x13de   :  { %3796 = vrot.lane.b32.xlu1 %v3719_v17, %s12594_s24 }
0x144b   :  { %v3722_v25 = vpop.permute.xlu0 %3721 }
0x144c   :  { %11178 = vmatmul.mubr.msk.f32.vlgmr.msra.gmra.mxu0 %vm1988_vm2, %v3722_v25 }
0x144d   :  { %11192 = vmatpush3.msra.mxu0 %v13800_v49  ;;  %11199 = vmatprep.mubr.msk.f32.mxu0 %vm12592_vm1, %v15595_v50 }
0x144e   :  { %11193 = vmatprep.subr.mxu0 %v15595_v50 }
0x144f   :  { %11194 = vmatpush3.msra.mxu0 %v13809_v30 }
0x1450   :  { %11195 = vmatprep.subr.mxu0 %v15595_v50  ;;  %v3797_v33 = vpop.permute.xlu1 %3796 }
0x1451   :  { %11196 = vmatpush3.msra.mxu0 %v13816_v19  ;;  %11189 = vmatmul.mubr.msk.f32.vlgmr.msra.gmra.mxu1 %vm1988_vm2, %v3797_v33 }
0x1452   :  { %11197 = vmatprep.subr.mxu0 %v15595_v50  ;;  %11203 = vmatpush3.msra.mxu1 %v13838_v18 }
0x1453   :  { %11198 = vmatpush3.msra.mxu0 %v13823_v10  ;;  %11204 = vmatprep.subr.mxu1 %v15595_v50 }
0x1454   :  { %11200 = vmatmul.mubr.msk.f32.vlgmr.msra.gmra.mxu0 %vm1988_vm2, %v3797_v33  ;;  %11213 = vmatprep.subr.mxu0 %v15595_v50 }
0x1455   :  { %11214 = vmatpush3.msra.mxu0 %v13832_v8  ;;  %11205 = vmatpush3.msra.mxu1 %v13852_v13 }
0x1456   :  { %11215 = vmatprep.subr.mxu0 %v15595_v50  ;;  %11206 = vmatprep.subr.mxu1 %v15595_v50 }
0x1457   :  { %11216 = vmatpush3.msra.mxu0 %v13846_v31  ;;  %11207 = vmatpush3.msra.mxu1 %v13866_v37 }
0x1458   :  { %11217 = vmatprep.subr.mxu0 %v15595_v50  ;;  %11208 = vmatprep.subr.mxu1 %v15595_v50 }
0x1459   :  { %11218 = vmatpush3.msra.mxu0 %v13860_v53  ;;  %11209 = vmatpush3.msra.mxu1 %v13882_v26 }
0x145a   :  { %11219 = vmatprep.subr.mxu0 %v15595_v50  ;;  %11221 = vmatprep.mubr.msk.f32.mxu0 %vm12592_vm1, %v15595_v50 }
0x145b   :  { %11220 = vmatpush3.msra.mxu0 %v13875_v45  ;;  %11210 = vmatprep.mubr.msk.f32.mxu1 %vm12592_vm1, %v15595_v50 }
0x145c   :  { %11224 = vmatprep.subr.mxu1 %v15595_v50  ;;  %11235 = vmatprep.subr.mxu0 %v15595_v50 }
0x150c   :  { %v3791_v40 = vpop.f32.mrf.mxu0 }
0x150e   :  { %v11179_v22 = vpop.f32.mrf.mxu0 }
0x1511   :  { %v3866_v11 = vpop.f32.mrf.mxu1 }
0x1512   :  { %v3867_v59 = vadd.f32 %v3866_v11, %v3791_v40 }
0x1513   :  { %v11190_v16 = vpop.f32.mrf.mxu1 }
0x1514   :  { %v3870_v24 = vadd.f32 %v13951_v47, %v3867_v59  ;;  %v3963_v9 = vpop.f32.mrf.mxu0 }
0x1515   :  { %v3967_v27 = vadd.f32 %v3963_v9, %v1844_v60 }
0x1516   :  { %12132 = vtanh.f32 %v3870_v24  ;;  %v11201_v21 = vpop.f32.mrf.mxu0  ;;  %v10306_v55 = vmul.f32 -1.442695, %v3870_v24 }
0x1517   :  { %12134 = vtanh.f32 %v3967_v27  ;;  %v10308_v51 = vmul.f32 -1.442695, %v3967_v27 }
0x1518   :  { %12136 = vpow2.f32 %v10306_v55 }
0x1519   :  { %12138 = vpow2.f32 %v10308_v51 }
0x1523   :  { %v12133_v14 = vpop.eup %12132 }
0x1524   :  { %v12135_v36 = vpop.eup %12134  ;;  %3880 = vrot.lane.b32.xlu0 %v12133_v14, %s12593_s23 }
0x1525   :  { %3977 = vrot.lane.b32.xlu1 %v12135_v36, %s12593_s23  ;;  %v12137_v58 = vpop.eup %12136 }
0x1526   :  { %v12139_v20 = vpop.eup %12138  ;;  %v3874_v29 = vadd.f32 1.0, %v12137_v58 }
0x1527   :  { %v3971_v56 = vadd.f32 1.0, %v12139_v20 }
0x1528   :  { %12140 = vrcp.f32 %v3874_v29 }
0x1529   :  { %12142 = vrcp.f32 %v3971_v56 }
0x1535   :  { %v12141_v42 = vpop.eup %12140 }
0x1536   :  { %v12143_v28 = vpop.eup %12142  ;;  %v3878_v33 = vmul.f32 %v12141_v42, %v14115_v15 }
0x1537   :  { %v3975_v40 = vmul.f32 %v12143_v28, %v14119_v46 }
0x1596   :  { %v3881_v39 = vpop.permute.xlu0 %3880 }
0x1597   :  { %v3978_v52 = vpop.permute.xlu1 %3977  ;;  %v3883_v17 = vmul.f32 %v12141_v42, %v3881_v39 }
0x1598   :  { %v3980_v25 = vmul.f32 %v12143_v28, %v3978_v52 }
0x1599   :  { %3885 = vrot.lane.b32.xlu0 %v3883_v17, %s12594_s24 }
0x159a   :  { %3982 = vrot.lane.b32.xlu1 %v3980_v25, %s12594_s24 }
0x160b   :  { %v3886_v22 = vpop.permute.xlu0 %3885 }
0x160c   :  { %v3983_v11 = vpop.permute.xlu1 %3982  ;;  %v14168_v59 = vadd.f32 %v3886_v22, %v3878_v33 }
0x160d   :  { %v14170_v60 = vadd.f32 %v3983_v11, %v3975_v40 }
0x160e   :  { %12144 = vtanh.f32 %v14168_v59 }
0x160f   :  { %12146 = vtanh.f32 %v14170_v60 }
0x161b   :  { %v12145_v16 = vpop.eup %12144 }
0x161c   :  { %v12147_v24 = vpop.eup %12146  ;;  %3891 = vrot.lane.b32.xlu0 %v12145_v16, %s12593_s23 }
0x161d   :  { %3988 = vrot.lane.b32.xlu1 %v12147_v24, %s12593_s23 }
0x168e   :  { %v3892_v9 = vpop.permute.xlu0 %3891 }
0x168f   :  { %v3989_v15 = vpop.permute.xlu1 %3988  ;;  %v3894_v27 = vmul.f32 %v12141_v42, %v3892_v9 }
0x1690   :  { %v3991_v46 = vmul.f32 %v12143_v28, %v3989_v15 }
0x1691   :  { %3993 = vrot.lane.b32.xlu0 %v3894_v27, %s12594_s24 }
0x1692   :  { %4068 = vrot.lane.b32.xlu1 %v3991_v46, %s12594_s24  ;;  %v14234_v46 = vld [vmem:[%s15559_s4 + $0x18] sm:$0xff] }
0x1703   :  { %v3994_v21 = vpop.permute.xlu0 %3993 }
0x1704   :  { %v4069_v14 = vpop.permute.xlu1 %4068  ;;  %11211 = vmatmul.mubr.msk.f32.vlgmr.msra.gmra.mxu1 %vm1988_vm2, %v3994_v21  ;;  %v14243_v21 = vld [vmem:[%s15559_s4 + $0x10] sm:$0xff] }
0x1705   :  { %11222 = vmatmul.mubr.msk.f32.vlgmr.msra.gmra.mxu0 %vm1988_vm2, %v4069_v14  ;;  %11225 = vmatpush3.msra.mxu1 %v13800_v49 }
0x1706   :  { %11226 = vmatprep.subr.mxu1 %v15595_v50  ;;  %11232 = vmatprep.mubr.msk.f32.mxu1 %vm12592_vm1, %v15595_v50 }
0x1707   :  { %11227 = vmatpush3.msra.mxu1 %v13809_v30  ;;  %11236 = vmatpush3.msra.mxu0 %v13838_v18 }
0x1708   :  { %11228 = vmatprep.subr.mxu1 %v15595_v50  ;;  %11237 = vmatprep.subr.mxu0 %v15595_v50 }
0x1709   :  { %11229 = vmatpush3.msra.mxu1 %v13816_v19  ;;  %11238 = vmatpush3.msra.mxu0 %v13852_v13 }
0x170a   :  { %11230 = vmatprep.subr.mxu1 %v15595_v50  ;;  %11239 = vmatprep.subr.mxu0 %v15595_v50 }
0x170b   :  { %11231 = vmatpush3.msra.mxu1 %v13823_v10  ;;  %11240 = vmatpush3.msra.mxu0 %v13866_v37 }
0x170c   :  { %11233 = vmatmul.mubr.msk.f32.vlgmr.msra.gmra.mxu1 %vm1988_vm2, %v4069_v14  ;;  %11241 = vmatprep.subr.mxu0 %v15595_v50 }
0x170d   :  { %11246 = vmatprep.subr.mxu1 %v15595_v50  ;;  %11242 = vmatpush3.msra.mxu0 %v13882_v26 }
0x170e   :  { %11247 = vmatpush3.msra.mxu1 %v13832_v8  ;;  %11243 = vmatprep.mubr.msk.f32.mxu0 %vm12592_vm1, %v15595_v50 }
0x170f   :  { %11248 = vmatprep.subr.mxu1 %v15595_v50  ;;  %11257 = vmatprep.subr.mxu0 %v15595_v50 }
0x1710   :  { %11249 = vmatpush3.msra.mxu1 %v13846_v31  ;;  %11254 = vmatprep.mubr.msk.f32.mxu1 %vm12592_vm1, %v15595_v50  ;;  %v1849_v31 = vadd.f32 %v13944_v6, %v13899_v34 }
0x1711   :  { %11250 = vmatprep.subr.mxu1 %v15595_v50 }
0x1712   :  { %11251 = vmatpush3.msra.mxu1 %v13860_v53 }
0x1713   :  { %11252 = vmatprep.subr.mxu1 %v15595_v50 }
0x1714   :  { %11253 = vmatpush3.msra.mxu1 %v13875_v45 }
0x1715   :  { %11268 = vmatprep.subr.mxu1 %v15595_v50 }
0x17c4   :  { %v4063_v49 = vpop.f32.mrf.mxu1 }
0x17c5   :  { %v4138_v30 = vpop.f32.mrf.mxu0 }
0x17c6   :  { %v4139_v19 = vadd.f32 %v4138_v30, %v4063_v49  ;;  %v11212_v10 = vpop.f32.mrf.mxu1  ;;  %v14250_v49 = vld [vmem:[%s15559_s4 + $0x8] sm:$0xff]  ;;  %v14258_v30 = vld [vmem:[%s15562_s7 + $0x18] sm:$0xff] }
0x17c7   :  { %v11223_v8 = vpop.f32.mrf.mxu0  ;;  %v14273_v10 = vld [vmem:[%s15563_s6 + $0x18] sm:$0xff] }
0x17c8   :  { %v4142_v18 = vadd.f32 %v13951_v47, %v4139_v19  ;;  %v14264_v19 = vld [vmem:[%s15559_s4] sm:$0xff]  ;;  %v14279_v8 = vld [vmem:[%s15562_s7 + $0x10] sm:$0xff] }
0x17ca   :  { %12148 = vtanh.f32 %v4142_v18  ;;  %v10311_v36 = vmul.f32 -1.442695, %v4142_v18  ;;  %v14287_v18 = vld [vmem:[%s15563_s6 + $0x10] sm:$0xff] }
0x17cc   :  { %v4235_v13 = vpop.f32.mrf.mxu1 }
0x17cd   :  { %v4239_v37 = vadd.f32 %v4235_v13, %v1849_v31  ;;  %v14293_v31 = vld [vmem:[%s15562_s7 + $0x8] sm:$0xff] }
0x17ce   :  { %v11234_v53 = vpop.f32.mrf.mxu1  ;;  %v14301_v13 = vld [vmem:[%s15563_s6 + $0x8] sm:$0xff] }
0x17cf   :  { %12150 = vtanh.f32 %v4239_v37  ;;  %v10313_v55 = vmul.f32 -1.442695, %v4239_v37  ;;  %v14307_v37 = vld [vmem:[%s15562_s7] sm:$0xff] }
0x17d0   :  { %12152 = vpow2.f32 %v10311_v36  ;;  %v14316_v53 = vld [vmem:[%s15563_s6] sm:$0xff] }
0x17d1   :  { %12154 = vpow2.f32 %v10313_v55 }
0x17d7   :  { %v12149_v26 = vpop.eup %12148 }
0x17d8   :  { %4152 = vrot.lane.b32.xlu0 %v12149_v26, %s12593_s23 }
0x17dc   :  { %v12151_v45 = vpop.eup %12150 }
0x17dd   :  { %4249 = vrot.lane.b32.xlu1 %v12151_v45, %s12593_s23  ;;  %v12153_v51 = vpop.eup %12152 }
0x17de   :  { %v4146_v58 = vadd.f32 1.0, %v12153_v51  ;;  %v12155_v20 = vpop.eup %12154  ;;  %v1854_v51 = vadd.f32 %v13944_v6, %v13897_v54 }
0x17df   :  { %v4243_v29 = vadd.f32 1.0, %v12155_v20 }
0x17e0   :  { %12156 = vrcp.f32 %v4146_v58 }
0x17e1   :  { %12158 = vrcp.f32 %v4243_v29 }
0x17ed   :  { %v12157_v34 = vpop.eup %12156 }
0x17ee   :  { %v12159_v39 = vpop.eup %12158  ;;  %v4150_v17 = vmul.f32 %v12157_v34, %v14168_v59 }
0x17ef   :  { %v4247_v40 = vmul.f32 %v12159_v39, %v14170_v60 }
0x184a   :  { %v4153_v56 = vpop.permute.xlu0 %4152 }
0x184b   :  { %v4155_v42 = vmul.f32 %v12157_v34, %v4153_v56 }
0x184d   :  { %4157 = vrot.lane.b32.xlu0 %v4155_v42, %s12594_s24 }
0x184f   :  { %v4250_v28 = vpop.permute.xlu1 %4249 }
0x1850   :  { %v4252_v52 = vmul.f32 %v12159_v39, %v4250_v28 }
0x1852   :  { %4254 = vrot.lane.b32.xlu1 %v4252_v52, %s12594_s24 }
0x18bf   :  { %v4158_v25 = vpop.permute.xlu0 %4157 }
0x18c0   :  { %v14219_v33 = vadd.f32 %v4158_v25, %v4150_v17 }
0x18c2   :  { %12160 = vtanh.f32 %v14219_v33 }
0x18c4   :  { %v4255_v22 = vpop.permute.xlu1 %4254 }
0x18c5   :  { %v14223_v11 = vadd.f32 %v4255_v22, %v4247_v40 }
0x18c7   :  { %12162 = vtanh.f32 %v14223_v11 }
0x18cf   :  { %v12161_v16 = vpop.eup %12160 }
0x18d0   :  { %4163 = vrot.lane.b32.xlu0 %v12161_v16, %s12593_s23 }
0x18d4   :  { %v12163_v24 = vpop.eup %12162 }
0x18d5   :  { %4260 = vrot.lane.b32.xlu1 %v12163_v24, %s12593_s23 }
0x1942   :  { %v4164_v9 = vpop.permute.xlu0 %4163 }
0x1943   :  { %v4166_v59 = vmul.f32 %v12157_v34, %v4164_v9 }
0x1945   :  { %4265 = vrot.lane.b32.xlu0 %v4166_v59, %s12594_s24 }
0x1947   :  { %v4261_v15 = vpop.permute.xlu1 %4260 }
0x1948   :  { %v4263_v27 = vmul.f32 %v12159_v39, %v4261_v15 }
0x194a   :  { %4340 = vrot.lane.b32.xlu1 %v4263_v27, %s12594_s24 }
0x19b7   :  { %v4266_v60 = vpop.permute.xlu0 %4265 }
0x19b8   :  { %11244 = vmatmul.mubr.msk.f32.vlgmr.msra.gmra.mxu0 %vm1988_vm2, %v4266_v60 }
0x19b9   :  { %11258 = vmatpush3.msra.mxu0 %v14234_v46  ;;  %11265 = vmatprep.mubr.msk.f32.mxu0 %vm12592_vm1, %v15595_v50 }
0x19ba   :  { %11259 = vmatprep.subr.mxu0 %v15595_v50 }
0x19bb   :  { %11260 = vmatpush3.msra.mxu0 %v14243_v21 }
0x19bc   :  { %11261 = vmatprep.subr.mxu0 %v15595_v50  ;;  %v4341_v14 = vpop.permute.xlu1 %4340 }
0x19bd   :  { %11262 = vmatpush3.msra.mxu0 %v14250_v49  ;;  %11255 = vmatmul.mubr.msk.f32.vlgmr.msra.gmra.mxu1 %vm1988_vm2, %v4341_v14 }
0x19be   :  { %11263 = vmatprep.subr.mxu0 %v15595_v50  ;;  %11269 = vmatpush3.msra.mxu1 %v14258_v30 }
0x19bf   :  { %11264 = vmatpush3.msra.mxu0 %v14264_v19  ;;  %11270 = vmatprep.subr.mxu1 %v15595_v50 }
0x19c0   :  { %11266 = vmatmul.mubr.msk.f32.vlgmr.msra.gmra.mxu0 %vm1988_vm2, %v4341_v14  ;;  %11279 = vmatprep.subr.mxu0 %v15595_v50 }
0x19c1   :  { %11280 = vmatpush3.msra.mxu0 %v14273_v10  ;;  %11271 = vmatpush3.msra.mxu1 %v14279_v8 }
0x19c2   :  { %11281 = vmatprep.subr.mxu0 %v15595_v50  ;;  %11272 = vmatprep.subr.mxu1 %v15595_v50 }
0x19c3   :  { %11282 = vmatpush3.msra.mxu0 %v14287_v18  ;;  %11273 = vmatpush3.msra.mxu1 %v14293_v31 }
0x19c4   :  { %11283 = vmatprep.subr.mxu0 %v15595_v50  ;;  %11274 = vmatprep.subr.mxu1 %v15595_v50 }
0x19c5   :  { %11284 = vmatpush3.msra.mxu0 %v14301_v13  ;;  %11275 = vmatpush3.msra.mxu1 %v14307_v37 }
0x19c6   :  { %11285 = vmatprep.subr.mxu0 %v15595_v50  ;;  %11287 = vmatprep.mubr.msk.f32.mxu0 %vm12592_vm1, %v15595_v50 }
0x19c7   :  { %11286 = vmatpush3.msra.mxu0 %v14316_v53  ;;  %11276 = vmatprep.mubr.msk.f32.mxu1 %vm12592_vm1, %v15595_v50 }
0x19c8   :  { %11290 = vmatprep.subr.mxu1 %v15595_v50  ;;  %11301 = vmatprep.subr.mxu0 %v15595_v50 }
0x1a78   :  { %v4335_v26 = vpop.f32.mrf.mxu0 }
0x1a7a   :  { %v11245_v45 = vpop.f32.mrf.mxu0 }
0x1a7d   :  { %v4410_v36 = vpop.f32.mrf.mxu1 }
0x1a7e   :  { %v4411_v55 = vadd.f32 %v4410_v36, %v4335_v26 }
0x1a7f   :  { %v11256_v58 = vpop.f32.mrf.mxu1 }
0x1a80   :  { %v4414_v20 = vadd.f32 %v13951_v47, %v4411_v55  ;;  %v4507_v29 = vpop.f32.mrf.mxu0 }
0x1a81   :  { %v4511_v34 = vadd.f32 %v4507_v29, %v1854_v51 }
0x1a82   :  { %12164 = vtanh.f32 %v4414_v20  ;;  %v11267_v56 = vpop.f32.mrf.mxu0  ;;  %v10316_v28 = vmul.f32 -1.442695, %v4414_v20 }
0x1a83   :  { %12166 = vtanh.f32 %v4511_v34  ;;  %v10318_v52 = vmul.f32 -1.442695, %v4511_v34 }
0x1a84   :  { %12168 = vpow2.f32 %v10316_v28  ;;  %v14378_v28 = vld [vmem:[%s15564_s8] ss:$0 sm:$0xff] }
0x1a85   :  { %12170 = vpow2.f32 %v10318_v52 }
0x1a8f   :  { %v12165_v42 = vpop.eup %12164 }
0x1a90   :  { %v12167_v39 = vpop.eup %12166  ;;  %4424 = vrot.lane.b32.xlu0 %v12165_v42, %s12593_s23 }
0x1a91   :  { %4521 = vrot.lane.b32.xlu1 %v12167_v39, %s12593_s23  ;;  %v12169_v17 = vpop.eup %12168 }
0x1a92   :  { %v12171_v54 = vpop.eup %12170  ;;  %v4418_v6 = vadd.f32 1.0, %v12169_v17  ;;  %v14384_v17 = vld [vmem:[%s15561_s5] ss:$0 sm:$0xff] }
0x1a93   :  { %v4515_v25 = vadd.f32 1.0, %v12171_v54  ;;  %v1859_v54 = vadd.f32 %v14384_v17, %v13903_v41 }
0x1a94   :  { %12172 = vrcp.f32 %v4418_v6 }
0x1a95   :  { %12174 = vrcp.f32 %v4515_v25 }
0x1aa1   :  { %v12173_v47 = vpop.eup %12172 }
0x1aa2   :  { %v12175_v22 = vpop.eup %12174  ;;  %v4422_v59 = vmul.f32 %v12173_v47, %v14219_v33 }
0x1aa3   :  { %v4519_v15 = vmul.f32 %v12175_v22, %v14223_v11 }
0x1b02   :  { %v4425_v40 = vpop.permute.xlu0 %4424 }
0x1b03   :  { %v4522_v16 = vpop.permute.xlu1 %4521  ;;  %v4427_v24 = vmul.f32 %v12173_v47, %v4425_v40 }
0x1b04   :  { %v4524_v9 = vmul.f32 %v12175_v22, %v4522_v16 }
0x1b05   :  { %4429 = vrot.lane.b32.xlu0 %v4427_v24, %s12594_s24 }
0x1b06   :  { %4526 = vrot.lane.b32.xlu1 %v4524_v9, %s12594_s24 }
0x1b77   :  { %v4430_v27 = vpop.permute.xlu0 %4429 }
0x1b78   :  { %v4527_v60 = vpop.permute.xlu1 %4526  ;;  %v14332_v14 = vadd.f32 %v4430_v27, %v4422_v59 }
0x1b79   :  { %v14334_v26 = vadd.f32 %v4527_v60, %v4519_v15 }
0x1b7a   :  { %12176 = vtanh.f32 %v14332_v14 }
0x1b7b   :  { %12178 = vtanh.f32 %v14334_v26 }
0x1b87   :  { %v12177_v45 = vpop.eup %12176 }
0x1b88   :  { %v12179_v36 = vpop.eup %12178  ;;  %4435 = vrot.lane.b32.xlu0 %v12177_v45, %s12593_s23 }
0x1b89   :  { %4532 = vrot.lane.b32.xlu1 %v12179_v36, %s12593_s23 }
0x1bfa   :  { %v4436_v55 = vpop.permute.xlu0 %4435 }
0x1bfb   :  { %v4533_v33 = vpop.permute.xlu1 %4532  ;;  %v4438_v51 = vmul.f32 %v12173_v47, %v4436_v55 }
0x1bfc   :  { %v4535_v11 = vmul.f32 %v12175_v22, %v4533_v33 }
0x1bfd   :  { %4537 = vrot.lane.b32.xlu0 %v4438_v51, %s12594_s24 }
0x1bfe   :  { %4612 = vrot.lane.b32.xlu1 %v4535_v11, %s12594_s24 }
0x1c6f   :  { %v4538_v58 = vpop.permute.xlu0 %4537 }
0x1c70   :  { %v4613_v20 = vpop.permute.xlu1 %4612  ;;  %11277 = vmatmul.mubr.msk.f32.vlgmr.msra.gmra.mxu1 %vm1988_vm2, %v4538_v58 }
0x1c71   :  { %11288 = vmatmul.mubr.msk.f32.vlgmr.msra.gmra.mxu0 %vm1988_vm2, %v4613_v20  ;;  %11291 = vmatpush3.msra.mxu1 %v14234_v46 }
0x1c72   :  { %11292 = vmatprep.subr.mxu1 %v15595_v50  ;;  %11298 = vmatprep.mubr.msk.f32.mxu1 %vm12592_vm1, %v15595_v50 }
0x1c73   :  { %11293 = vmatpush3.msra.mxu1 %v14243_v21  ;;  %11302 = vmatpush3.msra.mxu0 %v14258_v30 }
0x1c74   :  { %11294 = vmatprep.subr.mxu1 %v15595_v50  ;;  %11303 = vmatprep.subr.mxu0 %v15595_v50 }
0x1c75   :  { %11295 = vmatpush3.msra.mxu1 %v14250_v49  ;;  %11304 = vmatpush3.msra.mxu0 %v14279_v8 }
0x1c76   :  { %11296 = vmatprep.subr.mxu1 %v15595_v50  ;;  %11305 = vmatprep.subr.mxu0 %v15595_v50 }
0x1c77   :  { %11297 = vmatpush3.msra.mxu1 %v14264_v19  ;;  %11306 = vmatpush3.msra.mxu0 %v14293_v31 }
0x1c78   :  { %11299 = vmatmul.mubr.msk.f32.vlgmr.msra.gmra.mxu1 %vm1988_vm2, %v4613_v20  ;;  %11307 = vmatprep.subr.mxu0 %v15595_v50 }
0x1c79   :  { %11312 = vmatprep.subr.mxu1 %v15595_v50  ;;  %11308 = vmatpush3.msra.mxu0 %v14307_v37 }
0x1c7a   :  { %11313 = vmatpush3.msra.mxu1 %v14273_v10  ;;  %11309 = vmatprep.mubr.msk.f32.mxu0 %vm12592_vm1, %v15595_v50 }
0x1c7b   :  { %11314 = vmatprep.subr.mxu1 %v15595_v50  ;;  %11323 = vmatprep.subr.mxu0 %v15595_v50 }
0x1c7c   :  { %11315 = vmatpush3.msra.mxu1 %v14287_v18  ;;  %11320 = vmatprep.mubr.msk.f32.mxu1 %vm12592_vm1, %v15595_v50 }
0x1c7d   :  { %11316 = vmatprep.subr.mxu1 %v15595_v50 }
0x1c7e   :  { %11317 = vmatpush3.msra.mxu1 %v14301_v13 }
0x1c7f   :  { %11318 = vmatprep.subr.mxu1 %v15595_v50 }
0x1c80   :  { %11319 = vmatpush3.msra.mxu1 %v14316_v53 }
0x1c81   :  { %11334 = vmatprep.subr.mxu1 %v15595_v50 }
0x1d30   :  { %v4607_v29 = vpop.f32.mrf.mxu1 }
0x1d31   :  { %v4682_v34 = vpop.f32.mrf.mxu0 }
0x1d32   :  { %v4683_v56 = vadd.f32 %v4682_v34, %v4607_v29  ;;  %v11278_v42 = vpop.f32.mrf.mxu1 }
0x1d33   :  { %v11289_v39 = vpop.f32.mrf.mxu0 }
0x1d34   :  { %v4686_v52 = vadd.f32 %v14378_v28, %v4683_v56 }
0x1d36   :  { %12180 = vtanh.f32 %v4686_v52  ;;  %v10321_v16 = vmul.f32 -1.442695, %v4686_v52 }
0x1d38   :  { %v4779_v6 = vpop.f32.mrf.mxu1 }
0x1d39   :  { %v4783_v25 = vadd.f32 %v4779_v6, %v1859_v54 }
0x1d3a   :  { %v11300_v47 = vpop.f32.mrf.mxu1 }
0x1d3b   :  { %12182 = vtanh.f32 %v4783_v25  ;;  %v10323_v24 = vmul.f32 -1.442695, %v4783_v25 }
0x1d3c   :  { %12184 = vpow2.f32 %v10321_v16  ;;  %v1864_v16 = vadd.f32 %v14384_v17, %v13901_v7 }
0x1d3d   :  { %12186 = vpow2.f32 %v10323_v24 }
0x1d43   :  { %v12181_v40 = vpop.eup %12180 }
0x1d44   :  { %4696 = vrot.lane.b32.xlu0 %v12181_v40, %s12593_s23 }
0x1d48   :  { %v12183_v22 = vpop.eup %12182 }
0x1d49   :  { %4793 = vrot.lane.b32.xlu1 %v12183_v22, %s12593_s23  ;;  %v12185_v9 = vpop.eup %12184 }
0x1d4a   :  { %v4690_v59 = vadd.f32 1.0, %v12185_v9  ;;  %v12187_v15 = vpop.eup %12186 }
0x1d4b   :  { %v4787_v27 = vadd.f32 1.0, %v12187_v15 }
0x1d4c   :  { %12188 = vrcp.f32 %v4690_v59 }
0x1d4d   :  { %12190 = vrcp.f32 %v4787_v27 }
0x1d59   :  { %v12189_v41 = vpop.eup %12188 }
0x1d5a   :  { %v12191_v36 = vpop.eup %12190  ;;  %v4694_v51 = vmul.f32 %v12189_v41, %v14332_v14 }
0x1d5b   :  { %v4791_v20 = vmul.f32 %v12191_v36, %v14334_v26 }
0x1db6   :  { %v4697_v60 = vpop.permute.xlu0 %4696 }
0x1db7   :  { %v4699_v45 = vmul.f32 %v12189_v41, %v4697_v60 }
0x1db9   :  { %4701 = vrot.lane.b32.xlu0 %v4699_v45, %s12594_s24 }
0x1dbb   :  { %v4794_v55 = vpop.permute.xlu1 %4793 }
0x1dbc   :  { %v4796_v33 = vmul.f32 %v12191_v36, %v4794_v55 }
0x1dbe   :  { %4798 = vrot.lane.b32.xlu1 %v4796_v33, %s12594_s24 }
0x1e2b   :  { %v4702_v11 = vpop.permute.xlu0 %4701 }
0x1e2c   :  { %v14393_v58 = vadd.f32 %v4702_v11, %v4694_v51 }
0x1e2e   :  { %12192 = vtanh.f32 %v14393_v58 }
0x1e30   :  { %v4799_v29 = vpop.permute.xlu1 %4798 }
0x1e31   :  { %v14397_v34 = vadd.f32 %v4799_v29, %v4791_v20 }
0x1e33   :  { %12194 = vtanh.f32 %v14397_v34 }
0x1e3b   :  { %v12193_v56 = vpop.eup %12192 }
0x1e3c   :  { %4707 = vrot.lane.b32.xlu0 %v12193_v56, %s12593_s23 }
0x1e40   :  { %v12195_v42 = vpop.eup %12194 }
0x1e41   :  { %4804 = vrot.lane.b32.xlu1 %v12195_v42, %s12593_s23 }
0x1eae   :  { %v4708_v39 = vpop.permute.xlu0 %4707 }
0x1eaf   :  { %v4710_v14 = vmul.f32 %v12189_v41, %v4708_v39 }
0x1eb1   :  { %4809 = vrot.lane.b32.xlu0 %v4710_v14, %s12594_s24 }
0x1eb3   :  { %v4805_v52 = vpop.permute.xlu1 %4804 }
0x1eb4   :  { %v4807_v54 = vmul.f32 %v12191_v36, %v4805_v52 }
0x1eb6   :  { %4884 = vrot.lane.b32.xlu1 %v4807_v54, %s12594_s24 }
0x1f23   :  { %v4810_v26 = vpop.permute.xlu0 %4809 }
0x1f24   :  { %11310 = vmatmul.mubr.msk.f32.vlgmr.msra.gmra.mxu0 %vm1988_vm2, %v4810_v26 }
0x1f25   :  { %11324 = vmatpush3.msra.mxu0 %v14234_v46  ;;  %11331 = vmatprep.mubr.msk.f32.mxu0 %vm12592_vm1, %v15595_v50 }
0x1f26   :  { %11325 = vmatprep.subr.mxu0 %v15595_v50 }
0x1f27   :  { %11326 = vmatpush3.msra.mxu0 %v14243_v21 }
0x1f28   :  { %11327 = vmatprep.subr.mxu0 %v15595_v50  ;;  %v4885_v6 = vpop.permute.xlu1 %4884 }
0x1f29   :  { %11328 = vmatpush3.msra.mxu0 %v14250_v49  ;;  %11321 = vmatmul.mubr.msk.f32.vlgmr.msra.gmra.mxu1 %vm1988_vm2, %v4885_v6 }
0x1f2a   :  { %11329 = vmatprep.subr.mxu0 %v15595_v50  ;;  %11335 = vmatpush3.msra.mxu1 %v14258_v30 }
0x1f2b   :  { %11330 = vmatpush3.msra.mxu0 %v14264_v19  ;;  %11336 = vmatprep.subr.mxu1 %v15595_v50 }
0x1f2c   :  { %11332 = vmatmul.mubr.msk.f32.vlgmr.msra.gmra.mxu0 %vm1988_vm2, %v4885_v6  ;;  %11345 = vmatprep.subr.mxu0 %v15595_v50 }
0x1f2d   :  { %11346 = vmatpush3.msra.mxu0 %v14273_v10  ;;  %11337 = vmatpush3.msra.mxu1 %v14279_v8 }
0x1f2e   :  { %11347 = vmatprep.subr.mxu0 %v15595_v50  ;;  %11338 = vmatprep.subr.mxu1 %v15595_v50 }
0x1f2f   :  { %11348 = vmatpush3.msra.mxu0 %v14287_v18  ;;  %11339 = vmatpush3.msra.mxu1 %v14293_v31 }
0x1f30   :  { %11349 = vmatprep.subr.mxu0 %v15595_v50  ;;  %11340 = vmatprep.subr.mxu1 %v15595_v50 }
0x1f31   :  { %11350 = vmatpush3.msra.mxu0 %v14301_v13  ;;  %11341 = vmatpush3.msra.mxu1 %v14307_v37 }
0x1f32   :  { %11351 = vmatprep.subr.mxu0 %v15595_v50  ;;  %11353 = vmatprep.mubr.msk.f32.mxu0 %vm12592_vm1, %v15595_v50 }
0x1f33   :  { %11352 = vmatpush3.msra.mxu0 %v14316_v53  ;;  %11342 = vmatprep.mubr.msk.f32.mxu1 %vm12592_vm1, %v15595_v50 }
0x1f34   :  { %11356 = vmatprep.subr.mxu1 %v15595_v50  ;;  %11367 = vmatprep.subr.mxu0 %v15595_v50 }
0x1fe4   :  { %v4879_v25 = vpop.f32.mrf.mxu0 }
0x1fe6   :  { %v11311_v47 = vpop.f32.mrf.mxu0 }
0x1fe9   :  { %v4954_v40 = vpop.f32.mrf.mxu1 }
0x1fea   :  { %v4955_v22 = vadd.f32 %v4954_v40, %v4879_v25 }
0x1feb   :  { %v11322_v24 = vpop.f32.mrf.mxu1 }
0x1fec   :  { %v4958_v9 = vadd.f32 %v14378_v28, %v4955_v22  ;;  %v5051_v59 = vpop.f32.mrf.mxu0 }
0x1fed   :  { %v5055_v15 = vadd.f32 %v5051_v59, %v1864_v16 }
0x1fee   :  { %12196 = vtanh.f32 %v4958_v9  ;;  %v11333_v27 = vpop.f32.mrf.mxu0  ;;  %v10326_v45 = vmul.f32 -1.442695, %v4958_v9 }
0x1fef   :  { %12198 = vtanh.f32 %v5055_v15  ;;  %v10328_v36 = vmul.f32 -1.442695, %v5055_v15 }
0x1ff0   :  { %12200 = vpow2.f32 %v10326_v45 }
0x1ff1   :  { %12202 = vpow2.f32 %v10328_v36  ;;  %v1869_v36 = vadd.f32 %v14384_v17, %v13907_v3 }
0x1ffb   :  { %v12197_v41 = vpop.eup %12196 }
0x1ffc   :  { %v12199_v60 = vpop.eup %12198  ;;  %4968 = vrot.lane.b32.xlu0 %v12197_v41, %s12593_s23 }
0x1ffd   :  { %5065 = vrot.lane.b32.xlu1 %v12199_v60, %s12593_s23  ;;  %v12201_v55 = vpop.eup %12200 }
0x1ffe   :  { %v12203_v7 = vpop.eup %12202  ;;  %v4962_v33 = vadd.f32 1.0, %v12201_v55 }
0x1fff   :  { %v5059_v51 = vadd.f32 1.0, %v12203_v7 }
0x2000   :  { %12204 = vrcp.f32 %v4962_v33 }
0x2001   :  { %12206 = vrcp.f32 %v5059_v51 }
0x200d   :  { %v12205_v11 = vpop.eup %12204 }
0x200e   :  { %v12207_v29 = vpop.eup %12206  ;;  %v4966_v14 = vmul.f32 %v12205_v11, %v14393_v58 }
0x200f   :  { %v5063_v52 = vmul.f32 %v12207_v29, %v14397_v34 }
0x206e   :  { %v4969_v20 = vpop.permute.xlu0 %4968 }
0x206f   :  { %v5066_v56 = vpop.permute.xlu1 %5065  ;;  %v4971_v42 = vmul.f32 %v12205_v11, %v4969_v20 }
0x2070   :  { %v5068_v39 = vmul.f32 %v12207_v29, %v5066_v56 }
0x2071   :  { %4973 = vrot.lane.b32.xlu0 %v4971_v42, %s12594_s24 }
0x2072   :  { %5070 = vrot.lane.b32.xlu1 %v5068_v39, %s12594_s24 }
0x20e3   :  { %v4974_v54 = vpop.permute.xlu0 %4973 }
0x20e4   :  { %v5071_v26 = vpop.permute.xlu1 %5070  ;;  %v14446_v6 = vadd.f32 %v4974_v54, %v4966_v14 }
0x20e5   :  { %v14448_v25 = vadd.f32 %v5071_v26, %v5063_v52 }
0x20e6   :  { %12208 = vtanh.f32 %v14446_v6 }
0x20e7   :  { %12210 = vtanh.f32 %v14448_v25 }
0x20f3   :  { %v12209_v47 = vpop.eup %12208 }
0x20f4   :  { %v12211_v40 = vpop.eup %12210  ;;  %4979 = vrot.lane.b32.xlu0 %v12209_v47, %s12593_s23 }
0x20f5   :  { %5076 = vrot.lane.b32.xlu1 %v12211_v40, %s12593_s23 }
0x2166   :  { %v4980_v22 = vpop.permute.xlu0 %4979 }
0x2167   :  { %v5077_v58 = vpop.permute.xlu1 %5076  ;;  %v4982_v16 = vmul.f32 %v12205_v11, %v4980_v22 }
0x2168   :  { %v5079_v34 = vmul.f32 %v12207_v29, %v5077_v58 }
0x2169   :  { %5081 = vrot.lane.b32.xlu0 %v4982_v16, %s12594_s24 }
0x216a   :  { %5156 = vrot.lane.b32.xlu1 %v5079_v34, %s12594_s24 }
0x21db   :  { %v5082_v24 = vpop.permute.xlu0 %5081 }
0x21dc   :  { %v5157_v9 = vpop.permute.xlu1 %5156  ;;  %11343 = vmatmul.mubr.msk.f32.vlgmr.msra.gmra.mxu1 %vm1988_vm2, %v5082_v24 }
0x21dd   :  { %11354 = vmatmul.mubr.msk.f32.vlgmr.msra.gmra.mxu0 %vm1988_vm2, %v5157_v9  ;;  %11357 = vmatpush3.msra.mxu1 %v14234_v46 }
0x21de   :  { %11358 = vmatprep.subr.mxu1 %v15595_v50  ;;  %11364 = vmatprep.mubr.msk.f32.mxu1 %vm12592_vm1, %v15595_v50 }
0x21df   :  { %11359 = vmatpush3.msra.mxu1 %v14243_v21  ;;  %11368 = vmatpush3.msra.mxu0 %v14258_v30 }
0x21e0   :  { %11360 = vmatprep.subr.mxu1 %v15595_v50  ;;  %11369 = vmatprep.subr.mxu0 %v15595_v50 }
0x21e1   :  { %11361 = vmatpush3.msra.mxu1 %v14250_v49  ;;  %11370 = vmatpush3.msra.mxu0 %v14279_v8 }
0x21e2   :  { %11362 = vmatprep.subr.mxu1 %v15595_v50  ;;  %11371 = vmatprep.subr.mxu0 %v15595_v50 }
0x21e3   :  { %11363 = vmatpush3.msra.mxu1 %v14264_v19  ;;  %11372 = vmatpush3.msra.mxu0 %v14293_v31 }
0x21e4   :  { %11365 = vmatmul.mubr.msk.f32.vlgmr.msra.gmra.mxu1 %vm1988_vm2, %v5157_v9  ;;  %11373 = vmatprep.subr.mxu0 %v15595_v50 }
0x21e5   :  { %11378 = vmatprep.subr.mxu1 %v15595_v50  ;;  %11374 = vmatpush3.msra.mxu0 %v14307_v37 }
0x21e6   :  { %11379 = vmatpush3.msra.mxu1 %v14273_v10  ;;  %11375 = vmatprep.mubr.msk.f32.mxu0 %vm12592_vm1, %v15595_v50 }
0x21e7   :  { %11380 = vmatprep.subr.mxu1 %v15595_v50  ;;  %11389 = vmatprep.subr.mxu0 %v15595_v50 }
0x21e8   :  { %11381 = vmatpush3.msra.mxu1 %v14287_v18  ;;  %11386 = vmatprep.mubr.msk.f32.mxu1 %vm12592_vm1, %v15595_v50 }
0x21e9   :  { %11382 = vmatprep.subr.mxu1 %v15595_v50 }
0x21ea   :  { %11383 = vmatpush3.msra.mxu1 %v14301_v13 }
0x21eb   :  { %11384 = vmatprep.subr.mxu1 %v15595_v50 }
0x21ec   :  { %11385 = vmatpush3.msra.mxu1 %v14316_v53 }
0x21ed   :  { %11400 = vmatprep.subr.mxu1 %v15595_v50 }
0x229c   :  { %v5151_v59 = vpop.f32.mrf.mxu1 }
0x229d   :  { %v5226_v15 = vpop.f32.mrf.mxu0 }
0x229e   :  { %v5227_v27 = vadd.f32 %v5226_v15, %v5151_v59  ;;  %v11344_v41 = vpop.f32.mrf.mxu1 }
0x229f   :  { %v11355_v60 = vpop.f32.mrf.mxu0 }
0x22a0   :  { %v5230_v45 = vadd.f32 %v14378_v28, %v5227_v27 }
0x22a2   :  { %12212 = vtanh.f32 %v5230_v45  ;;  %v10331_v20 = vmul.f32 -1.442695, %v5230_v45 }
0x22a4   :  { %v5323_v55 = vpop.f32.mrf.mxu1 }
0x22a5   :  { %v5327_v7 = vadd.f32 %v5323_v55, %v1869_v36 }
0x22a6   :  { %v11366_v33 = vpop.f32.mrf.mxu1 }
0x22a7   :  { %12214 = vtanh.f32 %v5327_v7  ;;  %v10333_v29 = vmul.f32 -1.442695, %v5327_v7 }
0x22a8   :  { %12216 = vpow2.f32 %v10331_v20 }
0x22a9   :  { %12218 = vpow2.f32 %v10333_v29 }
0x22af   :  { %v12213_v51 = vpop.eup %12212 }
0x22b0   :  { %5240 = vrot.lane.b32.xlu0 %v12213_v51, %s12593_s23  ;;  %v1874_v51 = vadd.f32 %v14384_v17, %v13905_v12 }
0x22b4   :  { %v12215_v11 = vpop.eup %12214 }
0x22b5   :  { %5337 = vrot.lane.b32.xlu1 %v12215_v11, %s12593_s23  ;;  %v12217_v56 = vpop.eup %12216 }
0x22b6   :  { %v5234_v42 = vadd.f32 1.0, %v12217_v56  ;;  %v12219_v39 = vpop.eup %12218 }
0x22b7   :  { %v5331_v14 = vadd.f32 1.0, %v12219_v39 }
0x22b8   :  { %12220 = vrcp.f32 %v5234_v42 }
0x22b9   :  { %12222 = vrcp.f32 %v5331_v14 }
0x22c5   :  { %v12221_v3 = vpop.eup %12220 }
0x22c6   :  { %v12223_v26 = vpop.eup %12222  ;;  %v5238_v22 = vmul.f32 %v12221_v3, %v14446_v6 }
0x22c7   :  { %v5335_v34 = vmul.f32 %v12223_v26, %v14448_v25 }
0x2322   :  { %v5241_v52 = vpop.permute.xlu0 %5240 }
0x2323   :  { %v5243_v54 = vmul.f32 %v12221_v3, %v5241_v52 }
0x2325   :  { %5245 = vrot.lane.b32.xlu0 %v5243_v54, %s12594_s24 }
0x2327   :  { %v5338_v47 = vpop.permute.xlu1 %5337 }
0x2328   :  { %v5340_v40 = vmul.f32 %v12223_v26, %v5338_v47 }
0x232a   :  { %5342 = vrot.lane.b32.xlu1 %v5340_v40, %s12594_s24 }
0x2397   :  { %v5246_v58 = vpop.permute.xlu0 %5245 }
0x2398   :  { %v14497_v16 = vadd.f32 %v5246_v58, %v5238_v22 }
0x239a   :  { %12224 = vtanh.f32 %v14497_v16 }
0x239c   :  { %v5343_v24 = vpop.permute.xlu1 %5342 }
0x239d   :  { %v14501_v9 = vadd.f32 %v5343_v24, %v5335_v34 }
0x239f   :  { %12226 = vtanh.f32 %v14501_v9 }
0x23a7   :  { %v12225_v59 = vpop.eup %12224 }
0x23a8   :  { %5251 = vrot.lane.b32.xlu0 %v12225_v59, %s12593_s23 }
0x23ac   :  { %v12227_v15 = vpop.eup %12226 }
0x23ad   :  { %5348 = vrot.lane.b32.xlu1 %v12227_v15, %s12593_s23 }
0x241a   :  { %v5252_v27 = vpop.permute.xlu0 %5251 }
0x241b   :  { %v5254_v6 = vmul.f32 %v12221_v3, %v5252_v27 }
0x241d   :  { %5353 = vrot.lane.b32.xlu0 %v5254_v6, %s12594_s24 }
0x241f   :  { %v5349_v41 = vpop.permute.xlu1 %5348 }
0x2420   :  { %v5351_v60 = vmul.f32 %v12223_v26, %v5349_v41 }
0x2422   :  { %5428 = vrot.lane.b32.xlu1 %v5351_v60, %s12594_s24 }
0x248f   :  { %v5354_v25 = vpop.permute.xlu0 %5353 }
0x2490   :  { %11376 = vmatmul.mubr.msk.f32.vlgmr.msra.gmra.mxu0 %vm1988_vm2, %v5354_v25 }
0x2491   :  { %11390 = vmatpush3.msra.mxu0 %v14234_v46  ;;  %11397 = vmatprep.mubr.msk.f32.mxu0 %vm12592_vm1, %v15595_v50 }
0x2492   :  { %11391 = vmatprep.subr.mxu0 %v15595_v50 }
0x2493   :  { %11392 = vmatpush3.msra.mxu0 %v14243_v21 }
0x2494   :  { %11393 = vmatprep.subr.mxu0 %v15595_v50  ;;  %v5429_v45 = vpop.permute.xlu1 %5428 }
0x2495   :  { %11394 = vmatpush3.msra.mxu0 %v14250_v49  ;;  %11387 = vmatmul.mubr.msk.f32.vlgmr.msra.gmra.mxu1 %vm1988_vm2, %v5429_v45 }
0x2496   :  { %11395 = vmatprep.subr.mxu0 %v15595_v50  ;;  %11401 = vmatpush3.msra.mxu1 %v14258_v30 }
0x2497   :  { %11396 = vmatpush3.msra.mxu0 %v14264_v19  ;;  %11402 = vmatprep.subr.mxu1 %v15595_v50 }
0x2498   :  { %11398 = vmatmul.mubr.msk.f32.vlgmr.msra.gmra.mxu0 %vm1988_vm2, %v5429_v45  ;;  %11411 = vmatprep.subr.mxu0 %v15595_v50 }
0x2499   :  { %11412 = vmatpush3.msra.mxu0 %v14273_v10  ;;  %11403 = vmatpush3.msra.mxu1 %v14279_v8 }
0x249a   :  { %11413 = vmatprep.subr.mxu0 %v15595_v50  ;;  %11404 = vmatprep.subr.mxu1 %v15595_v50 }
0x249b   :  { %11414 = vmatpush3.msra.mxu0 %v14287_v18  ;;  %11405 = vmatpush3.msra.mxu1 %v14293_v31 }
0x249c   :  { %11415 = vmatprep.subr.mxu0 %v15595_v50  ;;  %11406 = vmatprep.subr.mxu1 %v15595_v50 }
0x249d   :  { %11416 = vmatpush3.msra.mxu0 %v14301_v13  ;;  %11407 = vmatpush3.msra.mxu1 %v14307_v37 }
0x249e   :  { %11417 = vmatprep.subr.mxu0 %v15595_v50  ;;  %11419 = vmatprep.mubr.msk.f32.mxu0 %vm12592_vm1, %v15595_v50 }
0x249f   :  { %11418 = vmatpush3.msra.mxu0 %v14316_v53  ;;  %11408 = vmatprep.mubr.msk.f32.mxu1 %vm12592_vm1, %v15595_v50 }
0x24a0   :  { %11422 = vmatprep.subr.mxu1 %v15595_v50  ;;  %11433 = vmatprep.subr.mxu0 %v15595_v50 }
0x2550   :  { %v5423_v36 = vpop.f32.mrf.mxu0 }
0x2552   :  { %v11377_v55 = vpop.f32.mrf.mxu0 }
0x2555   :  { %v5498_v7 = vpop.f32.mrf.mxu1 }
0x2556   :  { %v5499_v33 = vadd.f32 %v5498_v7, %v5423_v36 }
0x2557   :  { %v11388_v11 = vpop.f32.mrf.mxu1 }
0x2558   :  { %v5502_v20 = vadd.f32 %v14378_v28, %v5499_v33  ;;  %v5595_v29 = vpop.f32.mrf.mxu0 }
0x2559   :  { %v5599_v56 = vadd.f32 %v5595_v29, %v1874_v51 }
0x255a   :  { %12228 = vtanh.f32 %v5502_v20  ;;  %v11399_v42 = vpop.f32.mrf.mxu0  ;;  %v10336_v3 = vmul.f32 -1.442695, %v5502_v20 }
0x255b   :  { %12230 = vtanh.f32 %v5599_v56  ;;  %v10338_v52 = vmul.f32 -1.442695, %v5599_v56 }
0x255c   :  { %12232 = vpow2.f32 %v10336_v3 }
0x255d   :  { %12234 = vpow2.f32 %v10338_v52 }
0x2567   :  { %v12229_v39 = vpop.eup %12228 }
0x2568   :  { %v12231_v14 = vpop.eup %12230  ;;  %5512 = vrot.lane.b32.xlu0 %v12229_v39, %s12593_s23 }
0x2569   :  { %5609 = vrot.lane.b32.xlu1 %v12231_v14, %s12593_s23  ;;  %v12233_v54 = vpop.eup %12232  ;;  %v1879_v14 = vadd.f32 %v14384_v17, %v13911_v2 }
0x256a   :  { %v12235_v12 = vpop.eup %12234  ;;  %v5506_v26 = vadd.f32 1.0, %v12233_v54 }
0x256b   :  { %v5603_v47 = vadd.f32 1.0, %v12235_v12 }
0x256c   :  { %12236 = vrcp.f32 %v5506_v26 }
0x256d   :  { %12238 = vrcp.f32 %v5603_v47 }
0x2579   :  { %v12237_v40 = vpop.eup %12236 }
0x257a   :  { %v12239_v58 = vpop.eup %12238  ;;  %v5510_v15 = vmul.f32 %v12237_v40, %v14497_v16 }
0x257b   :  { %v5607_v27 = vmul.f32 %v12239_v58, %v14501_v9 }
0x25da   :  { %v5513_v22 = vpop.permute.xlu0 %5512 }
0x25db   :  { %v5610_v34 = vpop.permute.xlu1 %5609  ;;  %v5515_v24 = vmul.f32 %v12237_v40, %v5513_v22 }
0x25dc   :  { %v5612_v59 = vmul.f32 %v12239_v58, %v5610_v34 }
0x25dd   :  { %5517 = vrot.lane.b32.xlu0 %v5515_v24, %s12594_s24 }
0x25de   :  { %5614 = vrot.lane.b32.xlu1 %v5612_v59, %s12594_s24 }
0x264f   :  { %v5518_v6 = vpop.permute.xlu0 %5517 }
0x2650   :  { %v5615_v41 = vpop.permute.xlu1 %5614  ;;  %v14550_v60 = vadd.f32 %v5518_v6, %v5510_v15 }
0x2651   :  { %v14552_v25 = vadd.f32 %v5615_v41, %v5607_v27 }
0x2652   :  { %12240 = vtanh.f32 %v14550_v60 }
0x2653   :  { %12242 = vtanh.f32 %v14552_v25 }
0x265f   :  { %v12241_v45 = vpop.eup %12240 }
0x2660   :  { %v12243_v36 = vpop.eup %12242  ;;  %5523 = vrot.lane.b32.xlu0 %v12241_v45, %s12593_s23 }
0x2661   :  { %5620 = vrot.lane.b32.xlu1 %v12243_v36, %s12593_s23 }
0x26d2   :  { %v5524_v55 = vpop.permute.xlu0 %5523 }
0x26d3   :  { %v5621_v16 = vpop.permute.xlu1 %5620  ;;  %v5526_v7 = vmul.f32 %v12237_v40, %v5524_v55 }
0x26d4   :  { %v5623_v9 = vmul.f32 %v12239_v58, %v5621_v16 }
0x26d5   :  { %5625 = vrot.lane.b32.xlu0 %v5526_v7, %s12594_s24 }
0x26d6   :  { %5700 = vrot.lane.b32.xlu1 %v5623_v9, %s12594_s24 }
0x2747   :  { %v5626_v33 = vpop.permute.xlu0 %5625 }
0x2748   :  { %v5701_v51 = vpop.permute.xlu1 %5700  ;;  %11409 = vmatmul.mubr.msk.f32.vlgmr.msra.gmra.mxu1 %vm1988_vm2, %v5626_v33 }
0x2749   :  { %11420 = vmatmul.mubr.msk.f32.vlgmr.msra.gmra.mxu0 %vm1988_vm2, %v5701_v51  ;;  %11423 = vmatpush3.msra.mxu1 %v14234_v46 }
0x274a   :  { %11424 = vmatprep.subr.mxu1 %v15595_v50  ;;  %11430 = vmatprep.mubr.msk.f32.mxu1 %vm12592_vm1, %v15595_v50 }
0x274b   :  { %11425 = vmatpush3.msra.mxu1 %v14243_v21  ;;  %11434 = vmatpush3.msra.mxu0 %v14258_v30 }
0x274c   :  { %11426 = vmatprep.subr.mxu1 %v15595_v50  ;;  %11435 = vmatprep.subr.mxu0 %v15595_v50 }
0x274d   :  { %11427 = vmatpush3.msra.mxu1 %v14250_v49  ;;  %11436 = vmatpush3.msra.mxu0 %v14279_v8 }
0x274e   :  { %11428 = vmatprep.subr.mxu1 %v15595_v50  ;;  %11437 = vmatprep.subr.mxu0 %v15595_v50 }
0x274f   :  { %11429 = vmatpush3.msra.mxu1 %v14264_v19  ;;  %11438 = vmatpush3.msra.mxu0 %v14293_v31 }
0x2750   :  { %11431 = vmatmul.mubr.msk.f32.vlgmr.msra.gmra.mxu1 %vm1988_vm2, %v5701_v51  ;;  %11439 = vmatprep.subr.mxu0 %v15595_v50 }
0x2751   :  { %11444 = vmatprep.subr.mxu1 %v15595_v50  ;;  %11440 = vmatpush3.msra.mxu0 %v14307_v37 }
0x2752   :  { %11445 = vmatpush3.msra.mxu1 %v14273_v10  ;;  %11441 = vmatprep.mubr.msk.f32.mxu0 %vm12592_vm1, %v15595_v50 }
0x2753   :  { %11446 = vmatprep.subr.mxu1 %v15595_v50  ;;  %11455 = vmatprep.subr.mxu0 %v15595_v50 }
0x2754   :  { %11447 = vmatpush3.msra.mxu1 %v14287_v18  ;;  %11452 = vmatprep.mubr.msk.f32.mxu1 %vm12592_vm1, %v15595_v50 }
0x2755   :  { %11448 = vmatprep.subr.mxu1 %v15595_v50 }
0x2756   :  { %11449 = vmatpush3.msra.mxu1 %v14301_v13 }
0x2757   :  { %11450 = vmatprep.subr.mxu1 %v15595_v50 }
0x2758   :  { %11451 = vmatpush3.msra.mxu1 %v14316_v53 }
0x2759   :  { %11466 = vmatprep.subr.mxu1 %v15595_v50 }
0x2808   :  { %v5695_v11 = vpop.f32.mrf.mxu1 }
0x2809   :  { %v5770_v20 = vpop.f32.mrf.mxu0 }
0x280a   :  { %v5771_v29 = vadd.f32 %v5770_v20, %v5695_v11  ;;  %v11410_v56 = vpop.f32.mrf.mxu1 }
0x280b   :  { %v11421_v42 = vpop.f32.mrf.mxu0 }
0x280c   :  { %v5774_v39 = vadd.f32 %v14378_v28, %v5771_v29 }
0x280e   :  { %12244 = vtanh.f32 %v5774_v39  ;;  %v10341_v47 = vmul.f32 -1.442695, %v5774_v39 }
0x2810   :  { %v5867_v3 = vpop.f32.mrf.mxu1 }
0x2811   :  { %v5871_v52 = vadd.f32 %v5867_v3, %v1879_v14 }
0x2812   :  { %v11432_v54 = vpop.f32.mrf.mxu1 }
0x2813   :  { %12246 = vtanh.f32 %v5871_v52  ;;  %v10343_v40 = vmul.f32 -1.442695, %v5871_v52 }
0x2814   :  { %12248 = vpow2.f32 %v10341_v47 }
0x2815   :  { %12250 = vpow2.f32 %v10343_v40 }
0x281b   :  { %v12245_v12 = vpop.eup %12244 }
0x281c   :  { %5784 = vrot.lane.b32.xlu0 %v12245_v12, %s12593_s23 }
0x2820   :  { %v12247_v26 = vpop.eup %12246 }
0x2821   :  { %5881 = vrot.lane.b32.xlu1 %v12247_v26, %s12593_s23  ;;  %v12249_v22 = vpop.eup %12248 }
0x2822   :  { %v5778_v58 = vadd.f32 1.0, %v12249_v22  ;;  %v12251_v34 = vpop.eup %12250 }
0x2823   :  { %v5875_v24 = vadd.f32 1.0, %v12251_v34 }
0x2824   :  { %12252 = vrcp.f32 %v5778_v58 }
0x2825   :  { %12254 = vrcp.f32 %v5875_v24 }
0x2831   :  { %v12253_v2 = vpop.eup %12252 }
0x2832   :  { %v12255_v27 = vpop.eup %12254  ;;  %v5782_v45 = vmul.f32 %v12253_v2, %v14550_v60 }
0x2833   :  { %v5879_v16 = vmul.f32 %v12255_v27, %v14552_v25 }
0x288e   :  { %v5785_v59 = vpop.permute.xlu0 %5784 }
0x288f   :  { %v5787_v15 = vmul.f32 %v12253_v2, %v5785_v59 }
0x2891   :  { %5789 = vrot.lane.b32.xlu0 %v5787_v15, %s12594_s24 }
0x2893   :  { %v5882_v6 = vpop.permute.xlu1 %5881 }
0x2894   :  { %v5884_v41 = vmul.f32 %v12255_v27, %v5882_v6 }
0x2896   :  { %5886 = vrot.lane.b32.xlu1 %v5884_v41, %s12594_s24 }
0x2903   :  { %v5790_v36 = vpop.permute.xlu0 %5789 }
0x2904   :  { %v14601_v55 = vadd.f32 %v5790_v36, %v5782_v45 }
0x2906   :  { %12256 = vtanh.f32 %v14601_v55 }
0x2908   :  { %v5887_v7 = vpop.permute.xlu1 %5886 }
0x2909   :  { %v14605_v9 = vadd.f32 %v5887_v7, %v5879_v16 }
0x290b   :  { %12258 = vtanh.f32 %v14605_v9 }
0x2913   :  { %v12257_v33 = vpop.eup %12256 }
0x2914   :  { %5795 = vrot.lane.b32.xlu0 %v12257_v33, %s12593_s23  ;;  %v14678_v33 = vld [vmem:[%s15559_s4 + $0x10] sm:$0xff] }
0x2918   :  { %v12259_v51 = vpop.eup %12258 }
0x2919   :  { %5892 = vrot.lane.b32.xlu1 %v12259_v51, %s12593_s23  ;;  %v14684_v51 = vld [vmem:[%s15562_s7 + $0x18] sm:$0xff] }
0x2986   :  { %v5796_v11 = vpop.permute.xlu0 %5795 }
0x2987   :  { %v5798_v60 = vmul.f32 %v12253_v2, %v5796_v11  ;;  %v14692_v11 = vld [vmem:[%s15559_s4 + $0x8] sm:$0xff] }
0x2989   :  { %5897 = vrot.lane.b32.xlu0 %v5798_v60, %s12594_s24  ;;  %v14698_v60 = vld [vmem:[%s15562_s7 + $0x10] sm:$0xff] }
0x298b   :  { %v5893_v20 = vpop.permute.xlu1 %5892 }
0x298c   :  { %v5895_v29 = vmul.f32 %v12255_v27, %v5893_v20  ;;  %v14706_v20 = vld [vmem:[%s15559_s4] sm:$0xff] }
0x298e   :  { %5972 = vrot.lane.b32.xlu1 %v5895_v29, %s12594_s24  ;;  %v14712_v29 = vld [vmem:[%s15562_s7 + $0x8] sm:$0xff] }
0x29fb   :  { %v5898_v25 = vpop.permute.xlu0 %5897 }
0x29fc   :  { %11442 = vmatmul.mubr.msk.f32.vlgmr.msra.gmra.mxu0 %vm1988_vm2, %v5898_v25  ;;  %v14721_v25 = vld [vmem:[%s15562_s7] sm:$0xff] }
0x29fd   :  { %11456 = vmatpush3.msra.mxu0 %v14234_v46  ;;  %11463 = vmatprep.mubr.msk.f32.mxu0 %vm12592_vm1, %v15595_v50 }
0x29fe   :  { %11457 = vmatprep.subr.mxu0 %v15595_v50 }
0x29ff   :  { %11458 = vmatpush3.msra.mxu0 %v14243_v21 }
0x2a00   :  { %11459 = vmatprep.subr.mxu0 %v15595_v50  ;;  %v5973_v56 = vpop.permute.xlu1 %5972 }
0x2a01   :  { %11460 = vmatpush3.msra.mxu0 %v14250_v49  ;;  %11453 = vmatmul.mubr.msk.f32.vlgmr.msra.gmra.mxu1 %vm1988_vm2, %v5973_v56 }
0x2a02   :  { %11461 = vmatprep.subr.mxu0 %v15595_v50  ;;  %11467 = vmatpush3.msra.mxu1 %v14258_v30 }
0x2a03   :  { %11462 = vmatpush3.msra.mxu0 %v14264_v19  ;;  %11468 = vmatprep.subr.mxu1 %v15595_v50  ;;  %v1884_v19 = vadd.f32 %v14384_v17, %v13909_v4 }
0x2a04   :  { %11464 = vmatmul.mubr.msk.f32.vlgmr.msra.gmra.mxu0 %vm1988_vm2, %v5973_v56  ;;  %11477 = vmatprep.subr.mxu0 %v15595_v50  ;;  %v14727_v56 = vld [vmem:[%s15563_s6 + $0x18] sm:$0xff] }
0x2a05   :  { %11478 = vmatpush3.msra.mxu0 %v14273_v10  ;;  %11469 = vmatpush3.msra.mxu1 %v14279_v8 }
0x2a06   :  { %11479 = vmatprep.subr.mxu0 %v15595_v50  ;;  %11470 = vmatprep.subr.mxu1 %v15595_v50 }
0x2a07   :  { %11480 = vmatpush3.msra.mxu0 %v14287_v18  ;;  %11471 = vmatpush3.msra.mxu1 %v14293_v31 }
0x2a08   :  { %11481 = vmatprep.subr.mxu0 %v15595_v50  ;;  %11472 = vmatprep.subr.mxu1 %v15595_v50 }
0x2a09   :  { %11482 = vmatpush3.msra.mxu0 %v14301_v13  ;;  %11473 = vmatpush3.msra.mxu1 %v14307_v37 }
0x2a0a   :  { %11483 = vmatprep.subr.mxu0 %v15595_v50  ;;  %11485 = vmatprep.mubr.msk.f32.mxu0 %vm12592_vm1, %v15595_v50 }
0x2a0b   :  { %11484 = vmatpush3.msra.mxu0 %v14316_v53  ;;  %11474 = vmatprep.mubr.msk.f32.mxu1 %vm12592_vm1, %v15595_v50 }
0x2a0c   :  { %11488 = vmatprep.subr.mxu1 %v15595_v50  ;;  %11499 = vmatprep.subr.mxu0 %v15595_v50 }
0x2abc   :  { %v5967_v46 = vpop.f32.mrf.mxu0 }
0x2abe   :  { %v11443_v21 = vpop.f32.mrf.mxu0 }
0x2abf   :  { %v14746_v21 = vld [vmem:[%s15563_s6 + $0x8] sm:$0xff] }
0x2ac1   :  { %v6042_v49 = vpop.f32.mrf.mxu1 }
0x2ac2   :  { %v6043_v30 = vadd.f32 %v6042_v49, %v5967_v46  ;;  %v14737_v46 = vld [vmem:[%s15563_s6 + $0x10] sm:$0xff]  ;;  %v14753_v49 = vld [vmem:[%s15563_s6] sm:$0xff] }
0x2ac3   :  { %v11454_v10 = vpop.f32.mrf.mxu1 }
0x2ac4   :  { %v6046_v8 = vadd.f32 %v14378_v28, %v6043_v30  ;;  %v6139_v18 = vpop.f32.mrf.mxu0 }
0x2ac5   :  { %v6143_v31 = vadd.f32 %v6139_v18, %v1884_v19 }
0x2ac6   :  { %12260 = vtanh.f32 %v6046_v8  ;;  %v11465_v13 = vpop.f32.mrf.mxu0  ;;  %v10346_v42 = vmul.f32 -1.442695, %v6046_v8 }
0x2ac7   :  { %12262 = vtanh.f32 %v6143_v31  ;;  %v10348_v39 = vmul.f32 -1.442695, %v6143_v31  ;;  %v1889_v13 = vadd.f32 %v14384_v17, %v13915_v35 }
0x2ac8   :  { %12264 = vpow2.f32 %v10346_v42 }
0x2ac9   :  { %12266 = vpow2.f32 %v10348_v39 }
0x2ad3   :  { %v12261_v37 = vpop.eup %12260 }
0x2ad4   :  { %v12263_v53 = vpop.eup %12262  ;;  %6056 = vrot.lane.b32.xlu0 %v12261_v37, %s12593_s23 }
0x2ad5   :  { %6153 = vrot.lane.b32.xlu1 %v12263_v53, %s12593_s23  ;;  %v12265_v14 = vpop.eup %12264 }
0x2ad6   :  { %v12267_v4 = vpop.eup %12266  ;;  %v6050_v3 = vadd.f32 1.0, %v12265_v14 }
0x2ad7   :  { %v6147_v52 = vadd.f32 1.0, %v12267_v4 }
0x2ad8   :  { %12268 = vrcp.f32 %v6050_v3 }
0x2ad9   :  { %12270 = vrcp.f32 %v6147_v52 }
0x2ae5   :  { %v12269_v54 = vpop.eup %12268 }
0x2ae6   :  { %v12271_v26 = vpop.eup %12270  ;;  %v6054_v58 = vmul.f32 %v12269_v54, %v14601_v55 }
0x2ae7   :  { %v6151_v34 = vmul.f32 %v12271_v26, %v14605_v9  ;;  %v14669_v9 = vld [vmem:[%s15559_s4 + $0x18] sm:$0xff] }
0x2b46   :  { %v6057_v12 = vpop.permute.xlu0 %6056 }
0x2b47   :  { %v6154_v47 = vpop.permute.xlu1 %6153  ;;  %v6059_v40 = vmul.f32 %v12269_v54, %v6057_v12 }
0x2b48   :  { %v6156_v22 = vmul.f32 %v12271_v26, %v6154_v47 }
0x2b49   :  { %6061 = vrot.lane.b32.xlu0 %v6059_v40, %s12594_s24 }
0x2b4a   :  { %6158 = vrot.lane.b32.xlu1 %v6156_v22, %s12594_s24 }
0x2bbb   :  { %v6062_v24 = vpop.permute.xlu0 %6061 }
0x2bbc   :  { %v6159_v2 = vpop.permute.xlu1 %6158  ;;  %v14654_v59 = vadd.f32 %v6062_v24, %v6054_v58 }
0x2bbd   :  { %v14656_v15 = vadd.f32 %v6159_v2, %v6151_v34 }
0x2bbe   :  { %12272 = vtanh.f32 %v14654_v59 }
0x2bbf   :  { %12274 = vtanh.f32 %v14656_v15 }
0x2bcb   :  { %v12273_v27 = vpop.eup %12272 }
0x2bcc   :  { %v12275_v6 = vpop.eup %12274  ;;  %6067 = vrot.lane.b32.xlu0 %v12273_v27, %s12593_s23 }
0x2bcd   :  { %6164 = vrot.lane.b32.xlu1 %v12275_v6, %s12593_s23 }
0x2c3e   :  { %v6068_v41 = vpop.permute.xlu0 %6067 }
0x2c3f   :  { %v6165_v45 = vpop.permute.xlu1 %6164  ;;  %v6070_v36 = vmul.f32 %v12269_v54, %v6068_v41 }
0x2c40   :  { %v6167_v55 = vmul.f32 %v12271_v26, %v6165_v45 }
0x2c41   :  { %6169 = vrot.lane.b32.xlu0 %v6070_v36, %s12594_s24 }
0x2c42   :  { %6244 = vrot.lane.b32.xlu1 %v6167_v55, %s12594_s24 }
0x2cb3   :  { %v6170_v16 = vpop.permute.xlu0 %6169 }
0x2cb4   :  { %v6245_v7 = vpop.permute.xlu1 %6244  ;;  %11475 = vmatmul.mubr.msk.f32.vlgmr.msra.gmra.mxu1 %vm1988_vm2, %v6170_v16 }
0x2cb5   :  { %11486 = vmatmul.mubr.msk.f32.vlgmr.msra.gmra.mxu0 %vm1988_vm2, %v6245_v7  ;;  %11489 = vmatpush3.msra.mxu1 %v14669_v9 }
0x2cb6   :  { %11490 = vmatprep.subr.mxu1 %v15595_v50  ;;  %11496 = vmatprep.mubr.msk.f32.mxu1 %vm12592_vm1, %v15595_v50 }
0x2cb7   :  { %11491 = vmatpush3.msra.mxu1 %v14678_v33  ;;  %11500 = vmatpush3.msra.mxu0 %v14684_v51 }
0x2cb8   :  { %11492 = vmatprep.subr.mxu1 %v15595_v50  ;;  %11501 = vmatprep.subr.mxu0 %v15595_v50 }
0x2cb9   :  { %11493 = vmatpush3.msra.mxu1 %v14692_v11  ;;  %11502 = vmatpush3.msra.mxu0 %v14698_v60 }
0x2cba   :  { %11494 = vmatprep.subr.mxu1 %v15595_v50  ;;  %11503 = vmatprep.subr.mxu0 %v15595_v50 }
0x2cbb   :  { %11495 = vmatpush3.msra.mxu1 %v14706_v20  ;;  %11504 = vmatpush3.msra.mxu0 %v14712_v29 }
0x2cbc   :  { %11497 = vmatmul.mubr.msk.f32.vlgmr.msra.gmra.mxu1 %vm1988_vm2, %v6245_v7  ;;  %11505 = vmatprep.subr.mxu0 %v15595_v50 }
0x2cbd   :  { %11510 = vmatprep.subr.mxu1 %v15595_v50  ;;  %11506 = vmatpush3.msra.mxu0 %v14721_v25 }
0x2cbe   :  { %11511 = vmatpush3.msra.mxu1 %v14727_v56  ;;  %11507 = vmatprep.mubr.msk.f32.mxu0 %vm12592_vm1, %v15595_v50 }
0x2cbf   :  { %11512 = vmatprep.subr.mxu1 %v15595_v50  ;;  %11521 = vmatprep.subr.mxu0 %v15595_v50 }
0x2cc0   :  { %11513 = vmatpush3.msra.mxu1 %v14737_v46  ;;  %11518 = vmatprep.mubr.msk.f32.mxu1 %vm12592_vm1, %v15595_v50 }
0x2cc1   :  { %11514 = vmatprep.subr.mxu1 %v15595_v50 }
0x2cc2   :  { %11515 = vmatpush3.msra.mxu1 %v14746_v21 }
0x2cc3   :  { %11516 = vmatprep.subr.mxu1 %v15595_v50 }
0x2cc4   :  { %11517 = vmatpush3.msra.mxu1 %v14753_v49 }
0x2cc5   :  { %11532 = vmatprep.subr.mxu1 %v15595_v50 }
0x2d74   :  { %v6239_v30 = vpop.f32.mrf.mxu1 }
0x2d75   :  { %v6314_v19 = vpop.f32.mrf.mxu0 }
0x2d76   :  { %v6315_v10 = vadd.f32 %v6314_v19, %v6239_v30  ;;  %v11476_v8 = vpop.f32.mrf.mxu1 }
0x2d77   :  { %v11487_v18 = vpop.f32.mrf.mxu0 }
0x2d78   :  { %v6318_v31 = vadd.f32 %v14378_v28, %v6315_v10  ;;  %v14812_v18 = vld [vmem:[%s15561_s5] ss:$0 sm:$0xff] }
0x2d7a   :  { %12276 = vtanh.f32 %v6318_v31  ;;  %v10351_v4 = vmul.f32 -1.442695, %v6318_v31  ;;  %v1894_v31 = vadd.f32 %v14812_v18, %v13913_v43 }
0x2d7c   :  { %v6411_v37 = vpop.f32.mrf.mxu1 }
0x2d7d   :  { %v6415_v53 = vadd.f32 %v6411_v37, %v1889_v13  ;;  %v14819_v37 = vld [vmem:[%s15564_s8] ss:$0 sm:$0xff] }
0x2d7e   :  { %v11498_v42 = vpop.f32.mrf.mxu1 }
0x2d7f   :  { %12278 = vtanh.f32 %v6415_v53  ;;  %v10353_v3 = vmul.f32 -1.442695, %v6415_v53 }
0x2d80   :  { %12280 = vpow2.f32 %v10351_v4 }
0x2d81   :  { %12282 = vpow2.f32 %v10353_v3 }
0x2d87   :  { %v12277_v39 = vpop.eup %12276 }
0x2d88   :  { %6328 = vrot.lane.b32.xlu0 %v12277_v39, %s12593_s23 }
0x2d8c   :  { %v12279_v14 = vpop.eup %12278 }
0x2d8d   :  { %6425 = vrot.lane.b32.xlu1 %v12279_v14, %s12593_s23  ;;  %v12281_v52 = vpop.eup %12280 }
0x2d8e   :  { %v6322_v28 = vadd.f32 1.0, %v12281_v52  ;;  %v12283_v54 = vpop.eup %12282 }
0x2d8f   :  { %v6419_v12 = vadd.f32 1.0, %v12283_v54 }
0x2d90   :  { %12284 = vrcp.f32 %v6322_v28 }
0x2d91   :  { %12286 = vrcp.f32 %v6419_v12 }
0x2d9d   :  { %v12285_v35 = vpop.eup %12284 }
0x2d9e   :  { %v12287_v47 = vpop.eup %12286  ;;  %v6326_v58 = vmul.f32 %v12285_v35, %v14654_v59 }
0x2d9f   :  { %v6423_v2 = vmul.f32 %v12287_v47, %v14656_v15 }
0x2dfa   :  { %v6329_v17 = vpop.permute.xlu0 %6328 }
0x2dfb   :  { %v6331_v26 = vmul.f32 %v12285_v35, %v6329_v17 }
0x2dfd   :  { %6333 = vrot.lane.b32.xlu0 %v6331_v26, %s12594_s24 }
0x2dff   :  { %v6426_v40 = vpop.permute.xlu1 %6425 }
0x2e00   :  { %v6428_v22 = vmul.f32 %v12287_v47, %v6426_v40 }
0x2e02   :  { %6430 = vrot.lane.b32.xlu1 %v6428_v22, %s12594_s24 }
0x2e6f   :  { %v6334_v34 = vpop.permute.xlu0 %6333 }
0x2e70   :  { %v14765_v24 = vadd.f32 %v6334_v34, %v6326_v58 }
0x2e72   :  { %12288 = vtanh.f32 %v14765_v24 }
0x2e74   :  { %v6431_v27 = vpop.permute.xlu1 %6430 }
0x2e75   :  { %v14769_v6 = vadd.f32 %v6431_v27, %v6423_v2 }
0x2e77   :  { %12290 = vtanh.f32 %v14769_v6 }
0x2e7f   :  { %v12289_v41 = vpop.eup %12288 }
0x2e80   :  { %6339 = vrot.lane.b32.xlu0 %v12289_v41, %s12593_s23 }
0x2e84   :  { %v12291_v45 = vpop.eup %12290 }
0x2e85   :  { %6436 = vrot.lane.b32.xlu1 %v12291_v45, %s12593_s23 }
0x2ef2   :  { %v6340_v36 = vpop.permute.xlu0 %6339 }
0x2ef3   :  { %v6342_v59 = vmul.f32 %v12285_v35, %v6340_v36 }
0x2ef5   :  { %6441 = vrot.lane.b32.xlu0 %v6342_v59, %s12594_s24 }
0x2ef7   :  { %v6437_v55 = vpop.permute.xlu1 %6436 }
0x2ef8   :  { %v6439_v16 = vmul.f32 %v12287_v47, %v6437_v55 }
0x2efa   :  { %6516 = vrot.lane.b32.xlu1 %v6439_v16, %s12594_s24 }
0x2f67   :  { %v6442_v15 = vpop.permute.xlu0 %6441 }
0x2f68   :  { %11508 = vmatmul.mubr.msk.f32.vlgmr.msra.gmra.mxu0 %vm1988_vm2, %v6442_v15 }
0x2f69   :  { %11522 = vmatpush3.msra.mxu0 %v14669_v9  ;;  %11529 = vmatprep.mubr.msk.f32.mxu0 %vm12592_vm1, %v15595_v50 }
0x2f6a   :  { %11523 = vmatprep.subr.mxu0 %v15595_v50 }
0x2f6b   :  { %11524 = vmatpush3.msra.mxu0 %v14678_v33 }
0x2f6c   :  { %11525 = vmatprep.subr.mxu0 %v15595_v50  ;;  %v6517_v7 = vpop.permute.xlu1 %6516 }
0x2f6d   :  { %11526 = vmatpush3.msra.mxu0 %v14692_v11  ;;  %11519 = vmatmul.mubr.msk.f32.vlgmr.msra.gmra.mxu1 %vm1988_vm2, %v6517_v7 }
0x2f6e   :  { %11527 = vmatprep.subr.mxu0 %v15595_v50  ;;  %11533 = vmatpush3.msra.mxu1 %v14684_v51 }
0x2f6f   :  { %11528 = vmatpush3.msra.mxu0 %v14706_v20  ;;  %11534 = vmatprep.subr.mxu1 %v15595_v50 }
0x2f70   :  { %11530 = vmatmul.mubr.msk.f32.vlgmr.msra.gmra.mxu0 %vm1988_vm2, %v6517_v7  ;;  %11543 = vmatprep.subr.mxu0 %v15595_v50 }
0x2f71   :  { %11544 = vmatpush3.msra.mxu0 %v14727_v56  ;;  %11535 = vmatpush3.msra.mxu1 %v14698_v60 }
0x2f72   :  { %11545 = vmatprep.subr.mxu0 %v15595_v50  ;;  %11536 = vmatprep.subr.mxu1 %v15595_v50 }
0x2f73   :  { %11546 = vmatpush3.msra.mxu0 %v14737_v46  ;;  %11537 = vmatpush3.msra.mxu1 %v14712_v29 }
0x2f74   :  { %11547 = vmatprep.subr.mxu0 %v15595_v50  ;;  %11538 = vmatprep.subr.mxu1 %v15595_v50 }
0x2f75   :  { %11548 = vmatpush3.msra.mxu0 %v14746_v21  ;;  %11539 = vmatpush3.msra.mxu1 %v14721_v25 }
0x2f76   :  { %11549 = vmatprep.subr.mxu0 %v15595_v50  ;;  %11551 = vmatprep.mubr.msk.f32.mxu0 %vm12592_vm1, %v15595_v50 }
0x2f77   :  { %11550 = vmatpush3.msra.mxu0 %v14753_v49  ;;  %11540 = vmatprep.mubr.msk.f32.mxu1 %vm12592_vm1, %v15595_v50 }
0x2f78   :  { %11554 = vmatprep.subr.mxu1 %v15595_v50  ;;  %11565 = vmatprep.subr.mxu0 %v15595_v50 }
0x3028   :  { %v6511_v30 = vpop.f32.mrf.mxu0 }
0x302a   :  { %v11509_v19 = vpop.f32.mrf.mxu0 }
0x302d   :  { %v6586_v10 = vpop.f32.mrf.mxu1 }
0x302e   :  { %v6587_v8 = vadd.f32 %v6586_v10, %v6511_v30 }
0x302f   :  { %v11520_v13 = vpop.f32.mrf.mxu1 }
0x3030   :  { %v6590_v53 = vadd.f32 %v14819_v37, %v6587_v8  ;;  %v6683_v42 = vpop.f32.mrf.mxu0 }
0x3031   :  { %v6687_v39 = vadd.f32 %v6683_v42, %v1894_v31  ;;  %v1899_v42 = vadd.f32 %v14812_v18, %v13919_v32 }
0x3032   :  { %12292 = vtanh.f32 %v6590_v53  ;;  %v11531_v14 = vpop.f32.mrf.mxu0  ;;  %v10356_v43 = vmul.f32 -1.442695, %v6590_v53 }
0x3033   :  { %12294 = vtanh.f32 %v6687_v39  ;;  %v10358_v52 = vmul.f32 -1.442695, %v6687_v39 }
0x3034   :  { %12296 = vpow2.f32 %v10356_v43 }
0x3035   :  { %12298 = vpow2.f32 %v10358_v52 }
0x303f   :  { %v12293_v4 = vpop.eup %12292 }
0x3040   :  { %v12295_v3 = vpop.eup %12294  ;;  %6600 = vrot.lane.b32.xlu0 %v12293_v4, %s12593_s23 }
0x3041   :  { %6697 = vrot.lane.b32.xlu1 %v12295_v3, %s12593_s23  ;;  %v12297_v28 = vpop.eup %12296 }
0x3042   :  { %v12299_v54 = vpop.eup %12298  ;;  %v6594_v12 = vadd.f32 1.0, %v12297_v28 }
0x3043   :  { %v6691_v35 = vadd.f32 1.0, %v12299_v54 }
0x3044   :  { %12300 = vrcp.f32 %v6594_v12 }
0x3045   :  { %12302 = vrcp.f32 %v6691_v35 }
0x3051   :  { %v12301_v17 = vpop.eup %12300 }
0x3052   :  { %v12303_v47 = vpop.eup %12302  ;;  %v6598_v34 = vmul.f32 %v12301_v17, %v14765_v24 }
0x3053   :  { %v6695_v2 = vmul.f32 %v12303_v47, %v14769_v6 }
0x30b2   :  { %v6601_v26 = vpop.permute.xlu0 %6600 }
0x30b3   :  { %v6698_v40 = vpop.permute.xlu1 %6697  ;;  %v6603_v22 = vmul.f32 %v12301_v17, %v6601_v26 }
0x30b4   :  { %v6700_v58 = vmul.f32 %v12303_v47, %v6698_v40 }
0x30b5   :  { %6605 = vrot.lane.b32.xlu0 %v6603_v22, %s12594_s24 }
0x30b6   :  { %6702 = vrot.lane.b32.xlu1 %v6700_v58, %s12594_s24 }
0x3127   :  { %v6606_v27 = vpop.permute.xlu0 %6605 }
0x3128   :  { %v6703_v41 = vpop.permute.xlu1 %6702  ;;  %v14828_v45 = vadd.f32 %v6606_v27, %v6598_v34 }
0x3129   :  { %v14830_v36 = vadd.f32 %v6703_v41, %v6695_v2 }
0x312a   :  { %12304 = vtanh.f32 %v14828_v45 }
0x312b   :  { %12306 = vtanh.f32 %v14830_v36 }
0x3137   :  { %v12305_v59 = vpop.eup %12304 }
0x3138   :  { %v12307_v55 = vpop.eup %12306  ;;  %6611 = vrot.lane.b32.xlu0 %v12305_v59, %s12593_s23 }
0x3139   :  { %6708 = vrot.lane.b32.xlu1 %v12307_v55, %s12593_s23 }
0x31aa   :  { %v6612_v16 = vpop.permute.xlu0 %6611 }
0x31ab   :  { %v6709_v24 = vpop.permute.xlu1 %6708  ;;  %v6614_v15 = vmul.f32 %v12301_v17, %v6612_v16 }
0x31ac   :  { %v6711_v6 = vmul.f32 %v12303_v47, %v6709_v24 }
0x31ad   :  { %6713 = vrot.lane.b32.xlu0 %v6614_v15, %s12594_s24 }
0x31ae   :  { %6788 = vrot.lane.b32.xlu1 %v6711_v6, %s12594_s24 }
0x321f   :  { %v6714_v7 = vpop.permute.xlu0 %6713 }
0x3220   :  { %v6789_v30 = vpop.permute.xlu1 %6788  ;;  %11541 = vmatmul.mubr.msk.f32.vlgmr.msra.gmra.mxu1 %vm1988_vm2, %v6714_v7 }
0x3221   :  { %11552 = vmatmul.mubr.msk.f32.vlgmr.msra.gmra.mxu0 %vm1988_vm2, %v6789_v30  ;;  %11555 = vmatpush3.msra.mxu1 %v14669_v9 }
0x3222   :  { %11556 = vmatprep.subr.mxu1 %v15595_v50  ;;  %11562 = vmatprep.mubr.msk.f32.mxu1 %vm12592_vm1, %v15595_v50 }
0x3223   :  { %11557 = vmatpush3.msra.mxu1 %v14678_v33  ;;  %11566 = vmatpush3.msra.mxu0 %v14684_v51 }
0x3224   :  { %11558 = vmatprep.subr.mxu1 %v15595_v50  ;;  %11567 = vmatprep.subr.mxu0 %v15595_v50 }
0x3225   :  { %11559 = vmatpush3.msra.mxu1 %v14692_v11  ;;  %11568 = vmatpush3.msra.mxu0 %v14698_v60 }
0x3226   :  { %11560 = vmatprep.subr.mxu1 %v15595_v50  ;;  %11569 = vmatprep.subr.mxu0 %v15595_v50 }
0x3227   :  { %11561 = vmatpush3.msra.mxu1 %v14706_v20  ;;  %11570 = vmatpush3.msra.mxu0 %v14712_v29 }
0x3228   :  { %11563 = vmatmul.mubr.msk.f32.vlgmr.msra.gmra.mxu1 %vm1988_vm2, %v6789_v30  ;;  %11571 = vmatprep.subr.mxu0 %v15595_v50 }
0x3229   :  { %11576 = vmatprep.subr.mxu1 %v15595_v50  ;;  %11572 = vmatpush3.msra.mxu0 %v14721_v25 }
0x322a   :  { %11577 = vmatpush3.msra.mxu1 %v14727_v56  ;;  %11573 = vmatprep.mubr.msk.f32.mxu0 %vm12592_vm1, %v15595_v50 }
0x322b   :  { %11578 = vmatprep.subr.mxu1 %v15595_v50  ;;  %11587 = vmatprep.subr.mxu0 %v15595_v50 }
0x322c   :  { %11579 = vmatpush3.msra.mxu1 %v14737_v46  ;;  %11584 = vmatprep.mubr.msk.f32.mxu1 %vm12592_vm1, %v15595_v50 }
0x322d   :  { %11580 = vmatprep.subr.mxu1 %v15595_v50 }
0x322e   :  { %11581 = vmatpush3.msra.mxu1 %v14746_v21 }
0x322f   :  { %11582 = vmatprep.subr.mxu1 %v15595_v50 }
0x3230   :  { %11583 = vmatpush3.msra.mxu1 %v14753_v49 }
0x3231   :  { %11598 = vmatprep.subr.mxu1 %v15595_v50 }
0x32e0   :  { %v6783_v19 = vpop.f32.mrf.mxu1 }
0x32e1   :  { %v6858_v10 = vpop.f32.mrf.mxu0 }
0x32e2   :  { %v6859_v8 = vadd.f32 %v6858_v10, %v6783_v19  ;;  %v11542_v31 = vpop.f32.mrf.mxu1 }
0x32e3   :  { %v11553_v13 = vpop.f32.mrf.mxu0 }
0x32e4   :  { %v6862_v53 = vadd.f32 %v14819_v37, %v6859_v8  ;;  %v1904_v13 = vadd.f32 %v14812_v18, %v13917_v62 }
0x32e6   :  { %12308 = vtanh.f32 %v6862_v53  ;;  %v10361_v52 = vmul.f32 -1.442695, %v6862_v53 }
0x32e8   :  { %v6955_v39 = vpop.f32.mrf.mxu1 }
0x32e9   :  { %v6959_v14 = vadd.f32 %v6955_v39, %v1899_v42 }
0x32ea   :  { %v11564_v4 = vpop.f32.mrf.mxu1 }
0x32eb   :  { %12310 = vtanh.f32 %v6959_v14  ;;  %v10363_v28 = vmul.f32 -1.442695, %v6959_v14 }
0x32ec   :  { %12312 = vpow2.f32 %v10361_v52 }
0x32ed   :  { %12314 = vpow2.f32 %v10363_v28 }
0x32f3   :  { %v12309_v3 = vpop.eup %12308 }
0x32f4   :  { %6872 = vrot.lane.b32.xlu0 %v12309_v3, %s12593_s23 }
0x32f8   :  { %v12311_v43 = vpop.eup %12310 }
0x32f9   :  { %6969 = vrot.lane.b32.xlu1 %v12311_v43, %s12593_s23  ;;  %v12313_v54 = vpop.eup %12312 }
0x32fa   :  { %v6866_v12 = vadd.f32 1.0, %v12313_v54  ;;  %v12315_v35 = vpop.eup %12314 }
0x32fb   :  { %v6963_v17 = vadd.f32 1.0, %v12315_v35 }
0x32fc   :  { %12316 = vrcp.f32 %v6866_v12 }
0x32fd   :  { %12318 = vrcp.f32 %v6963_v17 }
0x3309   :  { %v12317_v32 = vpop.eup %12316 }
0x330a   :  { %v12319_v40 = vpop.eup %12318  ;;  %v6870_v34 = vmul.f32 %v12317_v32, %v14828_v45 }
0x330b   :  { %v6967_v41 = vmul.f32 %v12319_v40, %v14830_v36 }
0x3366   :  { %v6873_v26 = vpop.permute.xlu0 %6872 }
0x3367   :  { %v6875_v47 = vmul.f32 %v12317_v32, %v6873_v26 }
0x3369   :  { %6877 = vrot.lane.b32.xlu0 %v6875_v47, %s12594_s24 }
0x336b   :  { %v6970_v22 = vpop.permute.xlu1 %6969 }
0x336c   :  { %v6972_v58 = vmul.f32 %v12319_v40, %v6970_v22 }
0x336e   :  { %6974 = vrot.lane.b32.xlu1 %v6972_v58, %s12594_s24 }
0x33db   :  { %v6878_v2 = vpop.permute.xlu0 %6877 }
0x33dc   :  { %v14879_v27 = vadd.f32 %v6878_v2, %v6870_v34 }
0x33de   :  { %12320 = vtanh.f32 %v14879_v27 }
0x33e0   :  { %v6975_v59 = vpop.permute.xlu1 %6974 }
0x33e1   :  { %v14883_v55 = vadd.f32 %v6975_v59, %v6967_v41 }
0x33e3   :  { %12322 = vtanh.f32 %v14883_v55 }
0x33eb   :  { %v12321_v16 = vpop.eup %12320 }
0x33ec   :  { %6883 = vrot.lane.b32.xlu0 %v12321_v16, %s12593_s23 }
0x33f0   :  { %v12323_v24 = vpop.eup %12322 }
0x33f1   :  { %6980 = vrot.lane.b32.xlu1 %v12323_v24, %s12593_s23 }
0x345e   :  { %v6884_v15 = vpop.permute.xlu0 %6883 }
0x345f   :  { %v6886_v45 = vmul.f32 %v12317_v32, %v6884_v15 }
0x3461   :  { %6985 = vrot.lane.b32.xlu0 %v6886_v45, %s12594_s24 }
0x3463   :  { %v6981_v6 = vpop.permute.xlu1 %6980 }
0x3464   :  { %v6983_v7 = vmul.f32 %v12319_v40, %v6981_v6 }
0x3466   :  { %7060 = vrot.lane.b32.xlu1 %v6983_v7, %s12594_s24 }
0x34d3   :  { %v6986_v36 = vpop.permute.xlu0 %6985 }
0x34d4   :  { %11574 = vmatmul.mubr.msk.f32.vlgmr.msra.gmra.mxu0 %vm1988_vm2, %v6986_v36 }
0x34d5   :  { %11588 = vmatpush3.msra.mxu0 %v14669_v9  ;;  %11595 = vmatprep.mubr.msk.f32.mxu0 %vm12592_vm1, %v15595_v50 }
0x34d6   :  { %11589 = vmatprep.subr.mxu0 %v15595_v50 }
0x34d7   :  { %11590 = vmatpush3.msra.mxu0 %v14678_v33 }
0x34d8   :  { %11591 = vmatprep.subr.mxu0 %v15595_v50  ;;  %v7061_v30 = vpop.permute.xlu1 %7060 }
0x34d9   :  { %11592 = vmatpush3.msra.mxu0 %v14692_v11  ;;  %11585 = vmatmul.mubr.msk.f32.vlgmr.msra.gmra.mxu1 %vm1988_vm2, %v7061_v30 }
0x34da   :  { %11593 = vmatprep.subr.mxu0 %v15595_v50  ;;  %11599 = vmatpush3.msra.mxu1 %v14684_v51 }
0x34db   :  { %11594 = vmatpush3.msra.mxu0 %v14706_v20  ;;  %11600 = vmatprep.subr.mxu1 %v15595_v50 }
0x34dc   :  { %11596 = vmatmul.mubr.msk.f32.vlgmr.msra.gmra.mxu0 %vm1988_vm2, %v7061_v30  ;;  %11609 = vmatprep.subr.mxu0 %v15595_v50 }
0x34dd   :  { %11610 = vmatpush3.msra.mxu0 %v14727_v56  ;;  %11601 = vmatpush3.msra.mxu1 %v14698_v60 }
0x34de   :  { %11611 = vmatprep.subr.mxu0 %v15595_v50  ;;  %11602 = vmatprep.subr.mxu1 %v15595_v50 }
0x34df   :  { %11612 = vmatpush3.msra.mxu0 %v14737_v46  ;;  %11603 = vmatpush3.msra.mxu1 %v14712_v29 }
0x34e0   :  { %11613 = vmatprep.subr.mxu0 %v15595_v50  ;;  %11604 = vmatprep.subr.mxu1 %v15595_v50 }
0x34e1   :  { %11614 = vmatpush3.msra.mxu0 %v14746_v21  ;;  %11605 = vmatpush3.msra.mxu1 %v14721_v25 }
0x34e2   :  { %11615 = vmatprep.subr.mxu0 %v15595_v50  ;;  %11617 = vmatprep.mubr.msk.f32.mxu0 %vm12592_vm1, %v15595_v50 }
0x34e3   :  { %11616 = vmatpush3.msra.mxu0 %v14753_v49  ;;  %11606 = vmatprep.mubr.msk.f32.mxu1 %vm12592_vm1, %v15595_v50 }
0x34e4   :  { %11620 = vmatprep.subr.mxu1 %v15595_v50  ;;  %11631 = vmatprep.subr.mxu0 %v15595_v50 }
0x3594   :  { %v7055_v19 = vpop.f32.mrf.mxu0 }
0x3596   :  { %v11575_v10 = vpop.f32.mrf.mxu0 }
0x3599   :  { %v7130_v8 = vpop.f32.mrf.mxu1 }
0x359a   :  { %v7131_v31 = vadd.f32 %v7130_v8, %v7055_v19 }
0x359b   :  { %v11586_v53 = vpop.f32.mrf.mxu1 }
0x359c   :  { %v7134_v42 = vadd.f32 %v14819_v37, %v7131_v31  ;;  %v7227_v39 = vpop.f32.mrf.mxu0  ;;  %v1909_v53 = vadd.f32 %v14812_v18, %v13923_v44 }
0x359d   :  { %v7231_v14 = vadd.f32 %v7227_v39, %v1904_v13 }
0x359e   :  { %12324 = vtanh.f32 %v7134_v42  ;;  %v11597_v4 = vpop.f32.mrf.mxu0  ;;  %v10366_v52 = vmul.f32 -1.442695, %v7134_v42 }
0x359f   :  { %12326 = vtanh.f32 %v7231_v14  ;;  %v10368_v28 = vmul.f32 -1.442695, %v7231_v14 }
0x35a0   :  { %12328 = vpow2.f32 %v10366_v52 }
0x35a1   :  { %12330 = vpow2.f32 %v10368_v28 }
0x35ab   :  { %v12325_v3 = vpop.eup %12324 }
0x35ac   :  { %v12327_v43 = vpop.eup %12326  ;;  %7144 = vrot.lane.b32.xlu0 %v12325_v3, %s12593_s23 }
0x35ad   :  { %7241 = vrot.lane.b32.xlu1 %v12327_v43, %s12593_s23  ;;  %v12329_v54 = vpop.eup %12328 }
0x35ae   :  { %v12331_v62 = vpop.eup %12330  ;;  %v7138_v12 = vadd.f32 1.0, %v12329_v54 }
0x35af   :  { %v7235_v35 = vadd.f32 1.0, %v12331_v62 }
0x35b0   :  { %12332 = vrcp.f32 %v7138_v12 }
0x35b1   :  { %12334 = vrcp.f32 %v7235_v35 }
0x35bd   :  { %v12333_v17 = vpop.eup %12332 }
0x35be   :  { %v12335_v26 = vpop.eup %12334  ;;  %v7142_v58 = vmul.f32 %v12333_v17, %v14879_v27 }
0x35bf   :  { %v7239_v34 = vmul.f32 %v12335_v26, %v14883_v55 }
0x361e   :  { %v7145_v32 = vpop.permute.xlu0 %7144 }
0x361f   :  { %v7242_v47 = vpop.permute.xlu1 %7241  ;;  %v7147_v40 = vmul.f32 %v12333_v17, %v7145_v32 }
0x3620   :  { %v7244_v22 = vmul.f32 %v12335_v26, %v7242_v47 }
0x3621   :  { %7149 = vrot.lane.b32.xlu0 %v7147_v40, %s12594_s24 }
0x3622   :  { %7246 = vrot.lane.b32.xlu1 %v7244_v22, %s12594_s24 }
0x3693   :  { %v7150_v2 = vpop.permute.xlu0 %7149 }
0x3694   :  { %v7247_v41 = vpop.permute.xlu1 %7246  ;;  %v14932_v59 = vadd.f32 %v7150_v2, %v7142_v58 }
0x3695   :  { %v14934_v16 = vadd.f32 %v7247_v41, %v7239_v34 }
0x3696   :  { %12336 = vtanh.f32 %v14932_v59 }
0x3697   :  { %12338 = vtanh.f32 %v14934_v16 }
0x36a3   :  { %v12337_v24 = vpop.eup %12336 }
0x36a4   :  { %v12339_v15 = vpop.eup %12338  ;;  %7155 = vrot.lane.b32.xlu0 %v12337_v24, %s12593_s23 }
0x36a5   :  { %7252 = vrot.lane.b32.xlu1 %v12339_v15, %s12593_s23 }
0x3716   :  { %v7156_v45 = vpop.permute.xlu0 %7155 }
0x3717   :  { %v7253_v27 = vpop.permute.xlu1 %7252  ;;  %v7158_v6 = vmul.f32 %v12333_v17, %v7156_v45 }
0x3718   :  { %v7255_v55 = vmul.f32 %v12335_v26, %v7253_v27 }
0x3719   :  { %7257 = vrot.lane.b32.xlu0 %v7158_v6, %s12594_s24 }
0x371a   :  { %7332 = vrot.lane.b32.xlu1 %v7255_v55, %s12594_s24 }
0x378b   :  { %v7258_v7 = vpop.permute.xlu0 %7257 }
0x378c   :  { %v7333_v36 = vpop.permute.xlu1 %7332  ;;  %11607 = vmatmul.mubr.msk.f32.vlgmr.msra.gmra.mxu1 %vm1988_vm2, %v7258_v7 }
0x378d   :  { %11618 = vmatmul.mubr.msk.f32.vlgmr.msra.gmra.mxu0 %vm1988_vm2, %v7333_v36  ;;  %11621 = vmatpush3.msra.mxu1 %v14669_v9 }
0x378e   :  { %11622 = vmatprep.subr.mxu1 %v15595_v50  ;;  %11628 = vmatprep.mubr.msk.f32.mxu1 %vm12592_vm1, %v15595_v50 }
0x378f   :  { %11623 = vmatpush3.msra.mxu1 %v14678_v33  ;;  %11632 = vmatpush3.msra.mxu0 %v14684_v51 }
0x3790   :  { %11624 = vmatprep.subr.mxu1 %v15595_v50  ;;  %11633 = vmatprep.subr.mxu0 %v15595_v50 }
0x3791   :  { %11625 = vmatpush3.msra.mxu1 %v14692_v11  ;;  %11634 = vmatpush3.msra.mxu0 %v14698_v60 }
0x3792   :  { %11626 = vmatprep.subr.mxu1 %v15595_v50  ;;  %11635 = vmatprep.subr.mxu0 %v15595_v50 }
0x3793   :  { %11627 = vmatpush3.msra.mxu1 %v14706_v20  ;;  %11636 = vmatpush3.msra.mxu0 %v14712_v29 }
0x3794   :  { %11629 = vmatmul.mubr.msk.f32.vlgmr.msra.gmra.mxu1 %vm1988_vm2, %v7333_v36  ;;  %11637 = vmatprep.subr.mxu0 %v15595_v50 }
0x3795   :  { %11642 = vmatprep.subr.mxu1 %v15595_v50  ;;  %11638 = vmatpush3.msra.mxu0 %v14721_v25 }
0x3796   :  { %11643 = vmatpush3.msra.mxu1 %v14727_v56  ;;  %11639 = vmatprep.mubr.msk.f32.mxu0 %vm12592_vm1, %v15595_v50 }
0x3797   :  { %11644 = vmatprep.subr.mxu1 %v15595_v50  ;;  %11653 = vmatprep.subr.mxu0 %v15595_v50 }
0x3798   :  { %11645 = vmatpush3.msra.mxu1 %v14737_v46  ;;  %11650 = vmatprep.mubr.msk.f32.mxu1 %vm12592_vm1, %v15595_v50 }
0x3799   :  { %11646 = vmatprep.subr.mxu1 %v15595_v50 }
0x379a   :  { %11647 = vmatpush3.msra.mxu1 %v14746_v21 }
0x379b   :  { %11648 = vmatprep.subr.mxu1 %v15595_v50 }
0x379c   :  { %11649 = vmatpush3.msra.mxu1 %v14753_v49 }
0x379d   :  { %11664 = vmatprep.subr.mxu1 %v15595_v50 }
0x384c   :  { %v7327_v30 = vpop.f32.mrf.mxu1 }
0x384d   :  { %v7402_v19 = vpop.f32.mrf.mxu0 }
0x384e   :  { %v7403_v10 = vadd.f32 %v7402_v19, %v7327_v30  ;;  %v11608_v8 = vpop.f32.mrf.mxu1 }
0x384f   :  { %v11619_v31 = vpop.f32.mrf.mxu0 }
0x3850   :  { %v7406_v13 = vadd.f32 %v14819_v37, %v7403_v10  ;;  %v1914_v10 = vadd.f32 %v14812_v18, %v13921_v23 }
0x3852   :  { %12340 = vtanh.f32 %v7406_v13  ;;  %v10371_v43 = vmul.f32 -1.442695, %v7406_v13 }
0x3854   :  { %v7499_v42 = vpop.f32.mrf.mxu1 }
0x3855   :  { %v7503_v39 = vadd.f32 %v7499_v42, %v1909_v53 }
0x3856   :  { %v11630_v14 = vpop.f32.mrf.mxu1 }
0x3857   :  { %12342 = vtanh.f32 %v7503_v39  ;;  %v10373_v52 = vmul.f32 -1.442695, %v7503_v39 }
0x3858   :  { %12344 = vpow2.f32 %v10371_v43 }
0x3859   :  { %12346 = vpow2.f32 %v10373_v52 }
0x385f   :  { %v12341_v4 = vpop.eup %12340 }
0x3860   :  { %7416 = vrot.lane.b32.xlu0 %v12341_v4, %s12593_s23 }
0x3864   :  { %v12343_v3 = vpop.eup %12342 }
0x3865   :  { %7513 = vrot.lane.b32.xlu1 %v12343_v3, %s12593_s23  ;;  %v12345_v28 = vpop.eup %12344 }
0x3866   :  { %v7410_v54 = vadd.f32 1.0, %v12345_v28  ;;  %v12347_v62 = vpop.eup %12346 }
0x3867   :  { %v7507_v12 = vadd.f32 1.0, %v12347_v62 }
0x3868   :  { %12348 = vrcp.f32 %v7410_v54 }
0x3869   :  { %12350 = vrcp.f32 %v7507_v12 }
0x3875   :  { %v12349_v44 = vpop.eup %12348 }
0x3876   :  { %v12351_v32 = vpop.eup %12350  ;;  %v7414_v40 = vmul.f32 %v12349_v44, %v14932_v59 }
0x3877   :  { %v7511_v34 = vmul.f32 %v12351_v32, %v14934_v16 }
0x38d2   :  { %v7417_v35 = vpop.permute.xlu0 %7416 }
0x38d3   :  { %v7419_v17 = vmul.f32 %v12349_v44, %v7417_v35 }
0x38d5   :  { %7421 = vrot.lane.b32.xlu0 %v7419_v17, %s12594_s24 }
0x38d7   :  { %v7514_v26 = vpop.permute.xlu1 %7513 }
0x38d8   :  { %v7516_v47 = vmul.f32 %v12351_v32, %v7514_v26 }
0x38da   :  { %7518 = vrot.lane.b32.xlu1 %v7516_v47, %s12594_s24 }
0x3947   :  { %v7422_v22 = vpop.permute.xlu0 %7421 }
0x3948   :  { %v14983_v58 = vadd.f32 %v7422_v22, %v7414_v40 }
0x394a   :  { %12352 = vtanh.f32 %v14983_v58 }
0x394c   :  { %v7519_v2 = vpop.permute.xlu1 %7518 }
0x394d   :  { %v14987_v41 = vadd.f32 %v7519_v2, %v7511_v34 }
0x394f   :  { %12354 = vtanh.f32 %v14987_v41 }
0x3957   :  { %v12353_v24 = vpop.eup %12352 }
0x3958   :  { %7427 = vrot.lane.b32.xlu0 %v12353_v24, %s12593_s23 }
0x395c   :  { %v12355_v15 = vpop.eup %12354 }
0x395d   :  { %7524 = vrot.lane.b32.xlu1 %v12355_v15, %s12593_s23 }
0x39ca   :  { %v7428_v45 = vpop.permute.xlu0 %7427 }
0x39cb   :  { %v7430_v59 = vmul.f32 %v12349_v44, %v7428_v45 }
0x39cd   :  { %7529 = vrot.lane.b32.xlu0 %v7430_v59, %s12594_s24 }
0x39cf   :  { %v7525_v27 = vpop.permute.xlu1 %7524 }
0x39d0   :  { %v7527_v6 = vmul.f32 %v12351_v32, %v7525_v27 }
0x39d2   :  { %7604 = vrot.lane.b32.xlu1 %v7527_v6, %s12594_s24 }
0x3a3f   :  { %v7530_v16 = vpop.permute.xlu0 %7529 }
0x3a40   :  { %11640 = vmatmul.mubr.msk.f32.vlgmr.msra.gmra.mxu0 %vm1988_vm2, %v7530_v16 }
0x3a41   :  { %11654 = vmatpush3.msra.mxu0 %v14669_v9  ;;  %11661 = vmatprep.mubr.msk.f32.mxu0 %vm12592_vm1, %v15595_v50 }
0x3a42   :  { %11655 = vmatprep.subr.mxu0 %v15595_v50 }
0x3a43   :  { %11656 = vmatpush3.msra.mxu0 %v14678_v33 }
0x3a44   :  { %11657 = vmatprep.subr.mxu0 %v15595_v50  ;;  %v7605_v55 = vpop.permute.xlu1 %7604 }
0x3a45   :  { %11658 = vmatpush3.msra.mxu0 %v14692_v11  ;;  %11651 = vmatmul.mubr.msk.f32.vlgmr.msra.gmra.mxu1 %vm1988_vm2, %v7605_v55 }
0x3a46   :  { %11659 = vmatprep.subr.mxu0 %v15595_v50  ;;  %11665 = vmatpush3.msra.mxu1 %v14684_v51 }
0x3a47   :  { %11660 = vmatpush3.msra.mxu0 %v14706_v20  ;;  %11666 = vmatprep.subr.mxu1 %v15595_v50 }
0x3a48   :  { %11662 = vmatmul.mubr.msk.f32.vlgmr.msra.gmra.mxu0 %vm1988_vm2, %v7605_v55  ;;  %11675 = vmatprep.subr.mxu0 %v15595_v50 }
0x3a49   :  { %11676 = vmatpush3.msra.mxu0 %v14727_v56  ;;  %11667 = vmatpush3.msra.mxu1 %v14698_v60 }
0x3a4a   :  { %11677 = vmatprep.subr.mxu0 %v15595_v50  ;;  %11668 = vmatprep.subr.mxu1 %v15595_v50 }
0x3a4b   :  { %11678 = vmatpush3.msra.mxu0 %v14737_v46  ;;  %11669 = vmatpush3.msra.mxu1 %v14712_v29 }
0x3a4c   :  { %11679 = vmatprep.subr.mxu0 %v15595_v50  ;;  %11670 = vmatprep.subr.mxu1 %v15595_v50 }
0x3a4d   :  { %11680 = vmatpush3.msra.mxu0 %v14746_v21  ;;  %11671 = vmatpush3.msra.mxu1 %v14721_v25 }
0x3a4e   :  { %11681 = vmatprep.subr.mxu0 %v15595_v50  ;;  %11683 = vmatprep.mubr.msk.f32.mxu0 %vm12592_vm1, %v15595_v50 }
0x3a4f   :  { %11682 = vmatpush3.msra.mxu0 %v14753_v49  ;;  %11672 = vmatprep.mubr.msk.f32.mxu1 %vm12592_vm1, %v15595_v50 }
0x3a50   :  { %11686 = vmatprep.subr.mxu1 %v15595_v50  ;;  %11697 = vmatprep.subr.mxu0 %v15595_v50 }
0x3b00   :  { %v7599_v7 = vpop.f32.mrf.mxu0 }
0x3b02   :  { %v11641_v36 = vpop.f32.mrf.mxu0 }
0x3b05   :  { %v7674_v30 = vpop.f32.mrf.mxu1 }
0x3b06   :  { %v7675_v19 = vadd.f32 %v7674_v30, %v7599_v7 }
0x3b07   :  { %v11652_v8 = vpop.f32.mrf.mxu1 }
0x3b08   :  { %v7678_v31 = vadd.f32 %v14819_v37, %v7675_v19  ;;  %v7771_v13 = vpop.f32.mrf.mxu0 }
0x3b09   :  { %v7775_v53 = vadd.f32 %v7771_v13, %v1914_v10 }
0x3b0a   :  { %12356 = vtanh.f32 %v7678_v31  ;;  %v11663_v42 = vpop.f32.mrf.mxu0  ;;  %v10376_v4 = vmul.f32 -1.442695, %v7678_v31 }
0x3b0b   :  { %12358 = vtanh.f32 %v7775_v53  ;;  %v10378_v3 = vmul.f32 -1.442695, %v7775_v53 }
0x3b0c   :  { %12360 = vpow2.f32 %v10376_v4 }
0x3b0d   :  { %12362 = vpow2.f32 %v10378_v3 }
0x3b17   :  { %v12357_v39 = vpop.eup %12356 }
0x3b18   :  { %v12359_v14 = vpop.eup %12358  ;;  %7688 = vrot.lane.b32.xlu0 %v12357_v39, %s12593_s23 }
0x3b19   :  { %7785 = vrot.lane.b32.xlu1 %v12359_v14, %s12593_s23  ;;  %v12361_v43 = vpop.eup %12360 }
0x3b1a   :  { %v12363_v23 = vpop.eup %12362  ;;  %v7682_v52 = vadd.f32 1.0, %v12361_v43 }
0x3b1b   :  { %v7779_v28 = vadd.f32 1.0, %v12363_v23 }
0x3b1c   :  { %12364 = vrcp.f32 %v7682_v52 }
0x3b1d   :  { %12366 = vrcp.f32 %v7779_v28 }
0x3b29   :  { %v12365_v54 = vpop.eup %12364 }
0x3b2a   :  { %v12367_v12 = vpop.eup %12366  ;;  %v7686_v32 = vmul.f32 %v12365_v54, %v14983_v58 }
0x3b2b   :  { %v7783_v26 = vmul.f32 %v12367_v12, %v14987_v41 }
0x3b8a   :  { %v7689_v62 = vpop.permute.xlu0 %7688 }
0x3b8b   :  { %v7786_v44 = vpop.permute.xlu1 %7785  ;;  %v7691_v35 = vmul.f32 %v12365_v54, %v7689_v62 }
0x3b8c   :  { %v7788_v17 = vmul.f32 %v12367_v12, %v7786_v44  ;;  %v15102_v44 = vld [vmem:[%s15559_s4 + $0x18] sm:$0xff] }
0x3b8d   :  { %7693 = vrot.lane.b32.xlu0 %v7691_v35, %s12594_s24  ;;  %v15111_v35 = vld [vmem:[%s15559_s4 + $0x10] sm:$0xff] }
0x3b8e   :  { %7790 = vrot.lane.b32.xlu1 %v7788_v17, %s12594_s24 }
0x3bff   :  { %v7694_v47 = vpop.permute.xlu0 %7693 }
0x3c00   :  { %v7791_v40 = vpop.permute.xlu1 %7790  ;;  %v15036_v22 = vadd.f32 %v7694_v47, %v7686_v32  ;;  %v15118_v32 = vld [vmem:[%s15559_s4 + $0x8] sm:$0xff]  ;;  %v15132_v47 = vld [vmem:[%s15559_s4] sm:$0xff] }
0x3c01   :  { %v15038_v34 = vadd.f32 %v7791_v40, %v7783_v26  ;;  %v15126_v26 = vld [vmem:[%s15562_s7 + $0x18] sm:$0xff] }
0x3c02   :  { %12368 = vtanh.f32 %v15036_v22  ;;  %v15141_v40 = vld [vmem:[%s15563_s6 + $0x18] sm:$0xff] }
0x3c03   :  { %12370 = vtanh.f32 %v15038_v34 }
0x3c0f   :  { %v12369_v2 = vpop.eup %12368 }
0x3c10   :  { %v12371_v24 = vpop.eup %12370  ;;  %7699 = vrot.lane.b32.xlu0 %v12369_v2, %s12593_s23  ;;  %v15161_v2 = vld [vmem:[%s15562_s7 + $0x8] sm:$0xff] }
0x3c11   :  { %7796 = vrot.lane.b32.xlu1 %v12371_v24, %s12593_s23  ;;  %v15169_v24 = vld [vmem:[%s15563_s6 + $0x8] sm:$0xff] }
0x3c82   :  { %v7700_v15 = vpop.permute.xlu0 %7699 }
0x3c83   :  { %v7797_v58 = vpop.permute.xlu1 %7796  ;;  %v7702_v45 = vmul.f32 %v12365_v54, %v7700_v15  ;;  %v15175_v15 = vld [vmem:[%s15562_s7] sm:$0xff] }
0x3c84   :  { %v7799_v41 = vmul.f32 %v12367_v12, %v7797_v58  ;;  %v15184_v58 = vld [vmem:[%s15563_s6] sm:$0xff] }
0x3c85   :  { %7801 = vrot.lane.b32.xlu0 %v7702_v45, %s12594_s24 }
0x3c86   :  { %7876 = vrot.lane.b32.xlu1 %v7799_v41, %s12594_s24 }
0x3cf7   :  { %v7802_v59 = vpop.permute.xlu0 %7801 }
0x3cf8   :  { %v7877_v27 = vpop.permute.xlu1 %7876  ;;  %11673 = vmatmul.mubr.msk.f32.vlgmr.msra.gmra.mxu1 %vm1988_vm2, %v7802_v59 }
0x3cf9   :  { %11684 = vmatmul.mubr.msk.f32.vlgmr.msra.gmra.mxu0 %vm1988_vm2, %v7877_v27  ;;  %11687 = vmatpush3.msra.mxu1 %v14669_v9 }
0x3cfa   :  { %11688 = vmatprep.subr.mxu1 %v15595_v50  ;;  %11694 = vmatprep.mubr.msk.f32.mxu1 %vm12592_vm1, %v15595_v50 }
0x3cfb   :  { %11689 = vmatpush3.msra.mxu1 %v14678_v33  ;;  %11698 = vmatpush3.msra.mxu0 %v14684_v51 }
0x3cfc   :  { %11690 = vmatprep.subr.mxu1 %v15595_v50  ;;  %11699 = vmatprep.subr.mxu0 %v15595_v50 }
0x3cfd   :  { %11691 = vmatpush3.msra.mxu1 %v14692_v11  ;;  %11700 = vmatpush3.msra.mxu0 %v14698_v60 }
0x3cfe   :  { %11692 = vmatprep.subr.mxu1 %v15595_v50  ;;  %11701 = vmatprep.subr.mxu0 %v15595_v50 }
0x3cff   :  { %11693 = vmatpush3.msra.mxu1 %v14706_v20  ;;  %11702 = vmatpush3.msra.mxu0 %v14712_v29  ;;  %v1919_v29 = vadd.f32 %v14812_v18, %v13927_v61 }
0x3d00   :  { %11695 = vmatmul.mubr.msk.f32.vlgmr.msra.gmra.mxu1 %vm1988_vm2, %v7877_v27  ;;  %11703 = vmatprep.subr.mxu0 %v15595_v50 }
0x3d01   :  { %11708 = vmatprep.subr.mxu1 %v15595_v50  ;;  %11704 = vmatpush3.msra.mxu0 %v14721_v25 }
0x3d02   :  { %11709 = vmatpush3.msra.mxu1 %v14727_v56  ;;  %11705 = vmatprep.mubr.msk.f32.mxu0 %vm12592_vm1, %v15595_v50 }
0x3d03   :  { %11710 = vmatprep.subr.mxu1 %v15595_v50  ;;  %11719 = vmatprep.subr.mxu0 %v15595_v50 }
0x3d04   :  { %11711 = vmatpush3.msra.mxu1 %v14737_v46  ;;  %11716 = vmatprep.mubr.msk.f32.mxu1 %vm12592_vm1, %v15595_v50 }
0x3d05   :  { %11712 = vmatprep.subr.mxu1 %v15595_v50 }
0x3d06   :  { %11713 = vmatpush3.msra.mxu1 %v14746_v21 }
0x3d07   :  { %11714 = vmatprep.subr.mxu1 %v15595_v50 }
0x3d08   :  { %11715 = vmatpush3.msra.mxu1 %v14753_v49 }
0x3d09   :  { %11730 = vmatprep.subr.mxu1 %v15595_v50 }
0x3db8   :  { %v7871_v9 = vpop.f32.mrf.mxu1 }
0x3db9   :  { %v7946_v33 = vpop.f32.mrf.mxu0 }
0x3dba   :  { %v7947_v51 = vadd.f32 %v7946_v33, %v7871_v9  ;;  %v11674_v11 = vpop.f32.mrf.mxu1  ;;  %v1924_v9 = vadd.f32 %v14812_v18, %v13925_v1 }
0x3dbb   :  { %v11685_v60 = vpop.f32.mrf.mxu0 }
0x3dbc   :  { %v7950_v20 = vadd.f32 %v14819_v37, %v7947_v51 }
0x3dbe   :  { %12372 = vtanh.f32 %v7950_v20  ;;  %v10381_v6 = vmul.f32 -1.442695, %v7950_v20 }
0x3dc0   :  { %v8043_v25 = vpop.f32.mrf.mxu1 }
0x3dc1   :  { %v8047_v56 = vadd.f32 %v8043_v25, %v1919_v29 }
0x3dc2   :  { %v11696_v46 = vpop.f32.mrf.mxu1 }
0x3dc3   :  { %12374 = vtanh.f32 %v8047_v56  ;;  %v10383_v16 = vmul.f32 -1.442695, %v8047_v56 }
0x3dc4   :  { %12376 = vpow2.f32 %v10381_v6 }
0x3dc5   :  { %12378 = vpow2.f32 %v10383_v16 }
0x3dcb   :  { %v12373_v21 = vpop.eup %12372 }
0x3dcc   :  { %7960 = vrot.lane.b32.xlu0 %v12373_v21, %s12593_s23 }
0x3dd0   :  { %v12375_v49 = vpop.eup %12374 }
0x3dd1   :  { %8057 = vrot.lane.b32.xlu1 %v12375_v49, %s12593_s23  ;;  %v12377_v55 = vpop.eup %12376 }
0x3dd2   :  { %v7954_v7 = vadd.f32 1.0, %v12377_v55  ;;  %v12379_v36 = vpop.eup %12378 }
0x3dd3   :  { %v8051_v30 = vadd.f32 1.0, %v12379_v36 }
0x3dd4   :  { %12380 = vrcp.f32 %v7954_v7 }
0x3dd5   :  { %12382 = vrcp.f32 %v8051_v30 }
0x3de1   :  { %v12381_v61 = vpop.eup %12380 }
0x3de2   :  { %v12383_v8 = vpop.eup %12382  ;;  %v7958_v53 = vmul.f32 %v12381_v61, %v15036_v22  ;;  %v15147_v22 = vld [vmem:[%s15562_s7 + $0x10] sm:$0xff] }
0x3de3   :  { %v8055_v14 = vmul.f32 %v12383_v8, %v15038_v34  ;;  %v15155_v34 = vld [vmem:[%s15563_s6 + $0x10] sm:$0xff] }
0x3e3e   :  { %v7961_v19 = vpop.permute.xlu0 %7960 }
0x3e3f   :  { %v7963_v10 = vmul.f32 %v12381_v61, %v7961_v19 }
0x3e41   :  { %7965 = vrot.lane.b32.xlu0 %v7963_v10, %s12594_s24 }
0x3e43   :  { %v8058_v31 = vpop.permute.xlu1 %8057 }
0x3e44   :  { %v8060_v13 = vmul.f32 %v12383_v8, %v8058_v31 }
0x3e46   :  { %8062 = vrot.lane.b32.xlu1 %v8060_v13, %s12594_s24 }
0x3eb3   :  { %v7966_v42 = vpop.permute.xlu0 %7965 }
0x3eb4   :  { %v15087_v39 = vadd.f32 %v7966_v42, %v7958_v53 }
0x3eb6   :  { %12384 = vtanh.f32 %v15087_v39 }
0x3eb8   :  { %v8063_v4 = vpop.permute.xlu1 %8062 }
0x3eb9   :  { %v15091_v3 = vadd.f32 %v8063_v4, %v8055_v14 }
0x3ebb   :  { %12386 = vtanh.f32 %v15091_v3 }
0x3ec3   :  { %v12385_v43 = vpop.eup %12384 }
0x3ec4   :  { %7971 = vrot.lane.b32.xlu0 %v12385_v43, %s12593_s23 }
0x3ec8   :  { %v12387_v23 = vpop.eup %12386 }
0x3ec9   :  { %8068 = vrot.lane.b32.xlu1 %v12387_v23, %s12593_s23 }
0x3f36   :  { %v7972_v52 = vpop.permute.xlu0 %7971 }
0x3f37   :  { %v7974_v28 = vmul.f32 %v12381_v61, %v7972_v52 }
0x3f39   :  { %8073 = vrot.lane.b32.xlu0 %v7974_v28, %s12594_s24 }
0x3f3b   :  { %v8069_v54 = vpop.permute.xlu1 %8068 }
0x3f3c   :  { %v8071_v62 = vmul.f32 %v12383_v8, %v8069_v54 }
0x3f3e   :  { %8148 = vrot.lane.b32.xlu1 %v8071_v62, %s12594_s24 }
0x3fab   :  { %v8074_v12 = vpop.permute.xlu0 %8073 }
0x3fac   :  { %11706 = vmatmul.mubr.msk.f32.vlgmr.msra.gmra.mxu0 %vm1988_vm2, %v8074_v12  ;;  %v15246_v12 = vld [vmem:[%s15564_s8] ss:$0 sm:$0xff] }
0x3fad   :  { %11720 = vmatpush3.msra.mxu0 %v15102_v44  ;;  %11727 = vmatprep.mubr.msk.f32.mxu0 %vm12592_vm1, %v15595_v50 }
0x3fae   :  { %11721 = vmatprep.subr.mxu0 %v15595_v50 }
0x3faf   :  { %11722 = vmatpush3.msra.mxu0 %v15111_v35 }
0x3fb0   :  { %11723 = vmatprep.subr.mxu0 %v15595_v50  ;;  %v8149_v17 = vpop.permute.xlu1 %8148 }
0x3fb1   :  { %11724 = vmatpush3.msra.mxu0 %v15118_v32  ;;  %11717 = vmatmul.mubr.msk.f32.vlgmr.msra.gmra.mxu1 %vm1988_vm2, %v8149_v17 }
0x3fb2   :  { %11725 = vmatprep.subr.mxu0 %v15595_v50  ;;  %11731 = vmatpush3.msra.mxu1 %v15126_v26 }
0x3fb3   :  { %11726 = vmatpush3.msra.mxu0 %v15132_v47  ;;  %11732 = vmatprep.subr.mxu1 %v15595_v50 }
0x3fb4   :  { %11728 = vmatmul.mubr.msk.f32.vlgmr.msra.gmra.mxu0 %vm1988_vm2, %v8149_v17  ;;  %11741 = vmatprep.subr.mxu0 %v15595_v50 }
0x3fb5   :  { %11742 = vmatpush3.msra.mxu0 %v15141_v40  ;;  %11733 = vmatpush3.msra.mxu1 %v15147_v22 }
0x3fb6   :  { %11743 = vmatprep.subr.mxu0 %v15595_v50  ;;  %11734 = vmatprep.subr.mxu1 %v15595_v50 }
0x3fb7   :  { %11744 = vmatpush3.msra.mxu0 %v15155_v34  ;;  %11735 = vmatpush3.msra.mxu1 %v15161_v2 }
0x3fb8   :  { %11745 = vmatprep.subr.mxu0 %v15595_v50  ;;  %11736 = vmatprep.subr.mxu1 %v15595_v50 }
0x3fb9   :  { %11746 = vmatpush3.msra.mxu0 %v15169_v24  ;;  %11737 = vmatpush3.msra.mxu1 %v15175_v15 }
0x3fba   :  { %11747 = vmatprep.subr.mxu0 %v15595_v50  ;;  %11749 = vmatprep.mubr.msk.f32.mxu0 %vm12592_vm1, %v15595_v50 }
0x3fbb   :  { %11748 = vmatpush3.msra.mxu0 %v15184_v58  ;;  %11738 = vmatprep.mubr.msk.f32.mxu1 %vm12592_vm1, %v15595_v50 }
0x3fbc   :  { %11752 = vmatprep.subr.mxu1 %v15595_v50  ;;  %11763 = vmatprep.subr.mxu0 %v15595_v50 }
0x406c   :  { %v8143_v45 = vpop.f32.mrf.mxu0 }
0x406e   :  { %v11707_v41 = vpop.f32.mrf.mxu0 }
0x4071   :  { %v8218_v59 = vpop.f32.mrf.mxu1 }
0x4072   :  { %v8219_v27 = vadd.f32 %v8218_v59, %v8143_v45  ;;  %v15252_v45 = vld [vmem:[%s15561_s5] ss:$0 sm:$0xff] }
0x4073   :  { %v11718_v33 = vpop.f32.mrf.mxu1  ;;  %v1929_v41 = vadd.f32 %v15252_v45, %v13931_v63 }
0x4074   :  { %v8222_v51 = vadd.f32 %v14819_v37, %v8219_v27  ;;  %v8315_v11 = vpop.f32.mrf.mxu0 }
0x4075   :  { %v8319_v60 = vadd.f32 %v8315_v11, %v1924_v9 }
0x4076   :  { %12388 = vtanh.f32 %v8222_v51  ;;  %v11729_v20 = vpop.f32.mrf.mxu0  ;;  %v10386_v56 = vmul.f32 -1.442695, %v8222_v51 }
0x4077   :  { %12390 = vtanh.f32 %v8319_v60  ;;  %v10388_v46 = vmul.f32 -1.442695, %v8319_v60 }
0x4078   :  { %12392 = vpow2.f32 %v10386_v56 }
0x4079   :  { %12394 = vpow2.f32 %v10388_v46 }
0x4083   :  { %v12389_v29 = vpop.eup %12388 }
0x4084   :  { %v12391_v25 = vpop.eup %12390  ;;  %8232 = vrot.lane.b32.xlu0 %v12389_v29, %s12593_s23 }
0x4085   :  { %8329 = vrot.lane.b32.xlu1 %v12391_v25, %s12593_s23  ;;  %v12393_v21 = vpop.eup %12392 }
0x4086   :  { %v12395_v1 = vpop.eup %12394  ;;  %v8226_v18 = vadd.f32 1.0, %v12393_v21 }
0x4087   :  { %v8323_v49 = vadd.f32 1.0, %v12395_v1 }
0x4088   :  { %12396 = vrcp.f32 %v8226_v18 }
0x4089   :  { %12398 = vrcp.f32 %v8323_v49 }
0x4095   :  { %v12397_v37 = vpop.eup %12396 }
0x4096   :  { %v12399_v16 = vpop.eup %12398  ;;  %v8230_v30 = vmul.f32 %v12397_v37, %v15087_v39 }
0x4097   :  { %v8327_v61 = vmul.f32 %v12399_v16, %v15091_v3 }
0x40f6   :  { %v8233_v6 = vpop.permute.xlu0 %8232 }
0x40f7   :  { %v8330_v55 = vpop.permute.xlu1 %8329  ;;  %v8235_v7 = vmul.f32 %v12397_v37, %v8233_v6 }
0x40f8   :  { %v8332_v36 = vmul.f32 %v12399_v16, %v8330_v55 }
0x40f9   :  { %8237 = vrot.lane.b32.xlu0 %v8235_v7, %s12594_s24 }
0x40fa   :  { %8334 = vrot.lane.b32.xlu1 %v8332_v36, %s12594_s24 }
0x416b   :  { %v8238_v19 = vpop.permute.xlu0 %8237 }
0x416c   :  { %v8335_v10 = vpop.permute.xlu1 %8334  ;;  %v15200_v8 = vadd.f32 %v8238_v19, %v8230_v30 }
0x416d   :  { %v15202_v31 = vadd.f32 %v8335_v10, %v8327_v61 }
0x416e   :  { %12400 = vtanh.f32 %v15200_v8 }
0x416f   :  { %12402 = vtanh.f32 %v15202_v31 }
0x417b   :  { %v12401_v13 = vpop.eup %12400 }
0x417c   :  { %v12403_v53 = vpop.eup %12402  ;;  %8243 = vrot.lane.b32.xlu0 %v12401_v13, %s12593_s23 }
0x417d   :  { %8340 = vrot.lane.b32.xlu1 %v12403_v53, %s12593_s23 }
0x41ee   :  { %v8244_v42 = vpop.permute.xlu0 %8243 }
0x41ef   :  { %v8341_v39 = vpop.permute.xlu1 %8340  ;;  %v8246_v14 = vmul.f32 %v12397_v37, %v8244_v42 }
0x41f0   :  { %v8343_v4 = vmul.f32 %v12399_v16, %v8341_v39 }
0x41f1   :  { %8345 = vrot.lane.b32.xlu0 %v8246_v14, %s12594_s24 }
0x41f2   :  { %8420 = vrot.lane.b32.xlu1 %v8343_v4, %s12594_s24 }
0x4263   :  { %v8346_v3 = vpop.permute.xlu0 %8345 }
0x4264   :  { %v8421_v43 = vpop.permute.xlu1 %8420  ;;  %11739 = vmatmul.mubr.msk.f32.vlgmr.msra.gmra.mxu1 %vm1988_vm2, %v8346_v3  ;;  %v1934_v3 = vadd.f32 %v15252_v45, %v13929_v0 }
0x4265   :  { %11750 = vmatmul.mubr.msk.f32.vlgmr.msra.gmra.mxu0 %vm1988_vm2, %v8421_v43  ;;  %11753 = vmatpush3.msra.mxu1 %v15102_v44 }
0x4266   :  { %11754 = vmatprep.subr.mxu1 %v15595_v50  ;;  %11760 = vmatprep.mubr.msk.f32.mxu1 %vm12592_vm1, %v15595_v50 }
0x4267   :  { %11755 = vmatpush3.msra.mxu1 %v15111_v35  ;;  %11764 = vmatpush3.msra.mxu0 %v15126_v26 }
0x4268   :  { %11756 = vmatprep.subr.mxu1 %v15595_v50  ;;  %11765 = vmatprep.subr.mxu0 %v15595_v50 }
0x4269   :  { %11757 = vmatpush3.msra.mxu1 %v15118_v32  ;;  %11766 = vmatpush3.msra.mxu0 %v15147_v22 }
0x426a   :  { %11758 = vmatprep.subr.mxu1 %v15595_v50  ;;  %11767 = vmatprep.subr.mxu0 %v15595_v50 }
0x426b   :  { %11759 = vmatpush3.msra.mxu1 %v15132_v47  ;;  %11768 = vmatpush3.msra.mxu0 %v15161_v2 }
0x426c   :  { %11761 = vmatmul.mubr.msk.f32.vlgmr.msra.gmra.mxu1 %vm1988_vm2, %v8421_v43  ;;  %11769 = vmatprep.subr.mxu0 %v15595_v50 }
0x426d   :  { %11774 = vmatprep.subr.mxu1 %v15595_v50  ;;  %11770 = vmatpush3.msra.mxu0 %v15175_v15 }
0x426e   :  { %11775 = vmatpush3.msra.mxu1 %v15141_v40  ;;  %11771 = vmatprep.mubr.msk.f32.mxu0 %vm12592_vm1, %v15595_v50 }
0x426f   :  { %11776 = vmatprep.subr.mxu1 %v15595_v50  ;;  %11785 = vmatprep.subr.mxu0 %v15595_v50 }
0x4270   :  { %11777 = vmatpush3.msra.mxu1 %v15155_v34  ;;  %11782 = vmatprep.mubr.msk.f32.mxu1 %vm12592_vm1, %v15595_v50 }
0x4271   :  { %11778 = vmatprep.subr.mxu1 %v15595_v50 }
0x4272   :  { %11779 = vmatpush3.msra.mxu1 %v15169_v24 }
0x4273   :  { %11780 = vmatprep.subr.mxu1 %v15595_v50 }
0x4274   :  { %11781 = vmatpush3.msra.mxu1 %v15184_v58 }
0x4275   :  { %11796 = vmatprep.subr.mxu1 %v15595_v50 }
0x4324   :  { %v8415_v23 = vpop.f32.mrf.mxu1 }
0x4325   :  { %v8490_v52 = vpop.f32.mrf.mxu0 }
0x4326   :  { %v8491_v28 = vadd.f32 %v8490_v52, %v8415_v23  ;;  %v11740_v54 = vpop.f32.mrf.mxu1 }
0x4327   :  { %v11751_v62 = vpop.f32.mrf.mxu0 }
0x4328   :  { %v8494_v17 = vadd.f32 %v15246_v12, %v8491_v28 }
0x432a   :  { %12404 = vtanh.f32 %v8494_v17  ;;  %v10391_v11 = vmul.f32 -1.442695, %v8494_v17 }
0x432c   :  { %v8587_v59 = vpop.f32.mrf.mxu1 }
0x432d   :  { %v8591_v27 = vadd.f32 %v8587_v59, %v1929_v41 }
0x432e   :  { %v11762_v9 = vpop.f32.mrf.mxu1 }
0x432f   :  { %12406 = vtanh.f32 %v8591_v27  ;;  %v10393_v60 = vmul.f32 -1.442695, %v8591_v27 }
0x4330   :  { %12408 = vpow2.f32 %v10391_v11 }
0x4331   :  { %12410 = vpow2.f32 %v10393_v60 }
0x4337   :  { %v12405_v33 = vpop.eup %12404 }
0x4338   :  { %8504 = vrot.lane.b32.xlu0 %v12405_v33, %s12593_s23 }
0x433c   :  { %v12407_v51 = vpop.eup %12406 }
0x433d   :  { %8601 = vrot.lane.b32.xlu1 %v12407_v51, %s12593_s23  ;;  %v12409_v20 = vpop.eup %12408 }
0x433e   :  { %v8498_v29 = vadd.f32 1.0, %v12409_v20  ;;  %v12411_v25 = vpop.eup %12410 }
0x433f   :  { %v8595_v56 = vadd.f32 1.0, %v12411_v25 }
0x4340   :  { %12412 = vrcp.f32 %v8498_v29 }
0x4341   :  { %12414 = vrcp.f32 %v8595_v56 }
0x434d   :  { %v12413_v63 = vpop.eup %12412 }
0x434e   :  { %v12415_v1 = vpop.eup %12414  ;;  %v8502_v37 = vmul.f32 %v12413_v63, %v15200_v8 }
0x434f   :  { %v8599_v55 = vmul.f32 %v12415_v1, %v15202_v31 }
0x43aa   :  { %v8505_v46 = vpop.permute.xlu0 %8504 }
0x43ab   :  { %v8507_v21 = vmul.f32 %v12413_v63, %v8505_v46 }
0x43ad   :  { %8509 = vrot.lane.b32.xlu0 %v8507_v21, %s12594_s24 }
0x43af   :  { %v8602_v18 = vpop.permute.xlu1 %8601 }
0x43b0   :  { %v8604_v49 = vmul.f32 %v12415_v1, %v8602_v18 }
0x43b2   :  { %8606 = vrot.lane.b32.xlu1 %v8604_v49, %s12594_s24 }
0x441f   :  { %v8510_v6 = vpop.permute.xlu0 %8509 }
0x4420   :  { %v15261_v16 = vadd.f32 %v8510_v6, %v8502_v37 }
0x4422   :  { %12416 = vtanh.f32 %v15261_v16 }
0x4424   :  { %v8607_v7 = vpop.permute.xlu1 %8606 }
0x4425   :  { %v15265_v36 = vadd.f32 %v8607_v7, %v8599_v55 }
0x4427   :  { %12418 = vtanh.f32 %v15265_v36 }
0x442f   :  { %v12417_v30 = vpop.eup %12416 }
0x4430   :  { %8515 = vrot.lane.b32.xlu0 %v12417_v30, %s12593_s23 }
0x4434   :  { %v12419_v61 = vpop.eup %12418 }
0x4435   :  { %8612 = vrot.lane.b32.xlu1 %v12419_v61, %s12593_s23 }
0x44a2   :  { %v8516_v19 = vpop.permute.xlu0 %8515 }
0x44a3   :  { %v8518_v10 = vmul.f32 %v12413_v63, %v8516_v19 }
0x44a5   :  { %8617 = vrot.lane.b32.xlu0 %v8518_v10, %s12594_s24 }
0x44a7   :  { %v8613_v8 = vpop.permute.xlu1 %8612 }
0x44a8   :  { %v8615_v13 = vmul.f32 %v12415_v1, %v8613_v8 }
0x44aa   :  { %8692 = vrot.lane.b32.xlu1 %v8615_v13, %s12594_s24 }
0x4517   :  { %v8618_v31 = vpop.permute.xlu0 %8617 }
0x4518   :  { %11772 = vmatmul.mubr.msk.f32.vlgmr.msra.gmra.mxu0 %vm1988_vm2, %v8618_v31 }
0x4519   :  { %11786 = vmatpush3.msra.mxu0 %v15102_v44  ;;  %11793 = vmatprep.mubr.msk.f32.mxu0 %vm12592_vm1, %v15595_v50 }
0x451a   :  { %11787 = vmatprep.subr.mxu0 %v15595_v50 }
0x451b   :  { %11788 = vmatpush3.msra.mxu0 %v15111_v35 }
0x451c   :  { %11789 = vmatprep.subr.mxu0 %v15595_v50  ;;  %v8693_v53 = vpop.permute.xlu1 %8692 }
0x451d   :  { %11790 = vmatpush3.msra.mxu0 %v15118_v32  ;;  %11783 = vmatmul.mubr.msk.f32.vlgmr.msra.gmra.mxu1 %vm1988_vm2, %v8693_v53 }
0x451e   :  { %11791 = vmatprep.subr.mxu0 %v15595_v50  ;;  %11797 = vmatpush3.msra.mxu1 %v15126_v26 }
0x451f   :  { %11792 = vmatpush3.msra.mxu0 %v15132_v47  ;;  %11798 = vmatprep.subr.mxu1 %v15595_v50 }
0x4520   :  { %11794 = vmatmul.mubr.msk.f32.vlgmr.msra.gmra.mxu0 %vm1988_vm2, %v8693_v53  ;;  %11807 = vmatprep.subr.mxu0 %v15595_v50  ;;  %v1939_v53 = vadd.f32 %v15252_v45, %v13935_v38 }
0x4521   :  { %11808 = vmatpush3.msra.mxu0 %v15141_v40  ;;  %11799 = vmatpush3.msra.mxu1 %v15147_v22 }
0x4522   :  { %11809 = vmatprep.subr.mxu0 %v15595_v50  ;;  %11800 = vmatprep.subr.mxu1 %v15595_v50 }
0x4523   :  { %11810 = vmatpush3.msra.mxu0 %v15155_v34  ;;  %11801 = vmatpush3.msra.mxu1 %v15161_v2 }
0x4524   :  { %11811 = vmatprep.subr.mxu0 %v15595_v50  ;;  %11802 = vmatprep.subr.mxu1 %v15595_v50 }
0x4525   :  { %11812 = vmatpush3.msra.mxu0 %v15169_v24  ;;  %11803 = vmatpush3.msra.mxu1 %v15175_v15 }
0x4526   :  { %11813 = vmatprep.subr.mxu0 %v15595_v50  ;;  %11815 = vmatprep.mubr.msk.f32.mxu0 %vm12592_vm1, %v15595_v50 }
0x4527   :  { %11814 = vmatpush3.msra.mxu0 %v15184_v58  ;;  %11804 = vmatprep.mubr.msk.f32.mxu1 %vm12592_vm1, %v15595_v50 }
0x4528   :  { %11818 = vmatprep.subr.mxu1 %v15595_v50  ;;  %11829 = vmatprep.subr.mxu0 %v15595_v50 }
0x45d8   :  { %v8687_v42 = vpop.f32.mrf.mxu0 }
0x45da   :  { %v11773_v39 = vpop.f32.mrf.mxu0 }
0x45dd   :  { %v8762_v14 = vpop.f32.mrf.mxu1 }
0x45de   :  { %v8763_v4 = vadd.f32 %v8762_v14, %v8687_v42 }
0x45df   :  { %v11784_v43 = vpop.f32.mrf.mxu1 }
0x45e0   :  { %v8766_v23 = vadd.f32 %v15246_v12, %v8763_v4  ;;  %v8859_v52 = vpop.f32.mrf.mxu0 }
0x45e1   :  { %v8863_v28 = vadd.f32 %v8859_v52, %v1934_v3 }
0x45e2   :  { %12420 = vtanh.f32 %v8766_v23  ;;  %v11795_v54 = vpop.f32.mrf.mxu0  ;;  %v10396_v41 = vmul.f32 -1.442695, %v8766_v23 }
0x45e3   :  { %12422 = vtanh.f32 %v8863_v28  ;;  %v10398_v59 = vmul.f32 -1.442695, %v8863_v28 }
0x45e4   :  { %12424 = vpow2.f32 %v10396_v41 }
0x45e5   :  { %12426 = vpow2.f32 %v10398_v59 }
0x45ef   :  { %v12421_v62 = vpop.eup %12420 }
0x45f0   :  { %v12423_v17 = vpop.eup %12422  ;;  %8776 = vrot.lane.b32.xlu0 %v12421_v62, %s12593_s23 }
0x45f1   :  { %8873 = vrot.lane.b32.xlu1 %v12423_v17, %s12593_s23  ;;  %v12425_v27 = vpop.eup %12424 }
0x45f2   :  { %v12427_v0 = vpop.eup %12426  ;;  %v8770_v9 = vadd.f32 1.0, %v12425_v27 }
0x45f3   :  { %v8867_v33 = vadd.f32 1.0, %v12427_v0 }
0x45f4   :  { %12428 = vrcp.f32 %v8770_v9 }
0x45f5   :  { %12430 = vrcp.f32 %v8867_v33 }
0x4601   :  { %v12429_v51 = vpop.eup %12428 }
0x4602   :  { %v12431_v60 = vpop.eup %12430  ;;  %v8774_v56 = vmul.f32 %v12429_v51, %v15261_v16 }
0x4603   :  { %v8871_v63 = vmul.f32 %v12431_v60, %v15265_v36 }
0x4662   :  { %v8777_v11 = vpop.permute.xlu0 %8776 }
0x4663   :  { %v8874_v20 = vpop.permute.xlu1 %8873  ;;  %v8779_v29 = vmul.f32 %v12429_v51, %v8777_v11 }
0x4664   :  { %v8876_v25 = vmul.f32 %v12431_v60, %v8874_v20 }
0x4665   :  { %8781 = vrot.lane.b32.xlu0 %v8779_v29, %s12594_s24 }
0x4666   :  { %8878 = vrot.lane.b32.xlu1 %v8876_v25, %s12594_s24 }
0x46d7   :  { %v8782_v46 = vpop.permute.xlu0 %8781 }
0x46d8   :  { %v8879_v21 = vpop.permute.xlu1 %8878  ;;  %v15314_v1 = vadd.f32 %v8782_v46, %v8774_v56 }
0x46d9   :  { %v15316_v18 = vadd.f32 %v8879_v21, %v8871_v63 }
0x46da   :  { %12432 = vtanh.f32 %v15314_v1 }
0x46db   :  { %12434 = vtanh.f32 %v15316_v18 }
0x46e7   :  { %v12433_v49 = vpop.eup %12432 }
0x46e8   :  { %v12435_v37 = vpop.eup %12434  ;;  %8787 = vrot.lane.b32.xlu0 %v12433_v49, %s12593_s23 }
0x46e9   :  { %8884 = vrot.lane.b32.xlu1 %v12435_v37, %s12593_s23 }
0x475a   :  { %v8788_v6 = vpop.permute.xlu0 %8787 }
0x475b   :  { %v8885_v16 = vpop.permute.xlu1 %8884  ;;  %v8790_v55 = vmul.f32 %v12429_v51, %v8788_v6 }
0x475c   :  { %v8887_v7 = vmul.f32 %v12431_v60, %v8885_v16 }
0x475d   :  { %8889 = vrot.lane.b32.xlu0 %v8790_v55, %s12594_s24  ;;  %v1944_v55 = vadd.f32 %v15252_v45, %v13933_v57 }
0x475e   :  { %8964 = vrot.lane.b32.xlu1 %v8887_v7, %s12594_s24 }
0x47cf   :  { %v8890_v36 = vpop.permute.xlu0 %8889 }
0x47d0   :  { %v8965_v30 = vpop.permute.xlu1 %8964  ;;  %11805 = vmatmul.mubr.msk.f32.vlgmr.msra.gmra.mxu1 %vm1988_vm2, %v8890_v36 }
0x47d1   :  { %11816 = vmatmul.mubr.msk.f32.vlgmr.msra.gmra.mxu0 %vm1988_vm2, %v8965_v30  ;;  %11819 = vmatpush3.msra.mxu1 %v15102_v44 }
0x47d2   :  { %11820 = vmatprep.subr.mxu1 %v15595_v50  ;;  %11826 = vmatprep.mubr.msk.f32.mxu1 %vm12592_vm1, %v15595_v50 }
0x47d3   :  { %11821 = vmatpush3.msra.mxu1 %v15111_v35  ;;  %11830 = vmatpush3.msra.mxu0 %v15126_v26 }
0x47d4   :  { %11822 = vmatprep.subr.mxu1 %v15595_v50  ;;  %11831 = vmatprep.subr.mxu0 %v15595_v50 }
0x47d5   :  { %11823 = vmatpush3.msra.mxu1 %v15118_v32  ;;  %11832 = vmatpush3.msra.mxu0 %v15147_v22 }
0x47d6   :  { %11824 = vmatprep.subr.mxu1 %v15595_v50  ;;  %11833 = vmatprep.subr.mxu0 %v15595_v50 }
0x47d7   :  { %11825 = vmatpush3.msra.mxu1 %v15132_v47  ;;  %11834 = vmatpush3.msra.mxu0 %v15161_v2 }
0x47d8   :  { %11827 = vmatmul.mubr.msk.f32.vlgmr.msra.gmra.mxu1 %vm1988_vm2, %v8965_v30  ;;  %11835 = vmatprep.subr.mxu0 %v15595_v50 }
0x47d9   :  { %11840 = vmatprep.subr.mxu1 %v15595_v50  ;;  %11836 = vmatpush3.msra.mxu0 %v15175_v15 }
0x47da   :  { %11841 = vmatpush3.msra.mxu1 %v15141_v40  ;;  %11837 = vmatprep.mubr.msk.f32.mxu0 %vm12592_vm1, %v15595_v50 }
0x47db   :  { %11842 = vmatprep.subr.mxu1 %v15595_v50  ;;  %11851 = vmatprep.subr.mxu0 %v15595_v50 }
0x47dc   :  { %11843 = vmatpush3.msra.mxu1 %v15155_v34  ;;  %11848 = vmatprep.mubr.msk.f32.mxu1 %vm12592_vm1, %v15595_v50 }
0x47dd   :  { %11844 = vmatprep.subr.mxu1 %v15595_v50 }
0x47de   :  { %11845 = vmatpush3.msra.mxu1 %v15169_v24 }
0x47df   :  { %11846 = vmatprep.subr.mxu1 %v15595_v50 }
0x47e0   :  { %11847 = vmatpush3.msra.mxu1 %v15184_v58 }
0x47e1   :  { %11862 = vmatprep.subr.mxu1 %v15595_v50 }
0x4890   :  { %v8959_v61 = vpop.f32.mrf.mxu1 }
0x4891   :  { %v9034_v19 = vpop.f32.mrf.mxu0 }
0x4892   :  { %v9035_v10 = vadd.f32 %v9034_v19, %v8959_v61  ;;  %v11806_v8 = vpop.f32.mrf.mxu1 }
0x4893   :  { %v11817_v13 = vpop.f32.mrf.mxu0 }
0x4894   :  { %v9038_v31 = vadd.f32 %v15246_v12, %v9035_v10 }
0x4896   :  { %12436 = vtanh.f32 %v9038_v31  ;;  %v10401_v43 = vmul.f32 -1.442695, %v9038_v31 }
0x4898   :  { %v9131_v42 = vpop.f32.mrf.mxu1 }
0x4899   :  { %v9135_v39 = vadd.f32 %v9131_v42, %v1939_v53 }
0x489a   :  { %v11828_v14 = vpop.f32.mrf.mxu1 }
0x489b   :  { %12438 = vtanh.f32 %v9135_v39  ;;  %v10403_v23 = vmul.f32 -1.442695, %v9135_v39 }
0x489c   :  { %12440 = vpow2.f32 %v10401_v43 }
0x489d   :  { %12442 = vpow2.f32 %v10403_v23 }
0x48a3   :  { %v12437_v4 = vpop.eup %12436 }
0x48a4   :  { %9048 = vrot.lane.b32.xlu0 %v12437_v4, %s12593_s23 }
0x48a8   :  { %v12439_v3 = vpop.eup %12438 }
0x48a9   :  { %9145 = vrot.lane.b32.xlu1 %v12439_v3, %s12593_s23  ;;  %v12441_v52 = vpop.eup %12440 }
0x48aa   :  { %v9042_v28 = vadd.f32 1.0, %v12441_v52  ;;  %v12443_v54 = vpop.eup %12442 }
0x48ab   :  { %v9139_v62 = vadd.f32 1.0, %v12443_v54 }
0x48ac   :  { %12444 = vrcp.f32 %v9042_v28 }
0x48ad   :  { %12446 = vrcp.f32 %v9139_v62 }
0x48b9   :  { %v12445_v38 = vpop.eup %12444 }
0x48ba   :  { %v12447_v59 = vpop.eup %12446  ;;  %v9046_v9 = vmul.f32 %v12445_v38, %v15314_v1 }
0x48bb   :  { %v9143_v11 = vmul.f32 %v12447_v59, %v15316_v18 }
0x4916   :  { %v9049_v17 = vpop.permute.xlu0 %9048 }
0x4917   :  { %v9051_v41 = vmul.f32 %v12445_v38, %v9049_v17 }
0x4919   :  { %9053 = vrot.lane.b32.xlu0 %v9051_v41, %s12594_s24 }
0x491b   :  { %v9146_v27 = vpop.permute.xlu1 %9145 }
0x491c   :  { %v9148_v0 = vmul.f32 %v12447_v59, %v9146_v27 }
0x491e   :  { %9150 = vrot.lane.b32.xlu1 %v9148_v0, %s12594_s24 }
0x498b   :  { %v9054_v33 = vpop.permute.xlu0 %9053 }
0x498c   :  { %v15365_v51 = vadd.f32 %v9054_v33, %v9046_v9 }
0x498e   :  { %12448 = vtanh.f32 %v15365_v51 }
0x4990   :  { %v9151_v60 = vpop.permute.xlu1 %9150 }
0x4991   :  { %v15369_v20 = vadd.f32 %v9151_v60, %v9143_v11 }
0x4993   :  { %12450 = vtanh.f32 %v15369_v20 }
0x499b   :  { %v12449_v29 = vpop.eup %12448 }
0x499c   :  { %9059 = vrot.lane.b32.xlu0 %v12449_v29, %s12593_s23 }
0x49a0   :  { %v12451_v25 = vpop.eup %12450 }
0x49a1   :  { %9156 = vrot.lane.b32.xlu1 %v12451_v25, %s12593_s23 }
0x4a0e   :  { %v9060_v56 = vpop.permute.xlu0 %9059 }
0x4a0f   :  { %v9062_v63 = vmul.f32 %v12445_v38, %v9060_v56 }
0x4a11   :  { %9161 = vrot.lane.b32.xlu0 %v9062_v63, %s12594_s24 }
0x4a13   :  { %v9157_v46 = vpop.permute.xlu1 %9156 }
0x4a14   :  { %v9159_v21 = vmul.f32 %v12447_v59, %v9157_v46 }
0x4a16   :  { %9236 = vrot.lane.b32.xlu1 %v9159_v21, %s12594_s24  ;;  %v1949_v21 = vadd.f32 %v15252_v45, %v13939_v5 }
0x4a83   :  { %v9162_v1 = vpop.permute.xlu0 %9161 }
0x4a84   :  { %11838 = vmatmul.mubr.msk.f32.vlgmr.msra.gmra.mxu0 %vm1988_vm2, %v9162_v1 }
0x4a85   :  { %11852 = vmatpush3.msra.mxu0 %v15102_v44  ;;  %11859 = vmatprep.mubr.msk.f32.mxu0 %vm12592_vm1, %v15595_v50 }
0x4a86   :  { %11853 = vmatprep.subr.mxu0 %v15595_v50 }
0x4a87   :  { %11854 = vmatpush3.msra.mxu0 %v15111_v35 }
0x4a88   :  { %11855 = vmatprep.subr.mxu0 %v15595_v50  ;;  %v9237_v18 = vpop.permute.xlu1 %9236 }
0x4a89   :  { %11856 = vmatpush3.msra.mxu0 %v15118_v32  ;;  %11849 = vmatmul.mubr.msk.f32.vlgmr.msra.gmra.mxu1 %vm1988_vm2, %v9237_v18 }
0x4a8a   :  { %11857 = vmatprep.subr.mxu0 %v15595_v50  ;;  %11863 = vmatpush3.msra.mxu1 %v15126_v26 }
0x4a8b   :  { %11858 = vmatpush3.msra.mxu0 %v15132_v47  ;;  %11864 = vmatprep.subr.mxu1 %v15595_v50 }
0x4a8c   :  { %11860 = vmatmul.mubr.msk.f32.vlgmr.msra.gmra.mxu0 %vm1988_vm2, %v9237_v18  ;;  %11873 = vmatprep.subr.mxu0 %v15595_v50 }
0x4a8d   :  { %11874 = vmatpush3.msra.mxu0 %v15141_v40  ;;  %11865 = vmatpush3.msra.mxu1 %v15147_v22 }
0x4a8e   :  { %11875 = vmatprep.subr.mxu0 %v15595_v50  ;;  %11866 = vmatprep.subr.mxu1 %v15595_v50 }
0x4a8f   :  { %11876 = vmatpush3.msra.mxu0 %v15155_v34  ;;  %11867 = vmatpush3.msra.mxu1 %v15161_v2 }
0x4a90   :  { %11877 = vmatprep.subr.mxu0 %v15595_v50  ;;  %11868 = vmatprep.subr.mxu1 %v15595_v50 }
0x4a91   :  { %11878 = vmatpush3.msra.mxu0 %v15169_v24  ;;  %11869 = vmatpush3.msra.mxu1 %v15175_v15 }
0x4a92   :  { %11879 = vmatprep.subr.mxu0 %v15595_v50  ;;  %11881 = vmatprep.mubr.msk.f32.mxu0 %vm12592_vm1, %v15595_v50 }
0x4a93   :  { %11880 = vmatpush3.msra.mxu0 %v15184_v58  ;;  %11870 = vmatprep.mubr.msk.f32.mxu1 %vm12592_vm1, %v15595_v50 }
0x4a94   :  { %11884 = vmatprep.subr.mxu1 %v15595_v50  ;;  %11895 = vmatprep.subr.mxu0 %v15595_v50 }
0x4b44   :  { %v9231_v49 = vpop.f32.mrf.mxu0 }
0x4b46   :  { %v11839_v37 = vpop.f32.mrf.mxu0 }
0x4b49   :  { %v9306_v6 = vpop.f32.mrf.mxu1 }
0x4b4a   :  { %v9307_v16 = vadd.f32 %v9306_v6, %v9231_v49 }
0x4b4b   :  { %v11850_v7 = vpop.f32.mrf.mxu1 }
0x4b4c   :  { %v9310_v36 = vadd.f32 %v15246_v12, %v9307_v16  ;;  %v9403_v30 = vpop.f32.mrf.mxu0 }
0x4b4d   :  { %v9407_v61 = vadd.f32 %v9403_v30, %v1944_v55 }
0x4b4e   :  { %12452 = vtanh.f32 %v9310_v36  ;;  %v11861_v19 = vpop.f32.mrf.mxu0  ;;  %v10406_v13 = vmul.f32 -1.442695, %v9310_v36 }
0x4b4f   :  { %12454 = vtanh.f32 %v9407_v61  ;;  %v10408_v31 = vmul.f32 -1.442695, %v9407_v61 }
0x4b50   :  { %12456 = vpow2.f32 %v10406_v13 }
0x4b51   :  { %12458 = vpow2.f32 %v10408_v31 }
0x4b5b   :  { %v12453_v10 = vpop.eup %12452 }
0x4b5c   :  { %v12455_v8 = vpop.eup %12454  ;;  %9320 = vrot.lane.b32.xlu0 %v12453_v10, %s12593_s23 }
0x4b5d   :  { %9417 = vrot.lane.b32.xlu1 %v12455_v8, %s12593_s23  ;;  %v12457_v53 = vpop.eup %12456 }
0x4b5e   :  { %v12459_v57 = vpop.eup %12458  ;;  %v9314_v42 = vadd.f32 1.0, %v12457_v53 }
0x4b5f   :  { %v9411_v39 = vadd.f32 1.0, %v12459_v57 }
0x4b60   :  { %12460 = vrcp.f32 %v9314_v42 }
0x4b61   :  { %12462 = vrcp.f32 %v9411_v39 }
0x4b6d   :  { %v12461_v14 = vpop.eup %12460 }
0x4b6e   :  { %v12463_v3 = vpop.eup %12462  ;;  %v9318_v28 = vmul.f32 %v12461_v14, %v15365_v51 }
0x4b6f   :  { %v9415_v54 = vmul.f32 %v12463_v3, %v15369_v20 }
0x4bce   :  { %v9321_v4 = vpop.permute.xlu0 %9320 }
0x4bcf   :  { %v9418_v43 = vpop.permute.xlu1 %9417  ;;  %v9323_v23 = vmul.f32 %v12461_v14, %v9321_v4 }
0x4bd0   :  { %v9420_v52 = vmul.f32 %v12463_v3, %v9418_v43 }
0x4bd1   :  { %9325 = vrot.lane.b32.xlu0 %v9323_v23, %s12594_s24 }
0x4bd2   :  { %9422 = vrot.lane.b32.xlu1 %v9420_v52, %s12594_s24 }
0x4c43   :  { %v9326_v62 = vpop.permute.xlu0 %9325 }
0x4c44   :  { %v9423_v38 = vpop.permute.xlu1 %9422  ;;  %v15418_v17 = vadd.f32 %v9326_v62, %v9318_v28 }
0x4c45   :  { %v15420_v41 = vadd.f32 %v9423_v38, %v9415_v54 }
0x4c46   :  { %12464 = vtanh.f32 %v15418_v17 }
0x4c47   :  { %12466 = vtanh.f32 %v15420_v41 }
0x4c53   :  { %v12465_v59 = vpop.eup %12464 }
0x4c54   :  { %v12467_v27 = vpop.eup %12466  ;;  %9331 = vrot.lane.b32.xlu0 %v12465_v59, %s12593_s23 }
0x4c55   :  { %9428 = vrot.lane.b32.xlu1 %v12467_v27, %s12593_s23 }
0x4cc6   :  { %v9332_v0 = vpop.permute.xlu0 %9331 }
0x4cc7   :  { %v9429_v9 = vpop.permute.xlu1 %9428  ;;  %v9334_v33 = vmul.f32 %v12461_v14, %v9332_v0 }
0x4cc8   :  { %v9431_v51 = vmul.f32 %v12463_v3, %v9429_v9 }
0x4cc9   :  { %9433 = vrot.lane.b32.xlu0 %v9334_v33, %s12594_s24 }
0x4cca   :  { %9508 = vrot.lane.b32.xlu1 %v9431_v51, %s12594_s24 }
0x4d3b   :  { %v9434_v11 = vpop.permute.xlu0 %9433 }
0x4d3c   :  { %v9509_v60 = vpop.permute.xlu1 %9508  ;;  %11871 = vmatmul.mubr.msk.f32.vlgmr.msra.gmra.mxu1 %vm1988_vm2, %v9434_v11 }
0x4d3d   :  { %11882 = vmatmul.mubr.msk.f32.vlgmr.msra.gmra.mxu0 %vm1988_vm2, %v9509_v60  ;;  %11885 = vmatpush3.msra.mxu1 %v15102_v44 }
0x4d3e   :  { %11886 = vmatprep.subr.mxu1 %v15595_v50  ;;  %11892 = vmatprep.mubr.msk.f32.mxu1 %vm12592_vm1, %v15595_v50 }
0x4d3f   :  { %11887 = vmatpush3.msra.mxu1 %v15111_v35  ;;  %11896 = vmatpush3.msra.mxu0 %v15126_v26 }
0x4d40   :  { %11888 = vmatprep.subr.mxu1 %v15595_v50  ;;  %11897 = vmatprep.subr.mxu0 %v15595_v50 }
0x4d41   :  { %11889 = vmatpush3.msra.mxu1 %v15118_v32  ;;  %11898 = vmatpush3.msra.mxu0 %v15147_v22 }
0x4d42   :  { %11890 = vmatprep.subr.mxu1 %v15595_v50  ;;  %11899 = vmatprep.subr.mxu0 %v15595_v50 }
0x4d43   :  { %11891 = vmatpush3.msra.mxu1 %v15132_v47  ;;  %11900 = vmatpush3.msra.mxu0 %v15161_v2 }
0x4d44   :  { %11893 = vmatmul.mubr.msk.f32.vlgmr.msra.gmra.mxu1 %vm1988_vm2, %v9509_v60  ;;  %11901 = vmatprep.subr.mxu0 %v15595_v50 }
0x4d45   :  { %11906 = vmatprep.subr.mxu1 %v15595_v50  ;;  %11902 = vmatpush3.msra.mxu0 %v15175_v15 }
0x4d46   :  { %11907 = vmatpush3.msra.mxu1 %v15141_v40  ;;  %11903 = vmatprep.mubr.msk.f32.mxu0 %vm12592_vm1, %v15595_v50 }
0x4d47   :  { %11908 = vmatprep.subr.mxu1 %v15595_v50  ;;  %11917 = vmatprep.subr.mxu0 %v15595_v50 }
0x4d48   :  { %11909 = vmatpush3.msra.mxu1 %v15155_v34  ;;  %11914 = vmatprep.mubr.msk.f32.mxu1 %vm12592_vm1, %v15595_v50 }
0x4d49   :  { %11910 = vmatprep.subr.mxu1 %v15595_v50 }
0x4d4a   :  { %11911 = vmatpush3.msra.mxu1 %v15169_v24 }
0x4d4b   :  { %11912 = vmatprep.subr.mxu1 %v15595_v50 }
0x4d4c   :  { %11913 = vmatpush3.msra.mxu1 %v15184_v58 }
0x4d4d   :  { %11928 = vmatprep.subr.mxu1 %v15595_v50 }
0x4dfc   :  { %v9503_v20 = vpop.f32.mrf.mxu1 }
0x4dfd   :  { %v9578_v29 = vpop.f32.mrf.mxu0 }
0x4dfe   :  { %v9579_v25 = vadd.f32 %v9578_v29, %v9503_v20  ;;  %v11872_v56 = vpop.f32.mrf.mxu1 }
0x4dff   :  { %v11883_v63 = vpop.f32.mrf.mxu0 }
0x4e00   :  { %v9582_v46 = vadd.f32 %v15246_v12, %v9579_v25 }
0x4e02   :  { %12468 = vtanh.f32 %v9582_v46  ;;  %v10411_v16 = vmul.f32 -1.442695, %v9582_v46 }
0x4e04   :  { %v9675_v1 = vpop.f32.mrf.mxu1 }
0x4e05   :  { %v9679_v18 = vadd.f32 %v9675_v1, %v1949_v21 }
0x4e06   :  { %v11894_v49 = vpop.f32.mrf.mxu1 }
0x4e07   :  { %12470 = vtanh.f32 %v9679_v18  ;;  %v10413_v55 = vmul.f32 -1.442695, %v9679_v18 }
0x4e08   :  { %12472 = vpow2.f32 %v10411_v16 }
0x4e09   :  { %12474 = vpow2.f32 %v10413_v55 }
0x4e0f   :  { %v12469_v37 = vpop.eup %12468 }
0x4e10   :  { %9592 = vrot.lane.b32.xlu0 %v12469_v37, %s12593_s23 }
0x4e14   :  { %v12471_v6 = vpop.eup %12470 }
0x4e15   :  { %9689 = vrot.lane.b32.xlu1 %v12471_v6, %s12593_s23  ;;  %v12473_v7 = vpop.eup %12472 }
0x4e16   :  { %v9586_v36 = vadd.f32 1.0, %v12473_v7  ;;  %v12475_v30 = vpop.eup %12474 }
0x4e17   :  { %v9683_v61 = vadd.f32 1.0, %v12475_v30 }
0x4e18   :  { %12476 = vrcp.f32 %v9586_v36 }
0x4e19   :  { %12478 = vrcp.f32 %v9683_v61 }
0x4e25   :  { %v12477_v5 = vpop.eup %12476 }
0x4e26   :  { %v12479_v8 = vpop.eup %12478  ;;  %v9590_v53 = vmul.f32 %v12477_v5, %v15418_v17 }
0x4e27   :  { %v9687_v39 = vmul.f32 %v12479_v8, %v15420_v41 }
0x4e82   :  { %v9593_v19 = vpop.permute.xlu0 %9592 }
0x4e83   :  { %v9595_v10 = vmul.f32 %v12477_v5, %v9593_v19 }
0x4e85   :  { %9597 = vrot.lane.b32.xlu0 %v9595_v10, %s12594_s24 }
0x4e87   :  { %v9690_v13 = vpop.permute.xlu1 %9689 }
0x4e88   :  { %v9692_v31 = vmul.f32 %v12479_v8, %v9690_v13 }
0x4e8a   :  { %9694 = vrot.lane.b32.xlu1 %v9692_v31, %s12594_s24 }
0x4ef7   :  { %v9598_v57 = vpop.permute.xlu0 %9597 }
0x4ef8   :  { %v15469_v42 = vadd.f32 %v9598_v57, %v9590_v53 }
0x4efa   :  { %12480 = vtanh.f32 %v15469_v42 }
0x4efc   :  { %v9695_v14 = vpop.permute.xlu1 %9694 }
0x4efd   :  { %v15473_v4 = vadd.f32 %v9695_v14, %v9687_v39 }
0x4eff   :  { %12482 = vtanh.f32 %v15473_v4 }
0x4f07   :  { %v12481_v3 = vpop.eup %12480 }
0x4f08   :  { %9603 = vrot.lane.b32.xlu0 %v12481_v3, %s12593_s23  ;;  %v10153_v3 = vld [vmem:[%s15565_s9 + $0x10] sm:$0xff] }
0x4f0c   :  { %v12483_v43 = vpop.eup %12482 }
0x4f0d   :  { %9700 = vrot.lane.b32.xlu1 %v12483_v43, %s12593_s23  ;;  %v10152_v43 = vld [vmem:[%s15565_s9 + $0x8] sm:$0xff] }
0x4f7a   :  { %v9604_v23 = vpop.permute.xlu0 %9603 }
0x4f7b   :  { %v9606_v52 = vmul.f32 %v12477_v5, %v9604_v23  ;;  %v10151_v23 = vld [vmem:[%s15565_s9] sm:$0xff] }
0x4f7d   :  { %9705 = vrot.lane.b32.xlu0 %v9606_v52, %s12594_s24 }
0x4f7f   :  { %v9701_v28 = vpop.permute.xlu1 %9700 }
0x4f80   :  { %v9703_v54 = vmul.f32 %v12479_v8, %v9701_v28 }
0x4f82   :  { %9780 = vrot.lane.b32.xlu1 %v9703_v54, %s12594_s24 }
0x4fef   :  { %v9706_v62 = vpop.permute.xlu0 %9705 }
0x4ff0   :  { %11904 = vmatmul.mubr.msk.f32.vlgmr.msra.gmra.mxu0 %vm1988_vm2, %v9706_v62 }
0x4ff1   :  { %11918 = vmatpush3.msra.mxu0 %v15102_v44  ;;  %11925 = vmatprep.mubr.msk.f32.mxu0 %vm12592_vm1, %v15595_v50 }
0x4ff2   :  { %11919 = vmatprep.subr.mxu0 %v15595_v50 }
0x4ff3   :  { %11920 = vmatpush3.msra.mxu0 %v15111_v35 }
0x4ff4   :  { %11921 = vmatprep.subr.mxu0 %v15595_v50  ;;  %v9781_v38 = vpop.permute.xlu1 %9780 }
0x4ff5   :  { %11922 = vmatpush3.msra.mxu0 %v15118_v32  ;;  %11915 = vmatmul.mubr.msk.f32.vlgmr.msra.gmra.mxu1 %vm1988_vm2, %v9781_v38 }
0x4ff6   :  { %11923 = vmatprep.subr.mxu0 %v15595_v50  ;;  %11929 = vmatpush3.msra.mxu1 %v15126_v26 }
0x4ff7   :  { %11924 = vmatpush3.msra.mxu0 %v15132_v47  ;;  %11930 = vmatprep.subr.mxu1 %v15595_v50  ;;  %v1954_v47 = vadd.f32 %v15252_v45, %v13937_v48 }
0x4ff8   :  { %11926 = vmatmul.mubr.msk.f32.vlgmr.msra.gmra.mxu0 %vm1988_vm2, %v9781_v38  ;;  %11939 = vmatprep.subr.mxu0 %v15595_v50  ;;  %v10422_v38 = vld [vmem:[%s15566_s10] ss:$0 sm:$0xff] }
0x4ff9   :  { %11940 = vmatpush3.msra.mxu0 %v15141_v40  ;;  %11931 = vmatpush3.msra.mxu1 %v15147_v22 }
0x4ffa   :  { %11941 = vmatprep.subr.mxu0 %v15595_v50  ;;  %11932 = vmatprep.subr.mxu1 %v15595_v50 }
0x4ffb   :  { %11942 = vmatpush3.msra.mxu0 %v15155_v34  ;;  %11933 = vmatpush3.msra.mxu1 %v15161_v2 }
0x4ffc   :  { %11943 = vmatprep.subr.mxu0 %v15595_v50  ;;  %11934 = vmatprep.subr.mxu1 %v15595_v50 }
0x4ffd   :  { %11944 = vmatpush3.msra.mxu0 %v15169_v24  ;;  %11947 = vmatprep.mubr.msk.f32.mxu0 %vm12592_vm1, %v15595_v50 }
0x4ffe   :  { %11945 = vmatprep.subr.mxu0 %v15595_v50  ;;  %11935 = vmatpush3.msra.mxu1 %v15175_v15 }
0x4fff   :  { %11946 = vmatpush3.msra.mxu0 %v15184_v58  ;;  %11936 = vmatprep.mubr.msk.f32.mxu1 %vm12592_vm1, %v15595_v50 }
0x5000   :  { %11950 = vmatprep.subr.mxu1 %v15595_v50 }
0x50b0   :  { %v9775_v44 = vpop.f32.mrf.mxu0 }
0x50b2   :  { %v11905_v35 = vpop.f32.mrf.mxu0 }
0x50b5   :  { %v9850_v32 = vpop.f32.mrf.mxu1 }
0x50b6   :  { %v9851_v26 = vadd.f32 %v9850_v32, %v9775_v44 }
0x50b7   :  { %v11916_v40 = vpop.f32.mrf.mxu1 }
0x50b8   :  { %v9854_v22 = vadd.f32 %v15246_v12, %v9851_v26  ;;  %v9947_v34 = vpop.f32.mrf.mxu0 }
0x50b9   :  { %v9951_v2 = vadd.f32 %v9947_v34, %v1954_v47 }
0x50ba   :  { %12484 = vtanh.f32 %v9854_v22  ;;  %v11927_v24 = vpop.f32.mrf.mxu0  ;;  %v10416_v17 = vmul.f32 -1.442695, %v9854_v22 }
0x50bb   :  { %12486 = vtanh.f32 %v9951_v2  ;;  %v10418_v41 = vmul.f32 -1.442695, %v9951_v2 }
0x50bc   :  { %12488 = vpow2.f32 %v10416_v17 }
0x50bd   :  { %12490 = vpow2.f32 %v10418_v41 }
0x50c7   :  { %v12485_v15 = vpop.eup %12484 }
0x50c8   :  { %v12487_v58 = vpop.eup %12486  ;;  %9864 = vrot.lane.b32.xlu0 %v12485_v15, %s12593_s23 }
0x50c9   :  { %9961 = vrot.lane.b32.xlu1 %v12487_v58, %s12593_s23  ;;  %v12489_v59 = vpop.eup %12488 }
0x50ca   :  { %v12491_v48 = vpop.eup %12490  ;;  %v9858_v45 = vadd.f32 1.0, %v12489_v59 }
0x50cb   :  { %v9955_v27 = vadd.f32 1.0, %v12491_v48 }
0x50cc   :  { %12492 = vrcp.f32 %v9858_v45 }
0x50cd   :  { %12494 = vrcp.f32 %v9955_v27 }
0x50d9   :  { %v12493_v0 = vpop.eup %12492 }
0x50da   :  { %v12495_v33 = vpop.eup %12494  ;;  %v9862_v20 = vmul.f32 %v12493_v0, %v15469_v42 }
0x50db   :  { %v9959_v29 = vmul.f32 %v12495_v33, %v15473_v4 }
0x513a   :  { %v9865_v9 = vpop.permute.xlu0 %9864 }
0x513b   :  { %v9962_v51 = vpop.permute.xlu1 %9961  ;;  %v9867_v11 = vmul.f32 %v12493_v0, %v9865_v9 }
0x513c   :  { %v9964_v60 = vmul.f32 %v12495_v33, %v9962_v51 }
0x513d   :  { %9869 = vrot.lane.b32.xlu0 %v9867_v11, %s12594_s24 }
0x513e   :  { %9966 = vrot.lane.b32.xlu1 %v9964_v60, %s12594_s24 }
0x51af   :  { %v9870_v25 = vpop.permute.xlu0 %9869 }
0x51b0   :  { %v9967_v56 = vpop.permute.xlu1 %9966  ;;  %v9872_v63 = vadd.f32 %v9870_v25, %v9862_v20 }
0x51b1   :  { %v9969_v46 = vadd.f32 %v9967_v56, %v9959_v29 }
0x51b2   :  { %12496 = vtanh.f32 %v9872_v63 }
0x51b3   :  { %12498 = vtanh.f32 %v9969_v46 }
0x51bf   :  { %v12497_v21 = vpop.eup %12496 }
0x51c0   :  { %v12499_v1 = vpop.eup %12498  ;;  %9875 = vrot.lane.b32.xlu0 %v12497_v21, %s12593_s23 }
0x51c1   :  { %9972 = vrot.lane.b32.xlu1 %v12499_v1, %s12593_s23 }
0x5232   :  { %v9876_v18 = vpop.permute.xlu0 %9875 }
0x5233   :  { %v9973_v49 = vpop.permute.xlu1 %9972  ;;  %v9878_v37 = vmul.f32 %v12493_v0, %v9876_v18 }
0x5234   :  { %v9975_v6 = vmul.f32 %v12495_v33, %v9973_v49 }
0x5235   :  { %9977 = vrot.lane.b32.xlu0 %v9878_v37, %s12594_s24 }
0x5236   :  { %10052 = vrot.lane.b32.xlu1 %v9975_v6, %s12594_s24 }
0x52a7   :  { %v9978_v16 = vpop.permute.xlu0 %9977 }
0x52a8   :  { %v10053_v55 = vpop.permute.xlu1 %10052  ;;  %11937 = vmatmul.mubr.msk.f32.vlgmr.msra.gmra.mxu1 %vm1988_vm2, %v9978_v16 }
0x52a9   :  { %11948 = vmatmul.mubr.msk.f32.vlgmr.msra.gmra.mxu0 %vm1988_vm2, %v10053_v55  ;;  %11958 = vmatprep.mubr.msk.f32.mxu1 %vm12592_vm1, %v15595_v50 }
0x5368   :  { %v10047_v7 = vpop.f32.mrf.mxu1 }
0x5369   :  { %v10122_v36 = vpop.f32.mrf.mxu0 }
0x536a   :  { %v10123_v30 = vadd.f32 %v10122_v36, %v10047_v7  ;;  %v11938_v61 = vpop.f32.mrf.mxu1 }
0x536b   :  { %v11949_v5 = vpop.f32.mrf.mxu0 }
0x536c   :  { %v10126_v19 = vadd.f32 %v15246_v12, %v10123_v30  ;;  %v10154_v12 = vld [vmem:[%s15565_s9 + $0x18] sm:$0xff] }
0x536d   :  { %11951 = vmatpush3.msra.mxu1 %v10154_v12 }
0x536e   :  { %12500 = vtanh.f32 %v10126_v19  ;;  %v10421_v8 = vmul.f32 -1.442695, %v10126_v19  ;;  %11952 = vmatprep.subr.mxu1 %v15595_v50 }
0x536f   :  { %11953 = vmatpush3.msra.mxu1 %v10153_v3 }
0x5370   :  { %12502 = vpow2.f32 %v10421_v8  ;;  %11954 = vmatprep.subr.mxu1 %v15595_v50 }
0x5371   :  { %11955 = vmatpush3.msra.mxu1 %v10152_v43 }
0x5372   :  { %11956 = vmatprep.subr.mxu1 %v15595_v50 }
0x5373   :  { %11957 = vmatpush3.msra.mxu1 %v10151_v23 }
0x537b   :  { %v12501_v10 = vpop.eup %12500 }
0x537c   :  { %10136 = vrot.lane.b32.xlu0 %v12501_v10, %s12593_s23 }
0x537d   :  { %v12503_v13 = vpop.eup %12502 }
0x537e   :  { %v10130_v31 = vadd.f32 1.0, %v12503_v13 }
0x5380   :  { %12504 = vrcp.f32 %v10130_v31 }
0x538d   :  { %v12505_v53 = vpop.eup %12504 }
0x538e   :  { %v10134_v39 = vmul.f32 %v12505_v53, %v9872_v63 }
0x53ee   :  { %v10137_v57 = vpop.permute.xlu0 %10136 }
0x53ef   :  { %v10139_v42 = vmul.f32 %v12505_v53, %v10137_v57 }
0x53f1   :  { %10141 = vrot.lane.b32.xlu1 %v10139_v42, %s12594_s24 }
0x5463   :  { %v10142_v14 = vpop.permute.xlu1 %10141 }
0x5464   :  { %v10144_v4 = vadd.f32 %v10142_v14, %v10134_v39 }
0x5466   :  { %12506 = vtanh.f32 %v10144_v4 }
0x5473   :  { %v12507_v52 = vpop.eup %12506 }
0x5474   :  { %10147 = vrot.lane.b32.xlu0 %v12507_v52, %s12593_s23 }
0x54e6   :  { %v10148_v28 = vpop.permute.xlu0 %10147 }
0x54e7   :  { %v10150_v54 = vmul.f32 %v12505_v53, %v10148_v28 }
0x54e9   :  { %10163 = vrot.lane.b32.xlu1 %v10150_v54, %s12594_s24 }
0x555b   :  { %v10164_v62 = vpop.permute.xlu1 %10163 }
0x555c   :  { %11959 = vmatmul.mubr.msk.f32.vlgmr.msra.gmra.mxu1 %vm1988_vm2, %v10164_v62 }
0x561c   :  { %v10233_v44 = vpop.f32.mrf.mxu1 }
0x561d   :  { %v10234_v35 = vadd.f32 %v10422_v38, %v10233_v44 }
0x561e   :  { %v11960_v32 = vpop.f32.mrf.mxu1 }
0x561f   :  { %10237 = vst [vmem:[%s15567_s11] sm:$0xff] %v10234_v35 }

</bundles_post_ra>
